<compile_context>
chip_gen: v7x
topology: tpu7x:2x2x1
jax: 0.10.0
libtpu: 0.0.40
codegen_flags: <defaults>
</compile_context>

<pallas_src>
import functools

import jax
import jax.numpy as jnp
from jax.experimental import pallas as pl
from jax.experimental.pallas import tpu as pltpu

VMEM_SPEC = pl.BlockSpec(memory_space=pltpu.MemorySpace.VMEM)

ENC_KEYS = ("wq", "bq", "wk", "bk", "wv", "bv", "wo", "bo",
            "w1", "b1", "w2", "b2", "g1", "beta1", "g2", "beta2")
DEC_KEYS = ("wq", "bq", "wk", "bk", "wv", "bv", "wo", "bo",
            "cwq", "cbq", "cwk", "cbk", "cwv", "cbv", "cwo", "cbo",
            "w1", "b1", "w2", "b2", "g1", "beta1", "g2", "beta2", "g3", "beta3")


# ------------------------- in-kernel math helpers (traced values) ------------------ #

def _mm(a, b):
    """a @ b on the MXU, bf16 inputs / f32 accumulation.  astype is a no-op for
    operands already stored in bf16 (weights), so only activations pay the convert."""
    return jnp.dot(a.astype(jnp.bfloat16), b.astype(jnp.bfloat16),
                   preferred_element_type=jnp.float32)


def _layernorm(z, g, b):
    mean = jnp.mean(z, axis=-1, keepdims=True)
    c = z - mean
    var = jnp.mean(c * c, axis=-1, keepdims=True)
    return c * jax.lax.rsqrt(var + 1e-5) * g + b


def _mha(q, k, v, mask_add, nhead):
    """q,k,v: [S, D] (scale already folded into the Q projection).
    Heads are batched into two einsum contractions ('hqd,hkd->hqk', 'hqk,hkd->hqd')
    instead of a per-head loop of tiny matmuls."""
    S, D = q.shape
    dh = D // nhead
    qh = jnp.stack([q[:, h * dh:(h + 1) * dh] for h in range(nhead)], axis=0)
    kh = jnp.stack([k[:, h * dh:(h + 1) * dh] for h in range(nhead)], axis=0)
    vh = jnp.stack([v[:, h * dh:(h + 1) * dh] for h in range(nhead)], axis=0)
    s = jnp.einsum('hqd,hkd->hqk', qh.astype(jnp.bfloat16), kh.astype(jnp.bfloat16),
                   preferred_element_type=jnp.float32)
    s = s + mask_add[None, :, :]
    s = s - jnp.max(s, axis=-1, keepdims=True)
    p = jnp.exp(s)
    p = p * pl.reciprocal(jnp.sum(p, axis=-1, keepdims=True), approx=True)
    o = jnp.einsum('hqk,hkd->hqd', p.astype(jnp.bfloat16), vh.astype(jnp.bfloat16),
                   preferred_element_type=jnp.float32)
    return jnp.concatenate([o[h] for h in range(nhead)], axis=-1)      # [S, D]


def _encoder_layer(x, mask_add, p, nhead):
    q = _mm(x, p["wq"]) + p["bq"]           # scale pre-folded into wq/bq
    k = _mm(x, p["wk"]) + p["bk"]
    v = _mm(x, p["wv"]) + p["bv"]
    sa = _mha(q, k, v, mask_add, nhead)
    x = _layernorm(x + _mm(sa, p["wo"]) + p["bo"], p["g1"], p["beta1"])
    h = jnp.maximum(_mm(x, p["w1"]) + p["b1"], 0.0)
    return _layernorm(x + _mm(h, p["w2"]) + p["b2"], p["g2"], p["beta2"])


def _decoder_layer(y, memory, tgt_mask, mem_mask, p, nhead):
    # self attention
    q = _mm(y, p["wq"]) + p["bq"]
    k = _mm(y, p["wk"]) + p["bk"]
    v = _mm(y, p["wv"]) + p["bv"]
    sa = _mha(q, k, v, tgt_mask, nhead)
    y = _layernorm(y + _mm(sa, p["wo"]) + p["bo"], p["g1"], p["beta1"])
    # cross attention (memory_mask + memory_key_padding_mask, per the PyTorch call)
    q2 = _mm(y, p["cwq"]) + p["cbq"]
    k2 = _mm(memory, p["cwk"]) + p["cbk"]
    v2 = _mm(memory, p["cwv"]) + p["cbv"]
    ca = _mha(q2, k2, v2, mem_mask, nhead)
    y = _layernorm(y + _mm(ca, p["cwo"]) + p["cbo"], p["g2"], p["beta2"])
    # feed forward
    h = jnp.maximum(_mm(y, p["w1"]) + p["b1"], 0.0)
    return _layernorm(y + _mm(h, p["w2"]) + p["b2"], p["g3"], p["beta3"])


# --------------------------------- Pallas kernels ----------------------------------- #

def _gcn_kernel(*refs, n_layers, dims):
    """All GCN layers fused.  A_norm/W are pre-stored in bf16 (no per-layer casts);
    contraction order per layer is chosen to contract the narrower dimension first."""
    a_ref, x_ref = refs[0], refs[1]
    w_refs = refs[2:2 + n_layers]
    b_refs = refs[2 + n_layers:2 + 2 * n_layers]
    o_ref = refs[2 + 2 * n_layers]
    a = a_ref[...]                               # bf16, loaded once for all layers
    x = x_ref[...]
    for i in range(n_layers):
        din, dout = dims[i], dims[i + 1]
        if din <= dout:
            x = _mm(_mm(a, x), w_refs[i][...]) + b_refs[i][...]   # (A@X)@W + b
        else:
            x = _mm(a, _mm(x, w_refs[i][...])) + b_refs[i][...]   # A@(X@W) + b
        if i < n_layers - 1:
            x = jnp.maximum(x, 0.0)
        # TODO(synk): inter-layer dropout is identity in eval mode.
    o_ref[...] = x
    # TODO(synk): for large tractography graphs, tile this kernel (row-block grid x
    # reduction over N with a VMEM accumulator) instead of keeping [N,N] resident.


def _transformer_kernel(*refs, nhead):
    """Whole transformer (enc + dec + output head) for one batch element."""
    feats_ref, pad_ref, causal_ref, pe_ref = refs[0], refs[1], refs[2], refs[3]
    pos = 4
    enc = dict(zip(ENC_KEYS, refs[pos:pos + len(ENC_KEYS)])); pos += len(ENC_KEYS)
    dec = dict(zip(DEC_KEYS, refs[pos:pos + len(DEC_KEYS)])); pos += len(DEC_KEYS)
    out_w_ref, out_b_ref = refs[pos], refs[pos + 1]
    o_ref = refs[pos + 2]

    x0 = feats_ref[0] + pe_ref[...]              # gathered feats + positional encoding

    # Additive attention mask built in-kernel: constant [S,S] causal mask combined with
    # this batch element's [1,S] key-padding row (no [B,S,S] HBM mask / per-step DMA).
    mask = jnp.minimum(causal_ref[...], pad_ref[0])             # [S, S]

    # ---- transformer encoder (static unroll; weights stay VMEM-resident) ----
    # TODO(synk): at production D/ff_dim/layer counts, stage per-layer weights with a
    # layer grid axis or pltpu.emit_pipeline so the VMEM peak stays ~2 layers (v7x).
    x = x0
    for l in range(enc["wq"].shape[0]):
        lp = {key: enc[key][l] for key in ENC_KEYS}
        x = _encoder_layer(x, mask, lp, nhead)
    memory = x

    # ---- transformer decoder ----
    y = x0
    for l in range(dec["wq"].shape[0]):
        lp = {key: dec[key][l] for key in DEC_KEYS}
        y = _decoder_layer(y, memory, mask, mask, lp, nhead)

    # NOTE: the PyTorch code applies ReLU to decoded_sequence but discards the result;
    # the final Linear operates on the un-activated tensor.  Fused logits+log_softmax.
    logits = _mm(y, out_w_ref[...]) + out_b_ref[...]
    m = jnp.max(logits, axis=-1, keepdims=True)
    s = logits - m
    lse = jnp.log(jnp.sum(jnp.exp(s), axis=-1, keepdims=True))
    o_ref[0] = s - lse
    # TODO(synk): if out_size * S grows large, stage logits in a lane-dense (B, S*O)
    # layout to avoid masked partial stores on the narrow last dim.


# --------------------------------- wrappers ----------------------------------------- #

def _vmem_limit_bytes(arrays, out_bytes):
    """Explicit scoped-VMEM budget sized from the actual resident buffers."""
    total = sum(int(a.size) * a.dtype.itemsize for a in arrays) + int(out_bytes)
    return int(min(48 * 1024 * 1024, 24 * 1024 * 1024 + 2 * total))


def gcn_forward(a_norm_bf16, x, gcn_params):
    n_layers = len(gcn_params)
    ws = [w for (w, _) in gcn_params]            # bf16 weight matrices
    bs = [b for (_, b) in gcn_params]            # f32 biases
    dims = tuple([x.shape[1]] + [w.shape[1] for w in ws])
    out_dim = dims[-1]
    arrays = [a_norm_bf16, x] + ws + bs
    return pl.pallas_call(
        functools.partial(_gcn_kernel, n_layers=n_layers, dims=dims),
        out_shape=jax.ShapeDtypeStruct((x.shape[0], out_dim), jnp.float32),
        in_specs=[VMEM_SPEC] * (2 + 2 * n_layers),
        out_specs=VMEM_SPEC,
        compiler_params=pltpu.CompilerParams(
            vmem_limit_bytes=_vmem_limit_bytes(arrays, x.shape[0] * out_dim * 4)),
    )(a_norm_bf16, x, *ws, *bs)


def transformer_forward(params, feats, pad_add, causal, pe, *, nhead):
    B, S, D = feats.shape
    O = params["out_w"].shape[1]
    enc_arrs = [params["enc"][k] for k in ENC_KEYS]
    dec_arrs = [params["dec"][k] for k in DEC_KEYS]
    const_arrs = [causal, pe] + enc_arrs + dec_arrs + [params["out_w"], params["out_b"]]

    def const_spec(a):
        # full-array block, constant block index -> no re-DMA across grid steps
        return pl.BlockSpec(a.shape, lambda b, _nd=a.ndim: (0,) * _nd)

    in_specs = ([pl.BlockSpec((1, S, D), lambda b: (b, 0, 0)),
                 pl.BlockSpec((1, 1, S), lambda b: (b, 0, 0))]
                + [const_spec(a) for a in const_arrs])

    vmem_bytes = _vmem_limit_bytes([feats, pad_add] + const_arrs, B * S * O * 4)

    return pl.pallas_call(
        functools.partial(_transformer_kernel, nhead=nhead),
        out_shape=jax.ShapeDtypeStruct((B, S, O), jnp.float32),
        grid=(B,),
        in_specs=in_specs,
        out_specs=pl.BlockSpec((1, S, O), lambda b: (b, 0, 0)),
        compiler_params=pltpu.CompilerParams(
            dimension_semantics=("parallel",),
            vmem_limit_bytes=vmem_bytes),
    )(feats, pad_add, *const_arrs)


def positional_encoding_table(seq_len, d_model):
    position = jnp.arange(seq_len, dtype=jnp.float32)[:, None]
    div_term = jnp.exp(jnp.arange(0, d_model, 2, dtype=jnp.float32)
                       * -(jnp.log(10000.0) / d_model))
    pe = jnp.zeros((seq_len, d_model), jnp.float32)
    pe = pe.at[:, 0::2].set(jnp.sin(position * div_term))
    pe = pe.at[:, 1::2].set(jnp.cos(position * div_term))
    return pe


def tractognn_forward(params, graph_x, edge_index, node_sequence_batch,
                      padding_mask, causality_mask, lengths, *, nhead):
    del lengths  # unused by the PyTorch forward as well

    # ---- GCN autoencoder: dense symmetric-normalized adjacency ----
    # TODO(synk): the edge-list scatter-add (adjacency build) stays a plain XLA op
    # (data-dependent scatter); all dense math runs inside the two Pallas kernels.
    N = graph_x.shape[0]
    src, dst = edge_index[0], edge_index[1]
    A = jnp.zeros((N, N), jnp.float32).at[dst, src].add(1.0)
    A = A + jnp.eye(N, dtype=jnp.float32)                       # add self-loops
    deg = jnp.sum(A, axis=1)
    dinv = jax.lax.rsqrt(jnp.maximum(deg, 1e-12))
    A_norm = (A * dinv[:, None] * dinv[None, :]).astype(jnp.bfloat16)   # bf16 once

    node_feats = gcn_forward(A_norm, graph_x, params["gcn"])    # [N, D] f32

    # ---- gather sequence node features ----
    # TODO(synk): this gather could be fused into the transformer kernel via
    # PrefetchScalarGridSpec + an element-wise row-gather index_map; kept as XLA here.
    feats = node_feats[node_sequence_batch]                     # [B, S, D]
    B, S = node_sequence_batch.shape
    D = node_feats.shape[1]
    pe = positional_encoding_table(S, D)

    # Key-padding additive row per batch element ([B,1,S]); the full [B,S,S] mask is
    # assembled inside the kernel from this row + the constant causal mask.
    pad_add = jnp.where(padding_mask, -1e9, 0.0).astype(jnp.float32).reshape(B, 1, S)
    causal = causality_mask.astype(jnp.float32)                 # [S, S]

    # ---- one fused kernel: +PE, encoder, decoder, output Linear, log_softmax ----
    return transformer_forward(params, feats, pad_add, causal, pe, nhead=nhead)


# ----------------------------- parameter init & kernel prep ------------------------ #

def init_params(key, graph_dims, nhead, ff_dim, n_layers, out_size):
    d = graph_dims[-1]
    keys = iter(jax.random.split(key, 1024))

    def lin(fi, fo):
        kw, kb = jax.random.split(next(keys))
        bound = 1.0 / (fi ** 0.5)
        w = jax.random.uniform(kw, (fi, fo), jnp.float32, -bound, bound)
        b = jax.random.uniform(kb, (1, fo), jnp.float32, -bound, bound)
        return w, b

    ones = jnp.ones((1, d), jnp.float32)
    zeros = jnp.zeros((1, d), jnp.float32)

    def attn(prefix=""):
        out = {}
        for name in ("wq", "wk", "wv", "wo"):
            w, b = lin(d, d)
            out[prefix + name] = w
            out[prefix + "b" + name[1]] = b
        return out

    def enc_layer():
        p = attn()
        w1, b1 = lin(d, ff_dim); w2, b2 = lin(ff_dim, d)
        p.update(w1=w1, b1=b1, w2=w2, b2=b2, g1=ones, beta1=zeros, g2=ones, beta2=zeros)
        return p

    def dec_layer():
        p = attn()
        p.update(attn(prefix="c"))
        w1, b1 = lin(d, ff_dim); w2, b2 = lin(ff_dim, d)
        p.update(w1=w1, b1=b1, w2=w2, b2=b2, g1=ones, beta1=zeros, g2=ones, beta2=zeros,
                 g3=ones, beta3=zeros)
        return p

    gcn = [lin(graph_dims[i], graph_dims[i + 1]) for i in range(len(graph_dims) - 1)]
    out_w, out_b = lin(d, out_size)
    return dict(gcn=gcn,
                enc=[enc_layer() for _ in range(n_layers)],
                dec=[dec_layer() for _ in range(n_layers)],
                out_w=out_w, out_b=out_b)


def prepare_params(params, nhead):
    """Kernel-side parameter prep: fold 1/sqrt(dh) into the Q projections, store all
    weight matrices in bf16 (biases/LayerNorm stay f32), and stack layers to [L,...]."""
    d = params["out_w"].shape[0]
    scale = 1.0 / ((d // nhead) ** 0.5)

    def conv_layer(p, q_keys):
        out = {}
        for k, v in p.items():
            if k in q_keys:
                v = v * scale
            if v.ndim == 2 and v.shape[0] > 1:         # weight matrix [fi, fo]
                out[k] = v.astype(jnp.bfloat16)
            else:                                       # bias / LayerNorm param [1, fo]
                out[k] = v.astype(jnp.float32)
        return out

    def stack(layers):
        return jax.tree_util.tree_map(lambda *xs: jnp.stack(xs), *layers)

    enc = stack([conv_layer(p, ("wq", "bq")) for p in params["enc"]])
    dec = stack([conv_layer(p, ("wq", "bq", "cwq", "cbq")) for p in params["dec"]])
    gcn = [(w.astype(jnp.bfloat16), b.astype(jnp.float32)) for (w, b) in params["gcn"]]
    return dict(gcn=gcn, enc=enc, dec=dec,
                out_w=params["out_w"].astype(jnp.bfloat16),
                out_b=params["out_b"].astype(jnp.float32))


# ----------------------------------- main ------------------------------------------ #

if __name__ == "__main__":
    key = jax.random.PRNGKey(0)
    k_par, k_gx, k_src, k_dst, k_seq = jax.random.split(key, 5)

    # small synthetic config matching the PyTorch module's params dict
    graph_dims = [16, 32, 32]     # graph_encoder_feature_dims -> latent_space_dim = 32
    nhead = 4
    ff_dim = 64                   # transformer_feed_forward_dim
    n_layers = 2                  # num_transformer_encoder_layers (== decoder layers)
    out_size = 16                 # output_size
    S = 8                         # max_streamline_len / sequence length
    B = 2                         # batch size
    N_nodes = 32
    n_edges = 64

    params = init_params(k_par, graph_dims, nhead, ff_dim, n_layers, out_size)
    kparams = prepare_params(params, nhead)       # bf16 weights, scale folded, stacked

    graph_x = jax.random.normal(k_gx, (N_nodes, graph_dims[0]), jnp.float32)
    src = jax.random.randint(k_src, (n_edges,), 0, N_nodes)
    dst = jax.random.randint(k_dst, (n_edges,), 0, N_nodes)
    edge_index = jnp.stack([src, dst]).astype(jnp.int32)

    node_sequence_batch = jax.random.randint(k_seq, (B, S), 0, N_nodes).astype(jnp.int32)
    lengths = jnp.array([S, S - 2], jnp.int32)
    padding_mask = jnp.arange(S)[None, :] >= lengths[:, None]          # True = pad
    causality_mask = jnp.where(
        jnp.arange(S)[None, :] > jnp.arange(S)[:, None], -1e9, 0.0
    ).astype(jnp.float32)

    fwd = jax.jit(functools.partial(tractognn_forward, nhead=nhead))
    out = fwd(kparams, graph_x, edge_index, node_sequence_batch,
              padding_mask, causality_mask, lengths)
    out = jax.block_until_ready(out)

    assert out.shape == (B, S, out_size), out.shape
    assert bool(jnp.all(jnp.isfinite(out)))
    # rows of log_softmax should exp-sum to 1
    assert bool(jnp.allclose(jnp.sum(jnp.exp(out), axis=-1), 1.0, atol=1e-4))
    print("KERNEL_OK")
</pallas_src>

<mosaic_0001>
module attributes {stable_mosaic.version = 11 : i64} {
  func.func private @main(%arg0: i32) attributes {dimension_semantics = [#tpu.dimension_semantics<core_parallel>], iteration_bounds = array<i64: 2>, tpu.core_type = #tpu.core_type<sc_scalar_subcore>, window_params = []} {
    return
  }
}

module attributes {stable_mosaic.version = 11 : i64} {
  func.func private @main(%arg0: i32) attributes {dimension_semantics = [#tpu.dimension_semantics<core_parallel>], iteration_bounds = array<i64: 2>, tpu.core_type = #tpu.core_type<sc_scalar_subcore>, window_params = []} {
    return
  }
}

module attributes {stable_mosaic.version = 11 : i64} {
  func.func @_gcn_kernel(%arg0: memref<32x32xbf16, #tpu.memory_space<vmem>>, %arg1: memref<32x16xf32, #tpu.memory_space<vmem>>, %arg2: memref<16x32xbf16, #tpu.memory_space<vmem>>, %arg3: memref<32x32xbf16, #tpu.memory_space<vmem>>, %arg4: memref<1x32xf32, #tpu.memory_space<vmem>>, %arg5: memref<1x32xf32, #tpu.memory_space<vmem>>, %arg6: memref<32x32xf32, #tpu.memory_space<vmem>>) attributes {dimension_semantics = [], scalar_prefetch = 0 : i64, scratch_operands = 0 : i64, tpu.core_type = #tpu.core_type<tc>} {
    %c0 = arith.constant 0 : index
    %c0_0 = arith.constant 0 : index
    %0 = vector.load %arg0[%c0, %c0_0] : memref<32x32xbf16, #tpu.memory_space<vmem>>, vector<32x32xbf16>
    %c0_1 = arith.constant 0 : index
    %c0_2 = arith.constant 0 : index
    %1 = vector.load %arg1[%c0_1, %c0_2] : memref<32x16xf32, #tpu.memory_space<vmem>>, vector<32x16xf32>
    %2 = arith.truncf %1 : vector<32x16xf32> to vector<32x16xbf16>
    %cst = arith.constant dense<0.000000e+00> : vector<32x16xf32>
    %3 = tpu.matmul %0, %2, %cst {dimension_numbers = #tpu.dot_dimension_numbers<[1], [0], [0], [1], [0, 0, 1, 1], [], []>} : vector<32x32xbf16>, vector<32x16xbf16>, vector<32x16xf32> -> vector<32x16xf32>
    %c0_3 = arith.constant 0 : index
    %c0_4 = arith.constant 0 : index
    %4 = vector.load %arg2[%c0_3, %c0_4] : memref<16x32xbf16, #tpu.memory_space<vmem>>, vector<16x32xbf16>
    %5 = arith.truncf %3 : vector<32x16xf32> to vector<32x16xbf16>
    %cst_5 = arith.constant dense<0.000000e+00> : vector<32x32xf32>
    %6 = tpu.matmul %5, %4, %cst_5 {dimension_numbers = #tpu.dot_dimension_numbers<[1], [0], [0], [1], [0, 0, 1, 1], [], []>} : vector<32x16xbf16>, vector<16x32xbf16>, vector<32x32xf32> -> vector<32x32xf32>
    %c0_6 = arith.constant 0 : index
    %c0_7 = arith.constant 0 : index
    %7 = vector.load %arg4[%c0_6, %c0_7] : memref<1x32xf32, #tpu.memory_space<vmem>>, vector<1x32xf32>
    %8 = vector.broadcast %7 : vector<1x32xf32> to vector<32x32xf32>
    %9 = arith.addf %6, %8 : vector<32x32xf32>
    %cst_8 = arith.constant 0.000000e+00 : f32
    %10 = vector.broadcast %cst_8 : f32 to vector<32x32xf32>
    %11 = arith.maximumf %9, %10 : vector<32x32xf32>
    %12 = arith.truncf %11 : vector<32x32xf32> to vector<32x32xbf16>
    %cst_9 = arith.constant dense<0.000000e+00> : vector<32x32xf32>
    %13 = tpu.matmul %0, %12, %cst_9 {dimension_numbers = #tpu.dot_dimension_numbers<[1], [0], [0], [1], [0, 0, 1, 1], [], []>} : vector<32x32xbf16>, vector<32x32xbf16>, vector<32x32xf32> -> vector<32x32xf32>
    %c0_10 = arith.constant 0 : index
    %c0_11 = arith.constant 0 : index
    %14 = vector.load %arg3[%c0_10, %c0_11] : memref<32x32xbf16, #tpu.memory_space<vmem>>, vector<32x32xbf16>
    %15 = arith.truncf %13 : vector<32x32xf32> to vector<32x32xbf16>
    %cst_12 = arith.constant dense<0.000000e+00> : vector<32x32xf32>
    %16 = tpu.matmul %15, %14, %cst_12 {dimension_numbers = #tpu.dot_dimension_numbers<[1], [0], [0], [1], [0, 0, 1, 1], [], []>} : vector<32x32xbf16>, vector<32x32xbf16>, vector<32x32xf32> -> vector<32x32xf32>
    %c0_13 = arith.constant 0 : index
    %c0_14 = arith.constant 0 : index
    %17 = vector.load %arg5[%c0_13, %c0_14] : memref<1x32xf32, #tpu.memory_space<vmem>>, vector<1x32xf32>
    %18 = vector.broadcast %17 : vector<1x32xf32> to vector<32x32xf32>
    %19 = arith.addf %16, %18 : vector<32x32xf32>
    %c0_15 = arith.constant 0 : index
    %c0_16 = arith.constant 0 : index
    %20 = vector.load %arg6[%c0_15, %c0_16] : memref<32x32xf32, #tpu.memory_space<vmem>>, vector<32x32xf32>
    tpu.vector_store %arg6[%c0_15, %c0_16], %19 {strides = array<i32>} : memref<32x32xf32, #tpu.memory_space<vmem>>, vector<32x32xf32>,
    return
  }
}

module attributes {stable_mosaic.version = 11 : i64} {
  func.func @_transformer_kernel(%arg0: i32, %arg1: memref<1x8x32xf32, #tpu.memory_space<vmem>>, %arg2: memref<1x1x8xf32, #tpu.memory_space<vmem>>, %arg3: memref<8x8xf32, #tpu.memory_space<vmem>>, %arg4: memref<8x32xf32, #tpu.memory_space<vmem>>, %arg5: memref<2x32x32xbf16, #tpu.memory_space<vmem>>, %arg6: memref<2x1x32xf32, #tpu.memory_space<vmem>>, %arg7: memref<2x32x32xbf16, #tpu.memory_space<vmem>>, %arg8: memref<2x1x32xf32, #tpu.memory_space<vmem>>, %arg9: memref<2x32x32xbf16, #tpu.memory_space<vmem>>, %arg10: memref<2x1x32xf32, #tpu.memory_space<vmem>>, %arg11: memref<2x32x32xbf16, #tpu.memory_space<vmem>>, %arg12: memref<2x1x32xf32, #tpu.memory_space<vmem>>, %arg13: memref<2x32x64xbf16, #tpu.memory_space<vmem>>, %arg14: memref<2x1x64xf32, #tpu.memory_space<vmem>>, %arg15: memref<2x64x32xbf16, #tpu.memory_space<vmem>>, %arg16: memref<2x1x32xf32, #tpu.memory_space<vmem>>, %arg17: memref<2x1x32xf32, #tpu.memory_space<vmem>>, %arg18: memref<2x1x32xf32, #tpu.memory_space<vmem>>, %arg19: memref<2x1x32xf32, #tpu.memory_space<vmem>>, %arg20: memref<2x1x32xf32, #tpu.memory_space<vmem>>, %arg21: memref<2x32x32xbf16, #tpu.memory_space<vmem>>, %arg22: memref<2x1x32xf32, #tpu.memory_space<vmem>>, %arg23: memref<2x32x32xbf16, #tpu.memory_space<vmem>>, %arg24: memref<2x1x32xf32, #tpu.memory_space<vmem>>, %arg25: memref<2x32x32xbf16, #tpu.memory_space<vmem>>, %arg26: memref<2x1x32xf32, #tpu.memory_space<vmem>>, %arg27: memref<2x32x32xbf16, #tpu.memory_space<vmem>>, %arg28: memref<2x1x32xf32, #tpu.memory_space<vmem>>, %arg29: memref<2x32x32xbf16, #tpu.memory_space<vmem>>, %arg30: memref<2x1x32xf32, #tpu.memory_space<vmem>>, %arg31: memref<2x32x32xbf16, #tpu.memory_space<vmem>>, %arg32: memref<2x1x32xf32, #tpu.memory_space<vmem>>, %arg33: memref<2x32x32xbf16, #tpu.memory_space<vmem>>, %arg34: memref<2x1x32xf32, #tpu.memory_space<vmem>>, %arg35: memref<2x32x32xbf16, #tpu.memory_space<vmem>>, %arg36: memref<2x1x32xf32, #tpu.memory_space<vmem>>, %arg37: memref<2x32x64xbf16, #tpu.memory_space<vmem>>, %arg38: memref<2x1x64xf32, #tpu.memory_space<vmem>>, %arg39: memref<2x64x32xbf16, #tpu.memory_space<vmem>>, %arg40: memref<2x1x32xf32, #tpu.memory_space<vmem>>, %arg41: memref<2x1x32xf32, #tpu.memory_space<vmem>>, %arg42: memref<2x1x32xf32, #tpu.memory_space<vmem>>, %arg43: memref<2x1x32xf32, #tpu.memory_space<vmem>>, %arg44: memref<2x1x32xf32, #tpu.memory_space<vmem>>, %arg45: memref<2x1x32xf32, #tpu.memory_space<vmem>>, %arg46: memref<2x1x32xf32, #tpu.memory_space<vmem>>, %arg47: memref<32x16xbf16, #tpu.memory_space<vmem>>, %arg48: memref<1x16xf32, #tpu.memory_space<vmem>>, %arg49: memref<1x8x16xf32, #tpu.memory_space<vmem>>) attributes {dimension_semantics = [#tpu.dimension_semantics<parallel>], iteration_bounds = array<i64: 2>, scalar_prefetch = 0 : i64, scratch_operands = 0 : i64, tpu.core_type = #tpu.core_type<tc>, window_params = [{transform_indices = @transform_0, window_bounds = array<i64: 1, 8, 32>}, {transform_indices = @transform_1, window_bounds = array<i64: 1, 1, 8>}, {pipeline_mode = #tpu.pipeline_mode<synchronous>, transform_indices = @transform_2, window_bounds = array<i64: 8, 8>}, {pipeline_mode = #tpu.pipeline_mode<synchronous>, transform_indices = @transform_3, window_bounds = array<i64: 8, 32>}, {pipeline_mode = #tpu.pipeline_mode<synchronous>, transform_indices = @transform_4, window_bounds = array<i64: 2, 32, 32>}, {pipeline_mode = #tpu.pipeline_mode<synchronous>, transform_indices = @transform_5, window_bounds = array<i64: 2, 1, 32>}, {pipeline_mode = #tpu.pipeline_mode<synchronous>, transform_indices = @transform_6, window_bounds = array<i64: 2, 32, 32>}, {pipeline_mode = #tpu.pipeline_mode<synchronous>, transform_indices = @transform_7, window_bounds = array<i64: 2, 1, 32>}, {pipeline_mode = #tpu.pipeline_mode<synchronous>, transform_indices = @transform_8, window_bounds = array<i64: 2, 32, 32>}, {pipeline_mode = #tpu.pipeline_mode<synchronous>, transform_indices = @transform_9, window_bounds = array<i64: 2, 1, 32>}, {pipeline_mode = #tpu.pipeline_mode<synchronous>, transform_indices = @transform_10, window_bounds = array<i64: 2, 32, 32>}, {pipeline_mode = #tpu.pipeline_mode<synchronous>, transform_indices = @transform_11, window_bounds = array<i64: 2, 1, 32>}, {pipeline_mode = #tpu.pipeline_mode<synchronous>, transform_indices = @transform_12, window_bounds = array<i64: 2, 32, 64>}, {pipeline_mode = #tpu.pipeline_mode<synchronous>, transform_indices = @transform_13, window_bounds = array<i64: 2, 1, 64>}, {pipeline_mode = #tpu.pipeline_mode<synchronous>, transform_indices = @transform_14, window_bounds = array<i64: 2, 64, 32>}, {pipeline_mode = #tpu.pipeline_mode<synchronous>, transform_indices = @transform_15, window_bounds = array<i64: 2, 1, 32>}, {pipeline_mode = #tpu.pipeline_mode<synchronous>, transform_indices = @transform_16, window_bounds = array<i64: 2, 1, 32>}, {pipeline_mode = #tpu.pipeline_mode<synchronous>, transform_indices = @transform_17, window_bounds = array<i64: 2, 1, 32>}, {pipeline_mode = #tpu.pipeline_mode<synchronous>, transform_indices = @transform_18, window_bounds = array<i64: 2, 1, 32>}, {pipeline_mode = #tpu.pipeline_mode<synchronous>, transform_indices = @transform_19, window_bounds = array<i64: 2, 1, 32>}, {pipeline_mode = #tpu.pipeline_mode<synchronous>, transform_indices = @transform_20, window_bounds = array<i64: 2, 32, 32>}, {pipeline_mode = #tpu.pipeline_mode<synchronous>, transform_indices = @transform_21, window_bounds = array<i64: 2, 1, 32>}, {pipeline_mode = #tpu.pipeline_mode<synchronous>, transform_indices = @transform_22, window_bounds = array<i64: 2, 32, 32>}, {pipeline_mode = #tpu.pipeline_mode<synchronous>, transform_indices = @transform_23, window_bounds = array<i64: 2, 1, 32>}, {pipeline_mode = #tpu.pipeline_mode<synchronous>, transform_indices = @transform_24, window_bounds = array<i64: 2, 32, 32>}, {pipeline_mode = #tpu.pipeline_mode<synchronous>, transform_indices = @transform_25, window_bounds = array<i64: 2, 1, 32>}, {pipeline_mode = #tpu.pipeline_mode<synchronous>, transform_indices = @transform_26, window_bounds = array<i64: 2, 32, 32>}, {pipeline_mode = #tpu.pipeline_mode<synchronous>, transform_indices = @transform_27, window_bounds = array<i64: 2, 1, 32>}, {pipeline_mode = #tpu.pipeline_mode<synchronous>, transform_indices = @transform_28, window_bounds = array<i64: 2, 32, 32>}, {pipeline_mode = #tpu.pipeline_mode<synchronous>, transform_indices = @transform_29, window_bounds = array<i64: 2, 1, 32>}, {pipeline_mode = #tpu.pipeline_mode<synchronous>, transform_indices = @transform_30, window_bounds = array<i64: 2, 32, 32>}, {pipeline_mode = #tpu.pipeline_mode<synchronous>, transform_indices = @transform_31, window_bounds = array<i64: 2, 1, 32>}, {pipeline_mode = #tpu.pipeline_mode<synchronous>, transform_indices = @transform_32, window_bounds = array<i64: 2, 32, 32>}, {pipeline_mode = #tpu.pipeline_mode<synchronous>, transform_indices = @transform_33, window_bounds = array<i64: 2, 1, 32>}, {pipeline_mode = #tpu.pipeline_mode<synchronous>, transform_indices = @transform_34, window_bounds = array<i64: 2, 32, 32>}, {pipeline_mode = #tpu.pipeline_mode<synchronous>, transform_indices = @transform_35, window_bounds = array<i64: 2, 1, 32>}, {pipeline_mode = #tpu.pipeline_mode<synchronous>, transform_indices = @transform_36, window_bounds = array<i64: 2, 32, 64>}, {pipeline_mode = #tpu.pipeline_mode<synchronous>, transform_indices = @transform_37, window_bounds = array<i64: 2, 1, 64>}, {pipeline_mode = #tpu.pipeline_mode<synchronous>, transform_indices = @transform_38, window_bounds = array<i64: 2, 64, 32>}, {pipeline_mode = #tpu.pipeline_mode<synchronous>, transform_indices = @transform_39, window_bounds = array<i64: 2, 1, 32>}, {pipeline_mode = #tpu.pipeline_mode<synchronous>, transform_indices = @transform_40, window_bounds = array<i64: 2, 1, 32>}, {pipeline_mode = #tpu.pipeline_mode<synchronous>, transform_indices = @transform_41, window_bounds = array<i64: 2, 1, 32>}, {pipeline_mode = #tpu.pipeline_mode<synchronous>, transform_indices = @transform_42, window_bounds = array<i64: 2, 1, 32>}, {pipeline_mode = #tpu.pipeline_mode<synchronous>, transform_indices = @transform_43, window_bounds = array<i64: 2, 1, 32>}, {pipeline_mode = #tpu.pipeline_mode<synchronous>, transform_indices = @transform_44, window_bounds = array<i64: 2, 1, 32>}, {pipeline_mode = #tpu.pipeline_mode<synchronous>, transform_indices = @transform_45, window_bounds = array<i64: 2, 1, 32>}, {pipeline_mode = #tpu.pipeline_mode<synchronous>, transform_indices = @transform_46, window_bounds = array<i64: 32, 16>}, {pipeline_mode = #tpu.pipeline_mode<synchronous>, transform_indices = @transform_47, window_bounds = array<i64: 1, 16>}, {transform_indices = @transform_48, window_bounds = array<i64: 1, 8, 16>}]} {
    %c0 = arith.constant 0 : index
    %c0_0 = arith.constant 0 : index
    %c0_1 = arith.constant 0 : index
    %0 = vector.load %arg1[%c0, %c0_0, %c0_1] : memref<1x8x32xf32, #tpu.memory_space<vmem>>, vector<1x8x32xf32>
    %1 = vector.shape_cast %0 : vector<1x8x32xf32> to vector<8x32xf32>
    %c0_2 = arith.constant 0 : index
    %c0_3 = arith.constant 0 : index
    %2 = vector.load %arg4[%c0_2, %c0_3] : memref<8x32xf32, #tpu.memory_space<vmem>>, vector<8x32xf32>
    %3 = arith.addf %1, %2 : vector<8x32xf32>
    %c0_4 = arith.constant 0 : index
    %c0_5 = arith.constant 0 : index
    %4 = vector.load %arg3[%c0_4, %c0_5] : memref<8x8xf32, #tpu.memory_space<vmem>>, vector<8x8xf32>
    %c0_6 = arith.constant 0 : index
    %c0_7 = arith.constant 0 : index
    %c0_8 = arith.constant 0 : index
    %5 = vector.load %arg2[%c0_6, %c0_7, %c0_8] : memref<1x1x8xf32, #tpu.memory_space<vmem>>, vector<1x1x8xf32>
    %6 = vector.shape_cast %5 : vector<1x1x8xf32> to vector<1x8xf32>
    %7 = vector.broadcast %6 : vector<1x8xf32> to vector<8x8xf32>
    %8 = arith.minimumf %4, %7 : vector<8x8xf32>
    %c0_9 = arith.constant 0 : index
    %c0_10 = arith.constant 0 : index
    %c0_11 = arith.constant 0 : index
    %9 = vector.load %arg5[%c0_9, %c0_10, %c0_11] : memref<2x32x32xbf16, #tpu.memory_space<vmem>>, vector<1x32x32xbf16>
    %10 = vector.shape_cast %9 : vector<1x32x32xbf16> to vector<32x32xbf16>
    %c0_12 = arith.constant 0 : index
    %c0_13 = arith.constant 0 : index
    %c0_14 = arith.constant 0 : index
    %11 = vector.load %arg6[%c0_12, %c0_13, %c0_14] : memref<2x1x32xf32, #tpu.memory_space<vmem>>, vector<1x1x32xf32>
    %12 = vector.shape_cast %11 : vector<1x1x32xf32> to vector<1x32xf32>
    %c0_15 = arith.constant 0 : index
    %c0_16 = arith.constant 0 : index
    %c0_17 = arith.constant 0 : index
    %13 = vector.load %arg7[%c0_15, %c0_16, %c0_17] : memref<2x32x32xbf16, #tpu.memory_space<vmem>>, vector<1x32x32xbf16>
    %14 = vector.shape_cast %13 : vector<1x32x32xbf16> to vector<32x32xbf16>
    %c0_18 = arith.constant 0 : index
    %c0_19 = arith.constant 0 : index
    %c0_20 = arith.constant 0 : index
    %15 = vector.load %arg8[%c0_18, %c0_19, %c0_20] : memref<2x1x32xf32, #tpu.memory_space<vmem>>, vector<1x1x32xf32>
    %16 = vector.shape_cast %15 : vector<1x1x32xf32> to vector<1x32xf32>
    %c0_21 = arith.constant 0 : index
    %c0_22 = arith.constant 0 : index
    %c0_23 = arith.constant 0 : index
    %17 = vector.load %arg9[%c0_21, %c0_22, %c0_23] : memref<2x32x32xbf16, #tpu.memory_space<vmem>>, vector<1x32x32xbf16>
    %18 = vector.shape_cast %17 : vector<1x32x32xbf16> to vector<32x32xbf16>
    %c0_24 = arith.constant 0 : index
    %c0_25 = arith.constant 0 : index
    %c0_26 = arith.constant 0 : index
    %19 = vector.load %arg10[%c0_24, %c0_25, %c0_26] : memref<2x1x32xf32, #tpu.memory_space<vmem>>, vector<1x1x32xf32>
    %20 = vector.shape_cast %19 : vector<1x1x32xf32> to vector<1x32xf32>
    %c0_27 = arith.constant 0 : index
    %c0_28 = arith.constant 0 : index
    %c0_29 = arith.constant 0 : index
    %21 = vector.load %arg11[%c0_27, %c0_28, %c0_29] : memref<2x32x32xbf16, #tpu.memory_space<vmem>>, vector<1x32x32xbf16>
    %22 = vector.shape_cast %21 : vector<1x32x32xbf16> to vector<32x32xbf16>
    %c0_30 = arith.constant 0 : index
    %c0_31 = arith.constant 0 : index
    %c0_32 = arith.constant 0 : index
    %23 = vector.load %arg12[%c0_30, %c0_31, %c0_32] : memref<2x1x32xf32, #tpu.memory_space<vmem>>, vector<1x1x32xf32>
    %24 = vector.shape_cast %23 : vector<1x1x32xf32> to vector<1x32xf32>
    %c0_33 = arith.constant 0 : index
    %c0_34 = arith.constant 0 : index
    %c0_35 = arith.constant 0 : index
    %25 = vector.load %arg13[%c0_33, %c0_34, %c0_35] : memref<2x32x64xbf16, #tpu.memory_space<vmem>>, vector<1x32x64xbf16>
    %26 = vector.shape_cast %25 : vector<1x32x64xbf16> to vector<32x64xbf16>
    %c0_36 = arith.constant 0 : index
    %c0_37 = arith.constant 0 : index
    %c0_38 = arith.constant 0 : index
    %27 = vector.load %arg14[%c0_36, %c0_37, %c0_38] : memref<2x1x64xf32, #tpu.memory_space<vmem>>, vector<1x1x64xf32>
    %28 = vector.shape_cast %27 : vector<1x1x64xf32> to vector<1x64xf32>
    %c0_39 = arith.constant 0 : index
    %c0_40 = arith.constant 0 : index
    %c0_41 = arith.constant 0 : index
    %29 = vector.load %arg15[%c0_39, %c0_40, %c0_41] : memref<2x64x32xbf16, #tpu.memory_space<vmem>>, vector<1x64x32xbf16>
    %30 = vector.shape_cast %29 : vector<1x64x32xbf16> to vector<64x32xbf16>
    %c0_42 = arith.constant 0 : index
    %c0_43 = arith.constant 0 : index
    %c0_44 = arith.constant 0 : index
    %31 = vector.load %arg16[%c0_42, %c0_43, %c0_44] : memref<2x1x32xf32, #tpu.memory_space<vmem>>, vector<1x1x32xf32>
    %32 = vector.shape_cast %31 : vector<1x1x32xf32> to vector<1x32xf32>
    %c0_45 = arith.constant 0 : index
    %c0_46 = arith.constant 0 : index
    %c0_47 = arith.constant 0 : index
    %33 = vector.load %arg17[%c0_45, %c0_46, %c0_47] : memref<2x1x32xf32, #tpu.memory_space<vmem>>, vector<1x1x32xf32>
    %34 = vector.shape_cast %33 : vector<1x1x32xf32> to vector<1x32xf32>
    %c0_48 = arith.constant 0 : index
    %c0_49 = arith.constant 0 : index
    %c0_50 = arith.constant 0 : index
    %35 = vector.load %arg18[%c0_48, %c0_49, %c0_50] : memref<2x1x32xf32, #tpu.memory_space<vmem>>, vector<1x1x32xf32>
    %36 = vector.shape_cast %35 : vector<1x1x32xf32> to vector<1x32xf32>
    %c0_51 = arith.constant 0 : index
    %c0_52 = arith.constant 0 : index
    %c0_53 = arith.constant 0 : index
    %37 = vector.load %arg19[%c0_51, %c0_52, %c0_53] : memref<2x1x32xf32, #tpu.memory_space<vmem>>, vector<1x1x32xf32>
    %38 = vector.shape_cast %37 : vector<1x1x32xf32> to vector<1x32xf32>
    %c0_54 = arith.constant 0 : index
    %c0_55 = arith.constant 0 : index
    %c0_56 = arith.constant 0 : index
    %39 = vector.load %arg20[%c0_54, %c0_55, %c0_56] : memref<2x1x32xf32, #tpu.memory_space<vmem>>, vector<1x1x32xf32>
    %40 = vector.shape_cast %39 : vector<1x1x32xf32> to vector<1x32xf32>
    %41 = arith.truncf %3 : vector<8x32xf32> to vector<8x32xbf16>
    %cst = arith.constant dense<0.000000e+00> : vector<8x32xf32>
    %42 = tpu.matmul %41, %10, %cst {dimension_numbers = #tpu.dot_dimension_numbers<[1], [0], [0], [1], [0, 0, 1, 1], [], []>} : vector<8x32xbf16>, vector<32x32xbf16>, vector<8x32xf32> -> vector<8x32xf32>
    %43 = vector.broadcast %12 : vector<1x32xf32> to vector<8x32xf32>
    %44 = arith.addf %42, %43 : vector<8x32xf32>
    %45 = arith.truncf %3 : vector<8x32xf32> to vector<8x32xbf16>
    %cst_57 = arith.constant dense<0.000000e+00> : vector<8x32xf32>
    %46 = tpu.matmul %45, %14, %cst_57 {dimension_numbers = #tpu.dot_dimension_numbers<[1], [0], [0], [1], [0, 0, 1, 1], [], []>} : vector<8x32xbf16>, vector<32x32xbf16>, vector<8x32xf32> -> vector<8x32xf32>
    %47 = vector.broadcast %16 : vector<1x32xf32> to vector<8x32xf32>
    %48 = arith.addf %46, %47 : vector<8x32xf32>
    %49 = arith.truncf %3 : vector<8x32xf32> to vector<8x32xbf16>
    %cst_58 = arith.constant dense<0.000000e+00> : vector<8x32xf32>
    %50 = tpu.matmul %49, %18, %cst_58 {dimension_numbers = #tpu.dot_dimension_numbers<[1], [0], [0], [1], [0, 0, 1, 1], [], []>} : vector<8x32xbf16>, vector<32x32xbf16>, vector<8x32xf32> -> vector<8x32xf32>
    %51 = vector.broadcast %20 : vector<1x32xf32> to vector<8x32xf32>
    %52 = arith.addf %50, %51 : vector<8x32xf32>
    %53 = vector.extract_strided_slice %44 {offsets = [0, 0], sizes = [8, 8], strides = [1, 1]} : vector<8x32xf32> to vector<8x8xf32>
    %54 = vector.extract_strided_slice %44 {offsets = [0, 8], sizes = [8, 8], strides = [1, 1]} : vector<8x32xf32> to vector<8x8xf32>
    %55 = vector.extract_strided_slice %44 {offsets = [0, 16], sizes = [8, 8], strides = [1, 1]} : vector<8x32xf32> to vector<8x8xf32>
    %56 = vector.extract_strided_slice %44 {offsets = [0, 24], sizes = [8, 8], strides = [1, 1]} : vector<8x32xf32> to vector<8x8xf32>
    %57 = vector.shape_cast %53 : vector<8x8xf32> to vector<1x8x8xf32>
    %58 = vector.shape_cast %54 : vector<8x8xf32> to vector<1x8x8xf32>
    %59 = vector.shape_cast %55 : vector<8x8xf32> to vector<1x8x8xf32>
    %60 = vector.shape_cast %56 : vector<8x8xf32> to vector<1x8x8xf32>
    %61 = tpu.concatenate %57, %58, %59, %60 in 0 : vector<1x8x8xf32>, vector<1x8x8xf32>, vector<1x8x8xf32>, vector<1x8x8xf32> -> vector<4x8x8xf32>
    %62 = vector.extract_strided_slice %48 {offsets = [0, 0], sizes = [8, 8], strides = [1, 1]} : vector<8x32xf32> to vector<8x8xf32>
    %63 = vector.extract_strided_slice %48 {offsets = [0, 8], sizes = [8, 8], strides = [1, 1]} : vector<8x32xf32> to vector<8x8xf32>
    %64 = vector.extract_strided_slice %48 {offsets = [0, 16], sizes = [8, 8], strides = [1, 1]} : vector<8x32xf32> to vector<8x8xf32>
    %65 = vector.extract_strided_slice %48 {offsets = [0, 24], sizes = [8, 8], strides = [1, 1]} : vector<8x32xf32> to vector<8x8xf32>
    %66 = vector.shape_cast %62 : vector<8x8xf32> to vector<1x8x8xf32>
    %67 = vector.shape_cast %63 : vector<8x8xf32> to vector<1x8x8xf32>
    %68 = vector.shape_cast %64 : vector<8x8xf32> to vector<1x8x8xf32>
    %69 = vector.shape_cast %65 : vector<8x8xf32> to vector<1x8x8xf32>
    %70 = tpu.concatenate %66, %67, %68, %69 in 0 : vector<1x8x8xf32>, vector<1x8x8xf32>, vector<1x8x8xf32>, vector<1x8x8xf32> -> vector<4x8x8xf32>
    %71 = vector.extract_strided_slice %52 {offsets = [0, 0], sizes = [8, 8], strides = [1, 1]} : vector<8x32xf32> to vector<8x8xf32>
    %72 = vector.extract_strided_slice %52 {offsets = [0, 8], sizes = [8, 8], strides = [1, 1]} : vector<8x32xf32> to vector<8x8xf32>
    %73 = vector.extract_strided_slice %52 {offsets = [0, 16], sizes = [8, 8], strides = [1, 1]} : vector<8x32xf32> to vector<8x8xf32>
    %74 = vector.extract_strided_slice %52 {offsets = [0, 24], sizes = [8, 8], strides = [1, 1]} : vector<8x32xf32> to vector<8x8xf32>
    %75 = vector.shape_cast %71 : vector<8x8xf32> to vector<1x8x8xf32>
    %76 = vector.shape_cast %72 : vector<8x8xf32> to vector<1x8x8xf32>
    %77 = vector.shape_cast %73 : vector<8x8xf32> to vector<1x8x8xf32>
    %78 = vector.shape_cast %74 : vector<8x8xf32> to vector<1x8x8xf32>
    %79 = tpu.concatenate %75, %76, %77, %78 in 0 : vector<1x8x8xf32>, vector<1x8x8xf32>, vector<1x8x8xf32>, vector<1x8x8xf32> -> vector<4x8x8xf32>
    %80 = arith.truncf %61 : vector<4x8x8xf32> to vector<4x8x8xbf16>
    %81 = arith.truncf %70 : vector<4x8x8xf32> to vector<4x8x8xbf16>
    "tpu.trace_start"() <{level = 10 : i32, message = "hqd,hkd->hqk"}> : () -> ()
    %cst_59 = arith.constant dense<0.000000e+00> : vector<4x8x8xf32>
    %82 = tpu.matmul %80, %81, %cst_59 {dimension_numbers = #tpu.dot_dimension_numbers<[2], [2], [1], [1], [0, 0, 0, 1, 1, 1], [0], [0]>} : vector<4x8x8xbf16>, vector<4x8x8xbf16>, vector<4x8x8xf32> -> vector<4x8x8xf32>
    "tpu.trace_stop"() : () -> ()
    %83 = vector.shape_cast %8 : vector<8x8xf32> to vector<1x8x8xf32>
    %84 = vector.broadcast %83 : vector<1x8x8xf32> to vector<4x8x8xf32>
    %85 = arith.addf %82, %84 : vector<4x8x8xf32>
    %cst_60 = arith.constant dense<0xFF800000> : vector<4x8xf32>
    %86 = vector.multi_reduction <maximumf>, %85, %cst_60 [2] : vector<4x8x8xf32> to vector<4x8xf32>
    %87 = vector.shape_cast %86 : vector<4x8xf32> to vector<4x8x1xf32>
    %88 = vector.broadcast %87 : vector<4x8x1xf32> to vector<4x8x8xf32>
    %89 = arith.subf %85, %88 : vector<4x8x8xf32>
    %90 = math.exp %89 : vector<4x8x8xf32>
    %cst_61 = arith.constant dense<0.000000e+00> : vector<4x8xf32>
    %91 = vector.multi_reduction <add>, %90, %cst_61 [2] : vector<4x8x8xf32> to vector<4x8xf32>
    %92 = vector.shape_cast %91 : vector<4x8xf32> to vector<4x8x1xf32>
    %93 = tpu.reciprocal %92 {approx = true} : vector<4x8x1xf32> -> vector<4x8x1xf32>
    %94 = vector.broadcast %93 : vector<4x8x1xf32> to vector<4x8x8xf32>
    %95 = arith.mulf %90, %94 : vector<4x8x8xf32>
    %96 = arith.truncf %95 : vector<4x8x8xf32> to vector<4x8x8xbf16>
    %97 = arith.truncf %79 : vector<4x8x8xf32> to vector<4x8x8xbf16>
    "tpu.trace_start"() <{level = 10 : i32, message = "hqk,hkd->hqd"}> : () -> ()
    %cst_62 = arith.constant dense<0.000000e+00> : vector<4x8x8xf32>
    %98 = tpu.matmul %96, %97, %cst_62 {dimension_numbers = #tpu.dot_dimension_numbers<[2], [1], [1], [2], [0, 0, 0, 1, 1, 2], [0], [0]>} : vector<4x8x8xbf16>, vector<4x8x8xbf16>, vector<4x8x8xf32> -> vector<4x8x8xf32>
    "tpu.trace_stop"() : () -> ()
    %99 = vector.extract_strided_slice %98 {offsets = [0, 0, 0], sizes = [1, 8, 8], strides = [1, 1, 1]} : vector<4x8x8xf32> to vector<1x8x8xf32>
    %100 = vector.shape_cast %99 : vector<1x8x8xf32> to vector<8x8xf32>
    %101 = vector.extract_strided_slice %98 {offsets = [1, 0, 0], sizes = [1, 8, 8], strides = [1, 1, 1]} : vector<4x8x8xf32> to vector<1x8x8xf32>
    %102 = vector.shape_cast %101 : vector<1x8x8xf32> to vector<8x8xf32>
    %103 = vector.extract_strided_slice %98 {offsets = [2, 0, 0], sizes = [1, 8, 8], strides = [1, 1, 1]} : vector<4x8x8xf32> to vector<1x8x8xf32>
    %104 = vector.shape_cast %103 : vector<1x8x8xf32> to vector<8x8xf32>
    %105 = vector.extract_strided_slice %98 {offsets = [3, 0, 0], sizes = [1, 8, 8], strides = [1, 1, 1]} : vector<4x8x8xf32> to vector<1x8x8xf32>
    %106 = vector.shape_cast %105 : vector<1x8x8xf32> to vector<8x8xf32>
    %107 = tpu.concatenate %100, %102, %104, %106 in 1 : vector<8x8xf32>, vector<8x8xf32>, vector<8x8xf32>, vector<8x8xf32> -> vector<8x32xf32>
    %108 = arith.truncf %107 : vector<8x32xf32> to vector<8x32xbf16>
    %cst_63 = arith.constant dense<0.000000e+00> : vector<8x32xf32>
    %109 = tpu.matmul %108, %22, %cst_63 {dimension_numbers = #tpu.dot_dimension_numbers<[1], [0], [0], [1], [0, 0, 1, 1], [], []>} : vector<8x32xbf16>, vector<32x32xbf16>, vector<8x32xf32> -> vector<8x32xf32>
    %110 = arith.addf %3, %109 : vector<8x32xf32>
    %111 = vector.broadcast %24 : vector<1x32xf32> to vector<8x32xf32>
    %112 = arith.addf %110, %111 : vector<8x32xf32>
    %cst_64 = arith.constant dense<0.000000e+00> : vector<8xf32>
    %113 = vector.multi_reduction <add>, %112, %cst_64 [1] : vector<8x32xf32> to vector<8xf32>
    %114 = vector.shape_cast %113 : vector<8xf32> to vector<8x1xf32>
    %cst_65 = arith.constant 3.200000e+01 : f32
    %115 = vector.broadcast %cst_65 : f32 to vector<8x1xf32>
    %116 = arith.divf %114, %115 : vector<8x1xf32>
    %117 = vector.broadcast %116 : vector<8x1xf32> to vector<8x32xf32>
    %118 = arith.subf %112, %117 : vector<8x32xf32>
    %119 = arith.mulf %118, %118 : vector<8x32xf32>
    %cst_66 = arith.constant dense<0.000000e+00> : vector<8xf32>
    %120 = vector.multi_reduction <add>, %119, %cst_66 [1] : vector<8x32xf32> to vector<8xf32>
    %121 = vector.shape_cast %120 : vector<8xf32> to vector<8x1xf32>
    %cst_67 = arith.constant 3.200000e+01 : f32
    %122 = vector.broadcast %cst_67 : f32 to vector<8x1xf32>
    %123 = arith.divf %121, %122 : vector<8x1xf32>
    %cst_68 = arith.constant 9.99999974E-6 : f32
    %124 = vector.broadcast %cst_68 : f32 to vector<8x1xf32>
    %125 = arith.addf %123, %124 : vector<8x1xf32>
    %126 = math.rsqrt %125 : vector<8x1xf32>
    %127 = vector.broadcast %126 : vector<8x1xf32> to vector<8x32xf32>
    %128 = arith.mulf %118, %127 : vector<8x32xf32>
    %129 = vector.broadcast %34 : vector<1x32xf32> to vector<8x32xf32>
    %130 = arith.mulf %128, %129 : vector<8x32xf32>
    %131 = vector.broadcast %36 : vector<1x32xf32> to vector<8x32xf32>
    %132 = arith.addf %130, %131 : vector<8x32xf32>
    %133 = arith.truncf %132 : vector<8x32xf32> to vector<8x32xbf16>
    %cst_69 = arith.constant dense<0.000000e+00> : vector<8x64xf32>
    %134 = tpu.matmul %133, %26, %cst_69 {dimension_numbers = #tpu.dot_dimension_numbers<[1], [0], [0], [1], [0, 0, 1, 1], [], []>} : vector<8x32xbf16>, vector<32x64xbf16>, vector<8x64xf32> -> vector<8x64xf32>
    %135 = vector.broadcast %28 : vector<1x64xf32> to vector<8x64xf32>
    %136 = arith.addf %134, %135 : vector<8x64xf32>
    %cst_70 = arith.constant 0.000000e+00 : f32
    %137 = vector.broadcast %cst_70 : f32 to vector<8x64xf32>
    %138 = arith.maximumf %136, %137 : vector<8x64xf32>
    %139 = arith.truncf %138 : vector<8x64xf32> to vector<8x64xbf16>
    %cst_71 = arith.constant dense<0.000000e+00> : vector<8x32xf32>
    %140 = tpu.matmul %139, %30, %cst_71 {dimension_numbers = #tpu.dot_dimension_numbers<[1], [0], [0], [1], [0, 0, 1, 1], [], []>} : vector<8x64xbf16>, vector<64x32xbf16>, vector<8x32xf32> -> vector<8x32xf32>
    %141 = arith.addf %132, %140 : vector<8x32xf32>
    %142 = vector.broadcast %32 : vector<1x32xf32> to vector<8x32xf32>
    %143 = arith.addf %141, %142 : vector<8x32xf32>
    %cst_72 = arith.constant dense<0.000000e+00> : vector<8xf32>
    %144 = vector.multi_reduction <add>, %143, %cst_72 [1] : vector<8x32xf32> to vector<8xf32>
    %145 = vector.shape_cast %144 : vector<8xf32> to vector<8x1xf32>
    %cst_73 = arith.constant 3.200000e+01 : f32
    %146 = vector.broadcast %cst_73 : f32 to vector<8x1xf32>
    %147 = arith.divf %145, %146 : vector<8x1xf32>
    %148 = vector.broadcast %147 : vector<8x1xf32> to vector<8x32xf32>
    %149 = arith.subf %143, %148 : vector<8x32xf32>
    %150 = arith.mulf %149, %149 : vector<8x32xf32>
    %cst_74 = arith.constant dense<0.000000e+00> : vector<8xf32>
    %151 = vector.multi_reduction <add>, %150, %cst_74 [1] : vector<8x32xf32> to vector<8xf32>
    %152 = vector.shape_cast %151 : vector<8xf32> to vector<8x1xf32>
    %cst_75 = arith.constant 3.200000e+01 : f32
    %153 = vector.broadcast %cst_75 : f32 to vector<8x1xf32>
    %154 = arith.divf %152, %153 : vector<8x1xf32>
    %cst_76 = arith.constant 9.99999974E-6 : f32
    %155 = vector.broadcast %cst_76 : f32 to vector<8x1xf32>
    %156 = arith.addf %154, %155 : vector<8x1xf32>
    %157 = math.rsqrt %156 : vector<8x1xf32>
    %158 = vector.broadcast %157 : vector<8x1xf32> to vector<8x32xf32>
    %159 = arith.mulf %149, %158 : vector<8x32xf32>
    %160 = vector.broadcast %38 : vector<1x32xf32> to vector<8x32xf32>
    %161 = arith.mulf %159, %160 : vector<8x32xf32>
    %162 = vector.broadcast %40 : vector<1x32xf32> to vector<8x32xf32>
    %163 = arith.addf %161, %162 : vector<8x32xf32>
    %c1 = arith.constant 1 : index
    %c0_77 = arith.constant 0 : index
    %c0_78 = arith.constant 0 : index
    %164 = vector.load %arg5[%c1, %c0_77, %c0_78] : memref<2x32x32xbf16, #tpu.memory_space<vmem>>, vector<1x32x32xbf16>
    %165 = vector.shape_cast %164 : vector<1x32x32xbf16> to vector<32x32xbf16>
    %c1_79 = arith.constant 1 : index
    %c0_80 = arith.constant 0 : index
    %c0_81 = arith.constant 0 : index
    %166 = vector.load %arg6[%c1_79, %c0_80, %c0_81] : memref<2x1x32xf32, #tpu.memory_space<vmem>>, vector<1x1x32xf32>
    %167 = vector.shape_cast %166 : vector<1x1x32xf32> to vector<1x32xf32>
    %c1_82 = arith.constant 1 : index
    %c0_83 = arith.constant 0 : index
    %c0_84 = arith.constant 0 : index
    %168 = vector.load %arg7[%c1_82, %c0_83, %c0_84] : memref<2x32x32xbf16, #tpu.memory_space<vmem>>, vector<1x32x32xbf16>
    %169 = vector.shape_cast %168 : vector<1x32x32xbf16> to vector<32x32xbf16>
    %c1_85 = arith.constant 1 : index
    %c0_86 = arith.constant 0 : index
    %c0_87 = arith.constant 0 : index
    %170 = vector.load %arg8[%c1_85, %c0_86, %c0_87] : memref<2x1x32xf32, #tpu.memory_space<vmem>>, vector<1x1x32xf32>
    %171 = vector.shape_cast %170 : vector<1x1x32xf32> to vector<1x32xf32>
    %c1_88 = arith.constant 1 : index
    %c0_89 = arith.constant 0 : index
    %c0_90 = arith.constant 0 : index
    %172 = vector.load %arg9[%c1_88, %c0_89, %c0_90] : memref<2x32x32xbf16, #tpu.memory_space<vmem>>, vector<1x32x32xbf16>
    %173 = vector.shape_cast %172 : vector<1x32x32xbf16> to vector<32x32xbf16>
    %c1_91 = arith.constant 1 : index
    %c0_92 = arith.constant 0 : index
    %c0_93 = arith.constant 0 : index
    %174 = vector.load %arg10[%c1_91, %c0_92, %c0_93] : memref<2x1x32xf32, #tpu.memory_space<vmem>>, vector<1x1x32xf32>
    %175 = vector.shape_cast %174 : vector<1x1x32xf32> to vector<1x32xf32>
    %c1_94 = arith.constant 1 : index
    %c0_95 = arith.constant 0 : index
    %c0_96 = arith.constant 0 : index
    %176 = vector.load %arg11[%c1_94, %c0_95, %c0_96] : memref<2x32x32xbf16, #tpu.memory_space<vmem>>, vector<1x32x32xbf16>
    %177 = vector.shape_cast %176 : vector<1x32x32xbf16> to vector<32x32xbf16>
    %c1_97 = arith.constant 1 : index
    %c0_98 = arith.constant 0 : index
    %c0_99 = arith.constant 0 : index
    %178 = vector.load %arg12[%c1_97, %c0_98, %c0_99] : memref<2x1x32xf32, #tpu.memory_space<vmem>>, vector<1x1x32xf32>
    %179 = vector.shape_cast %178 : vector<1x1x32xf32> to vector<1x32xf32>
    %c1_100 = arith.constant 1 : index
    %c0_101 = arith.constant 0 : index
    %c0_102 = arith.constant 0 : index
    %180 = vector.load %arg13[%c1_100, %c0_101, %c0_102] : memref<2x32x64xbf16, #tpu.memory_space<vmem>>, vector<1x32x64xbf16>
    %181 = vector.shape_cast %180 : vector<1x32x64xbf16> to vector<32x64xbf16>
    %c1_103 = arith.constant 1 : index
    %c0_104 = arith.constant 0 : index
    %c0_105 = arith.constant 0 : index
    %182 = vector.load %arg14[%c1_103, %c0_104, %c0_105] : memref<2x1x64xf32, #tpu.memory_space<vmem>>, vector<1x1x64xf32>
    %183 = vector.shape_cast %182 : vector<1x1x64xf32> to vector<1x64xf32>
    %c1_106 = arith.constant 1 : index
    %c0_107 = arith.constant 0 : index
    %c0_108 = arith.constant 0 : index
    %184 = vector.load %arg15[%c1_106, %c0_107, %c0_108] : memref<2x64x32xbf16, #tpu.memory_space<vmem>>, vector<1x64x32xbf16>
    %185 = vector.shape_cast %184 : vector<1x64x32xbf16> to vector<64x32xbf16>
    %c1_109 = arith.constant 1 : index
    %c0_110 = arith.constant 0 : index
    %c0_111 = arith.constant 0 : index
    %186 = vector.load %arg16[%c1_109, %c0_110, %c0_111] : memref<2x1x32xf32, #tpu.memory_space<vmem>>, vector<1x1x32xf32>
    %187 = vector.shape_cast %186 : vector<1x1x32xf32> to vector<1x32xf32>
    %c1_112 = arith.constant 1 : index
    %c0_113 = arith.constant 0 : index
    %c0_114 = arith.constant 0 : index
    %188 = vector.load %arg17[%c1_112, %c0_113, %c0_114] : memref<2x1x32xf32, #tpu.memory_space<vmem>>, vector<1x1x32xf32>
    %189 = vector.shape_cast %188 : vector<1x1x32xf32> to vector<1x32xf32>
    %c1_115 = arith.constant 1 : index
    %c0_116 = arith.constant 0 : index
    %c0_117 = arith.constant 0 : index
    %190 = vector.load %arg18[%c1_115, %c0_116, %c0_117] : memref<2x1x32xf32, #tpu.memory_space<vmem>>, vector<1x1x32xf32>
    %191 = vector.shape_cast %190 : vector<1x1x32xf32> to vector<1x32xf32>
    %c1_118 = arith.constant 1 : index
    %c0_119 = arith.constant 0 : index
    %c0_120 = arith.constant 0 : index
    %192 = vector.load %arg19[%c1_118, %c0_119, %c0_120] : memref<2x1x32xf32, #tpu.memory_space<vmem>>, vector<1x1x32xf32>
    %193 = vector.shape_cast %192 : vector<1x1x32xf32> to vector<1x32xf32>
    %c1_121 = arith.constant 1 : index
    %c0_122 = arith.constant 0 : index
    %c0_123 = arith.constant 0 : index
    %194 = vector.load %arg20[%c1_121, %c0_122, %c0_123] : memref<2x1x32xf32, #tpu.memory_space<vmem>>, vector<1x1x32xf32>
    %195 = vector.shape_cast %194 : vector<1x1x32xf32> to vector<1x32xf32>
    %196 = arith.truncf %163 : vector<8x32xf32> to vector<8x32xbf16>
    %cst_124 = arith.constant dense<0.000000e+00> : vector<8x32xf32>
    %197 = tpu.matmul %196, %165, %cst_124 {dimension_numbers = #tpu.dot_dimension_numbers<[1], [0], [0], [1], [0, 0, 1, 1], [], []>} : vector<8x32xbf16>, vector<32x32xbf16>, vector<8x32xf32> -> vector<8x32xf32>
    %198 = vector.broadcast %167 : vector<1x32xf32> to vector<8x32xf32>
    %199 = arith.addf %197, %198 : vector<8x32xf32>
    %200 = arith.truncf %163 : vector<8x32xf32> to vector<8x32xbf16>
    %cst_125 = arith.constant dense<0.000000e+00> : vector<8x32xf32>
    %201 = tpu.matmul %200, %169, %cst_125 {dimension_numbers = #tpu.dot_dimension_numbers<[1], [0], [0], [1], [0, 0, 1, 1], [], []>} : vector<8x32xbf16>, vector<32x32xbf16>, vector<8x32xf32> -> vector<8x32xf32>
    %202 = vector.broadcast %171 : vector<1x32xf32> to vector<8x32xf32>
    %203 = arith.addf %201, %202 : vector<8x32xf32>
    %204 = arith.truncf %163 : vector<8x32xf32> to vector<8x32xbf16>
    %cst_126 = arith.constant dense<0.000000e+00> : vector<8x32xf32>
    %205 = tpu.matmul %204, %173, %cst_126 {dimension_numbers = #tpu.dot_dimension_numbers<[1], [0], [0], [1], [0, 0, 1, 1], [], []>} : vector<8x32xbf16>, vector<32x32xbf16>, vector<8x32xf32> -> vector<8x32xf32>
    %206 = vector.broadcast %175 : vector<1x32xf32> to vector<8x32xf32>
    %207 = arith.addf %205, %206 : vector<8x32xf32>
    %208 = vector.extract_strided_slice %199 {offsets = [0, 0], sizes = [8, 8], strides = [1, 1]} : vector<8x32xf32> to vector<8x8xf32>
    %209 = vector.extract_strided_slice %199 {offsets = [0, 8], sizes = [8, 8], strides = [1, 1]} : vector<8x32xf32> to vector<8x8xf32>
    %210 = vector.extract_strided_slice %199 {offsets = [0, 16], sizes = [8, 8], strides = [1, 1]} : vector<8x32xf32> to vector<8x8xf32>
    %211 = vector.extract_strided_slice %199 {offsets = [0, 24], sizes = [8, 8], strides = [1, 1]} : vector<8x32xf32> to vector<8x8xf32>
    %212 = vector.shape_cast %208 : vector<8x8xf32> to vector<1x8x8xf32>
    %213 = vector.shape_cast %209 : vector<8x8xf32> to vector<1x8x8xf32>
    %214 = vector.shape_cast %210 : vector<8x8xf32> to vector<1x8x8xf32>
    %215 = vector.shape_cast %211 : vector<8x8xf32> to vector<1x8x8xf32>
    %216 = tpu.concatenate %212, %213, %214, %215 in 0 : vector<1x8x8xf32>, vector<1x8x8xf32>, vector<1x8x8xf32>, vector<1x8x8xf32> -> vector<4x8x8xf32>
    %217 = vector.extract_strided_slice %203 {offsets = [0, 0], sizes = [8, 8], strides = [1, 1]} : vector<8x32xf32> to vector<8x8xf32>
    %218 = vector.extract_strided_slice %203 {offsets = [0, 8], sizes = [8, 8], strides = [1, 1]} : vector<8x32xf32> to vector<8x8xf32>
    %219 = vector.extract_strided_slice %203 {offsets = [0, 16], sizes = [8, 8], strides = [1, 1]} : vector<8x32xf32> to vector<8x8xf32>
    %220 = vector.extract_strided_slice %203 {offsets = [0, 24], sizes = [8, 8], strides = [1, 1]} : vector<8x32xf32> to vector<8x8xf32>
    %221 = vector.shape_cast %217 : vector<8x8xf32> to vector<1x8x8xf32>
    %222 = vector.shape_cast %218 : vector<8x8xf32> to vector<1x8x8xf32>
    %223 = vector.shape_cast %219 : vector<8x8xf32> to vector<1x8x8xf32>
    %224 = vector.shape_cast %220 : vector<8x8xf32> to vector<1x8x8xf32>
    %225 = tpu.concatenate %221, %222, %223, %224 in 0 : vector<1x8x8xf32>, vector<1x8x8xf32>, vector<1x8x8xf32>, vector<1x8x8xf32> -> vector<4x8x8xf32>
    %226 = vector.extract_strided_slice %207 {offsets = [0, 0], sizes = [8, 8], strides = [1, 1]} : vector<8x32xf32> to vector<8x8xf32>
    %227 = vector.extract_strided_slice %207 {offsets = [0, 8], sizes = [8, 8], strides = [1, 1]} : vector<8x32xf32> to vector<8x8xf32>
    %228 = vector.extract_strided_slice %207 {offsets = [0, 16], sizes = [8, 8], strides = [1, 1]} : vector<8x32xf32> to vector<8x8xf32>
    %229 = vector.extract_strided_slice %207 {offsets = [0, 24], sizes = [8, 8], strides = [1, 1]} : vector<8x32xf32> to vector<8x8xf32>
    %230 = vector.shape_cast %226 : vector<8x8xf32> to vector<1x8x8xf32>
    %231 = vector.shape_cast %227 : vector<8x8xf32> to vector<1x8x8xf32>
    %232 = vector.shape_cast %228 : vector<8x8xf32> to vector<1x8x8xf32>
    %233 = vector.shape_cast %229 : vector<8x8xf32> to vector<1x8x8xf32>
    %234 = tpu.concatenate %230, %231, %232, %233 in 0 : vector<1x8x8xf32>, vector<1x8x8xf32>, vector<1x8x8xf32>, vector<1x8x8xf32> -> vector<4x8x8xf32>
    %235 = arith.truncf %216 : vector<4x8x8xf32> to vector<4x8x8xbf16>
    %236 = arith.truncf %225 : vector<4x8x8xf32> to vector<4x8x8xbf16>
    "tpu.trace_start"() <{level = 10 : i32, message = "hqd,hkd->hqk"}> : () -> ()
    %cst_127 = arith.constant dense<0.000000e+00> : vector<4x8x8xf32>
    %237 = tpu.matmul %235, %236, %cst_127 {dimension_numbers = #tpu.dot_dimension_numbers<[2], [2], [1], [1], [0, 0, 0, 1, 1, 1], [0], [0]>} : vector<4x8x8xbf16>, vector<4x8x8xbf16>, vector<4x8x8xf32> -> vector<4x8x8xf32>
    "tpu.trace_stop"() : () -> ()
    %238 = vector.shape_cast %8 : vector<8x8xf32> to vector<1x8x8xf32>
    %239 = vector.broadcast %238 : vector<1x8x8xf32> to vector<4x8x8xf32>
    %240 = arith.addf %237, %239 : vector<4x8x8xf32>
    %cst_128 = arith.constant dense<0xFF800000> : vector<4x8xf32>
    %241 = vector.multi_reduction <maximumf>, %240, %cst_128 [2] : vector<4x8x8xf32> to vector<4x8xf32>
    %242 = vector.shape_cast %241 : vector<4x8xf32> to vector<4x8x1xf32>
    %243 = vector.broadcast %242 : vector<4x8x1xf32> to vector<4x8x8xf32>
    %244 = arith.subf %240, %243 : vector<4x8x8xf32>
    %245 = math.exp %244 : vector<4x8x8xf32>
    %cst_129 = arith.constant dense<0.000000e+00> : vector<4x8xf32>
    %246 = vector.multi_reduction <add>, %245, %cst_129 [2] : vector<4x8x8xf32> to vector<4x8xf32>
    %247 = vector.shape_cast %246 : vector<4x8xf32> to vector<4x8x1xf32>
    %248 = tpu.reciprocal %247 {approx = true} : vector<4x8x1xf32> -> vector<4x8x1xf32>
    %249 = vector.broadcast %248 : vector<4x8x1xf32> to vector<4x8x8xf32>
    %250 = arith.mulf %245, %249 : vector<4x8x8xf32>
    %251 = arith.truncf %250 : vector<4x8x8xf32> to vector<4x8x8xbf16>
    %252 = arith.truncf %234 : vector<4x8x8xf32> to vector<4x8x8xbf16>
    "tpu.trace_start"() <{level = 10 : i32, message = "hqk,hkd->hqd"}> : () -> ()
    %cst_130 = arith.constant dense<0.000000e+00> : vector<4x8x8xf32>
    %253 = tpu.matmul %251, %252, %cst_130 {dimension_numbers = #tpu.dot_dimension_numbers<[2], [1], [1], [2], [0, 0, 0, 1, 1, 2], [0], [0]>} : vector<4x8x8xbf16>, vector<4x8x8xbf16>, vector<4x8x8xf32> -> vector<4x8x8xf32>
    "tpu.trace_stop"() : () -> ()
    %254 = vector.extract_strided_slice %253 {offsets = [0, 0, 0], sizes = [1, 8, 8], strides = [1, 1, 1]} : vector<4x8x8xf32> to vector<1x8x8xf32>
    %255 = vector.shape_cast %254 : vector<1x8x8xf32> to vector<8x8xf32>
    %256 = vector.extract_strided_slice %253 {offsets = [1, 0, 0], sizes = [1, 8, 8], strides = [1, 1, 1]} : vector<4x8x8xf32> to vector<1x8x8xf32>
    %257 = vector.shape_cast %256 : vector<1x8x8xf32> to vector<8x8xf32>
    %258 = vector.extract_strided_slice %253 {offsets = [2, 0, 0], sizes = [1, 8, 8], strides = [1, 1, 1]} : vector<4x8x8xf32> to vector<1x8x8xf32>
    %259 = vector.shape_cast %258 : vector<1x8x8xf32> to vector<8x8xf32>
    %260 = vector.extract_strided_slice %253 {offsets = [3, 0, 0], sizes = [1, 8, 8], strides = [1, 1, 1]} : vector<4x8x8xf32> to vector<1x8x8xf32>
    %261 = vector.shape_cast %260 : vector<1x8x8xf32> to vector<8x8xf32>
    %262 = tpu.concatenate %255, %257, %259, %261 in 1 : vector<8x8xf32>, vector<8x8xf32>, vector<8x8xf32>, vector<8x8xf32> -> vector<8x32xf32>
    %263 = arith.truncf %262 : vector<8x32xf32> to vector<8x32xbf16>
    %cst_131 = arith.constant dense<0.000000e+00> : vector<8x32xf32>
    %264 = tpu.matmul %263, %177, %cst_131 {dimension_numbers = #tpu.dot_dimension_numbers<[1], [0], [0], [1], [0, 0, 1, 1], [], []>} : vector<8x32xbf16>, vector<32x32xbf16>, vector<8x32xf32> -> vector<8x32xf32>
    %265 = arith.addf %163, %264 : vector<8x32xf32>
    %266 = vector.broadcast %179 : vector<1x32xf32> to vector<8x32xf32>
    %267 = arith.addf %265, %266 : vector<8x32xf32>
    %cst_132 = arith.constant dense<0.000000e+00> : vector<8xf32>
    %268 = vector.multi_reduction <add>, %267, %cst_132 [1] : vector<8x32xf32> to vector<8xf32>
    %269 = vector.shape_cast %268 : vector<8xf32> to vector<8x1xf32>
    %cst_133 = arith.constant 3.200000e+01 : f32
    %270 = vector.broadcast %cst_133 : f32 to vector<8x1xf32>
    %271 = arith.divf %269, %270 : vector<8x1xf32>
    %272 = vector.broadcast %271 : vector<8x1xf32> to vector<8x32xf32>
    %273 = arith.subf %267, %272 : vector<8x32xf32>
    %274 = arith.mulf %273, %273 : vector<8x32xf32>
    %cst_134 = arith.constant dense<0.000000e+00> : vector<8xf32>
    %275 = vector.multi_reduction <add>, %274, %cst_134 [1] : vector<8x32xf32> to vector<8xf32>
    %276 = vector.shape_cast %275 : vector<8xf32> to vector<8x1xf32>
    %cst_135 = arith.constant 3.200000e+01 : f32
    %277 = vector.broadcast %cst_135 : f32 to vector<8x1xf32>
    %278 = arith.divf %276, %277 : vector<8x1xf32>
    %cst_136 = arith.constant 9.99999974E-6 : f32
    %279 = vector.broadcast %cst_136 : f32 to vector<8x1xf32>
    %280 = arith.addf %278, %279 : vector<8x1xf32>
    %281 = math.rsqrt %280 : vector<8x1xf32>
    %282 = vector.broadcast %281 : vector<8x1xf32> to vector<8x32xf32>
    %283 = arith.mulf %273, %282 : vector<8x32xf32>
    %284 = vector.broadcast %189 : vector<1x32xf32> to vector<8x32xf32>
    %285 = arith.mulf %283, %284 : vector<8x32xf32>
    %286 = vector.broadcast %191 : vector<1x32xf32> to vector<8x32xf32>
    %287 = arith.addf %285, %286 : vector<8x32xf32>
    %288 = arith.truncf %287 : vector<8x32xf32> to vector<8x32xbf16>
    %cst_137 = arith.constant dense<0.000000e+00> : vector<8x64xf32>
    %289 = tpu.matmul %288, %181, %cst_137 {dimension_numbers = #tpu.dot_dimension_numbers<[1], [0], [0], [1], [0, 0, 1, 1], [], []>} : vector<8x32xbf16>, vector<32x64xbf16>, vector<8x64xf32> -> vector<8x64xf32>
    %290 = vector.broadcast %183 : vector<1x64xf32> to vector<8x64xf32>
    %291 = arith.addf %289, %290 : vector<8x64xf32>
    %cst_138 = arith.constant 0.000000e+00 : f32
    %292 = vector.broadcast %cst_138 : f32 to vector<8x64xf32>
    %293 = arith.maximumf %291, %292 : vector<8x64xf32>
    %294 = arith.truncf %293 : vector<8x64xf32> to vector<8x64xbf16>
    %cst_139 = arith.constant dense<0.000000e+00> : vector<8x32xf32>
    %295 = tpu.matmul %294, %185, %cst_139 {dimension_numbers = #tpu.dot_dimension_numbers<[1], [0], [0], [1], [0, 0, 1, 1], [], []>} : vector<8x64xbf16>, vector<64x32xbf16>, vector<8x32xf32> -> vector<8x32xf32>
    %296 = arith.addf %287, %295 : vector<8x32xf32>
    %297 = vector.broadcast %187 : vector<1x32xf32> to vector<8x32xf32>
    %298 = arith.addf %296, %297 : vector<8x32xf32>
    %cst_140 = arith.constant dense<0.000000e+00> : vector<8xf32>
    %299 = vector.multi_reduction <add>, %298, %cst_140 [1] : vector<8x32xf32> to vector<8xf32>
    %300 = vector.shape_cast %299 : vector<8xf32> to vector<8x1xf32>
    %cst_141 = arith.constant 3.200000e+01 : f32
    %301 = vector.broadcast %cst_141 : f32 to vector<8x1xf32>
    %302 = arith.divf %300, %301 : vector<8x1xf32>
    %303 = vector.broadcast %302 : vector<8x1xf32> to vector<8x32xf32>
    %304 = arith.subf %298, %303 : vector<8x32xf32>
    %305 = arith.mulf %304, %304 : vector<8x32xf32>
    %cst_142 = arith.constant dense<0.000000e+00> : vector<8xf32>
    %306 = vector.multi_reduction <add>, %305, %cst_142 [1] : vector<8x32xf32> to vector<8xf32>
    %307 = vector.shape_cast %306 : vector<8xf32> to vector<8x1xf32>
    %cst_143 = arith.constant 3.200000e+01 : f32
    %308 = vector.broadcast %cst_143 : f32 to vector<8x1xf32>
    %309 = arith.divf %307, %308 : vector<8x1xf32>
    %cst_144 = arith.constant 9.99999974E-6 : f32
    %310 = vector.broadcast %cst_144 : f32 to vector<8x1xf32>
    %311 = arith.addf %309, %310 : vector<8x1xf32>
    %312 = math.rsqrt %311 : vector<8x1xf32>
    %313 = vector.broadcast %312 : vector<8x1xf32> to vector<8x32xf32>
    %314 = arith.mulf %304, %313 : vector<8x32xf32>
    %315 = vector.broadcast %193 : vector<1x32xf32> to vector<8x32xf32>
    %316 = arith.mulf %314, %315 : vector<8x32xf32>
    %317 = vector.broadcast %195 : vector<1x32xf32> to vector<8x32xf32>
    %318 = arith.addf %316, %317 : vector<8x32xf32>
    %c0_145 = arith.constant 0 : index
    %c0_146 = arith.constant 0 : index
    %c0_147 = arith.constant 0 : index
    %319 = vector.load %arg21[%c0_145, %c0_146, %c0_147] : memref<2x32x32xbf16, #tpu.memory_space<vmem>>, vector<1x32x32xbf16>
    %320 = vector.shape_cast %319 : vector<1x32x32xbf16> to vector<32x32xbf16>
    %c0_148 = arith.constant 0 : index
    %c0_149 = arith.constant 0 : index
    %c0_150 = arith.constant 0 : index
    %321 = vector.load %arg22[%c0_148, %c0_149, %c0_150] : memref<2x1x32xf32, #tpu.memory_space<vmem>>, vector<1x1x32xf32>
    %322 = vector.shape_cast %321 : vector<1x1x32xf32> to vector<1x32xf32>
    %c0_151 = arith.constant 0 : index
    %c0_152 = arith.constant 0 : index
    %c0_153 = arith.constant 0 : index
    %323 = vector.load %arg23[%c0_151, %c0_152, %c0_153] : memref<2x32x32xbf16, #tpu.memory_space<vmem>>, vector<1x32x32xbf16>
    %324 = vector.shape_cast %323 : vector<1x32x32xbf16> to vector<32x32xbf16>
    %c0_154 = arith.constant 0 : index
    %c0_155 = arith.constant 0 : index
    %c0_156 = arith.constant 0 : index
    %325 = vector.load %arg24[%c0_154, %c0_155, %c0_156] : memref<2x1x32xf32, #tpu.memory_space<vmem>>, vector<1x1x32xf32>
    %326 = vector.shape_cast %325 : vector<1x1x32xf32> to vector<1x32xf32>
    %c0_157 = arith.constant 0 : index
    %c0_158 = arith.constant 0 : index
    %c0_159 = arith.constant 0 : index
    %327 = vector.load %arg25[%c0_157, %c0_158, %c0_159] : memref<2x32x32xbf16, #tpu.memory_space<vmem>>, vector<1x32x32xbf16>
    %328 = vector.shape_cast %327 : vector<1x32x32xbf16> to vector<32x32xbf16>
    %c0_160 = arith.constant 0 : index
    %c0_161 = arith.constant 0 : index
    %c0_162 = arith.constant 0 : index
    %329 = vector.load %arg26[%c0_160, %c0_161, %c0_162] : memref<2x1x32xf32, #tpu.memory_space<vmem>>, vector<1x1x32xf32>
    %330 = vector.shape_cast %329 : vector<1x1x32xf32> to vector<1x32xf32>
    %c0_163 = arith.constant 0 : index
    %c0_164 = arith.constant 0 : index
    %c0_165 = arith.constant 0 : index
    %331 = vector.load %arg27[%c0_163, %c0_164, %c0_165] : memref<2x32x32xbf16, #tpu.memory_space<vmem>>, vector<1x32x32xbf16>
    %332 = vector.shape_cast %331 : vector<1x32x32xbf16> to vector<32x32xbf16>
    %c0_166 = arith.constant 0 : index
    %c0_167 = arith.constant 0 : index
    %c0_168 = arith.constant 0 : index
    %333 = vector.load %arg28[%c0_166, %c0_167, %c0_168] : memref<2x1x32xf32, #tpu.memory_space<vmem>>, vector<1x1x32xf32>
    %334 = vector.shape_cast %333 : vector<1x1x32xf32> to vector<1x32xf32>
    %c0_169 = arith.constant 0 : index
    %c0_170 = arith.constant 0 : index
    %c0_171 = arith.constant 0 : index
    %335 = vector.load %arg29[%c0_169, %c0_170, %c0_171] : memref<2x32x32xbf16, #tpu.memory_space<vmem>>, vector<1x32x32xbf16>
    %336 = vector.shape_cast %335 : vector<1x32x32xbf16> to vector<32x32xbf16>
    %c0_172 = arith.constant 0 : index
    %c0_173 = arith.constant 0 : index
    %c0_174 = arith.constant 0 : index
    %337 = vector.load %arg30[%c0_172, %c0_173, %c0_174] : memref<2x1x32xf32, #tpu.memory_space<vmem>>, vector<1x1x32xf32>
    %338 = vector.shape_cast %337 : vector<1x1x32xf32> to vector<1x32xf32>
    %c0_175 = arith.constant 0 : index
    %c0_176 = arith.constant 0 : index
    %c0_177 = arith.constant 0 : index
    %339 = vector.load %arg31[%c0_175, %c0_176, %c0_177] : memref<2x32x32xbf16, #tpu.memory_space<vmem>>, vector<1x32x32xbf16>
    %340 = vector.shape_cast %339 : vector<1x32x32xbf16> to vector<32x32xbf16>
    %c0_178 = arith.constant 0 : index
    %c0_179 = arith.constant 0 : index
    %c0_180 = arith.constant 0 : index
    %341 = vector.load %arg32[%c0_178, %c0_179, %c0_180] : memref<2x1x32xf32, #tpu.memory_space<vmem>>, vector<1x1x32xf32>
    %342 = vector.shape_cast %341 : vector<1x1x32xf32> to vector<1x32xf32>
    %c0_181 = arith.constant 0 : index
    %c0_182 = arith.constant 0 : index
    %c0_183 = arith.constant 0 : index
    %343 = vector.load %arg33[%c0_181, %c0_182, %c0_183] : memref<2x32x32xbf16, #tpu.memory_space<vmem>>, vector<1x32x32xbf16>
    %344 = vector.shape_cast %343 : vector<1x32x32xbf16> to vector<32x32xbf16>
    %c0_184 = arith.constant 0 : index
    %c0_185 = arith.constant 0 : index
    %c0_186 = arith.constant 0 : index
    %345 = vector.load %arg34[%c0_184, %c0_185, %c0_186] : memref<2x1x32xf32, #tpu.memory_space<vmem>>, vector<1x1x32xf32>
    %346 = vector.shape_cast %345 : vector<1x1x32xf32> to vector<1x32xf32>
    %c0_187 = arith.constant 0 : index
    %c0_188 = arith.constant 0 : index
    %c0_189 = arith.constant 0 : index
    %347 = vector.load %arg35[%c0_187, %c0_188, %c0_189] : memref<2x32x32xbf16, #tpu.memory_space<vmem>>, vector<1x32x32xbf16>
    %348 = vector.shape_cast %347 : vector<1x32x32xbf16> to vector<32x32xbf16>
    %c0_190 = arith.constant 0 : index
    %c0_191 = arith.constant 0 : index
    %c0_192 = arith.constant 0 : index
    %349 = vector.load %arg36[%c0_190, %c0_191, %c0_192] : memref<2x1x32xf32, #tpu.memory_space<vmem>>, vector<1x1x32xf32>
    %350 = vector.shape_cast %349 : vector<1x1x32xf32> to vector<1x32xf32>
    %c0_193 = arith.constant 0 : index
    %c0_194 = arith.constant 0 : index
    %c0_195 = arith.constant 0 : index
    %351 = vector.load %arg37[%c0_193, %c0_194, %c0_195] : memref<2x32x64xbf16, #tpu.memory_space<vmem>>, vector<1x32x64xbf16>
    %352 = vector.shape_cast %351 : vector<1x32x64xbf16> to vector<32x64xbf16>
    %c0_196 = arith.constant 0 : index
    %c0_197 = arith.constant 0 : index
    %c0_198 = arith.constant 0 : index
    %353 = vector.load %arg38[%c0_196, %c0_197, %c0_198] : memref<2x1x64xf32, #tpu.memory_space<vmem>>, vector<1x1x64xf32>
    %354 = vector.shape_cast %353 : vector<1x1x64xf32> to vector<1x64xf32>
    %c0_199 = arith.constant 0 : index
    %c0_200 = arith.constant 0 : index
    %c0_201 = arith.constant 0 : index
    %355 = vector.load %arg39[%c0_199, %c0_200, %c0_201] : memref<2x64x32xbf16, #tpu.memory_space<vmem>>, vector<1x64x32xbf16>
    %356 = vector.shape_cast %355 : vector<1x64x32xbf16> to vector<64x32xbf16>
    %c0_202 = arith.constant 0 : index
    %c0_203 = arith.constant 0 : index
    %c0_204 = arith.constant 0 : index
    %357 = vector.load %arg40[%c0_202, %c0_203, %c0_204] : memref<2x1x32xf32, #tpu.memory_space<vmem>>, vector<1x1x32xf32>
    %358 = vector.shape_cast %357 : vector<1x1x32xf32> to vector<1x32xf32>
    %c0_205 = arith.constant 0 : index
    %c0_206 = arith.constant 0 : index
    %c0_207 = arith.constant 0 : index
    %359 = vector.load %arg41[%c0_205, %c0_206, %c0_207] : memref<2x1x32xf32, #tpu.memory_space<vmem>>, vector<1x1x32xf32>
    %360 = vector.shape_cast %359 : vector<1x1x32xf32> to vector<1x32xf32>
    %c0_208 = arith.constant 0 : index
    %c0_209 = arith.constant 0 : index
    %c0_210 = arith.constant 0 : index
    %361 = vector.load %arg42[%c0_208, %c0_209, %c0_210] : memref<2x1x32xf32, #tpu.memory_space<vmem>>, vector<1x1x32xf32>
    %362 = vector.shape_cast %361 : vector<1x1x32xf32> to vector<1x32xf32>
    %c0_211 = arith.constant 0 : index
    %c0_212 = arith.constant 0 : index
    %c0_213 = arith.constant 0 : index
    %363 = vector.load %arg43[%c0_211, %c0_212, %c0_213] : memref<2x1x32xf32, #tpu.memory_space<vmem>>, vector<1x1x32xf32>
    %364 = vector.shape_cast %363 : vector<1x1x32xf32> to vector<1x32xf32>
    %c0_214 = arith.constant 0 : index
    %c0_215 = arith.constant 0 : index
    %c0_216 = arith.constant 0 : index
    %365 = vector.load %arg44[%c0_214, %c0_215, %c0_216] : memref<2x1x32xf32, #tpu.memory_space<vmem>>, vector<1x1x32xf32>
    %366 = vector.shape_cast %365 : vector<1x1x32xf32> to vector<1x32xf32>
    %c0_217 = arith.constant 0 : index
    %c0_218 = arith.constant 0 : index
    %c0_219 = arith.constant 0 : index
    %367 = vector.load %arg45[%c0_217, %c0_218, %c0_219] : memref<2x1x32xf32, #tpu.memory_space<vmem>>, vector<1x1x32xf32>
    %368 = vector.shape_cast %367 : vector<1x1x32xf32> to vector<1x32xf32>
    %c0_220 = arith.constant 0 : index
    %c0_221 = arith.constant 0 : index
    %c0_222 = arith.constant 0 : index
    %369 = vector.load %arg46[%c0_220, %c0_221, %c0_222] : memref<2x1x32xf32, #tpu.memory_space<vmem>>, vector<1x1x32xf32>
    %370 = vector.shape_cast %369 : vector<1x1x32xf32> to vector<1x32xf32>
    %371 = arith.truncf %3 : vector<8x32xf32> to vector<8x32xbf16>
    %cst_223 = arith.constant dense<0.000000e+00> : vector<8x32xf32>
    %372 = tpu.matmul %371, %320, %cst_223 {dimension_numbers = #tpu.dot_dimension_numbers<[1], [0], [0], [1], [0, 0, 1, 1], [], []>} : vector<8x32xbf16>, vector<32x32xbf16>, vector<8x32xf32> -> vector<8x32xf32>
    %373 = vector.broadcast %322 : vector<1x32xf32> to vector<8x32xf32>
    %374 = arith.addf %372, %373 : vector<8x32xf32>
    %375 = arith.truncf %3 : vector<8x32xf32> to vector<8x32xbf16>
    %cst_224 = arith.constant dense<0.000000e+00> : vector<8x32xf32>
    %376 = tpu.matmul %375, %324, %cst_224 {dimension_numbers = #tpu.dot_dimension_numbers<[1], [0], [0], [1], [0, 0, 1, 1], [], []>} : vector<8x32xbf16>, vector<32x32xbf16>, vector<8x32xf32> -> vector<8x32xf32>
    %377 = vector.broadcast %326 : vector<1x32xf32> to vector<8x32xf32>
    %378 = arith.addf %376, %377 : vector<8x32xf32>
    %379 = arith.truncf %3 : vector<8x32xf32> to vector<8x32xbf16>
    %cst_225 = arith.constant dense<0.000000e+00> : vector<8x32xf32>
    %380 = tpu.matmul %379, %328, %cst_225 {dimension_numbers = #tpu.dot_dimension_numbers<[1], [0], [0], [1], [0, 0, 1, 1], [], []>} : vector<8x32xbf16>, vector<32x32xbf16>, vector<8x32xf32> -> vector<8x32xf32>
    %381 = vector.broadcast %330 : vector<1x32xf32> to vector<8x32xf32>
    %382 = arith.addf %380, %381 : vector<8x32xf32>
    %383 = vector.extract_strided_slice %374 {offsets = [0, 0], sizes = [8, 8], strides = [1, 1]} : vector<8x32xf32> to vector<8x8xf32>
    %384 = vector.extract_strided_slice %374 {offsets = [0, 8], sizes = [8, 8], strides = [1, 1]} : vector<8x32xf32> to vector<8x8xf32>
    %385 = vector.extract_strided_slice %374 {offsets = [0, 16], sizes = [8, 8], strides = [1, 1]} : vector<8x32xf32> to vector<8x8xf32>
    %386 = vector.extract_strided_slice %374 {offsets = [0, 24], sizes = [8, 8], strides = [1, 1]} : vector<8x32xf32> to vector<8x8xf32>
    %387 = vector.shape_cast %383 : vector<8x8xf32> to vector<1x8x8xf32>
    %388 = vector.shape_cast %384 : vector<8x8xf32> to vector<1x8x8xf32>
    %389 = vector.shape_cast %385 : vector<8x8xf32> to vector<1x8x8xf32>
    %390 = vector.shape_cast %386 : vector<8x8xf32> to vector<1x8x8xf32>
    %391 = tpu.concatenate %387, %388, %389, %390 in 0 : vector<1x8x8xf32>, vector<1x8x8xf32>, vector<1x8x8xf32>, vector<1x8x8xf32> -> vector<4x8x8xf32>
    %392 = vector.extract_strided_slice %378 {offsets = [0, 0], sizes = [8, 8], strides = [1, 1]} : vector<8x32xf32> to vector<8x8xf32>
    %393 = vector.extract_strided_slice %378 {offsets = [0, 8], sizes = [8, 8], strides = [1, 1]} : vector<8x32xf32> to vector<8x8xf32>
    %394 = vector.extract_strided_slice %378 {offsets = [0, 16], sizes = [8, 8], strides = [1, 1]} : vector<8x32xf32> to vector<8x8xf32>
    %395 = vector.extract_strided_slice %378 {offsets = [0, 24], sizes = [8, 8], strides = [1, 1]} : vector<8x32xf32> to vector<8x8xf32>
    %396 = vector.shape_cast %392 : vector<8x8xf32> to vector<1x8x8xf32>
    %397 = vector.shape_cast %393 : vector<8x8xf32> to vector<1x8x8xf32>
    %398 = vector.shape_cast %394 : vector<8x8xf32> to vector<1x8x8xf32>
    %399 = vector.shape_cast %395 : vector<8x8xf32> to vector<1x8x8xf32>
    %400 = tpu.concatenate %396, %397, %398, %399 in 0 : vector<1x8x8xf32>, vector<1x8x8xf32>, vector<1x8x8xf32>, vector<1x8x8xf32> -> vector<4x8x8xf32>
    %401 = vector.extract_strided_slice %382 {offsets = [0, 0], sizes = [8, 8], strides = [1, 1]} : vector<8x32xf32> to vector<8x8xf32>
    %402 = vector.extract_strided_slice %382 {offsets = [0, 8], sizes = [8, 8], strides = [1, 1]} : vector<8x32xf32> to vector<8x8xf32>
    %403 = vector.extract_strided_slice %382 {offsets = [0, 16], sizes = [8, 8], strides = [1, 1]} : vector<8x32xf32> to vector<8x8xf32>
    %404 = vector.extract_strided_slice %382 {offsets = [0, 24], sizes = [8, 8], strides = [1, 1]} : vector<8x32xf32> to vector<8x8xf32>
    %405 = vector.shape_cast %401 : vector<8x8xf32> to vector<1x8x8xf32>
    %406 = vector.shape_cast %402 : vector<8x8xf32> to vector<1x8x8xf32>
    %407 = vector.shape_cast %403 : vector<8x8xf32> to vector<1x8x8xf32>
    %408 = vector.shape_cast %404 : vector<8x8xf32> to vector<1x8x8xf32>
    %409 = tpu.concatenate %405, %406, %407, %408 in 0 : vector<1x8x8xf32>, vector<1x8x8xf32>, vector<1x8x8xf32>, vector<1x8x8xf32> -> vector<4x8x8xf32>
    %410 = arith.truncf %391 : vector<4x8x8xf32> to vector<4x8x8xbf16>
    %411 = arith.truncf %400 : vector<4x8x8xf32> to vector<4x8x8xbf16>
    "tpu.trace_start"() <{level = 10 : i32, message = "hqd,hkd->hqk"}> : () -> ()
    %cst_226 = arith.constant dense<0.000000e+00> : vector<4x8x8xf32>
    %412 = tpu.matmul %410, %411, %cst_226 {dimension_numbers = #tpu.dot_dimension_numbers<[2], [2], [1], [1], [0, 0, 0, 1, 1, 1], [0], [0]>} : vector<4x8x8xbf16>, vector<4x8x8xbf16>, vector<4x8x8xf32> -> vector<4x8x8xf32>
    "tpu.trace_stop"() : () -> ()
    %413 = vector.shape_cast %8 : vector<8x8xf32> to vector<1x8x8xf32>
    %414 = vector.broadcast %413 : vector<1x8x8xf32> to vector<4x8x8xf32>
    %415 = arith.addf %412, %414 : vector<4x8x8xf32>
    %cst_227 = arith.constant dense<0xFF800000> : vector<4x8xf32>
    %416 = vector.multi_reduction <maximumf>, %415, %cst_227 [2] : vector<4x8x8xf32> to vector<4x8xf32>
    %417 = vector.shape_cast %416 : vector<4x8xf32> to vector<4x8x1xf32>
    %418 = vector.broadcast %417 : vector<4x8x1xf32> to vector<4x8x8xf32>
    %419 = arith.subf %415, %418 : vector<4x8x8xf32>
    %420 = math.exp %419 : vector<4x8x8xf32>
    %cst_228 = arith.constant dense<0.000000e+00> : vector<4x8xf32>
    %421 = vector.multi_reduction <add>, %420, %cst_228 [2] : vector<4x8x8xf32> to vector<4x8xf32>
    %422 = vector.shape_cast %421 : vector<4x8xf32> to vector<4x8x1xf32>
    %423 = tpu.reciprocal %422 {approx = true} : vector<4x8x1xf32> -> vector<4x8x1xf32>
    %424 = vector.broadcast %423 : vector<4x8x1xf32> to vector<4x8x8xf32>
    %425 = arith.mulf %420, %424 : vector<4x8x8xf32>
    %426 = arith.truncf %425 : vector<4x8x8xf32> to vector<4x8x8xbf16>
    %427 = arith.truncf %409 : vector<4x8x8xf32> to vector<4x8x8xbf16>
    "tpu.trace_start"() <{level = 10 : i32, message = "hqk,hkd->hqd"}> : () -> ()
    %cst_229 = arith.constant dense<0.000000e+00> : vector<4x8x8xf32>
    %428 = tpu.matmul %426, %427, %cst_229 {dimension_numbers = #tpu.dot_dimension_numbers<[2], [1], [1], [2], [0, 0, 0, 1, 1, 2], [0], [0]>} : vector<4x8x8xbf16>, vector<4x8x8xbf16>, vector<4x8x8xf32> -> vector<4x8x8xf32>
    "tpu.trace_stop"() : () -> ()
    %429 = vector.extract_strided_slice %428 {offsets = [0, 0, 0], sizes = [1, 8, 8], strides = [1, 1, 1]} : vector<4x8x8xf32> to vector<1x8x8xf32>
    %430 = vector.shape_cast %429 : vector<1x8x8xf32> to vector<8x8xf32>
    %431 = vector.extract_strided_slice %428 {offsets = [1, 0, 0], sizes = [1, 8, 8], strides = [1, 1, 1]} : vector<4x8x8xf32> to vector<1x8x8xf32>
    %432 = vector.shape_cast %431 : vector<1x8x8xf32> to vector<8x8xf32>
    %433 = vector.extract_strided_slice %428 {offsets = [2, 0, 0], sizes = [1, 8, 8], strides = [1, 1, 1]} : vector<4x8x8xf32> to vector<1x8x8xf32>
    %434 = vector.shape_cast %433 : vector<1x8x8xf32> to vector<8x8xf32>
    %435 = vector.extract_strided_slice %428 {offsets = [3, 0, 0], sizes = [1, 8, 8], strides = [1, 1, 1]} : vector<4x8x8xf32> to vector<1x8x8xf32>
    %436 = vector.shape_cast %435 : vector<1x8x8xf32> to vector<8x8xf32>
    %437 = tpu.concatenate %430, %432, %434, %436 in 1 : vector<8x8xf32>, vector<8x8xf32>, vector<8x8xf32>, vector<8x8xf32> -> vector<8x32xf32>
    %438 = arith.truncf %437 : vector<8x32xf32> to vector<8x32xbf16>
    %cst_230 = arith.constant dense<0.000000e+00> : vector<8x32xf32>
    %439 = tpu.matmul %438, %332, %cst_230 {dimension_numbers = #tpu.dot_dimension_numbers<[1], [0], [0], [1], [0, 0, 1, 1], [], []>} : vector<8x32xbf16>, vector<32x32xbf16>, vector<8x32xf32> -> vector<8x32xf32>
    %440 = arith.addf %3, %439 : vector<8x32xf32>
    %441 = vector.broadcast %334 : vector<1x32xf32> to vector<8x32xf32>
    %442 = arith.addf %440, %441 : vector<8x32xf32>
    %cst_231 = arith.constant dense<0.000000e+00> : vector<8xf32>
    %443 = vector.multi_reduction <add>, %442, %cst_231 [1] : vector<8x32xf32> to vector<8xf32>
    %444 = vector.shape_cast %443 : vector<8xf32> to vector<8x1xf32>
    %cst_232 = arith.constant 3.200000e+01 : f32
    %445 = vector.broadcast %cst_232 : f32 to vector<8x1xf32>
    %446 = arith.divf %444, %445 : vector<8x1xf32>
    %447 = vector.broadcast %446 : vector<8x1xf32> to vector<8x32xf32>
    %448 = arith.subf %442, %447 : vector<8x32xf32>
    %449 = arith.mulf %448, %448 : vector<8x32xf32>
    %cst_233 = arith.constant dense<0.000000e+00> : vector<8xf32>
    %450 = vector.multi_reduction <add>, %449, %cst_233 [1] : vector<8x32xf32> to vector<8xf32>
    %451 = vector.shape_cast %450 : vector<8xf32> to vector<8x1xf32>
    %cst_234 = arith.constant 3.200000e+01 : f32
    %452 = vector.broadcast %cst_234 : f32 to vector<8x1xf32>
    %453 = arith.divf %451, %452 : vector<8x1xf32>
    %cst_235 = arith.constant 9.99999974E-6 : f32
    %454 = vector.broadcast %cst_235 : f32 to vector<8x1xf32>
    %455 = arith.addf %453, %454 : vector<8x1xf32>
    %456 = math.rsqrt %455 : vector<8x1xf32>
    %457 = vector.broadcast %456 : vector<8x1xf32> to vector<8x32xf32>
    %458 = arith.mulf %448, %457 : vector<8x32xf32>
    %459 = vector.broadcast %360 : vector<1x32xf32> to vector<8x32xf32>
    %460 = arith.mulf %458, %459 : vector<8x32xf32>
    %461 = vector.broadcast %362 : vector<1x32xf32> to vector<8x32xf32>
    %462 = arith.addf %460, %461 : vector<8x32xf32>
    %463 = arith.truncf %462 : vector<8x32xf32> to vector<8x32xbf16>
    %cst_236 = arith.constant dense<0.000000e+00> : vector<8x32xf32>
    %464 = tpu.matmul %463, %336, %cst_236 {dimension_numbers = #tpu.dot_dimension_numbers<[1], [0], [0], [1], [0, 0, 1, 1], [], []>} : vector<8x32xbf16>, vector<32x32xbf16>, vector<8x32xf32> -> vector<8x32xf32>
    %465 = vector.broadcast %338 : vector<1x32xf32> to vector<8x32xf32>
    %466 = arith.addf %464, %465 : vector<8x32xf32>
    %467 = arith.truncf %318 : vector<8x32xf32> to vector<8x32xbf16>
    %cst_237 = arith.constant dense<0.000000e+00> : vector<8x32xf32>
    %468 = tpu.matmul %467, %340, %cst_237 {dimension_numbers = #tpu.dot_dimension_numbers<[1], [0], [0], [1], [0, 0, 1, 1], [], []>} : vector<8x32xbf16>, vector<32x32xbf16>, vector<8x32xf32> -> vector<8x32xf32>
    %469 = vector.broadcast %342 : vector<1x32xf32> to vector<8x32xf32>
    %470 = arith.addf %468, %469 : vector<8x32xf32>
    %471 = arith.truncf %318 : vector<8x32xf32> to vector<8x32xbf16>
    %cst_238 = arith.constant dense<0.000000e+00> : vector<8x32xf32>
    %472 = tpu.matmul %471, %344, %cst_238 {dimension_numbers = #tpu.dot_dimension_numbers<[1], [0], [0], [1], [0, 0, 1, 1], [], []>} : vector<8x32xbf16>, vector<32x32xbf16>, vector<8x32xf32> -> vector<8x32xf32>
    %473 = vector.broadcast %346 : vector<1x32xf32> to vector<8x32xf32>
    %474 = arith.addf %472, %473 : vector<8x32xf32>
    %475 = vector.extract_strided_slice %466 {offsets = [0, 0], sizes = [8, 8], strides = [1, 1]} : vector<8x32xf32> to vector<8x8xf32>
    %476 = vector.extract_strided_slice %466 {offsets = [0, 8], sizes = [8, 8], strides = [1, 1]} : vector<8x32xf32> to vector<8x8xf32>
    %477 = vector.extract_strided_slice %466 {offsets = [0, 16], sizes = [8, 8], strides = [1, 1]} : vector<8x32xf32> to vector<8x8xf32>
    %478 = vector.extract_strided_slice %466 {offsets = [0, 24], sizes = [8, 8], strides = [1, 1]} : vector<8x32xf32> to vector<8x8xf32>
    %479 = vector.shape_cast %475 : vector<8x8xf32> to vector<1x8x8xf32>
    %480 = vector.shape_cast %476 : vector<8x8xf32> to vector<1x8x8xf32>
    %481 = vector.shape_cast %477 : vector<8x8xf32> to vector<1x8x8xf32>
    %482 = vector.shape_cast %478 : vector<8x8xf32> to vector<1x8x8xf32>
    %483 = tpu.concatenate %479, %480, %481, %482 in 0 : vector<1x8x8xf32>, vector<1x8x8xf32>, vector<1x8x8xf32>, vector<1x8x8xf32> -> vector<4x8x8xf32>
    %484 = vector.extract_strided_slice %470 {offsets = [0, 0], sizes = [8, 8], strides = [1, 1]} : vector<8x32xf32> to vector<8x8xf32>
    %485 = vector.extract_strided_slice %470 {offsets = [0, 8], sizes = [8, 8], strides = [1, 1]} : vector<8x32xf32> to vector<8x8xf32>
    %486 = vector.extract_strided_slice %470 {offsets = [0, 16], sizes = [8, 8], strides = [1, 1]} : vector<8x32xf32> to vector<8x8xf32>
    %487 = vector.extract_strided_slice %470 {offsets = [0, 24], sizes = [8, 8], strides = [1, 1]} : vector<8x32xf32> to vector<8x8xf32>
    %488 = vector.shape_cast %484 : vector<8x8xf32> to vector<1x8x8xf32>
    %489 = vector.shape_cast %485 : vector<8x8xf32> to vector<1x8x8xf32>
    %490 = vector.shape_cast %486 : vector<8x8xf32> to vector<1x8x8xf32>
    %491 = vector.shape_cast %487 : vector<8x8xf32> to vector<1x8x8xf32>
    %492 = tpu.concatenate %488, %489, %490, %491 in 0 : vector<1x8x8xf32>, vector<1x8x8xf32>, vector<1x8x8xf32>, vector<1x8x8xf32> -> vector<4x8x8xf32>
    %493 = vector.extract_strided_slice %474 {offsets = [0, 0], sizes = [8, 8], strides = [1, 1]} : vector<8x32xf32> to vector<8x8xf32>
    %494 = vector.extract_strided_slice %474 {offsets = [0, 8], sizes = [8, 8], strides = [1, 1]} : vector<8x32xf32> to vector<8x8xf32>
    %495 = vector.extract_strided_slice %474 {offsets = [0, 16], sizes = [8, 8], strides = [1, 1]} : vector<8x32xf32> to vector<8x8xf32>
    %496 = vector.extract_strided_slice %474 {offsets = [0, 24], sizes = [8, 8], strides = [1, 1]} : vector<8x32xf32> to vector<8x8xf32>
    %497 = vector.shape_cast %493 : vector<8x8xf32> to vector<1x8x8xf32>
    %498 = vector.shape_cast %494 : vector<8x8xf32> to vector<1x8x8xf32>
    %499 = vector.shape_cast %495 : vector<8x8xf32> to vector<1x8x8xf32>
    %500 = vector.shape_cast %496 : vector<8x8xf32> to vector<1x8x8xf32>
    %501 = tpu.concatenate %497, %498, %499, %500 in 0 : vector<1x8x8xf32>, vector<1x8x8xf32>, vector<1x8x8xf32>, vector<1x8x8xf32> -> vector<4x8x8xf32>
    %502 = arith.truncf %483 : vector<4x8x8xf32> to vector<4x8x8xbf16>
    %503 = arith.truncf %492 : vector<4x8x8xf32> to vector<4x8x8xbf16>
    "tpu.trace_start"() <{level = 10 : i32, message = "hqd,hkd->hqk"}> : () -> ()
    %cst_239 = arith.constant dense<0.000000e+00> : vector<4x8x8xf32>
    %504 = tpu.matmul %502, %503, %cst_239 {dimension_numbers = #tpu.dot_dimension_numbers<[2], [2], [1], [1], [0, 0, 0, 1, 1, 1], [0], [0]>} : vector<4x8x8xbf16>, vector<4x8x8xbf16>, vector<4x8x8xf32> -> vector<4x8x8xf32>
    "tpu.trace_stop"() : () -> ()
    %505 = vector.shape_cast %8 : vector<8x8xf32> to vector<1x8x8xf32>
    %506 = vector.broadcast %505 : vector<1x8x8xf32> to vector<4x8x8xf32>
    %507 = arith.addf %504, %506 : vector<4x8x8xf32>
    %cst_240 = arith.constant dense<0xFF800000> : vector<4x8xf32>
    %508 = vector.multi_reduction <maximumf>, %507, %cst_240 [2] : vector<4x8x8xf32> to vector<4x8xf32>
    %509 = vector.shape_cast %508 : vector<4x8xf32> to vector<4x8x1xf32>
    %510 = vector.broadcast %509 : vector<4x8x1xf32> to vector<4x8x8xf32>
    %511 = arith.subf %507, %510 : vector<4x8x8xf32>
    %512 = math.exp %511 : vector<4x8x8xf32>
    %cst_241 = arith.constant dense<0.000000e+00> : vector<4x8xf32>
    %513 = vector.multi_reduction <add>, %512, %cst_241 [2] : vector<4x8x8xf32> to vector<4x8xf32>
    %514 = vector.shape_cast %513 : vector<4x8xf32> to vector<4x8x1xf32>
    %515 = tpu.reciprocal %514 {approx = true} : vector<4x8x1xf32> -> vector<4x8x1xf32>
    %516 = vector.broadcast %515 : vector<4x8x1xf32> to vector<4x8x8xf32>
    %517 = arith.mulf %512, %516 : vector<4x8x8xf32>
    %518 = arith.truncf %517 : vector<4x8x8xf32> to vector<4x8x8xbf16>
    %519 = arith.truncf %501 : vector<4x8x8xf32> to vector<4x8x8xbf16>
    "tpu.trace_start"() <{level = 10 : i32, message = "hqk,hkd->hqd"}> : () -> ()
    %cst_242 = arith.constant dense<0.000000e+00> : vector<4x8x8xf32>
    %520 = tpu.matmul %518, %519, %cst_242 {dimension_numbers = #tpu.dot_dimension_numbers<[2], [1], [1], [2], [0, 0, 0, 1, 1, 2], [0], [0]>} : vector<4x8x8xbf16>, vector<4x8x8xbf16>, vector<4x8x8xf32> -> vector<4x8x8xf32>
    "tpu.trace_stop"() : () -> ()
    %521 = vector.extract_strided_slice %520 {offsets = [0, 0, 0], sizes = [1, 8, 8], strides = [1, 1, 1]} : vector<4x8x8xf32> to vector<1x8x8xf32>
    %522 = vector.shape_cast %521 : vector<1x8x8xf32> to vector<8x8xf32>
    %523 = vector.extract_strided_slice %520 {offsets = [1, 0, 0], sizes = [1, 8, 8], strides = [1, 1, 1]} : vector<4x8x8xf32> to vector<1x8x8xf32>
    %524 = vector.shape_cast %523 : vector<1x8x8xf32> to vector<8x8xf32>
    %525 = vector.extract_strided_slice %520 {offsets = [2, 0, 0], sizes = [1, 8, 8], strides = [1, 1, 1]} : vector<4x8x8xf32> to vector<1x8x8xf32>
    %526 = vector.shape_cast %525 : vector<1x8x8xf32> to vector<8x8xf32>
    %527 = vector.extract_strided_slice %520 {offsets = [3, 0, 0], sizes = [1, 8, 8], strides = [1, 1, 1]} : vector<4x8x8xf32> to vector<1x8x8xf32>
    %528 = vector.shape_cast %527 : vector<1x8x8xf32> to vector<8x8xf32>
    %529 = tpu.concatenate %522, %524, %526, %528 in 1 : vector<8x8xf32>, vector<8x8xf32>, vector<8x8xf32>, vector<8x8xf32> -> vector<8x32xf32>
    %530 = arith.truncf %529 : vector<8x32xf32> to vector<8x32xbf16>
    %cst_243 = arith.constant dense<0.000000e+00> : vector<8x32xf32>
    %531 = tpu.matmul %530, %348, %cst_243 {dimension_numbers = #tpu.dot_dimension_numbers<[1], [0], [0], [1], [0, 0, 1, 1], [], []>} : vector<8x32xbf16>, vector<32x32xbf16>, vector<8x32xf32> -> vector<8x32xf32>
    %532 = arith.addf %462, %531 : vector<8x32xf32>
    %533 = vector.broadcast %350 : vector<1x32xf32> to vector<8x32xf32>
    %534 = arith.addf %532, %533 : vector<8x32xf32>
    %cst_244 = arith.constant dense<0.000000e+00> : vector<8xf32>
    %535 = vector.multi_reduction <add>, %534, %cst_244 [1] : vector<8x32xf32> to vector<8xf32>
    %536 = vector.shape_cast %535 : vector<8xf32> to vector<8x1xf32>
    %cst_245 = arith.constant 3.200000e+01 : f32
    %537 = vector.broadcast %cst_245 : f32 to vector<8x1xf32>
    %538 = arith.divf %536, %537 : vector<8x1xf32>
    %539 = vector.broadcast %538 : vector<8x1xf32> to vector<8x32xf32>
    %540 = arith.subf %534, %539 : vector<8x32xf32>
    %541 = arith.mulf %540, %540 : vector<8x32xf32>
    %cst_246 = arith.constant dense<0.000000e+00> : vector<8xf32>
    %542 = vector.multi_reduction <add>, %541, %cst_246 [1] : vector<8x32xf32> to vector<8xf32>
    %543 = vector.shape_cast %542 : vector<8xf32> to vector<8x1xf32>
    %cst_247 = arith.constant 3.200000e+01 : f32
    %544 = vector.broadcast %cst_247 : f32 to vector<8x1xf32>
    %545 = arith.divf %543, %544 : vector<8x1xf32>
    %cst_248 = arith.constant 9.99999974E-6 : f32
    %546 = vector.broadcast %cst_248 : f32 to vector<8x1xf32>
    %547 = arith.addf %545, %546 : vector<8x1xf32>
    %548 = math.rsqrt %547 : vector<8x1xf32>
    %549 = vector.broadcast %548 : vector<8x1xf32> to vector<8x32xf32>
    %550 = arith.mulf %540, %549 : vector<8x32xf32>
    %551 = vector.broadcast %364 : vector<1x32xf32> to vector<8x32xf32>
    %552 = arith.mulf %550, %551 : vector<8x32xf32>
    %553 = vector.broadcast %366 : vector<1x32xf32> to vector<8x32xf32>
    %554 = arith.addf %552, %553 : vector<8x32xf32>
    %555 = arith.truncf %554 : vector<8x32xf32> to vector<8x32xbf16>
    %cst_249 = arith.constant dense<0.000000e+00> : vector<8x64xf32>
    %556 = tpu.matmul %555, %352, %cst_249 {dimension_numbers = #tpu.dot_dimension_numbers<[1], [0], [0], [1], [0, 0, 1, 1], [], []>} : vector<8x32xbf16>, vector<32x64xbf16>, vector<8x64xf32> -> vector<8x64xf32>
    %557 = vector.broadcast %354 : vector<1x64xf32> to vector<8x64xf32>
    %558 = arith.addf %556, %557 : vector<8x64xf32>
    %cst_250 = arith.constant 0.000000e+00 : f32
    %559 = vector.broadcast %cst_250 : f32 to vector<8x64xf32>
    %560 = arith.maximumf %558, %559 : vector<8x64xf32>
    %561 = arith.truncf %560 : vector<8x64xf32> to vector<8x64xbf16>
    %cst_251 = arith.constant dense<0.000000e+00> : vector<8x32xf32>
    %562 = tpu.matmul %561, %356, %cst_251 {dimension_numbers = #tpu.dot_dimension_numbers<[1], [0], [0], [1], [0, 0, 1, 1], [], []>} : vector<8x64xbf16>, vector<64x32xbf16>, vector<8x32xf32> -> vector<8x32xf32>
    %563 = arith.addf %554, %562 : vector<8x32xf32>
    %564 = vector.broadcast %358 : vector<1x32xf32> to vector<8x32xf32>
    %565 = arith.addf %563, %564 : vector<8x32xf32>
    %cst_252 = arith.constant dense<0.000000e+00> : vector<8xf32>
    %566 = vector.multi_reduction <add>, %565, %cst_252 [1] : vector<8x32xf32> to vector<8xf32>
    %567 = vector.shape_cast %566 : vector<8xf32> to vector<8x1xf32>
    %cst_253 = arith.constant 3.200000e+01 : f32
    %568 = vector.broadcast %cst_253 : f32 to vector<8x1xf32>
    %569 = arith.divf %567, %568 : vector<8x1xf32>
    %570 = vector.broadcast %569 : vector<8x1xf32> to vector<8x32xf32>
    %571 = arith.subf %565, %570 : vector<8x32xf32>
    %572 = arith.mulf %571, %571 : vector<8x32xf32>
    %cst_254 = arith.constant dense<0.000000e+00> : vector<8xf32>
    %573 = vector.multi_reduction <add>, %572, %cst_254 [1] : vector<8x32xf32> to vector<8xf32>
    %574 = vector.shape_cast %573 : vector<8xf32> to vector<8x1xf32>
    %cst_255 = arith.constant 3.200000e+01 : f32
    %575 = vector.broadcast %cst_255 : f32 to vector<8x1xf32>
    %576 = arith.divf %574, %575 : vector<8x1xf32>
    %cst_256 = arith.constant 9.99999974E-6 : f32
    %577 = vector.broadcast %cst_256 : f32 to vector<8x1xf32>
    %578 = arith.addf %576, %577 : vector<8x1xf32>
    %579 = math.rsqrt %578 : vector<8x1xf32>
    %580 = vector.broadcast %579 : vector<8x1xf32> to vector<8x32xf32>
    %581 = arith.mulf %571, %580 : vector<8x32xf32>
    %582 = vector.broadcast %368 : vector<1x32xf32> to vector<8x32xf32>
    %583 = arith.mulf %581, %582 : vector<8x32xf32>
    %584 = vector.broadcast %370 : vector<1x32xf32> to vector<8x32xf32>
    %585 = arith.addf %583, %584 : vector<8x32xf32>
    %c1_257 = arith.constant 1 : index
    %c0_258 = arith.constant 0 : index
    %c0_259 = arith.constant 0 : index
    %586 = vector.load %arg21[%c1_257, %c0_258, %c0_259] : memref<2x32x32xbf16, #tpu.memory_space<vmem>>, vector<1x32x32xbf16>
    %587 = vector.shape_cast %586 : vector<1x32x32xbf16> to vector<32x32xbf16>
    %c1_260 = arith.constant 1 : index
    %c0_261 = arith.constant 0 : index
    %c0_262 = arith.constant 0 : index
    %588 = vector.load %arg22[%c1_260, %c0_261, %c0_262] : memref<2x1x32xf32, #tpu.memory_space<vmem>>, vector<1x1x32xf32>
    %589 = vector.shape_cast %588 : vector<1x1x32xf32> to vector<1x32xf32>
    %c1_263 = arith.constant 1 : index
    %c0_264 = arith.constant 0 : index
    %c0_265 = arith.constant 0 : index
    %590 = vector.load %arg23[%c1_263, %c0_264, %c0_265] : memref<2x32x32xbf16, #tpu.memory_space<vmem>>, vector<1x32x32xbf16>
    %591 = vector.shape_cast %590 : vector<1x32x32xbf16> to vector<32x32xbf16>
    %c1_266 = arith.constant 1 : index
    %c0_267 = arith.constant 0 : index
    %c0_268 = arith.constant 0 : index
    %592 = vector.load %arg24[%c1_266, %c0_267, %c0_268] : memref<2x1x32xf32, #tpu.memory_space<vmem>>, vector<1x1x32xf32>
    %593 = vector.shape_cast %592 : vector<1x1x32xf32> to vector<1x32xf32>
    %c1_269 = arith.constant 1 : index
    %c0_270 = arith.constant 0 : index
    %c0_271 = arith.constant 0 : index
    %594 = vector.load %arg25[%c1_269, %c0_270, %c0_271] : memref<2x32x32xbf16, #tpu.memory_space<vmem>>, vector<1x32x32xbf16>
    %595 = vector.shape_cast %594 : vector<1x32x32xbf16> to vector<32x32xbf16>
    %c1_272 = arith.constant 1 : index
    %c0_273 = arith.constant 0 : index
    %c0_274 = arith.constant 0 : index
    %596 = vector.load %arg26[%c1_272, %c0_273, %c0_274] : memref<2x1x32xf32, #tpu.memory_space<vmem>>, vector<1x1x32xf32>
    %597 = vector.shape_cast %596 : vector<1x1x32xf32> to vector<1x32xf32>
    %c1_275 = arith.constant 1 : index
    %c0_276 = arith.constant 0 : index
    %c0_277 = arith.constant 0 : index
    %598 = vector.load %arg27[%c1_275, %c0_276, %c0_277] : memref<2x32x32xbf16, #tpu.memory_space<vmem>>, vector<1x32x32xbf16>
    %599 = vector.shape_cast %598 : vector<1x32x32xbf16> to vector<32x32xbf16>
    %c1_278 = arith.constant 1 : index
    %c0_279 = arith.constant 0 : index
    %c0_280 = arith.constant 0 : index
    %600 = vector.load %arg28[%c1_278, %c0_279, %c0_280] : memref<2x1x32xf32, #tpu.memory_space<vmem>>, vector<1x1x32xf32>
    %601 = vector.shape_cast %600 : vector<1x1x32xf32> to vector<1x32xf32>
    %c1_281 = arith.constant 1 : index
    %c0_282 = arith.constant 0 : index
    %c0_283 = arith.constant 0 : index
    %602 = vector.load %arg29[%c1_281, %c0_282, %c0_283] : memref<2x32x32xbf16, #tpu.memory_space<vmem>>, vector<1x32x32xbf16>
    %603 = vector.shape_cast %602 : vector<1x32x32xbf16> to vector<32x32xbf16>
    %c1_284 = arith.constant 1 : index
    %c0_285 = arith.constant 0 : index
    %c0_286 = arith.constant 0 : index
    %604 = vector.load %arg30[%c1_284, %c0_285, %c0_286] : memref<2x1x32xf32, #tpu.memory_space<vmem>>, vector<1x1x32xf32>
    %605 = vector.shape_cast %604 : vector<1x1x32xf32> to vector<1x32xf32>
    %c1_287 = arith.constant 1 : index
    %c0_288 = arith.constant 0 : index
    %c0_289 = arith.constant 0 : index
    %606 = vector.load %arg31[%c1_287, %c0_288, %c0_289] : memref<2x32x32xbf16, #tpu.memory_space<vmem>>, vector<1x32x32xbf16>
    %607 = vector.shape_cast %606 : vector<1x32x32xbf16> to vector<32x32xbf16>
    %c1_290 = arith.constant 1 : index
    %c0_291 = arith.constant 0 : index
    %c0_292 = arith.constant 0 : index
    %608 = vector.load %arg32[%c1_290, %c0_291, %c0_292] : memref<2x1x32xf32, #tpu.memory_space<vmem>>, vector<1x1x32xf32>
    %609 = vector.shape_cast %608 : vector<1x1x32xf32> to vector<1x32xf32>
    %c1_293 = arith.constant 1 : index
    %c0_294 = arith.constant 0 : index
    %c0_295 = arith.constant 0 : index
    %610 = vector.load %arg33[%c1_293, %c0_294, %c0_295] : memref<2x32x32xbf16, #tpu.memory_space<vmem>>, vector<1x32x32xbf16>
    %611 = vector.shape_cast %610 : vector<1x32x32xbf16> to vector<32x32xbf16>
    %c1_296 = arith.constant 1 : index
    %c0_297 = arith.constant 0 : index
    %c0_298 = arith.constant 0 : index
    %612 = vector.load %arg34[%c1_296, %c0_297, %c0_298] : memref<2x1x32xf32, #tpu.memory_space<vmem>>, vector<1x1x32xf32>
    %613 = vector.shape_cast %612 : vector<1x1x32xf32> to vector<1x32xf32>
    %c1_299 = arith.constant 1 : index
    %c0_300 = arith.constant 0 : index
    %c0_301 = arith.constant 0 : index
    %614 = vector.load %arg35[%c1_299, %c0_300, %c0_301] : memref<2x32x32xbf16, #tpu.memory_space<vmem>>, vector<1x32x32xbf16>
    %615 = vector.shape_cast %614 : vector<1x32x32xbf16> to vector<32x32xbf16>
    %c1_302 = arith.constant 1 : index
    %c0_303 = arith.constant 0 : index
    %c0_304 = arith.constant 0 : index
    %616 = vector.load %arg36[%c1_302, %c0_303, %c0_304] : memref<2x1x32xf32, #tpu.memory_space<vmem>>, vector<1x1x32xf32>
    %617 = vector.shape_cast %616 : vector<1x1x32xf32> to vector<1x32xf32>
    %c1_305 = arith.constant 1 : index
    %c0_306 = arith.constant 0 : index
    %c0_307 = arith.constant 0 : index
    %618 = vector.load %arg37[%c1_305, %c0_306, %c0_307] : memref<2x32x64xbf16, #tpu.memory_space<vmem>>, vector<1x32x64xbf16>
    %619 = vector.shape_cast %618 : vector<1x32x64xbf16> to vector<32x64xbf16>
    %c1_308 = arith.constant 1 : index
    %c0_309 = arith.constant 0 : index
    %c0_310 = arith.constant 0 : index
    %620 = vector.load %arg38[%c1_308, %c0_309, %c0_310] : memref<2x1x64xf32, #tpu.memory_space<vmem>>, vector<1x1x64xf32>
    %621 = vector.shape_cast %620 : vector<1x1x64xf32> to vector<1x64xf32>
    %c1_311 = arith.constant 1 : index
    %c0_312 = arith.constant 0 : index
    %c0_313 = arith.constant 0 : index
    %622 = vector.load %arg39[%c1_311, %c0_312, %c0_313] : memref<2x64x32xbf16, #tpu.memory_space<vmem>>, vector<1x64x32xbf16>
    %623 = vector.shape_cast %622 : vector<1x64x32xbf16> to vector<64x32xbf16>
    %c1_314 = arith.constant 1 : index
    %c0_315 = arith.constant 0 : index
    %c0_316 = arith.constant 0 : index
    %624 = vector.load %arg40[%c1_314, %c0_315, %c0_316] : memref<2x1x32xf32, #tpu.memory_space<vmem>>, vector<1x1x32xf32>
    %625 = vector.shape_cast %624 : vector<1x1x32xf32> to vector<1x32xf32>
    %c1_317 = arith.constant 1 : index
    %c0_318 = arith.constant 0 : index
    %c0_319 = arith.constant 0 : index
    %626 = vector.load %arg41[%c1_317, %c0_318, %c0_319] : memref<2x1x32xf32, #tpu.memory_space<vmem>>, vector<1x1x32xf32>
    %627 = vector.shape_cast %626 : vector<1x1x32xf32> to vector<1x32xf32>
    %c1_320 = arith.constant 1 : index
    %c0_321 = arith.constant 0 : index
    %c0_322 = arith.constant 0 : index
    %628 = vector.load %arg42[%c1_320, %c0_321, %c0_322] : memref<2x1x32xf32, #tpu.memory_space<vmem>>, vector<1x1x32xf32>
    %629 = vector.shape_cast %628 : vector<1x1x32xf32> to vector<1x32xf32>
    %c1_323 = arith.constant 1 : index
    %c0_324 = arith.constant 0 : index
    %c0_325 = arith.constant 0 : index
    %630 = vector.load %arg43[%c1_323, %c0_324, %c0_325] : memref<2x1x32xf32, #tpu.memory_space<vmem>>, vector<1x1x32xf32>
    %631 = vector.shape_cast %630 : vector<1x1x32xf32> to vector<1x32xf32>
    %c1_326 = arith.constant 1 : index
    %c0_327 = arith.constant 0 : index
    %c0_328 = arith.constant 0 : index
    %632 = vector.load %arg44[%c1_326, %c0_327, %c0_328] : memref<2x1x32xf32, #tpu.memory_space<vmem>>, vector<1x1x32xf32>
    %633 = vector.shape_cast %632 : vector<1x1x32xf32> to vector<1x32xf32>
    %c1_329 = arith.constant 1 : index
    %c0_330 = arith.constant 0 : index
    %c0_331 = arith.constant 0 : index
    %634 = vector.load %arg45[%c1_329, %c0_330, %c0_331] : memref<2x1x32xf32, #tpu.memory_space<vmem>>, vector<1x1x32xf32>
    %635 = vector.shape_cast %634 : vector<1x1x32xf32> to vector<1x32xf32>
    %c1_332 = arith.constant 1 : index
    %c0_333 = arith.constant 0 : index
    %c0_334 = arith.constant 0 : index
    %636 = vector.load %arg46[%c1_332, %c0_333, %c0_334] : memref<2x1x32xf32, #tpu.memory_space<vmem>>, vector<1x1x32xf32>
    %637 = vector.shape_cast %636 : vector<1x1x32xf32> to vector<1x32xf32>
    %638 = arith.truncf %585 : vector<8x32xf32> to vector<8x32xbf16>
    %cst_335 = arith.constant dense<0.000000e+00> : vector<8x32xf32>
    %639 = tpu.matmul %638, %587, %cst_335 {dimension_numbers = #tpu.dot_dimension_numbers<[1], [0], [0], [1], [0, 0, 1, 1], [], []>} : vector<8x32xbf16>, vector<32x32xbf16>, vector<8x32xf32> -> vector<8x32xf32>
    %640 = vector.broadcast %589 : vector<1x32xf32> to vector<8x32xf32>
    %641 = arith.addf %639, %640 : vector<8x32xf32>
    %642 = arith.truncf %585 : vector<8x32xf32> to vector<8x32xbf16>
    %cst_336 = arith.constant dense<0.000000e+00> : vector<8x32xf32>
    %643 = tpu.matmul %642, %591, %cst_336 {dimension_numbers = #tpu.dot_dimension_numbers<[1], [0], [0], [1], [0, 0, 1, 1], [], []>} : vector<8x32xbf16>, vector<32x32xbf16>, vector<8x32xf32> -> vector<8x32xf32>
    %644 = vector.broadcast %593 : vector<1x32xf32> to vector<8x32xf32>
    %645 = arith.addf %643, %644 : vector<8x32xf32>
    %646 = arith.truncf %585 : vector<8x32xf32> to vector<8x32xbf16>
    %cst_337 = arith.constant dense<0.000000e+00> : vector<8x32xf32>
    %647 = tpu.matmul %646, %595, %cst_337 {dimension_numbers = #tpu.dot_dimension_numbers<[1], [0], [0], [1], [0, 0, 1, 1], [], []>} : vector<8x32xbf16>, vector<32x32xbf16>, vector<8x32xf32> -> vector<8x32xf32>
    %648 = vector.broadcast %597 : vector<1x32xf32> to vector<8x32xf32>
    %649 = arith.addf %647, %648 : vector<8x32xf32>
    %650 = vector.extract_strided_slice %641 {offsets = [0, 0], sizes = [8, 8], strides = [1, 1]} : vector<8x32xf32> to vector<8x8xf32>
    %651 = vector.extract_strided_slice %641 {offsets = [0, 8], sizes = [8, 8], strides = [1, 1]} : vector<8x32xf32> to vector<8x8xf32>
    %652 = vector.extract_strided_slice %641 {offsets = [0, 16], sizes = [8, 8], strides = [1, 1]} : vector<8x32xf32> to vector<8x8xf32>
    %653 = vector.extract_strided_slice %641 {offsets = [0, 24], sizes = [8, 8], strides = [1, 1]} : vector<8x32xf32> to vector<8x8xf32>
    %654 = vector.shape_cast %650 : vector<8x8xf32> to vector<1x8x8xf32>
    %655 = vector.shape_cast %651 : vector<8x8xf32> to vector<1x8x8xf32>
    %656 = vector.shape_cast %652 : vector<8x8xf32> to vector<1x8x8xf32>
    %657 = vector.shape_cast %653 : vector<8x8xf32> to vector<1x8x8xf32>
    %658 = tpu.concatenate %654, %655, %656, %657 in 0 : vector<1x8x8xf32>, vector<1x8x8xf32>, vector<1x8x8xf32>, vector<1x8x8xf32> -> vector<4x8x8xf32>
    %659 = vector.extract_strided_slice %645 {offsets = [0, 0], sizes = [8, 8], strides = [1, 1]} : vector<8x32xf32> to vector<8x8xf32>
    %660 = vector.extract_strided_slice %645 {offsets = [0, 8], sizes = [8, 8], strides = [1, 1]} : vector<8x32xf32> to vector<8x8xf32>
    %661 = vector.extract_strided_slice %645 {offsets = [0, 16], sizes = [8, 8], strides = [1, 1]} : vector<8x32xf32> to vector<8x8xf32>
    %662 = vector.extract_strided_slice %645 {offsets = [0, 24], sizes = [8, 8], strides = [1, 1]} : vector<8x32xf32> to vector<8x8xf32>
    %663 = vector.shape_cast %659 : vector<8x8xf32> to vector<1x8x8xf32>
    %664 = vector.shape_cast %660 : vector<8x8xf32> to vector<1x8x8xf32>
    %665 = vector.shape_cast %661 : vector<8x8xf32> to vector<1x8x8xf32>
    %666 = vector.shape_cast %662 : vector<8x8xf32> to vector<1x8x8xf32>
    %667 = tpu.concatenate %663, %664, %665, %666 in 0 : vector<1x8x8xf32>, vector<1x8x8xf32>, vector<1x8x8xf32>, vector<1x8x8xf32> -> vector<4x8x8xf32>
    %668 = vector.extract_strided_slice %649 {offsets = [0, 0], sizes = [8, 8], strides = [1, 1]} : vector<8x32xf32> to vector<8x8xf32>
    %669 = vector.extract_strided_slice %649 {offsets = [0, 8], sizes = [8, 8], strides = [1, 1]} : vector<8x32xf32> to vector<8x8xf32>
    %670 = vector.extract_strided_slice %649 {offsets = [0, 16], sizes = [8, 8], strides = [1, 1]} : vector<8x32xf32> to vector<8x8xf32>
    %671 = vector.extract_strided_slice %649 {offsets = [0, 24], sizes = [8, 8], strides = [1, 1]} : vector<8x32xf32> to vector<8x8xf32>
    %672 = vector.shape_cast %668 : vector<8x8xf32> to vector<1x8x8xf32>
    %673 = vector.shape_cast %669 : vector<8x8xf32> to vector<1x8x8xf32>
    %674 = vector.shape_cast %670 : vector<8x8xf32> to vector<1x8x8xf32>
    %675 = vector.shape_cast %671 : vector<8x8xf32> to vector<1x8x8xf32>
    %676 = tpu.concatenate %672, %673, %674, %675 in 0 : vector<1x8x8xf32>, vector<1x8x8xf32>, vector<1x8x8xf32>, vector<1x8x8xf32> -> vector<4x8x8xf32>
    %677 = arith.truncf %658 : vector<4x8x8xf32> to vector<4x8x8xbf16>
    %678 = arith.truncf %667 : vector<4x8x8xf32> to vector<4x8x8xbf16>
    "tpu.trace_start"() <{level = 10 : i32, message = "hqd,hkd->hqk"}> : () -> ()
    %cst_338 = arith.constant dense<0.000000e+00> : vector<4x8x8xf32>
    %679 = tpu.matmul %677, %678, %cst_338 {dimension_numbers = #tpu.dot_dimension_numbers<[2], [2], [1], [1], [0, 0, 0, 1, 1, 1], [0], [0]>} : vector<4x8x8xbf16>, vector<4x8x8xbf16>, vector<4x8x8xf32> -> vector<4x8x8xf32>
    "tpu.trace_stop"() : () -> ()
    %680 = vector.shape_cast %8 : vector<8x8xf32> to vector<1x8x8xf32>
    %681 = vector.broadcast %680 : vector<1x8x8xf32> to vector<4x8x8xf32>
    %682 = arith.addf %679, %681 : vector<4x8x8xf32>
    %cst_339 = arith.constant dense<0xFF800000> : vector<4x8xf32>
    %683 = vector.multi_reduction <maximumf>, %682, %cst_339 [2] : vector<4x8x8xf32> to vector<4x8xf32>
    %684 = vector.shape_cast %683 : vector<4x8xf32> to vector<4x8x1xf32>
    %685 = vector.broadcast %684 : vector<4x8x1xf32> to vector<4x8x8xf32>
    %686 = arith.subf %682, %685 : vector<4x8x8xf32>
    %687 = math.exp %686 : vector<4x8x8xf32>
    %cst_340 = arith.constant dense<0.000000e+00> : vector<4x8xf32>
    %688 = vector.multi_reduction <add>, %687, %cst_340 [2] : vector<4x8x8xf32> to vector<4x8xf32>
    %689 = vector.shape_cast %688 : vector<4x8xf32> to vector<4x8x1xf32>
    %690 = tpu.reciprocal %689 {approx = true} : vector<4x8x1xf32> -> vector<4x8x1xf32>
    %691 = vector.broadcast %690 : vector<4x8x1xf32> to vector<4x8x8xf32>
    %692 = arith.mulf %687, %691 : vector<4x8x8xf32>
    %693 = arith.truncf %692 : vector<4x8x8xf32> to vector<4x8x8xbf16>
    %694 = arith.truncf %676 : vector<4x8x8xf32> to vector<4x8x8xbf16>
    "tpu.trace_start"() <{level = 10 : i32, message = "hqk,hkd->hqd"}> : () -> ()
    %cst_341 = arith.constant dense<0.000000e+00> : vector<4x8x8xf32>
    %695 = tpu.matmul %693, %694, %cst_341 {dimension_numbers = #tpu.dot_dimension_numbers<[2], [1], [1], [2], [0, 0, 0, 1, 1, 2], [0], [0]>} : vector<4x8x8xbf16>, vector<4x8x8xbf16>, vector<4x8x8xf32> -> vector<4x8x8xf32>
    "tpu.trace_stop"() : () -> ()
    %696 = vector.extract_strided_slice %695 {offsets = [0, 0, 0], sizes = [1, 8, 8], strides = [1, 1, 1]} : vector<4x8x8xf32> to vector<1x8x8xf32>
    %697 = vector.shape_cast %696 : vector<1x8x8xf32> to vector<8x8xf32>
    %698 = vector.extract_strided_slice %695 {offsets = [1, 0, 0], sizes = [1, 8, 8], strides = [1, 1, 1]} : vector<4x8x8xf32> to vector<1x8x8xf32>
    %699 = vector.shape_cast %698 : vector<1x8x8xf32> to vector<8x8xf32>
    %700 = vector.extract_strided_slice %695 {offsets = [2, 0, 0], sizes = [1, 8, 8], strides = [1, 1, 1]} : vector<4x8x8xf32> to vector<1x8x8xf32>
    %701 = vector.shape_cast %700 : vector<1x8x8xf32> to vector<8x8xf32>
    %702 = vector.extract_strided_slice %695 {offsets = [3, 0, 0], sizes = [1, 8, 8], strides = [1, 1, 1]} : vector<4x8x8xf32> to vector<1x8x8xf32>
    %703 = vector.shape_cast %702 : vector<1x8x8xf32> to vector<8x8xf32>
    %704 = tpu.concatenate %697, %699, %701, %703 in 1 : vector<8x8xf32>, vector<8x8xf32>, vector<8x8xf32>, vector<8x8xf32> -> vector<8x32xf32>
    %705 = arith.truncf %704 : vector<8x32xf32> to vector<8x32xbf16>
    %cst_342 = arith.constant dense<0.000000e+00> : vector<8x32xf32>
    %706 = tpu.matmul %705, %599, %cst_342 {dimension_numbers = #tpu.dot_dimension_numbers<[1], [0], [0], [1], [0, 0, 1, 1], [], []>} : vector<8x32xbf16>, vector<32x32xbf16>, vector<8x32xf32> -> vector<8x32xf32>
    %707 = arith.addf %585, %706 : vector<8x32xf32>
    %708 = vector.broadcast %601 : vector<1x32xf32> to vector<8x32xf32>
    %709 = arith.addf %707, %708 : vector<8x32xf32>
    %cst_343 = arith.constant dense<0.000000e+00> : vector<8xf32>
    %710 = vector.multi_reduction <add>, %709, %cst_343 [1] : vector<8x32xf32> to vector<8xf32>
    %711 = vector.shape_cast %710 : vector<8xf32> to vector<8x1xf32>
    %cst_344 = arith.constant 3.200000e+01 : f32
    %712 = vector.broadcast %cst_344 : f32 to vector<8x1xf32>
    %713 = arith.divf %711, %712 : vector<8x1xf32>
    %714 = vector.broadcast %713 : vector<8x1xf32> to vector<8x32xf32>
    %715 = arith.subf %709, %714 : vector<8x32xf32>
    %716 = arith.mulf %715, %715 : vector<8x32xf32>
    %cst_345 = arith.constant dense<0.000000e+00> : vector<8xf32>
    %717 = vector.multi_reduction <add>, %716, %cst_345 [1] : vector<8x32xf32> to vector<8xf32>
    %718 = vector.shape_cast %717 : vector<8xf32> to vector<8x1xf32>
    %cst_346 = arith.constant 3.200000e+01 : f32
    %719 = vector.broadcast %cst_346 : f32 to vector<8x1xf32>
    %720 = arith.divf %718, %719 : vector<8x1xf32>
    %cst_347 = arith.constant 9.99999974E-6 : f32
    %721 = vector.broadcast %cst_347 : f32 to vector<8x1xf32>
    %722 = arith.addf %720, %721 : vector<8x1xf32>
    %723 = math.rsqrt %722 : vector<8x1xf32>
    %724 = vector.broadcast %723 : vector<8x1xf32> to vector<8x32xf32>
    %725 = arith.mulf %715, %724 : vector<8x32xf32>
    %726 = vector.broadcast %627 : vector<1x32xf32> to vector<8x32xf32>
    %727 = arith.mulf %725, %726 : vector<8x32xf32>
    %728 = vector.broadcast %629 : vector<1x32xf32> to vector<8x32xf32>
    %729 = arith.addf %727, %728 : vector<8x32xf32>
    %730 = arith.truncf %729 : vector<8x32xf32> to vector<8x32xbf16>
    %cst_348 = arith.constant dense<0.000000e+00> : vector<8x32xf32>
    %731 = tpu.matmul %730, %603, %cst_348 {dimension_numbers = #tpu.dot_dimension_numbers<[1], [0], [0], [1], [0, 0, 1, 1], [], []>} : vector<8x32xbf16>, vector<32x32xbf16>, vector<8x32xf32> -> vector<8x32xf32>
    %732 = vector.broadcast %605 : vector<1x32xf32> to vector<8x32xf32>
    %733 = arith.addf %731, %732 : vector<8x32xf32>
    %734 = arith.truncf %318 : vector<8x32xf32> to vector<8x32xbf16>
    %cst_349 = arith.constant dense<0.000000e+00> : vector<8x32xf32>
    %735 = tpu.matmul %734, %607, %cst_349 {dimension_numbers = #tpu.dot_dimension_numbers<[1], [0], [0], [1], [0, 0, 1, 1], [], []>} : vector<8x32xbf16>, vector<32x32xbf16>, vector<8x32xf32> -> vector<8x32xf32>
    %736 = vector.broadcast %609 : vector<1x32xf32> to vector<8x32xf32>
    %737 = arith.addf %735, %736 : vector<8x32xf32>
    %738 = arith.truncf %318 : vector<8x32xf32> to vector<8x32xbf16>
    %cst_350 = arith.constant dense<0.000000e+00> : vector<8x32xf32>
    %739 = tpu.matmul %738, %611, %cst_350 {dimension_numbers = #tpu.dot_dimension_numbers<[1], [0], [0], [1], [0, 0, 1, 1], [], []>} : vector<8x32xbf16>, vector<32x32xbf16>, vector<8x32xf32> -> vector<8x32xf32>
    %740 = vector.broadcast %613 : vector<1x32xf32> to vector<8x32xf32>
    %741 = arith.addf %739, %740 : vector<8x32xf32>
    %742 = vector.extract_strided_slice %733 {offsets = [0, 0], sizes = [8, 8], strides = [1, 1]} : vector<8x32xf32> to vector<8x8xf32>
    %743 = vector.extract_strided_slice %733 {offsets = [0, 8], sizes = [8, 8], strides = [1, 1]} : vector<8x32xf32> to vector<8x8xf32>
    %744 = vector.extract_strided_slice %733 {offsets = [0, 16], sizes = [8, 8], strides = [1, 1]} : vector<8x32xf32> to vector<8x8xf32>
    %745 = vector.extract_strided_slice %733 {offsets = [0, 24], sizes = [8, 8], strides = [1, 1]} : vector<8x32xf32> to vector<8x8xf32>
    %746 = vector.shape_cast %742 : vector<8x8xf32> to vector<1x8x8xf32>
    %747 = vector.shape_cast %743 : vector<8x8xf32> to vector<1x8x8xf32>
    %748 = vector.shape_cast %744 : vector<8x8xf32> to vector<1x8x8xf32>
    %749 = vector.shape_cast %745 : vector<8x8xf32> to vector<1x8x8xf32>
    %750 = tpu.concatenate %746, %747, %748, %749 in 0 : vector<1x8x8xf32>, vector<1x8x8xf32>, vector<1x8x8xf32>, vector<1x8x8xf32> -> vector<4x8x8xf32>
    %751 = vector.extract_strided_slice %737 {offsets = [0, 0], sizes = [8, 8], strides = [1, 1]} : vector<8x32xf32> to vector<8x8xf32>
    %752 = vector.extract_strided_slice %737 {offsets = [0, 8], sizes = [8, 8], strides = [1, 1]} : vector<8x32xf32> to vector<8x8xf32>
    %753 = vector.extract_strided_slice %737 {offsets = [0, 16], sizes = [8, 8], strides = [1, 1]} : vector<8x32xf32> to vector<8x8xf32>
    %754 = vector.extract_strided_slice %737 {offsets = [0, 24], sizes = [8, 8], strides = [1, 1]} : vector<8x32xf32> to vector<8x8xf32>
    %755 = vector.shape_cast %751 : vector<8x8xf32> to vector<1x8x8xf32>
    %756 = vector.shape_cast %752 : vector<8x8xf32> to vector<1x8x8xf32>
    %757 = vector.shape_cast %753 : vector<8x8xf32> to vector<1x8x8xf32>
    %758 = vector.shape_cast %754 : vector<8x8xf32> to vector<1x8x8xf32>
    %759 = tpu.concatenate %755, %756, %757, %758 in 0 : vector<1x8x8xf32>, vector<1x8x8xf32>, vector<1x8x8xf32>, vector<1x8x8xf32> -> vector<4x8x8xf32>
    %760 = vector.extract_strided_slice %741 {offsets = [0, 0], sizes = [8, 8], strides = [1, 1]} : vector<8x32xf32> to vector<8x8xf32>
    %761 = vector.extract_strided_slice %741 {offsets = [0, 8], sizes = [8, 8], strides = [1, 1]} : vector<8x32xf32> to vector<8x8xf32>
    %762 = vector.extract_strided_slice %741 {offsets = [0, 16], sizes = [8, 8], strides = [1, 1]} : vector<8x32xf32> to vector<8x8xf32>
    %763 = vector.extract_strided_slice %741 {offsets = [0, 24], sizes = [8, 8], strides = [1, 1]} : vector<8x32xf32> to vector<8x8xf32>
    %764 = vector.shape_cast %760 : vector<8x8xf32> to vector<1x8x8xf32>
    %765 = vector.shape_cast %761 : vector<8x8xf32> to vector<1x8x8xf32>
    %766 = vector.shape_cast %762 : vector<8x8xf32> to vector<1x8x8xf32>
    %767 = vector.shape_cast %763 : vector<8x8xf32> to vector<1x8x8xf32>
    %768 = tpu.concatenate %764, %765, %766, %767 in 0 : vector<1x8x8xf32>, vector<1x8x8xf32>, vector<1x8x8xf32>, vector<1x8x8xf32> -> vector<4x8x8xf32>
    %769 = arith.truncf %750 : vector<4x8x8xf32> to vector<4x8x8xbf16>
    %770 = arith.truncf %759 : vector<4x8x8xf32> to vector<4x8x8xbf16>
    "tpu.trace_start"() <{level = 10 : i32, message = "hqd,hkd->hqk"}> : () -> ()
    %cst_351 = arith.constant dense<0.000000e+00> : vector<4x8x8xf32>
    %771 = tpu.matmul %769, %770, %cst_351 {dimension_numbers = #tpu.dot_dimension_numbers<[2], [2], [1], [1], [0, 0, 0, 1, 1, 1], [0], [0]>} : vector<4x8x8xbf16>, vector<4x8x8xbf16>, vector<4x8x8xf32> -> vector<4x8x8xf32>
    "tpu.trace_stop"() : () -> ()
    %772 = vector.shape_cast %8 : vector<8x8xf32> to vector<1x8x8xf32>
    %773 = vector.broadcast %772 : vector<1x8x8xf32> to vector<4x8x8xf32>
    %774 = arith.addf %771, %773 : vector<4x8x8xf32>
    %cst_352 = arith.constant dense<0xFF800000> : vector<4x8xf32>
    %775 = vector.multi_reduction <maximumf>, %774, %cst_352 [2] : vector<4x8x8xf32> to vector<4x8xf32>
    %776 = vector.shape_cast %775 : vector<4x8xf32> to vector<4x8x1xf32>
    %777 = vector.broadcast %776 : vector<4x8x1xf32> to vector<4x8x8xf32>
    %778 = arith.subf %774, %777 : vector<4x8x8xf32>
    %779 = math.exp %778 : vector<4x8x8xf32>
    %cst_353 = arith.constant dense<0.000000e+00> : vector<4x8xf32>
    %780 = vector.multi_reduction <add>, %779, %cst_353 [2] : vector<4x8x8xf32> to vector<4x8xf32>
    %781 = vector.shape_cast %780 : vector<4x8xf32> to vector<4x8x1xf32>
    %782 = tpu.reciprocal %781 {approx = true} : vector<4x8x1xf32> -> vector<4x8x1xf32>
    %783 = vector.broadcast %782 : vector<4x8x1xf32> to vector<4x8x8xf32>
    %784 = arith.mulf %779, %783 : vector<4x8x8xf32>
    %785 = arith.truncf %784 : vector<4x8x8xf32> to vector<4x8x8xbf16>
    %786 = arith.truncf %768 : vector<4x8x8xf32> to vector<4x8x8xbf16>
    "tpu.trace_start"() <{level = 10 : i32, message = "hqk,hkd->hqd"}> : () -> ()
    %cst_354 = arith.constant dense<0.000000e+00> : vector<4x8x8xf32>
    %787 = tpu.matmul %785, %786, %cst_354 {dimension_numbers = #tpu.dot_dimension_numbers<[2], [1], [1], [2], [0, 0, 0, 1, 1, 2], [0], [0]>} : vector<4x8x8xbf16>, vector<4x8x8xbf16>, vector<4x8x8xf32> -> vector<4x8x8xf32>
    "tpu.trace_stop"() : () -> ()
    %788 = vector.extract_strided_slice %787 {offsets = [0, 0, 0], sizes = [1, 8, 8], strides = [1, 1, 1]} : vector<4x8x8xf32> to vector<1x8x8xf32>
    %789 = vector.shape_cast %788 : vector<1x8x8xf32> to vector<8x8xf32>
    %790 = vector.extract_strided_slice %787 {offsets = [1, 0, 0], sizes = [1, 8, 8], strides = [1, 1, 1]} : vector<4x8x8xf32> to vector<1x8x8xf32>
    %791 = vector.shape_cast %790 : vector<1x8x8xf32> to vector<8x8xf32>
    %792 = vector.extract_strided_slice %787 {offsets = [2, 0, 0], sizes = [1, 8, 8], strides = [1, 1, 1]} : vector<4x8x8xf32> to vector<1x8x8xf32>
    %793 = vector.shape_cast %792 : vector<1x8x8xf32> to vector<8x8xf32>
    %794 = vector.extract_strided_slice %787 {offsets = [3, 0, 0], sizes = [1, 8, 8], strides = [1, 1, 1]} : vector<4x8x8xf32> to vector<1x8x8xf32>
    %795 = vector.shape_cast %794 : vector<1x8x8xf32> to vector<8x8xf32>
    %796 = tpu.concatenate %789, %791, %793, %795 in 1 : vector<8x8xf32>, vector<8x8xf32>, vector<8x8xf32>, vector<8x8xf32> -> vector<8x32xf32>
    %797 = arith.truncf %796 : vector<8x32xf32> to vector<8x32xbf16>
    %cst_355 = arith.constant dense<0.000000e+00> : vector<8x32xf32>
    %798 = tpu.matmul %797, %615, %cst_355 {dimension_numbers = #tpu.dot_dimension_numbers<[1], [0], [0], [1], [0, 0, 1, 1], [], []>} : vector<8x32xbf16>, vector<32x32xbf16>, vector<8x32xf32> -> vector<8x32xf32>
    %799 = arith.addf %729, %798 : vector<8x32xf32>
    %800 = vector.broadcast %617 : vector<1x32xf32> to vector<8x32xf32>
    %801 = arith.addf %799, %800 : vector<8x32xf32>
    %cst_356 = arith.constant dense<0.000000e+00> : vector<8xf32>
    %802 = vector.multi_reduction <add>, %801, %cst_356 [1] : vector<8x32xf32> to vector<8xf32>
    %803 = vector.shape_cast %802 : vector<8xf32> to vector<8x1xf32>
    %cst_357 = arith.constant 3.200000e+01 : f32
    %804 = vector.broadcast %cst_357 : f32 to vector<8x1xf32>
    %805 = arith.divf %803, %804 : vector<8x1xf32>
    %806 = vector.broadcast %805 : vector<8x1xf32> to vector<8x32xf32>
    %807 = arith.subf %801, %806 : vector<8x32xf32>
    %808 = arith.mulf %807, %807 : vector<8x32xf32>
    %cst_358 = arith.constant dense<0.000000e+00> : vector<8xf32>
    %809 = vector.multi_reduction <add>, %808, %cst_358 [1] : vector<8x32xf32> to vector<8xf32>
    %810 = vector.shape_cast %809 : vector<8xf32> to vector<8x1xf32>
    %cst_359 = arith.constant 3.200000e+01 : f32
    %811 = vector.broadcast %cst_359 : f32 to vector<8x1xf32>
    %812 = arith.divf %810, %811 : vector<8x1xf32>
    %cst_360 = arith.constant 9.99999974E-6 : f32
    %813 = vector.broadcast %cst_360 : f32 to vector<8x1xf32>
    %814 = arith.addf %812, %813 : vector<8x1xf32>
    %815 = math.rsqrt %814 : vector<8x1xf32>
    %816 = vector.broadcast %815 : vector<8x1xf32> to vector<8x32xf32>
    %817 = arith.mulf %807, %816 : vector<8x32xf32>
    %818 = vector.broadcast %631 : vector<1x32xf32> to vector<8x32xf32>
    %819 = arith.mulf %817, %818 : vector<8x32xf32>
    %820 = vector.broadcast %633 : vector<1x32xf32> to vector<8x32xf32>
    %821 = arith.addf %819, %820 : vector<8x32xf32>
    %822 = arith.truncf %821 : vector<8x32xf32> to vector<8x32xbf16>
    %cst_361 = arith.constant dense<0.000000e+00> : vector<8x64xf32>
    %823 = tpu.matmul %822, %619, %cst_361 {dimension_numbers = #tpu.dot_dimension_numbers<[1], [0], [0], [1], [0, 0, 1, 1], [], []>} : vector<8x32xbf16>, vector<32x64xbf16>, vector<8x64xf32> -> vector<8x64xf32>
    %824 = vector.broadcast %621 : vector<1x64xf32> to vector<8x64xf32>
    %825 = arith.addf %823, %824 : vector<8x64xf32>
    %cst_362 = arith.constant 0.000000e+00 : f32
    %826 = vector.broadcast %cst_362 : f32 to vector<8x64xf32>
    %827 = arith.maximumf %825, %826 : vector<8x64xf32>
    %828 = arith.truncf %827 : vector<8x64xf32> to vector<8x64xbf16>
    %cst_363 = arith.constant dense<0.000000e+00> : vector<8x32xf32>
    %829 = tpu.matmul %828, %623, %cst_363 {dimension_numbers = #tpu.dot_dimension_numbers<[1], [0], [0], [1], [0, 0, 1, 1], [], []>} : vector<8x64xbf16>, vector<64x32xbf16>, vector<8x32xf32> -> vector<8x32xf32>
    %830 = arith.addf %821, %829 : vector<8x32xf32>
    %831 = vector.broadcast %625 : vector<1x32xf32> to vector<8x32xf32>
    %832 = arith.addf %830, %831 : vector<8x32xf32>
    %cst_364 = arith.constant dense<0.000000e+00> : vector<8xf32>
    %833 = vector.multi_reduction <add>, %832, %cst_364 [1] : vector<8x32xf32> to vector<8xf32>
    %834 = vector.shape_cast %833 : vector<8xf32> to vector<8x1xf32>
    %cst_365 = arith.constant 3.200000e+01 : f32
    %835 = vector.broadcast %cst_365 : f32 to vector<8x1xf32>
    %836 = arith.divf %834, %835 : vector<8x1xf32>
    %837 = vector.broadcast %836 : vector<8x1xf32> to vector<8x32xf32>
    %838 = arith.subf %832, %837 : vector<8x32xf32>
    %839 = arith.mulf %838, %838 : vector<8x32xf32>
    %cst_366 = arith.constant dense<0.000000e+00> : vector<8xf32>
    %840 = vector.multi_reduction <add>, %839, %cst_366 [1] : vector<8x32xf32> to vector<8xf32>
    %841 = vector.shape_cast %840 : vector<8xf32> to vector<8x1xf32>
    %cst_367 = arith.constant 3.200000e+01 : f32
    %842 = vector.broadcast %cst_367 : f32 to vector<8x1xf32>
    %843 = arith.divf %841, %842 : vector<8x1xf32>
    %cst_368 = arith.constant 9.99999974E-6 : f32
    %844 = vector.broadcast %cst_368 : f32 to vector<8x1xf32>
    %845 = arith.addf %843, %844 : vector<8x1xf32>
    %846 = math.rsqrt %845 : vector<8x1xf32>
    %847 = vector.broadcast %846 : vector<8x1xf32> to vector<8x32xf32>
    %848 = arith.mulf %838, %847 : vector<8x32xf32>
    %849 = vector.broadcast %635 : vector<1x32xf32> to vector<8x32xf32>
    %850 = arith.mulf %848, %849 : vector<8x32xf32>
    %851 = vector.broadcast %637 : vector<1x32xf32> to vector<8x32xf32>
    %852 = arith.addf %850, %851 : vector<8x32xf32>
    %c0_369 = arith.constant 0 : index
    %c0_370 = arith.constant 0 : index
    %853 = vector.load %arg47[%c0_369, %c0_370] : memref<32x16xbf16, #tpu.memory_space<vmem>>, vector<32x16xbf16>
    %854 = arith.truncf %852 : vector<8x32xf32> to vector<8x32xbf16>
    %cst_371 = arith.constant dense<0.000000e+00> : vector<8x16xf32>
    %855 = tpu.matmul %854, %853, %cst_371 {dimension_numbers = #tpu.dot_dimension_numbers<[1], [0], [0], [1], [0, 0, 1, 1], [], []>} : vector<8x32xbf16>, vector<32x16xbf16>, vector<8x16xf32> -> vector<8x16xf32>
    %c0_372 = arith.constant 0 : index
    %c0_373 = arith.constant 0 : index
    %856 = vector.load %arg48[%c0_372, %c0_373] : memref<1x16xf32, #tpu.memory_space<vmem>>, vector<1x16xf32>
    %857 = vector.broadcast %856 : vector<1x16xf32> to vector<8x16xf32>
    %858 = arith.addf %855, %857 : vector<8x16xf32>
    %cst_374 = arith.constant dense<0xFF800000> : vector<8xf32>
    %859 = vector.multi_reduction <maximumf>, %858, %cst_374 [1] : vector<8x16xf32> to vector<8xf32>
    %860 = vector.shape_cast %859 : vector<8xf32> to vector<8x1xf32>
    %861 = vector.broadcast %860 : vector<8x1xf32> to vector<8x16xf32>
    %862 = arith.subf %858, %861 : vector<8x16xf32>
    %863 = math.exp %862 : vector<8x16xf32>
    %cst_375 = arith.constant dense<0.000000e+00> : vector<8xf32>
    %864 = vector.multi_reduction <add>, %863, %cst_375 [1] : vector<8x16xf32> to vector<8xf32>
    %865 = vector.shape_cast %864 : vector<8xf32> to vector<8x1xf32>
    %866 = math.log %865 : vector<8x1xf32>
    %867 = vector.broadcast %866 : vector<8x1xf32> to vector<8x16xf32>
    %868 = arith.subf %862, %867 : vector<8x16xf32>
    %c0_376 = arith.constant 0 : index
    %c0_377 = arith.constant 0 : index
    %c0_378 = arith.constant 0 : index
    %869 = vector.load %arg49[%c0_376, %c0_377, %c0_378] : memref<1x8x16xf32, #tpu.memory_space<vmem>>, vector<1x8x16xf32>
    %870 = vector.shape_cast %869 : vector<1x8x16xf32> to vector<8x16xf32>
    %871 = vector.shape_cast %868 : vector<8x16xf32> to vector<1x8x16xf32>
    tpu.vector_store %arg49[%c0_376, %c0_377, %c0_378], %871 {strides = array<i32>} : memref<1x8x16xf32, #tpu.memory_space<vmem>>, vector<1x8x16xf32>,
    return
  }
  func.func @transform_0(%arg0: i32) -> (i32, i32, i32) {
    %c0_i32 = arith.constant 0 : i32
    %c0_i32_0 = arith.constant 0 : i32
    %c0_i32_1 = arith.constant 0 : i32
    return %arg0, %c0_i32, %c0_i32_0 : i32, i32, i32
  }
  func.func @transform_1(%arg0: i32) -> (i32, i32, i32) {
    %c0_i32 = arith.constant 0 : i32
    %c0_i32_0 = arith.constant 0 : i32
    %c0_i32_1 = arith.constant 0 : i32
    return %arg0, %c0_i32, %c0_i32_0 : i32, i32, i32
  }
  func.func @transform_2(%arg0: i32) -> (i32, i32) {
    %c0_i32 = arith.constant 0 : i32
    %c0_i32_0 = arith.constant 0 : i32
    %c0_i32_1 = arith.constant 0 : i32
    return %c0_i32, %c0_i32_0 : i32, i32
  }
  func.func @transform_3(%arg0: i32) -> (i32, i32) {
    %c0_i32 = arith.constant 0 : i32
    %c0_i32_0 = arith.constant 0 : i32
    %c0_i32_1 = arith.constant 0 : i32
    return %c0_i32, %c0_i32_0 : i32, i32
  }
  func.func @transform_4(%arg0: i32) -> (i32, i32, i32) {
    %c0_i32 = arith.constant 0 : i32
    %c0_i32_0 = arith.constant 0 : i32
    %c0_i32_1 = arith.constant 0 : i32
    %c0_i32_2 = arith.constant 0 : i32
    return %c0_i32, %c0_i32_0, %c0_i32_1 : i32, i32, i32
  }
  func.func @transform_5(%arg0: i32) -> (i32, i32, i32) {
    %c0_i32 = arith.constant 0 : i32
    %c0_i32_0 = arith.constant 0 : i32
    %c0_i32_1 = arith.constant 0 : i32
    %c0_i32_2 = arith.constant 0 : i32
    return %c0_i32, %c0_i32_0, %c0_i32_1 : i32, i32, i32
  }
  func.func @transform_6(%arg0: i32) -> (i32, i32, i32) {
    %c0_i32 = arith.constant 0 : i32
    %c0_i32_0 = arith.constant 0 : i32
    %c0_i32_1 = arith.constant 0 : i32
    %c0_i32_2 = arith.constant 0 : i32
    return %c0_i32, %c0_i32_0, %c0_i32_1 : i32, i32, i32
  }
  func.func @transform_7(%arg0: i32) -> (i32, i32, i32) {
    %c0_i32 = arith.constant 0 : i32
    %c0_i32_0 = arith.constant 0 : i32
    %c0_i32_1 = arith.constant 0 : i32
    %c0_i32_2 = arith.constant 0 : i32
    return %c0_i32, %c0_i32_0, %c0_i32_1 : i32, i32, i32
  }
  func.func @transform_8(%arg0: i32) -> (i32, i32, i32) {
    %c0_i32 = arith.constant 0 : i32
    %c0_i32_0 = arith.constant 0 : i32
    %c0_i32_1 = arith.constant 0 : i32
    %c0_i32_2 = arith.constant 0 : i32
    return %c0_i32, %c0_i32_0, %c0_i32_1 : i32, i32, i32
  }
  func.func @transform_9(%arg0: i32) -> (i32, i32, i32) {
    %c0_i32 = arith.constant 0 : i32
    %c0_i32_0 = arith.constant 0 : i32
    %c0_i32_1 = arith.constant 0 : i32
    %c0_i32_2 = arith.constant 0 : i32
    return %c0_i32, %c0_i32_0, %c0_i32_1 : i32, i32, i32
  }
  func.func @transform_10(%arg0: i32) -> (i32, i32, i32) {
    %c0_i32 = arith.constant 0 : i32
    %c0_i32_0 = arith.constant 0 : i32
    %c0_i32_1 = arith.constant 0 : i32
    %c0_i32_2 = arith.constant 0 : i32
    return %c0_i32, %c0_i32_0, %c0_i32_1 : i32, i32, i32
  }
  func.func @transform_11(%arg0: i32) -> (i32, i32, i32) {
    %c0_i32 = arith.constant 0 : i32
    %c0_i32_0 = arith.constant 0 : i32
    %c0_i32_1 = arith.constant 0 : i32
    %c0_i32_2 = arith.constant 0 : i32
    return %c0_i32, %c0_i32_0, %c0_i32_1 : i32, i32, i32
  }
  func.func @transform_12(%arg0: i32) -> (i32, i32, i32) {
    %c0_i32 = arith.constant 0 : i32
    %c0_i32_0 = arith.constant 0 : i32
    %c0_i32_1 = arith.constant 0 : i32
    %c0_i32_2 = arith.constant 0 : i32
    return %c0_i32, %c0_i32_0, %c0_i32_1 : i32, i32, i32
  }
  func.func @transform_13(%arg0: i32) -> (i32, i32, i32) {
    %c0_i32 = arith.constant 0 : i32
    %c0_i32_0 = arith.constant 0 : i32
    %c0_i32_1 = arith.constant 0 : i32
    %c0_i32_2 = arith.constant 0 : i32
    return %c0_i32, %c0_i32_0, %c0_i32_1 : i32, i32, i32
  }
  func.func @transform_14(%arg0: i32) -> (i32, i32, i32) {
    %c0_i32 = arith.constant 0 : i32
    %c0_i32_0 = arith.constant 0 : i32
    %c0_i32_1 = arith.constant 0 : i32
    %c0_i32_2 = arith.constant 0 : i32
    return %c0_i32, %c0_i32_0, %c0_i32_1 : i32, i32, i32
  }
  func.func @transform_15(%arg0: i32) -> (i32, i32, i32) {
    %c0_i32 = arith.constant 0 : i32
    %c0_i32_0 = arith.constant 0 : i32
    %c0_i32_1 = arith.constant 0 : i32
    %c0_i32_2 = arith.constant 0 : i32
    return %c0_i32, %c0_i32_0, %c0_i32_1 : i32, i32, i32
  }
  func.func @transform_16(%arg0: i32) -> (i32, i32, i32) {
    %c0_i32 = arith.constant 0 : i32
    %c0_i32_0 = arith.constant 0 : i32
    %c0_i32_1 = arith.constant 0 : i32
    %c0_i32_2 = arith.constant 0 : i32
    return %c0_i32, %c0_i32_0, %c0_i32_1 : i32, i32, i32
  }
  func.func @transform_17(%arg0: i32) -> (i32, i32, i32) {
    %c0_i32 = arith.constant 0 : i32
    %c0_i32_0 = arith.constant 0 : i32
    %c0_i32_1 = arith.constant 0 : i32
    %c0_i32_2 = arith.constant 0 : i32
    return %c0_i32, %c0_i32_0, %c0_i32_1 : i32, i32, i32
  }
  func.func @transform_18(%arg0: i32) -> (i32, i32, i32) {
    %c0_i32 = arith.constant 0 : i32
    %c0_i32_0 = arith.constant 0 : i32
    %c0_i32_1 = arith.constant 0 : i32
    %c0_i32_2 = arith.constant 0 : i32
    return %c0_i32, %c0_i32_0, %c0_i32_1 : i32, i32, i32
  }
  func.func @transform_19(%arg0: i32) -> (i32, i32, i32) {
    %c0_i32 = arith.constant 0 : i32
    %c0_i32_0 = arith.constant 0 : i32
    %c0_i32_1 = arith.constant 0 : i32
    %c0_i32_2 = arith.constant 0 : i32
    return %c0_i32, %c0_i32_0, %c0_i32_1 : i32, i32, i32
  }
  func.func @transform_20(%arg0: i32) -> (i32, i32, i32) {
    %c0_i32 = arith.constant 0 : i32
    %c0_i32_0 = arith.constant 0 : i32
    %c0_i32_1 = arith.constant 0 : i32
    %c0_i32_2 = arith.constant 0 : i32
    return %c0_i32, %c0_i32_0, %c0_i32_1 : i32, i32, i32
  }
  func.func @transform_21(%arg0: i32) -> (i32, i32, i32) {
    %c0_i32 = arith.constant 0 : i32
    %c0_i32_0 = arith.constant 0 : i32
    %c0_i32_1 = arith.constant 0 : i32
    %c0_i32_2 = arith.constant 0 : i32
    return %c0_i32, %c0_i32_0, %c0_i32_1 : i32, i32, i32
  }
  func.func @transform_22(%arg0: i32) -> (i32, i32, i32) {
    %c0_i32 = arith.constant 0 : i32
    %c0_i32_0 = arith.constant 0 : i32
    %c0_i32_1 = arith.constant 0 : i32
    %c0_i32_2 = arith.constant 0 : i32
    return %c0_i32, %c0_i32_0, %c0_i32_1 : i32, i32, i32
  }
  func.func @transform_23(%arg0: i32) -> (i32, i32, i32) {
    %c0_i32 = arith.constant 0 : i32
    %c0_i32_0 = arith.constant 0 : i32
    %c0_i32_1 = arith.constant 0 : i32
    %c0_i32_2 = arith.constant 0 : i32
    return %c0_i32, %c0_i32_0, %c0_i32_1 : i32, i32, i32
  }
  func.func @transform_24(%arg0: i32) -> (i32, i32, i32) {
    %c0_i32 = arith.constant 0 : i32
    %c0_i32_0 = arith.constant 0 : i32
    %c0_i32_1 = arith.constant 0 : i32
    %c0_i32_2 = arith.constant 0 : i32
    return %c0_i32, %c0_i32_0, %c0_i32_1 : i32, i32, i32
  }
  func.func @transform_25(%arg0: i32) -> (i32, i32, i32) {
    %c0_i32 = arith.constant 0 : i32
    %c0_i32_0 = arith.constant 0 : i32
    %c0_i32_1 = arith.constant 0 : i32
    %c0_i32_2 = arith.constant 0 : i32
    return %c0_i32, %c0_i32_0, %c0_i32_1 : i32, i32, i32
  }
  func.func @transform_26(%arg0: i32) -> (i32, i32, i32) {
    %c0_i32 = arith.constant 0 : i32
    %c0_i32_0 = arith.constant 0 : i32
    %c0_i32_1 = arith.constant 0 : i32
    %c0_i32_2 = arith.constant 0 : i32
    return %c0_i32, %c0_i32_0, %c0_i32_1 : i32, i32, i32
  }
  func.func @transform_27(%arg0: i32) -> (i32, i32, i32) {
    %c0_i32 = arith.constant 0 : i32
    %c0_i32_0 = arith.constant 0 : i32
    %c0_i32_1 = arith.constant 0 : i32
    %c0_i32_2 = arith.constant 0 : i32
    return %c0_i32, %c0_i32_0, %c0_i32_1 : i32, i32, i32
  }
  func.func @transform_28(%arg0: i32) -> (i32, i32, i32) {
    %c0_i32 = arith.constant 0 : i32
    %c0_i32_0 = arith.constant 0 : i32
    %c0_i32_1 = arith.constant 0 : i32
    %c0_i32_2 = arith.constant 0 : i32
    return %c0_i32, %c0_i32_0, %c0_i32_1 : i32, i32, i32
  }
  func.func @transform_29(%arg0: i32) -> (i32, i32, i32) {
    %c0_i32 = arith.constant 0 : i32
    %c0_i32_0 = arith.constant 0 : i32
    %c0_i32_1 = arith.constant 0 : i32
    %c0_i32_2 = arith.constant 0 : i32
    return %c0_i32, %c0_i32_0, %c0_i32_1 : i32, i32, i32
  }
  func.func @transform_30(%arg0: i32) -> (i32, i32, i32) {
    %c0_i32 = arith.constant 0 : i32
    %c0_i32_0 = arith.constant 0 : i32
    %c0_i32_1 = arith.constant 0 : i32
    %c0_i32_2 = arith.constant 0 : i32
    return %c0_i32, %c0_i32_0, %c0_i32_1 : i32, i32, i32
  }
  func.func @transform_31(%arg0: i32) -> (i32, i32, i32) {
    %c0_i32 = arith.constant 0 : i32
    %c0_i32_0 = arith.constant 0 : i32
    %c0_i32_1 = arith.constant 0 : i32
    %c0_i32_2 = arith.constant 0 : i32
    return %c0_i32, %c0_i32_0, %c0_i32_1 : i32, i32, i32
  }
  func.func @transform_32(%arg0: i32) -> (i32, i32, i32) {
    %c0_i32 = arith.constant 0 : i32
    %c0_i32_0 = arith.constant 0 : i32
    %c0_i32_1 = arith.constant 0 : i32
    %c0_i32_2 = arith.constant 0 : i32
    return %c0_i32, %c0_i32_0, %c0_i32_1 : i32, i32, i32
  }
  func.func @transform_33(%arg0: i32) -> (i32, i32, i32) {
    %c0_i32 = arith.constant 0 : i32
    %c0_i32_0 = arith.constant 0 : i32
    %c0_i32_1 = arith.constant 0 : i32
    %c0_i32_2 = arith.constant 0 : i32
    return %c0_i32, %c0_i32_0, %c0_i32_1 : i32, i32, i32
  }
  func.func @transform_34(%arg0: i32) -> (i32, i32, i32) {
    %c0_i32 = arith.constant 0 : i32
    %c0_i32_0 = arith.constant 0 : i32
    %c0_i32_1 = arith.constant 0 : i32
    %c0_i32_2 = arith.constant 0 : i32
    return %c0_i32, %c0_i32_0, %c0_i32_1 : i32, i32, i32
  }
  func.func @transform_35(%arg0: i32) -> (i32, i32, i32) {
    %c0_i32 = arith.constant 0 : i32
    %c0_i32_0 = arith.constant 0 : i32
    %c0_i32_1 = arith.constant 0 : i32
    %c0_i32_2 = arith.constant 0 : i32
    return %c0_i32, %c0_i32_0, %c0_i32_1 : i32, i32, i32
  }
  func.func @transform_36(%arg0: i32) -> (i32, i32, i32) {
    %c0_i32 = arith.constant 0 : i32
    %c0_i32_0 = arith.constant 0 : i32
    %c0_i32_1 = arith.constant 0 : i32
    %c0_i32_2 = arith.constant 0 : i32
    return %c0_i32, %c0_i32_0, %c0_i32_1 : i32, i32, i32
  }
  func.func @transform_37(%arg0: i32) -> (i32, i32, i32) {
    %c0_i32 = arith.constant 0 : i32
    %c0_i32_0 = arith.constant 0 : i32
    %c0_i32_1 = arith.constant 0 : i32
    %c0_i32_2 = arith.constant 0 : i32
    return %c0_i32, %c0_i32_0, %c0_i32_1 : i32, i32, i32
  }
  func.func @transform_38(%arg0: i32) -> (i32, i32, i32) {
    %c0_i32 = arith.constant 0 : i32
    %c0_i32_0 = arith.constant 0 : i32
    %c0_i32_1 = arith.constant 0 : i32
    %c0_i32_2 = arith.constant 0 : i32
    return %c0_i32, %c0_i32_0, %c0_i32_1 : i32, i32, i32
  }
  func.func @transform_39(%arg0: i32) -> (i32, i32, i32) {
    %c0_i32 = arith.constant 0 : i32
    %c0_i32_0 = arith.constant 0 : i32
    %c0_i32_1 = arith.constant 0 : i32
    %c0_i32_2 = arith.constant 0 : i32
    return %c0_i32, %c0_i32_0, %c0_i32_1 : i32, i32, i32
  }
  func.func @transform_40(%arg0: i32) -> (i32, i32, i32) {
    %c0_i32 = arith.constant 0 : i32
    %c0_i32_0 = arith.constant 0 : i32
    %c0_i32_1 = arith.constant 0 : i32
    %c0_i32_2 = arith.constant 0 : i32
    return %c0_i32, %c0_i32_0, %c0_i32_1 : i32, i32, i32
  }
  func.func @transform_41(%arg0: i32) -> (i32, i32, i32) {
    %c0_i32 = arith.constant 0 : i32
    %c0_i32_0 = arith.constant 0 : i32
    %c0_i32_1 = arith.constant 0 : i32
    %c0_i32_2 = arith.constant 0 : i32
    return %c0_i32, %c0_i32_0, %c0_i32_1 : i32, i32, i32
  }
  func.func @transform_42(%arg0: i32) -> (i32, i32, i32) {
    %c0_i32 = arith.constant 0 : i32
    %c0_i32_0 = arith.constant 0 : i32
    %c0_i32_1 = arith.constant 0 : i32
    %c0_i32_2 = arith.constant 0 : i32
    return %c0_i32, %c0_i32_0, %c0_i32_1 : i32, i32, i32
  }
  func.func @transform_43(%arg0: i32) -> (i32, i32, i32) {
    %c0_i32 = arith.constant 0 : i32
    %c0_i32_0 = arith.constant 0 : i32
    %c0_i32_1 = arith.constant 0 : i32
    %c0_i32_2 = arith.constant 0 : i32
    return %c0_i32, %c0_i32_0, %c0_i32_1 : i32, i32, i32
  }
  func.func @transform_44(%arg0: i32) -> (i32, i32, i32) {
    %c0_i32 = arith.constant 0 : i32
    %c0_i32_0 = arith.constant 0 : i32
    %c0_i32_1 = arith.constant 0 : i32
    %c0_i32_2 = arith.constant 0 : i32
    return %c0_i32, %c0_i32_0, %c0_i32_1 : i32, i32, i32
  }
  func.func @transform_45(%arg0: i32) -> (i32, i32, i32) {
    %c0_i32 = arith.constant 0 : i32
    %c0_i32_0 = arith.constant 0 : i32
    %c0_i32_1 = arith.constant 0 : i32
    %c0_i32_2 = arith.constant 0 : i32
    return %c0_i32, %c0_i32_0, %c0_i32_1 : i32, i32, i32
  }
  func.func @transform_46(%arg0: i32) -> (i32, i32) {
    %c0_i32 = arith.constant 0 : i32
    %c0_i32_0 = arith.constant 0 : i32
    %c0_i32_1 = arith.constant 0 : i32
    return %c0_i32, %c0_i32_0 : i32, i32
  }
  func.func @transform_47(%arg0: i32) -> (i32, i32) {
    %c0_i32 = arith.constant 0 : i32
    %c0_i32_0 = arith.constant 0 : i32
    %c0_i32_1 = arith.constant 0 : i32
    return %c0_i32, %c0_i32_0 : i32, i32
  }
  func.func @transform_48(%arg0: i32) -> (i32, i32, i32) {
    %c0_i32 = arith.constant 0 : i32
    %c0_i32_0 = arith.constant 0 : i32
    %c0_i32_1 = arith.constant 0 : i32
    return %arg0, %c0_i32, %c0_i32_0 : i32, i32, i32
  }
}

</mosaic_0001>

<bundles_post_ra>
// kernel: tractognn_forward.2
= control target key start
LH: loop header
LB: loop body
LE: loop exit
PB: predicated region body
PF: predicated region fallthrough
CT: control target
= control target key end

     0   :  { %vm44_vm0 = vcmask 261120   ;;  %vm117_vm1 = vcmask 130048   ;;  %s471_s1 = inlined_call_operand.vmem [shape: f32[32,16], index: 1, kind: input, shape index: {}]   ;;  %s472_s0 = inlined_call_operand.vmem [shape: bf16[32,32], index: 0, kind: input, shape index: {}]   ;;  %s473_s2 = inlined_call_operand.vmem [shape: bf16[16,32], index: 2, kind: input, shape index: {}]   ;;  %s474_s3 = inlined_call_operand.vmem [shape: bf16[32,32], index: 3, kind: input, shape index: {}]   ;;  %s475_s4 = inlined_call_operand.vmem [shape: f32[1,32], index: 4, kind: input, shape index: {}]   ;;  %s476_s5 = inlined_call_operand.vmem [shape: f32[1,32], index: 5, kind: input, shape index: {}]   ;;  %s477_s6 = inlined_call_operand.vmem [shape: f32[32,32], index: 6, kind: output, shape index: {}]  }
   0x1   :  { %v28_v0 = vld [vmem:[%s471_s1] sm:$0xff]  ;;  %v29_v1 = vld [vmem:[%s471_s1 + $0x8] sm:$0xff]  ;;  %v30_v2 = vld [vmem:[%s471_s1 + $0x10] sm:$0xff] }
   0x2   :  { %v32_v3 = vpack.c.bf16 %v29_v1, %v28_v0  ;;  %v31_v4 = vld [vmem:[%s471_s1 + $0x18] sm:$0xff]  ;;  %v376_v6 = vld [vmem:[%s472_s0] sm:$0xff]   ;;  %v377_v7 = vld [vmem:[%s472_s0 + $0x8] sm:$0xff]  }
   0x3   :  { %v33_v5 = vpack.c.bf16 %v31_v4, %v30_v2  ;;  %350 = vmatprep.mubr.msk.bf16.mxu0 %vm44_vm0, %v376_v6  ;;  %v378_v8 = vld [vmem:[%s473_s2] sm:$0xff]   ;;  %v380_v31 = vld [vmem:[%s474_s3 + $0x8] sm:$0xff]  }
   0x4   :  { %346 = vmatprep.subr.bf16.mxu0 %v32_v3  ;;  %354 = vmatprep.subr.bf16.mxu1 %v378_v8  ;;  %v379_v15 = vld [vmem:[%s474_s3] sm:$0xff]  }
   0x5   :  { %347 = vmatpush3.bf16.msra.mxu0 %v32_v3  ;;  %355 = vmatpush3.bf16.msra.mxu1 %v378_v8  ;;  %v320_v16 = vld [vmem:[%s475_s4] ss:$0 sm:$0xff] }
   0x6   :  { %348 = vmatprep.subr.bf16.mxu0 %v33_v5  ;;  %v326_v38 = vld [vmem:[%s476_s5] ss:$0 sm:$0xff] }
   0x9   :  { %349 = vmatpush3.bf16.msra.mxu0 %v33_v5 }
   0xa   :  { %368 = vmatprep.subr.bf16.mxu0 %v379_v15 }
   0xc   :  { %351 = vmatmul.mubr.msk.bf16.vlgmr.msra.gmra.mrb[0].mxu0 %vm44_vm0, %v377_v7 }
   0xd   :  { %369 = vmatpush3.bf16.msra.mxu0 %v379_v15 }
   0xe   :  { %370 = vmatprep.subr.bf16.mxu0 %v380_v31 }
  0x11   :  { %371 = vmatpush3.bf16.msra.mxu0 %v380_v31 }
  0xdf   :  { %v352_v9 = vpop.f32.mrb[0].mxu0 }
  0xe0   :  { %v85_v10 = vpop.f32.mrb[1].mxu0 }
  0xe1   :  { %v353_v11 = vpop.f32.mrb[2].mxu0 }
  0xe2   :  { %v103_v12 = vpack.c.bf16 %v353_v11, %v352_v9  ;;  %v88_v13 = vpop.f32.mrb[3].mxu0 }
  0xe3   :  { %v102_v14 = vpack.c.bf16 %v88_v13, %v85_v10 }
  0xe5   :  { %356 = vmatprep.mubr.msk.bf16.mxu1 %vm117_vm1, %v102_v14 }
  0xe6   :  { %357 = vmatmul.mubr.msk.bf16.vlgmr.msra.gmra.mrb[0].mxu1 %vm117_vm1, %v103_v12 }
  0xe7   :  { %364 = vmatprep.mubr.msk.bf16.mxu1 %vm44_vm0, %v376_v6 }
 0x1b9   :  { %v358_v17 = vpop.f32.mrb[0].mxu1 }
 0x1ba   :  { %v167_v18 = vadd.f32 %v358_v17, %v320_v16  ;;  %v158_v19 = vpop.f32.mrb[1].mxu1 }
 0x1bb   :  { %v159_v20 = vadd.f32 %v320_v16, %v158_v19  ;;  %v359_v21 = vpop.f32.mrb[2].mxu1 }
 0x1bc   :  { %v170_v22 = vadd.f32 %v359_v21, %v320_v16  ;;  %v161_v23 = vpop.f32.mrb[3].mxu1  ;;  %v175_v25 = vmax.f32 %v167_v18, 0.0 }
 0x1bd   :  { %v162_v24 = vadd.f32 %v320_v16, %v161_v23  ;;  %v173_v27 = vmax.f32 %v159_v20, 0.0 }
 0x1be   :  { %v176_v26 = vmax.f32 %v170_v22, 0.0 }
 0x1bf   :  { %v174_v28 = vmax.f32 %v162_v24, 0.0 }
 0x1c0   :  { %v178_v29 = vpack.c.bf16 %v176_v26, %v175_v25 }
 0x1c1   :  { %v177_v30 = vpack.c.bf16 %v174_v28, %v173_v27 }
 0x1c3   :  { %360 = vmatprep.subr.bf16.mxu1 %v177_v30 }
 0x1c4   :  { %361 = vmatpush3.bf16.msra.mxu1 %v177_v30 }
 0x1c5   :  { %362 = vmatprep.subr.bf16.mxu1 %v178_v29 }
 0x1c8   :  { %363 = vmatpush3.bf16.msra.mxu1 %v178_v29 }
 0x1cb   :  { %365 = vmatmul.mubr.msk.bf16.vlgmr.msra.gmra.mrb[4].mxu1 %vm44_vm0, %v377_v7 }
 0x29e   :  { %v366_v32 = vpop.f32.mrb[4].mxu1 }
 0x29f   :  { %v213_v33 = vpop.f32.mrb[5].mxu1 }
 0x2a0   :  { %v367_v34 = vpop.f32.mrb[6].mxu1 }
 0x2a1   :  { %v233_v35 = vpack.c.bf16 %v367_v34, %v366_v32  ;;  %v216_v36 = vpop.f32.mrb[7].mxu1 }
 0x2a2   :  { %v232_v37 = vpack.c.bf16 %v216_v36, %v213_v33 }
 0x2a4   :  { %372 = vmatprep.mubr.msk.bf16.mxu0 %vm44_vm0, %v232_v37 }
 0x2a5   :  { %373 = vmatmul.mubr.msk.bf16.vlgmr.msra.gmra.mrb[4].mxu0 %vm44_vm0, %v233_v35 }
 0x378   :  { %v374_v39 = vpop.f32.mrb[4].mxu0 }
 0x379   :  { %v302_v40 = vadd.f32 %v374_v39, %v326_v38  ;;  %v293_v41 = vpop.f32.mrb[5].mxu0 }
 0x37a   :  { %v294_v42 = vadd.f32 %v326_v38, %v293_v41  ;;  %v375_v43 = vpop.f32.mrb[6].mxu0 }
 0x37b   :  { %310 = vst.msk [vmem:[%s477_s6 + $0x10] sm:$0xff] %vm44_vm0, %v302_v40  ;;  %v305_v44 = vadd.f32 %v375_v43, %v326_v38  ;;  %v296_v45 = vpop.f32.mrb[7].mxu0 }
 0x37c   :  { %308 = vst.msk [vmem:[%s477_s6] sm:$0xff] %vm44_vm0, %v294_v42  ;;  %v297_v46 = vadd.f32 %v326_v38, %v296_v45 }
 0x37d   :  { %311 = vst.msk [vmem:[%s477_s6 + $0x18] sm:$0xff] %vm44_vm0, %v305_v44 }
 0x37e   :  { %309 = vst.msk [vmem:[%s477_s6 + $0x8] sm:$0xff] %vm44_vm0, %v297_v46 }

// kernel: tractognn_forward.3
= control target key start
LH: loop header
LB: loop body
LE: loop exit
PB: predicated region body
PF: predicated region fallthrough
CT: control target
= control target key end

     0   :  { %s8802_s6 = smov 1   ;;  %s8803_s10 = smov 2   ;;  %s10137_s0 = inlined_call_operand.smem [shape: u32[49], index: -1, kind: input, shape index: {}] }
   0x1   :  { %s8874_s5 = sld [smem:[%s10137_s0]]   ;;  %s8804_s14 = smov 3  }
   0x2   :  { %s8879_s9 = sld [smem:[%s10137_s0 + %s8802_s6]]   ;;  %s8805_s18 = smov 4  }
   0x3   :  { %s8884_s13 = sld [smem:[%s10137_s0 + %s8803_s10]]   ;;  %s8806_s22 = smov 5  }
   0x4   :  { %s8889_s17 = sld [smem:[%s10137_s0 + %s8804_s14]]   ;;  %s8807_s26 = smov 6  }
   0x5   :  { %s8894_s21 = sld [smem:[%s10137_s0 + %s8805_s18]]   ;;  %s8808_s30 = smov 7  }
   0x6   :  { %s8899_s25 = sld [smem:[%s10137_s0 + %s8806_s22]]   ;;  %s8809_s4 = smov 8  }
   0x7   :  { %10219 = sst [smem:[#allocation16_spill]] %s8874_s5  ;;  %s8810_s10 = smov 9  }
   0x8   :  { %10220 = sst [smem:[#allocation17_spill]] %s8879_s9  ;;  %s8811_s15 = smov 10  }
   0x9   :  { %10221 = sst [smem:[#allocation18_spill]] %s8884_s13  ;;  %s8812_s20 = smov 11  }
   0xa   :  { %10222 = sst [smem:[#allocation19_spill]] %s8889_s17  ;;  %s8814_s1 = smov 13  }
   0xb   :  { %10223 = sst [smem:[#allocation20_spill]] %s8894_s21  ;;  %s8815_s7 = smov 14  }
   0xc   :  { %10224 = sst [smem:[#allocation21_spill]] %s8899_s25  ;;  %s8817_s22 = smov 16  }
   0xd   :  { %s8904_s29 = sld [smem:[%s10137_s0 + %s8807_s26]]   ;;  %s8813_s26 = smov 12  }
   0xe   :  { %s8909_s3 = sld [smem:[%s10137_s0 + %s8808_s30]]   ;;  %s8818_s28 = smov 17  }
   0xf   :  { %s8914_s8 = sld [smem:[%s10137_s0 + %s8809_s4]]  }
  0x10   :  { %s8919_s14 = sld [smem:[%s10137_s0 + %s8810_s10]]  }
  0x11   :  { %s8924_s19 = sld [smem:[%s10137_s0 + %s8811_s15]]   ;;  %s8816_s15 = smov 15  }
  0x12   :  { %s8929_s24 = sld [smem:[%s10137_s0 + %s8812_s20]]  }
  0x13   :  { %10225 = sst [smem:[#allocation22_spill]] %s8904_s29 }
  0x14   :  { %10226 = sst [smem:[#allocation23_spill]] %s8909_s3 }
  0x15   :  { %10227 = sst [smem:[#allocation24_spill]] %s8914_s8 }
  0x16   :  { %10228 = sst [smem:[#allocation25_spill]] %s8919_s14 }
  0x17   :  { %10229 = sst [smem:[#allocation26_spill]] %s8924_s19 }
  0x18   :  { %10230 = sst [smem:[#allocation27_spill]] %s8929_s24 }
  0x19   :  { %s8934_s30 = sld [smem:[%s10137_s0 + %s8813_s26]]  }
  0x1a   :  { %s8939_s6 = sld [smem:[%s10137_s0 + %s8814_s1]]  }
  0x1b   :  { %s8944_s12 = sld [smem:[%s10137_s0 + %s8815_s7]]   ;;  %s8819_s7 = smov 18  }
  0x1c   :  { %s8949_s20 = sld [smem:[%s10137_s0 + %s8816_s15]]   ;;  %s8820_s15 = smov 19  }
  0x1d   :  { %s8954_s27 = sld [smem:[%s10137_s0 + %s8817_s22]]   ;;  %s8821_s22 = smov 20  }
  0x1e   :  { %s8959_s4 = sld [smem:[%s10137_s0 + %s8818_s28]]   ;;  %s8822_s28 = smov 21  }
  0x1f   :  { %10231 = sst [smem:[#allocation28_spill]] %s8934_s30 }
  0x20   :  { %10232 = sst [smem:[#allocation29_spill]] %s8939_s6 }
  0x21   :  { %10233 = sst [smem:[#allocation30_spill]] %s8944_s12 }
  0x22   :  { %10234 = sst [smem:[#allocation31_spill]] %s8949_s20 }
  0x23   :  { %10235 = sst [smem:[#allocation32_spill]] %s8954_s27 }
  0x24   :  { %10236 = sst [smem:[#allocation33_spill]] %s8959_s4 }
  0x25   :  { %s8964_s6 = sld [smem:[%s10137_s0 + %s8819_s7]]   ;;  %s8823_s7 = smov 22  }
  0x26   :  { %s8969_s20 = sld [smem:[%s10137_s0 + %s8820_s15]]   ;;  %s8824_s15 = smov 23  }
  0x27   :  { %s8974_s27 = sld [smem:[%s10137_s0 + %s8821_s22]]   ;;  %s8825_s22 = smov 24  }
  0x28   :  { %s8979_s4 = sld [smem:[%s10137_s0 + %s8822_s28]]   ;;  %s8826_s28 = smov 25  }
  0x2b   :  { %10237 = sst [smem:[#allocation34_spill]] %s8964_s6 }
  0x2c   :  { %10238 = sst [smem:[#allocation35_spill]] %s8969_s20 }
  0x2d   :  { %10239 = sst [smem:[#allocation36_spill]] %s8974_s27 }
  0x2e   :  { %10240 = sst [smem:[#allocation37_spill]] %s8979_s4 }
  0x2f   :  { %s8984_s6 = sld [smem:[%s10137_s0 + %s8823_s7]]   ;;  %s8827_s7 = smov 26  }
  0x30   :  { %s8989_s20 = sld [smem:[%s10137_s0 + %s8824_s15]]   ;;  %s8828_s15 = smov 27  }
  0x31   :  { %s8994_s27 = sld [smem:[%s10137_s0 + %s8825_s22]]   ;;  %s8829_s22 = smov 28  }
  0x32   :  { %s8999_s4 = sld [smem:[%s10137_s0 + %s8826_s28]]   ;;  %s8830_s28 = smov 29  }
  0x35   :  { %10241 = sst [smem:[#allocation38_spill]] %s8984_s6 }
  0x36   :  { %10242 = sst [smem:[#allocation39_spill]] %s8989_s20 }
  0x37   :  { %10243 = sst [smem:[#allocation40_spill]] %s8994_s27 }
  0x38   :  { %10244 = sst [smem:[#allocation41_spill]] %s8999_s4 }
  0x39   :  { %s9004_s6 = sld [smem:[%s10137_s0 + %s8827_s7]]   ;;  %s8831_s7 = smov 30  }
  0x3a   :  { %s9009_s20 = sld [smem:[%s10137_s0 + %s8828_s15]]   ;;  %s8832_s15 = smov 31  }
  0x3b   :  { %s9014_s27 = sld [smem:[%s10137_s0 + %s8829_s22]]   ;;  %s8833_s22 = smov 32  }
  0x3c   :  { %s9019_s4 = sld [smem:[%s10137_s0 + %s8830_s28]]   ;;  %s8834_s28 = smov 33  }
  0x3f   :  { %10245 = sst [smem:[#allocation42_spill]] %s9004_s6 }
  0x40   :  { %10246 = sst [smem:[#allocation43_spill]] %s9009_s20 }
  0x41   :  { %10247 = sst [smem:[#allocation44_spill]] %s9014_s27 }
  0x42   :  { %10248 = sst [smem:[#allocation45_spill]] %s9019_s4 }
  0x43   :  { %s9024_s6 = sld [smem:[%s10137_s0 + %s8831_s7]]   ;;  %s8835_s7 = smov 34  }
  0x44   :  { %s9029_s20 = sld [smem:[%s10137_s0 + %s8832_s15]]   ;;  %s8836_s15 = smov 35  }
  0x45   :  { %s9034_s27 = sld [smem:[%s10137_s0 + %s8833_s22]]   ;;  %s8837_s22 = smov 36  }
  0x46   :  { %s9039_s4 = sld [smem:[%s10137_s0 + %s8834_s28]]   ;;  %s8838_s28 = smov 37  }
  0x49   :  { %10249 = sst [smem:[#allocation46_spill]] %s9024_s6 }
  0x4a   :  { %10250 = sst [smem:[#allocation47_spill]] %s9029_s20 }
  0x4b   :  { %10251 = sst [smem:[#allocation48_spill]] %s9034_s27 }
  0x4c   :  { %10252 = sst [smem:[#allocation49_spill]] %s9039_s4 }
  0x4d   :  { %s9044_s6 = sld [smem:[%s10137_s0 + %s8835_s7]]   ;;  %s8839_s7 = smov 38  }
  0x4e   :  { %s9049_s20 = sld [smem:[%s10137_s0 + %s8836_s15]]   ;;  %s8840_s15 = smov 39  }
  0x4f   :  { %s9054_s27 = sld [smem:[%s10137_s0 + %s8837_s22]]   ;;  %s8841_s22 = smov 40  }
  0x50   :  { %s9059_s4 = sld [smem:[%s10137_s0 + %s8838_s28]]   ;;  %s8842_s28 = smov 41  }
  0x53   :  { %10253 = sst [smem:[#allocation50_spill]] %s9044_s6 }
  0x54   :  { %10254 = sst [smem:[#allocation51_spill]] %s9049_s20 }
  0x55   :  { %10255 = sst [smem:[#allocation52_spill]] %s9054_s27 }
  0x56   :  { %10256 = sst [smem:[#allocation53_spill]] %s9059_s4 }
  0x57   :  { %s9064_s6 = sld [smem:[%s10137_s0 + %s8839_s7]]   ;;  %s8843_s7 = smov 42  }
  0x58   :  { %s9069_s20 = sld [smem:[%s10137_s0 + %s8840_s15]]   ;;  %s8844_s15 = smov 43  }
  0x59   :  { %s9074_s27 = sld [smem:[%s10137_s0 + %s8841_s22]]   ;;  %s8845_s22 = smov 44  }
  0x5a   :  { %s9079_s4 = sld [smem:[%s10137_s0 + %s8842_s28]]   ;;  %s8846_s28 = smov 45  }
  0x5b   :  { %s9099_s12 = sld [smem:[%s10137_s0 + %s8846_s28]]  }
  0x5d   :  { %10257 = sst [smem:[#allocation54_spill]] %s9064_s6 }
  0x5e   :  { %10258 = sst [smem:[#allocation55_spill]] %s9069_s20 }
  0x5f   :  { %10259 = sst [smem:[#allocation56_spill]] %s9074_s27 }
  0x60   :  { %10260 = sst [smem:[#allocation57_spill]] %s9079_s4 }
  0x61   :  { %s9084_s6 = sld [smem:[%s10137_s0 + %s8843_s7]]   ;;  %s8847_s7 = smov 46  }
  0x62   :  { %s9089_s20 = sld [smem:[%s10137_s0 + %s8844_s15]]   ;;  %s8848_s15 = smov 47  }
  0x63   :  { %s9094_s27 = sld [smem:[%s10137_s0 + %s8845_s22]]   ;;  %s8849_s22 = smov 48  }
  0x64   :  { %10264 = sst [smem:[#allocation61_spill]] %s9099_s12 }
  0x65   :  { %s9104_s30 = sld [smem:[%s10137_s0 + %s8847_s7]]  }
  0x66   :  { %s9109_s24 = sld [smem:[%s10137_s0 + %s8848_s15]]  }
  0x67   :  { %10261 = sst [smem:[#allocation58_spill]] %s9084_s6 }
  0x68   :  { %10262 = sst [smem:[#allocation59_spill]] %s9089_s20 }
  0x69   :  { %10263 = sst [smem:[#allocation60_spill]] %s9094_s27 }
  0x6a   :  { %s9114_s19 = sld [smem:[%s10137_s0 + %s8849_s22]]  }
  0x70   :  { %10265 = sst [smem:[#allocation62_spill]] %s9114_s19 }
  0x71   :  { %102 = vsyncpa [#allocation3], 0 }
  0x72   :  { %103 = vsyncpa [#allocation6], 0 }
  0x73   :  { %104 = vsyncpa [#allocation9], 0 }
  0x74   :  { %105 = vsyncpa [#allocation4], 0 }
  0x75   :  { %107 = vsyncpa [#allocation4 + $0x1], 0  ;;  %s9116_s28 = smov 0   ;;  %s9118_s1 = smov 0  }
  0x76   :  { %10266 = sst [smem:[#allocation63_spill]] %s9116_s28  ;;  %s9120_s2 = smov 0  }
  0x77   :  { %s9122_s7 = smov 0  }
  0x78 LB: > { %s10268_s29 = sld [smem:[#allocation22_spill]]  ;;  %s10269_s25 = sld [smem:[#allocation21_spill]]  ;;  %s8796_s2 = sphi %s9120_s2, %s10353_s2   ;;  %s8792_s1 = sphi %s9118_s1, %s10355_s1   ;;  %s8800_s7 = sphi %s9122_s7, %s10351_s7  }
  0x79   : > { %s10270_s21 = sld [smem:[#allocation20_spill]]  ;;  %s10271_s20 = sld [smem:[#allocation59_spill]] }
  0x7a   : > { %s10272_s14 = sld [smem:[#allocation25_spill]]  ;;  %s10273_s12 = sld [smem:[#allocation61_spill]] }
  0x7b   : > { %s10274_s8 = sld [smem:[#allocation24_spill]]  ;;  %s10275_s4 = sld [smem:[#allocation57_spill]] }
  0x7c   : > { %s10276_s3 = sld [smem:[#allocation23_spill]]  ;;  %s10277_s27 = sld [smem:[#allocation60_spill]] }
  0x7d   : > { %s10278_s6 = sld [smem:[#allocation58_spill]]  ;;  %s10279_s28 = sld [smem:[#allocation63_spill]] }
  0x7e   : > { %10281 = sst [smem:[#allocation64_spill]] %s8796_s2  ;;  %s9137_s0 = sadd.s32 4294967295, %s8800_s7  }
  0x7f   : > { %10282 = sst [smem:[#allocation65_spill]] %s8800_s7  ;;  %s7151_s10 = sadd.s32 4294967294, %s8800_s7  }
  0x80   : > { %s9141_s11 = sadd.s32 1, %s8800_s7   ;;  %s1138_s15 = sadd.s32 1, %s8796_s2 }
  0x81   : > { %10283 = sst [smem:[#allocation66_spill]] %s9141_s11  ;;  %s1135_s16 = ssub.s32 %s8800_s7, %s9141_s11 }
  0x82   : > { %p1148_p0 = scmp.ne.s32.totalorder %s8796_s2, %s8792_s1  ;;  %p1136_p1 = scmp.eq.s32.totalorder %s1135_s16, 0 }
  0x83   : > { %10280 = sst [smem:[#allocation63_spill]] %s10279_s28  ;;  %p1149_p2 = scmp.eq.s32.totalorder %s9137_s0, 1 }
  0x84   : > { %p1154_p3 = scmp.ne.s32.totalorder %s8792_s1, %s10279_s28  ;;  %p1155_p4 = scmp.eq.s32.totalorder %s7151_s10, 1 }
  0x85   : > { %s9152_s18 = scalar_select %p1136_p1, %s8796_s2, %s1138_s15  }
  0x86   : > { %p9154_p5 = por %p1149_p2, %p1148_p0  ;;  %p9158_p6 = por %p1155_p4, %p1154_p3 }
  0x87   : > { %10284 = sst [smem:[#allocation67_spill]] %s9152_s18  ;;  %p7152_p7 = scmp.ge.s32.totalorder %s8800_s7, 1 }
  0x88   : > { %s10285_s22 = scalar_select %p9154_p5, 1, 0 }
  0x89   : > { %s10287_s23 = scalar_select %p9158_p6, 1, 0 }
  0x8a   : > { %10286 = sst [smem:[#allocation68_spill]] %s10285_s22  ;;  %p1162_p8 = scmp.lt.s32.totalorder %s8800_s7, 3 }
  0x8b   : > { %10288 = sst [smem:[#allocation69_spill]] %s10287_s23  ;;  %p10174_p9 = scmp.eq.s32.totalorder %s9137_s0, 0 }
  0x8c   : > { %p9165_p10 = pnand %p7152_p7, %p1162_p8  ;;  %s8850_s10 = smov [#allocation5]  }
  0x8d   : > { %s1304_s15 = sshll.u32 %s8850_s10, 4  ;;  %s8851_s18 = smov [#allocation8]   ;;  %s9171_s15 = int_to_ptr.vmem [resolvable:$true] %s1304_s15 }
  0x8e   : > { %s10289_s26 = scalar_select %p9165_p10, 1, 0 }
  0x8f   : > { %p8266_p11 = pneg %p9165_p10  ;;  %s1330_s2 = sshll.u32 %s8851_s18, 4  ;;  %s9179_s2 = int_to_ptr.vmem [resolvable:$true] %s1330_s2 }
  0x90   : > { %s8852_s11 = smov [#allocation2]   ;;  %s8586_s28 = scalar_lea.hbm %s10278_s6, 32 }
  0x91   : > { %p9175_p12 = pnand %p10174_p9, %p8266_p11  ;;  %s9181_s23 = sshll.u32 %s8852_s11, 4  ;;  %s1292_s23 = int_to_ptr.vmem [resolvable:$true] %s9181_s23 }
  0x92   : > { %p8587_p13 = scmp.ne.s32.totalorder %s10278_s6, %s8586_s28  ;;  %p8593_p3 = scmp.lt.u32.totalorder %s8586_s28, %s10278_s6 }
  0x93   : > { %p9187_p0 = pneg %p9175_p12 }
  0x95   : > { %p8589_p1 = pnand %p9187_p0, %p8587_p13 }
  0x97   : > { %p8590_p2 = pneg %p8589_p1 }
  0x99   : > { %p8595_p4 = pnand %p8593_p3, %p8590_p2 }
  0x9b   : > { %8598 = shalt.err (!%p8595_p4)
}
  0x9c   : > { %s8599_s11 = scalar_lea.vmem %s9171_s15, 32  ;;  %p8607_p9 = scmp.lt.s32.totalorder %s9171_s15, %s9171_s15 }
  0x9d   : > { %p8600_p7 = scmp.ne.s32.totalorder %s9171_s15, %s8599_s11  ;;  %p8608_p6 = scmp.lt.s32.totalorder %s8599_s11, %s8599_s11 }
  0x9f   : > { %p8602_p8 = pnand %p8600_p7, %p9187_p0  ;;  %p8609_p5 = por %p8608_p6, %p8607_p9 }
  0xa1   : > { %p8603_p11 = pneg %p8602_p8 }
  0xa3   : > { %p8610_p10 = pnand %p8609_p5, %p8603_p11 }
  0xa5   : > { %8613 = shalt.err (!%p8610_p10)
}
  0xa6   : > { %s8853_s18 = smov 16   ;;  %s8854_s28 = smov 1  }
  0xa7   : > { %8272 = dma.hbm_to_vmem [thread:$0]  (!%p9175_p12), %s10278_s6, 32, %s9171_s15, [#allocation6], %s8853_s18, %s8853_s18, %s8854_s28  }
  0xa8   : > { %s8614_s7 = scalar_lea.hbm %s10277_s27, 32 }
  0xa9   : > { %p8615_p13 = scmp.ne.s32.totalorder %s10277_s27, %s8614_s7  ;;  %p8621_p9 = scmp.lt.u32.totalorder %s8614_s7, %s10277_s27 }
  0xab   : > { %p8617_p6 = pnand %p8615_p13, %p9187_p0 }
  0xad   : > { %p8618_p5 = pneg %p8617_p6 }
  0xaf   : > { %p8623_p10 = pnand %p8621_p9, %p8618_p5 }
  0xb1   : > { %8626 = shalt.err (!%p8623_p10)
}
  0xb2   : > { %s8627_s11 = scalar_lea.vmem %s9179_s2, 32  ;;  %p8635_p4 = scmp.lt.s32.totalorder %s9179_s2, %s9179_s2 }
  0xb3   : > { %p8628_p1 = scmp.ne.s32.totalorder %s9179_s2, %s8627_s11  ;;  %p8636_p7 = scmp.lt.s32.totalorder %s8627_s11, %s8627_s11 }
  0xb5   : > { %p8630_p2 = pnand %p8628_p1, %p9187_p0  ;;  %p8637_p8 = por %p8636_p7, %p8635_p4 }
  0xb7   : > { %p8631_p3 = pneg %p8630_p2 }
  0xb9   : > { %p8638_p11 = pnand %p8637_p8, %p8631_p3 }
  0xbb   : > { %8641 = shalt.err (!%p8638_p11)
}
  0xbc   : > { %8278 = dma.hbm_to_vmem [thread:$0]  (!%p9175_p12), %s10277_s27, 32, %s9179_s2, [#allocation9], %s8853_s18, %s8853_s18, %s8854_s28  }
  0xbd   : > { %s8642_s7 = scalar_lea.hbm %s10275_s4, 32 }
  0xbe   : > { %p8643_p13 = scmp.ne.s32.totalorder %s10275_s4, %s8642_s7  ;;  %p8649_p9 = scmp.lt.u32.totalorder %s8642_s7, %s10275_s4 }
  0xc0   : > { %p8645_p6 = pnand %p8643_p13, %p9187_p0 }
  0xc2   : > { %p8646_p5 = pneg %p8645_p6 }
  0xc4   : > { %p8651_p10 = pnand %p8649_p9, %p8646_p5 }
  0xc6   : > { %8654 = shalt.err (!%p8651_p10)
}
  0xc7   : > { %s8655_s15 = scalar_lea.vmem %s1292_s23, 32  ;;  %p8663_p4 = scmp.lt.s32.totalorder %s1292_s23, %s1292_s23 }
  0xc8   : > { %p8656_p1 = scmp.ne.s32.totalorder %s1292_s23, %s8655_s15  ;;  %p8664_p7 = scmp.lt.s32.totalorder %s8655_s15, %s8655_s15 }
  0xca   : > { %p8658_p2 = pnand %p8656_p1, %p9187_p0  ;;  %p8665_p8 = por %p8664_p7, %p8663_p4 }
  0xcc   : > { %p8659_p3 = pneg %p8658_p2 }
  0xce   : > { %p8666_p11 = pnand %p8665_p8, %p8659_p3 }
  0xd0   : > { %8669 = shalt.err (!%p8666_p11)
}
  0xd1   : > { %8269 = dma.hbm_to_vmem [thread:$0]  (!%p9175_p12), %s10275_s4, 32, %s1292_s23, [#allocation3], %s8853_s18, %s8853_s18, %s8854_s28  }
  0xd2   : > { %s8855_s2 = smov [#allocation7]   ;;  %s8856_s7 = smov [#allocation10]  }
  0xd3   : > { %s1317_s11 = sshll.u32 %s8855_s2, 4  ;;  %s1343_s6 = sshll.u32 %s8856_s7, 4  ;;  %s1318_s11 = int_to_ptr.vmem [resolvable:$true] %s1317_s11  ;;  %s1344_s6 = int_to_ptr.vmem [resolvable:$true] %s1343_s6 }
  0xd4   : > { %s8670_s15 = scalar_lea.hbm %s10271_s20, 32 }
  0xd5   : > { %p8671_p13 = scmp.ne.s32.totalorder %s10271_s20, %s8670_s15  ;;  %p8677_p9 = scmp.lt.u32.totalorder %s8670_s15, %s10271_s20 }
  0xd7   : > { %p8673_p6 = pnand %p8671_p13, %p9187_p0 }
  0xd9   : > { %p8674_p5 = pneg %p8673_p6 }
  0xdb   : > { %p8679_p10 = pnand %p8677_p9, %p8674_p5 }
  0xdd   : > { %8682 = shalt.err (!%p8679_p10)
}
  0xde   : > { %s8683_s27 = scalar_lea.vmem %s1318_s11, 32  ;;  %p8691_p4 = scmp.lt.s32.totalorder %s1318_s11, %s1318_s11 }
  0xdf   : > { %p8684_p1 = scmp.ne.s32.totalorder %s1318_s11, %s8683_s27  ;;  %p8692_p7 = scmp.lt.s32.totalorder %s8683_s27, %s8683_s27 }
  0xe1   : > { %p8686_p2 = pnand %p8684_p1, %p9187_p0  ;;  %p8693_p8 = por %p8692_p7, %p8691_p4 }
  0xe3   : > { %p8687_p3 = pneg %p8686_p2 }
  0xe5   : > { %p8694_p11 = pnand %p8693_p8, %p8687_p3 }
  0xe7   : > { %8697 = shalt.err (!%p8694_p11)
}
  0xe8   : > { %8275 = dma.hbm_to_vmem [thread:$0]  (!%p9175_p12), %s10271_s20, 32, %s1318_s11, [#allocation6], %s8853_s18, %s8853_s18, %s8854_s28  }
  0xe9   : > { %s8698_s23 = scalar_lea.hbm %s10273_s12, 32 }
  0xea   : > { %p8699_p13 = scmp.ne.s32.totalorder %s10273_s12, %s8698_s23  ;;  %p8705_p9 = scmp.lt.u32.totalorder %s8698_s23, %s10273_s12 }
  0xec   : > { %p8701_p6 = pnand %p8699_p13, %p9187_p0 }
  0xee   : > { %p8702_p5 = pneg %p8701_p6 }
  0xf0   : > { %p8707_p10 = pnand %p8705_p9, %p8702_p5 }
  0xf2   : > { %8710 = shalt.err (!%p8707_p10)
}
  0xf3   : > { %s8711_s27 = scalar_lea.vmem %s1344_s6, 32  ;;  %p8719_p4 = scmp.lt.s32.totalorder %s1344_s6, %s1344_s6 }
  0xf4   : > { %p8712_p1 = scmp.ne.s32.totalorder %s1344_s6, %s8711_s27  ;;  %p8720_p7 = scmp.lt.s32.totalorder %s8711_s27, %s8711_s27 }
  0xf6   : > { %p8714_p2 = pnand %p8712_p1, %p9187_p0  ;;  %p8721_p8 = por %p8720_p7, %p8719_p4 }
  0xf8   : > { %p8715_p3 = pneg %p8714_p2 }
  0xfa   : > { %p8722_p11 = pnand %p8721_p8, %p8715_p3 }
  0xfc   : > { %8725 = shalt.err (!%p8722_p11)
}
  0xfd   : > { %8281 = dma.hbm_to_vmem [thread:$0]  (!%p9175_p12), %s10273_s12, 32, %s1344_s6, [#allocation9], %s8853_s18, %s8853_s18, %s8854_s28  }
  0xfe   : > { %p10292_p13 = scmp.ne.s32.totalorder %s10289_s26, 0 }
  0xff   : > { %p10293_p6 = scmp.eq.s32.totalorder (!%p10292_p13), %s9137_s0, 0 }
 0x100   : > { %1378 = sbr.rel (%p10292_p13) target bundleno = 13524 (0x34d4), region = 212 }
 0x107   : > { %8771 = dma.done.wait (%p10293_p6), [#allocation3], 32   ;;  %p10294_p0 = pmov %p10293_p6 }
 0x109   : > { %8773 = vsyncadd (%p10294_p0), [#allocation3], 4294967264  ;;  %p10295_p5 = pmov %p10294_p0 }
 0x10a   : > { %p10296_p9 = pmov %p10294_p0 }
 0x10b   : > { %8775 = dma.done.wait (%p10295_p5), [#allocation6], 64  }
 0x10c   : > { %8777 = vsyncadd (%p10296_p9), [#allocation6], 4294967232  ;;  %p10297_p10 = pmov %p10294_p0 }
 0x10d   : > { %p10298_p12 = pmov %p10294_p0 }
 0x10e   : > { %8779 = dma.done.wait (%p10297_p10), [#allocation9], 64  }
 0x10f   : > { %8781 = vsyncadd (%p10298_p12), [#allocation9], 4294967232  ;;  %s10299_s5 = sld [smem:[#allocation16_spill]]  ;;  %p1510_p1 = scmp.lt.s32.totalorder %s9137_s0, 1  ;;  %v8857_v0 = vmov 0.0   ;;  %vm8858_vm0 = vmmov 0  }
 0x110   : > { %7676 = vmatprep.subr.bf16.mxu0 %v8857_v0  ;;  %7684 = vmatprep.subr.bf16.mxu1 %v8857_v0  ;;  %s10300_s17 = sld [smem:[#allocation19_spill]]  ;;  %v8392_v1 = vld [vmem:[%s10270_s21] sm:$0xff]   ;;  %v8394_v3 = vld [vmem:[%s10270_s21 + $0x8] sm:$0xff]   ;;  %vm1587_vm1 = vcmask 261120   ;;  %s10188_s10 = smov 120   ;;  %vm1785_vm2 = vcmask 64512  }
 0x111   : > { %7680 = vmatprep.mubr.msk.bf16.mxu0 %vm8858_vm0, %v8857_v0  ;;  %7688 = vmatprep.mubr.msk.bf16.mxu1 %vm8858_vm0, %v8857_v0  ;;  %s9287_s6 = scalar_select %p1510_p1, %s9137_s0, 1  ;;  %v8393_v2 = vld [vmem:[%s10268_s29] sm:$0xff]   ;;  %v8395_v4 = vld [vmem:[%s10268_s29 + $0x8] sm:$0xff]   ;;  %vm2025_vm3 = vcmask 1043456   ;;  %vm2220_vm4 = vcmask 130048   ;;  %vm2222_vm5 = vcmask 195584  }
 0x112   : > { %7677 = vmatpush3.bf16.msra.mxu0 %v8392_v1  ;;  %7685 = vmatpush3.bf16.msra.mxu1 %v8393_v2  ;;  %v8396_v9 = vld [vmem:[%s10274_s8] sm:$0xff]   ;;  %v8397_v10 = vld [vmem:[%s10274_s8 + $0x8] sm:$0xff]   ;;  %s10186_s18 = smov 104   ;;  %s10190_s28 = smov 112   ;;  %vm2404_vm6 = vcmask 523264  }
 0x113   : > { %s7166_s26 = sshll.u32 %s9287_s6, 3  ;;  %7678 = vmatprep.subr.bf16.mxu0 %v8857_v0  ;;  %7686 = vmatprep.subr.bf16.mxu1 %v8857_v0  ;;  %v7168_v11 = vld [vmem:[%s10269_s25] ss:$0 sm:$0xff]  ;;  %s10301_s9 = sld [smem:[#allocation17_spill]] }
 0x114   : > { %v7172_v12 = vld [vmem:[%s10276_s3] ss:$0 sm:$0xff]  ;;  %s10302_s13 = sld [smem:[#allocation18_spill]]  ;;  %s10184_s7 = smov 8  }
 0x115   : > { %s1513_s16 = scalar_lea.vmem %s10299_s5, %s7166_s26  ;;  %v7176_v33 = vld [vmem:[%s10272_s14] ss:$0 sm:$0xff]  ;;  %s10303_s11 = sld [smem:[#allocation26_spill]] }
 0x116   : > { %v1518_v5 = vld [vmem:[%s1513_s16] sm:$0xff]  ;;  %7679 = vmatpush3.bf16.msra.mxu0 %v8394_v3  ;;  %7687 = vmatpush3.bf16.msra.mxu1 %v8395_v4  ;;  %s10182_s15 = smov 16   ;;  %s10180_s23 = smov 24  }
 0x117   : > { %v1519_v6 = vld [vmem:[%s10300_s17] sm:$0xff]  ;;  %7692 = vmatprep.subr.bf16.mxu0 %v8857_v0  ;;  %7700 = vmatprep.subr.bf16.mxu1 %v8857_v0  ;;  %s10304_s27 = sld [smem:[#allocation27_spill]]  ;;  %s10306_s26 = sld [smem:[#allocation30_spill]] }
 0x118   : > { %v9298_v7 = vadd.f32 %v1519_v6, %v1518_v5  ;;  %s10307_s16 = sld [smem:[#allocation32_spill]]  ;;  %s10320_s4 = smov 8  }
 0x119   : > { %s1516_s2 = scalar_lea.vmem %s10301_s9, %s9287_s6  ;;  %s10305_s6 = sld [smem:[#allocation28_spill]] }
 0x11a   : > { %v9302_v8 = vpack.c.bf16 %v9298_v7, %v9298_v7  ;;  %v1521_v49 = vld [vmem:[%s10302_s13] sm:$0xff]  ;;  %s10321_s5 = smov 16   ;;  %s10323_s9 = sld [smem:[#allocation36_spill]] }
 0x11b   : > { %v7167_v50 = vld [vmem:[%s1516_s2] ss:$0 sm:$0xff]  ;;  %s10308_s2 = sld [smem:[#allocation33_spill]]  ;;  %s10326_s12 = sld [smem:[#allocation39_spill]] }
 0x11c   : > { %7681 = vmatmul.mubr.msk.bf16.vlgmr.msra.gmra.mrb[0].mxu0 %vm1587_vm1, %v9302_v8  ;;  %7689 = vmatmul.mubr.msk.bf16.vlgmr.msra.gmra.mrb[0].mxu1 %vm1587_vm1, %v9302_v8  ;;  %v9360_v51 = vmin.f32 %v1521_v49, %v7167_v50  ;;  %s10327_s13 = sld [smem:[#allocation37_spill]]  ;;  %s10331_s17 = sld [smem:[#allocation43_spill]] }
 0x11d   : > { %7696 = vmatprep.mubr.msk.bf16.mxu0 %vm8858_vm0, %v8857_v0  ;;  %7702 = vmatprep.mubr.msk.bf16.mxu1 %vm8858_vm0, %v8857_v0  ;;  %s10333_s20 = sld [smem:[#allocation47_spill]]  ;;  %s10342_s22 = sld [smem:[#allocation53_spill]] }
 0x11e   : > { %7693 = vmatpush3.bf16.msra.mxu0 %v8396_v9  ;;  %s10343_s19 = sld [smem:[#allocation55_spill]] }
 0x11f   : > { %7694 = vmatprep.subr.bf16.mxu0 %v8857_v0 }
 0x122   : > { %7695 = vmatpush3.bf16.msra.mxu0 %v8397_v10 }
 0x123   : > { %7706 = vmatprep.subr.bf16.mxu0 %v8857_v0 }
 0x125   : > { %7697 = vmatmul.mubr.msk.bf16.vlgmr.msra.gmra.mrb[4].mxu0 %vm1587_vm1, %v9302_v8 }
 0x126   : > { %7708 = vmatprep.mubr.msk.bf16.mxu0 %vm8858_vm0, %v8857_v0 }
 0x1ef   : > { %v1625_v13 = vpop.f32.mrb[0].mxu0  ;;  %v1683_v15 = vpop.f32.mrb[0].mxu1 }
 0x1f0   : > { %v1626_v14 = vadd.f32 %v7168_v11, %v1625_v13  ;;  %v7682_v16 = vpop.f32.mrb[1].mxu0  ;;  %v1684_v17 = vadd.f32 %v7172_v12, %v1683_v15  ;;  %v7690_v18 = vpop.f32.mrb[1].mxu1 }
 0x1f1   : > { %v1628_v19 = vpop.f32.mrb[2].mxu0  ;;  %v1686_v20 = vpop.f32.mrb[2].mxu1 }
 0x1f2   : > { %1748 = vrot.lane.b32.xlu1 %v1626_v14, %s10188_s10  ;;  %v7683_v21 = vpop.f32.mrb[3].mxu0  ;;  %1758 = vrot.lane.b32.xlu0 %v1684_v17, %s10188_s10  ;;  %v7691_v22 = vpop.f32.mrb[3].mxu1  ;;  %v1781_v23 = vpack.c.bf16 %v1684_v17, %v1684_v17  ;;  %v1777_v25 = vpack.c.bf16 %v1626_v14, %v1626_v14 }
 0x1f4   : > { %v1790_v24 = vsel %vm1785_vm2, %v1781_v23, 0 }
 0x1f5   : > { %7701 = vmatpush3.bf16.xpose.msra.mxu1 %v1790_v24 }
 0x1f6   : > { %1764 = vrot.lane.b32.xlu1 %v1684_v17, %s10186_s18  ;;  %1761 = vrot.lane.b32.xlu0 %v1684_v17, %s10190_s28 }
 0x1f7   : > { %7712 = vmatprep.subr.bf16.mxu1 %v8857_v0 }
 0x1f8   : > { %v1741_v26 = vpop.f32.mrb[4].mxu0 }
 0x1f9   : > { %v7698_v27 = vpop.f32.mrb[5].mxu0  ;;  %v9338_v38 = vadd.f32 %v7176_v33, %v1741_v26 }
 0x1fa   : > { %1754 = vrot.lane.b32.xlu1 %v1626_v14, %s10186_s18  ;;  %1751 = vrot.lane.b32.xlu0 %v1626_v14, %s10190_s28  ;;  %v1744_v28 = vpop.f32.mrb[6].mxu0 }
 0x1fb   : > { %v7699_v29 = vpop.f32.mrb[7].mxu0  ;;  %v2018_v42 = vpack.c.bf16 %v9338_v38, %v9338_v38 }
 0x1fc   : > { %7703 = vmatmul.mubr.msk.bf16.vlgmr.msra.gmra.mrb[4].mxu1 %vm1785_vm2, %v1777_v25 }
 0x1fd   : > { %7714 = vmatprep.mubr.msk.bf16.mxu1 %vm8858_vm0, %v8857_v0  ;;  %v2027_v46 = vsel %vm2025_vm3, %v2018_v42, 0 }
 0x264   : > { %v1749_v30 = vpop.permute.xlu1 %1748  ;;  %v1759_v31 = vpop.permute.xlu0 %1758 }
 0x265   : > { %v1782_v32 = vpack.c.bf16 %v1759_v31, %v1759_v31  ;;  %v1778_v41 = vpack.c.bf16 %v1749_v30, %v1749_v30 }
 0x267   : > { %v1836_v34 = vsel %vm1785_vm2, %v1782_v32, 0 }
 0x268   : > { %v1762_v35 = vpop.permute.xlu0 %1761  ;;  %7707 = vmatpush3.bf16.xpose.msra.mxu0 %v1836_v34  ;;  %v1765_v36 = vpop.permute.xlu1 %1764 }
 0x269   : > { %v1783_v37 = vpack.c.bf16 %v1762_v35, %v1762_v35  ;;  %7718 = vmatprep.subr.bf16.mxu0 %v8857_v0  ;;  %v1784_v39 = vpack.c.bf16 %v1765_v36, %v1765_v36 }
 0x26b   : > { %v1882_v40 = vsel %vm1785_vm2, %v1783_v37, 0  ;;  %v1928_v44 = vsel %vm1785_vm2, %v1784_v39, 0 }
 0x26c   : > { %7713 = vmatpush3.bf16.xpose.msra.mxu1 %v1882_v40  ;;  %v1752_v43 = vpop.permute.xlu0 %1751  ;;  %v1755_v47 = vpop.permute.xlu1 %1754 }
 0x26d   : > { %7724 = vmatprep.subr.bf16.mxu1 %v8857_v0  ;;  %v1779_v45 = vpack.c.bf16 %v1752_v43, %v1752_v43  ;;  %v1780_v48 = vpack.c.bf16 %v1755_v47, %v1755_v47 }
 0x26f   : > { %7709 = vmatmul.mubr.msk.bf16.vlgmr.msra.gmra.mrb[8].mxu0 %vm1785_vm2, %v1778_v41 }
 0x270   : > { %7719 = vmatpush3.bf16.xpose.msra.mxu0 %v1928_v44  ;;  %7720 = vmatprep.mubr.msk.bf16.mxu0 %vm8858_vm0, %v8857_v0 }
 0x271   : > { %7730 = vmatprep.subr.bf16.mxu0 %v8857_v0 }
 0x273   : > { %7715 = vmatmul.mubr.msk.bf16.vlgmr.msra.gmra.mrb[8].mxu1 %vm1785_vm2, %v1779_v45 }
 0x274   : > { %7725 = vmatpush3.bf16.msra.mxu1 %v2027_v46  ;;  %7726 = vmatprep.mubr.msk.bf16.mxu1 %vm8858_vm0, %v8857_v0 }
 0x275   : > { %7736 = vmatprep.subr.bf16.mxu1 %v8857_v0 }
 0x277   : > { %7721 = vmatmul.mubr.msk.bf16.vlgmr.msra.gmra.mrb[12].mxu0 %vm1785_vm2, %v1780_v48 }
 0x278   : > { %7732 = vmatprep.mubr.msk.bf16.mxu0 %vm8858_vm0, %v8857_v0 }
 0x2cf   : > { %v1826_v52 = vpop.f32.mrb[4].mxu1 }
 0x2d0   : > { %v1827_v53 = vadd.f32 %v1826_v52, %v9360_v51  ;;  %v7704_v54 = vpop.f32.mrb[5].mxu1 }
 0x2d1   : > { %v1829_v55 = vpop.f32.mrb[6].mxu1 }
 0x2d2   : > { %v7705_v56 = vpop.f32.mrb[7].mxu1  ;;  %v1970_v57 = vsel %vm1785_vm2, %v1827_v53, -inf }
 0x2d3   : > { %1971 = vmax.xlane.f32.xlu0 %v1970_v57 }
 0x342   : > { %v1872_v58 = vpop.f32.mrb[8].mxu0 }
 0x343   : > { %v1873_v59 = vadd.f32 %v1872_v58, %v9360_v51  ;;  %v7710_v60 = vpop.f32.mrb[9].mxu0 }
 0x344   : > { %v1875_v61 = vpop.f32.mrb[10].mxu0 }
 0x345   : > { %v7711_v62 = vpop.f32.mrb[11].mxu0  ;;  %v1973_v63 = vsel %vm1785_vm2, %v1873_v59, -inf }
 0x346   : > { %v1918_v1 = vpop.f32.mrb[8].mxu1  ;;  %1974 = vmax.xlane.f32.xlu1 %v1973_v63 }
 0x347   : > { %v1919_v2 = vadd.f32 %v1918_v1, %v9360_v51  ;;  %v7716_v3 = vpop.f32.mrb[9].mxu1 }
 0x348   : > { %v1921_v4 = vpop.f32.mrb[10].mxu1  ;;  %v8399_v3 = vld [vmem:[%s10303_s11 + $0x8] sm:$0xff]  }
 0x349   : > { %v7717_v5 = vpop.f32.mrb[11].mxu1  ;;  %v1976_v6 = vsel %vm1785_vm2, %v1919_v2, -inf }
 0x34a   : > { %1977 = vmax.xlane.f32.xlu0 %v1976_v6  ;;  %v1964_v9 = vpop.f32.mrb[12].mxu0 }
 0x34b   : > { %v1965_v10 = vadd.f32 %v1964_v9, %v9360_v51  ;;  %v7722_v11 = vpop.f32.mrb[13].mxu0 }
 0x34c   : > { %v1967_v12 = vpop.f32.mrb[14].mxu0 }
 0x34d   : > { %v7723_v13 = vpop.f32.mrb[15].mxu0  ;;  %v1979_v14 = vsel %vm1785_vm2, %v1965_v10, -inf }
 0x34e   : > { %1980 = vmax.xlane.f32.xlu0 %v1979_v14 }
 0x357   : > { %1768 = vrot.lane.b32.xlu1 %v9338_v38, %s10188_s10 }
 0x360   : > { %v1972_v15 = vpop.xlane.xlu0 %1971 }
 0x361   : > { %v1982_v16 = vsub.f32 %v1827_v53, %v1972_v15 }
 0x363   : > { %v1986_v17 = vmul.f32 1.442695, %v1982_v16 }
 0x365   : > { %8466 = vpow2.f32 %v1986_v17 }
 0x36f   : > { %v8467_v18 = vpop.eup %8466 }
 0x370   : > { %v1994_v19 = vsel %vm1785_vm2, %v8467_v18, 0.0 }
 0x37b   : > { %1995 = vadd.xlane.f32.xlu1 %v1994_v19 }
 0x3d3   : > { %v1975_v20 = vpop.xlane.xlu1 %1974 }
 0x3d4   : > { %v1983_v21 = vsub.f32 %v1873_v59, %v1975_v20 }
 0x3d6   : > { %v1988_v22 = vmul.f32 1.442695, %v1983_v21 }
 0x3d7   : > { %v1978_v23 = vpop.xlane.xlu0 %1977  ;;  %v1769_v24 = vpop.permute.xlu1 %1768 }
 0x3d8   : > { %8468 = vpow2.f32 %v1988_v22  ;;  %v1984_v25 = vsub.f32 %v1919_v2, %v1978_v23  ;;  %v2019_v26 = vpack.c.bf16 %v1769_v24, %v1769_v24  ;;  %v8398_v2 = vld [vmem:[%s10303_s11] sm:$0xff]  }
 0x3da   : > { %v1990_v27 = vmul.f32 1.442695, %v1984_v25  ;;  %v2073_v28 = vsel %vm2025_vm3, %v2019_v26, 0  ;;  %v7191_v26 = vld [vmem:[%s10304_s27] ss:$0 sm:$0xff] }
 0x3db   : > { %7731 = vmatpush3.bf16.msra.mxu0 %v2073_v28  ;;  %v1981_v29 = vpop.xlane.xlu0 %1980 }
 0x3dc   : > { %8470 = vpow2.f32 %v1990_v27  ;;  %v1985_v30 = vsub.f32 %v1965_v10, %v1981_v29  ;;  %7742 = vmatprep.subr.bf16.mxu0 %v8857_v0 }
 0x3de   : > { %v1992_v31 = vmul.f32 1.442695, %v1985_v30 }
 0x3e0   : > { %8472 = vpow2.f32 %v1992_v31 }
 0x3e2   : > { %v8469_v32 = vpop.eup %8468 }
 0x3e3   : > { %v1997_v33 = vsel %vm1785_vm2, %v8469_v32, 0.0 }
 0x3e4   : > { %1998 = vadd.xlane.f32.xlu0 %v1997_v33 }
 0x3e6   : > { %v8471_v34 = vpop.eup %8470 }
 0x3e7   : > { %v2000_v35 = vsel %vm1785_vm2, %v8471_v34, 0.0 }
 0x3e8   : > { %2001 = vadd.xlane.f32.xlu1 %v2000_v35 }
 0x3ea   : > { %v8473_v36 = vpop.eup %8472 }
 0x3eb   : > { %v2003_v37 = vsel %vm1785_vm2, %v8473_v36, 0.0 }
 0x3ec   : > { %2004 = vadd.xlane.f32.xlu0 %v2003_v37 }
 0x3f9   : > { %1774 = vrot.lane.b32.xlu1 %v9338_v38, %s10186_s18 }
 0x402   : > { %1771 = vrot.lane.b32.xlu0 %v9338_v38, %s10190_s28 }
 0x408   : > { %v1996_v39 = vpop.xlane.xlu1 %1995 }
 0x409   : > { %8474 = vrcp.f32 %v1996_v39  ;;  %v8400_v39 = vld [vmem:[%s10305_s6] sm:$0xff]  }
 0x413   : > { %v8475_v40 = vpop.eup %8474 }
 0x414   : > { %v2010_v41 = vmul.f32 %v8475_v40, %v8467_v18  ;;  %v8401_v40 = vld [vmem:[%s10305_s6 + $0x8] sm:$0xff]  }
 0x416   : > { %v2014_v42 = vpack.c.bf16 %v2010_v41, %v2010_v41  ;;  %v8402_v41 = vld [vmem:[%s10306_s26] sm:$0xff]  }
 0x418   : > { %7727 = vmatmul.mubr.msk.bf16.vlgmr.msra.gmra.mrb[12].mxu1 %vm1785_vm2, %v2014_v42  ;;  %v8403_v42 = vld [vmem:[%s10306_s26 + $0x8] sm:$0xff]  }
 0x419   : > { %7738 = vmatprep.mubr.msk.bf16.mxu1 %vm8858_vm0, %v8857_v0 }
 0x471   : > { %v1999_v43 = vpop.xlane.xlu0 %1998 }
 0x472   : > { %8476 = vrcp.f32 %v1999_v43 }
 0x475   : > { %v2002_v44 = vpop.xlane.xlu1 %2001 }
 0x476   : > { %8478 = vrcp.f32 %v2002_v44 }
 0x479   : > { %v2005_v45 = vpop.xlane.xlu0 %2004  ;;  %v1775_v46 = vpop.permute.xlu1 %1774 }
 0x47a   : > { %8480 = vrcp.f32 %v2005_v45  ;;  %v2021_v48 = vpack.c.bf16 %v1775_v46, %v1775_v46 }
 0x47c   : > { %v8477_v47 = vpop.eup %8476  ;;  %v2165_v55 = vsel %vm2025_vm3, %v2021_v48, 0 }
 0x47d   : > { %v1772_v38 = vpop.permute.xlu0 %1771  ;;  %v2011_v49 = vmul.f32 %v8477_v47, %v8469_v32  ;;  %v7192_v47 = vld [vmem:[%s10307_s16] ss:$0 sm:$0xff] }
 0x47e   : > { %v2020_v50 = vpack.c.bf16 %v1772_v38, %v1772_v38  ;;  %v7193_v38 = vld [vmem:[%s10308_s2] ss:$0 sm:$0xff] }
 0x47f   : > { %v2015_v52 = vpack.c.bf16 %v2011_v49, %v2011_v49 }
 0x480   : > { %v8479_v53 = vpop.eup %8478  ;;  %v2119_v54 = vsel %vm2025_vm3, %v2020_v50, 0 }
 0x481   : > { %7733 = vmatmul.mubr.msk.bf16.vlgmr.msra.gmra.mrb[16].mxu0 %vm1785_vm2, %v2015_v52  ;;  %7737 = vmatpush3.bf16.msra.mxu1 %v2119_v54  ;;  %v2012_v56 = vmul.f32 %v8479_v53, %v8471_v34  ;;  %v8404_v53 = vld [vmem:[%s10306_s26 + $0x10] sm:$0xff]   ;;  %v8405_v54 = vld [vmem:[%s10306_s26 + $0x18] sm:$0xff]  }
 0x482   : > { %7743 = vmatpush3.bf16.msra.mxu0 %v2165_v55  ;;  %7744 = vmatprep.mubr.msk.bf16.mxu0 %vm8858_vm0, %v8857_v0 }
 0x483   : > { %v2016_v57 = vpack.c.bf16 %v2012_v56, %v2012_v56  ;;  %7748 = vmatprep.subr.bf16.mxu1 %v8857_v0  ;;  %7756 = vmatprep.subr.bf16.mxu0 %v8857_v0 }
 0x484   : > { %v8481_v58 = vpop.eup %8480 }
 0x485   : > { %7739 = vmatmul.mubr.msk.bf16.vlgmr.msra.gmra.mrb[16].mxu1 %vm1785_vm2, %v2016_v57  ;;  %v2013_v59 = vmul.f32 %v8481_v58, %v8473_v36 }
 0x486   : > { %7752 = vmatprep.mubr.msk.bf16.mxu1 %vm8858_vm0, %v8857_v0  ;;  %7749 = vmatpush3.bf16.msra.mxu1 %v8398_v2 }
 0x487   : > { %v2017_v60 = vpack.c.bf16 %v2013_v59, %v2013_v59  ;;  %7750 = vmatprep.subr.bf16.mxu1 %v8857_v0 }
 0x489   : > { %7745 = vmatmul.mubr.msk.bf16.vlgmr.msra.gmra.mrb[20].mxu0 %vm1785_vm2, %v2017_v60 }
 0x48a   : > { %7760 = vmatprep.mubr.msk.bf16.mxu0 %vm8858_vm0, %v8857_v0  ;;  %7751 = vmatpush3.bf16.msra.mxu1 %v8399_v3 }
 0x48b   : > { %7764 = vmatprep.subr.bf16.mxu1 %v8857_v0  ;;  %7757 = vmatpush3.bf16.msra.mxu0 %v8400_v39 }
 0x48c   : > { %7758 = vmatprep.subr.bf16.mxu0 %v8857_v0 }
 0x48f   : > { %7759 = vmatpush3.bf16.msra.mxu0 %v8401_v40  ;;  %v7248_v40 = vld [vmem:[%s10276_s3 + $0x1] ss:$0 sm:$0xff]  ;;  %s10319_s3 = smov 104  }
 0x490   : > { %7776 = vmatprep.subr.bf16.mxu0 %v8857_v0 }
 0x4eb   : > { %v2063_v61 = vpop.f32.mrb[12].mxu1 }
 0x4ec   : > { %v7728_v62 = vpop.f32.mrb[13].mxu1 }
 0x4ed   : > { %v2066_v63 = vpop.f32.mrb[14].mxu1 }
 0x4ee   : > { %v7729_v1 = vpop.f32.mrb[15].mxu1 }
 0x554   : > { %v2109_v4 = vpop.f32.mrb[16].mxu0 }
 0x555   : > { %2208 = vrot.lane.b32.xlu1 %v2109_v4, %s10184_s7  ;;  %v7734_v5 = vpop.f32.mrb[17].mxu0  ;;  %s10311_s7 = sld [smem:[#allocation31_spill]] }
 0x556   : > { %v2112_v6 = vpop.f32.mrb[18].mxu0 }
 0x557   : > { %v7735_v9 = vpop.f32.mrb[19].mxu0 }
 0x558   : > { %v2155_v10 = vpop.f32.mrb[16].mxu1 }
 0x559   : > { %2212 = vrot.lane.b32.xlu0 %v2155_v10, %s10182_s15  ;;  %v7740_v11 = vpop.f32.mrb[17].mxu1  ;;  %s10310_s15 = sld [smem:[#allocation29_spill]] }
 0x55a   : > { %v2158_v12 = vpop.f32.mrb[18].mxu1 }
 0x55b   : > { %v7741_v13 = vpop.f32.mrb[19].mxu1  ;;  %s10312_s18 = smov %s10311_s7  ;;  %v7203_v1 = vld [vmem:[%s10311_s7] ss:$0 sm:$0xff]  ;;  %s10313_s7 = sld [smem:[#allocation34_spill]] }
 0x55c   : > { %v2201_v14 = vpop.f32.mrb[20].mxu0 }
 0x55d   : > { %2216 = vrot.lane.b32.xlu1 %v2201_v14, %s10180_s23  ;;  %v7746_v15 = vpop.f32.mrb[21].mxu0  ;;  %s10309_s23 = smov %s10308_s2  ;;  %s10315_s2 = sld [smem:[#allocation35_spill]] }
 0x55e   : > { %v2204_v16 = vpop.f32.mrb[22].mxu0  ;;  %v8406_v15 = vld [vmem:[%s10270_s21 + $0x10] sm:$0xff]  }
 0x55f   : > { %v7747_v17 = vpop.f32.mrb[23].mxu0  ;;  %v7194_v55 = vld [vmem:[%s10310_s15] ss:$0 sm:$0xff]  ;;  %v8407_v16 = vld [vmem:[%s10274_s8 + $0x10] sm:$0xff]  }
 0x560   : > { %v8408_v17 = vld [vmem:[%s10270_s21 + $0x18] sm:$0xff]   ;;  %s10335_s21 = sld [smem:[#allocation48_spill]] }
 0x561   : > { %s10314_s10 = smov %s10313_s7 }
 0x563   : > { %s10316_s28 = smov %s10315_s2 }
 0x5c7   : > { %v2209_v18 = vpop.permute.xlu1 %2208 }
 0x5c8   : > { %v2219_v20 = vsel %vm1785_vm2, %v2063_v61, %v2209_v18  ;;  %v8409_v18 = vld [vmem:[%s10274_s8 + $0x18] sm:$0xff]   ;;  %s10322_s8 = smov 24  }
 0x5cb   : > { %v2213_v19 = vpop.permute.xlu0 %2212 }
 0x5cc   : > { %v2221_v21 = vsel %vm2220_vm4, %v2219_v20, %v2213_v19 }
 0x5cf   : > { %v2217_v22 = vpop.permute.xlu1 %2216 }
 0x5d0   : > { %v2223_v23 = vsel %vm2222_vm5, %v2221_v21, %v2217_v22 }
 0x5d1   : > { %v2224_v24 = vpack.c.bf16 %v2223_v23, %v2223_v23  ;;  %v7204_v23 = vld [vmem:[%s10313_s7] ss:$0 sm:$0xff]  ;;  %s10317_s7 = smov 112  }
 0x5d3   : > { %7753 = vmatmul.mubr.msk.bf16.vlgmr.msra.gmra.mrb[20].mxu1 %vm1587_vm1, %v2224_v24 }
 0x5d4   : > { %7772 = vmatprep.mubr.msk.bf16.mxu1 %vm8858_vm0, %v8857_v0  ;;  %7765 = vmatpush3.bf16.msra.mxu1 %v8402_v41 }
 0x5d5   : > { %7766 = vmatprep.subr.bf16.mxu1 %v8857_v0 }
 0x5d8   : > { %7767 = vmatpush3.bf16.msra.mxu1 %v8403_v42 }
 0x5d9   : > { %7768 = vmatprep.subr.bf16.mxu1 %v8857_v0 }
 0x5dc   : > { %7769 = vmatpush3.bf16.msra.mxu1 %v8404_v53 }
 0x5dd   : > { %7770 = vmatprep.subr.bf16.mxu1 %v8857_v0 }
 0x5e0   : > { %7771 = vmatpush3.bf16.msra.mxu1 %v8405_v54 }
 0x5e1   : > { %7792 = vmatprep.subr.bf16.mxu1 %v8857_v0 }
 0x6a6   : > { %v2274_v25 = vpop.f32.mrb[20].mxu1 }
 0x6a7   : > { %v2280_v27 = vadd.f32 %v2274_v25, %v9298_v7  ;;  %v7754_v28 = vpop.f32.mrb[21].mxu1  ;;  %v7205_v25 = vld [vmem:[%s10315_s2] ss:$0 sm:$0xff]  ;;  %s10318_s2 = smov 120  }
 0x6a8   : > { %v2277_v29 = vpop.f32.mrb[22].mxu1  ;;  %v8410_v28 = vld [vmem:[%s10268_s29 + $0x10] sm:$0xff]  }
 0x6a9   : > { %v7755_v30 = vpop.f32.mrb[23].mxu1  ;;  %v2287_v31 = vadd.f32 %v7191_v26, %v2280_v27 }
 0x6aa   : > { %v8411_v30 = vld [vmem:[%s10268_s29 + $0x18] sm:$0xff]   ;;  %s10341_s29 = sld [smem:[#allocation54_spill]] }
 0x6ab   : > { %v2288_v32 = vsel %vm1587_vm1, %v2287_v31, 0.0 }
 0x6ac   : > { %2289 = vadd.xlane.f32.xlu0 %v2288_v32 }
 0x739   : > { %v2290_v33 = vpop.xlane.xlu0 %2289 }
 0x73a   : > { %v2292_v34 = vmul.f32 0.03125, %v2290_v33 }
 0x73c   : > { %v2293_v35 = vsub.f32 %v2287_v31, %v2292_v34 }
 0x73e   : > { %v2294_v36 = vmul.f32 %v2293_v35, %v2293_v35 }
 0x740   : > { %v2295_v37 = vsel %vm1587_vm1, %v2294_v36, 0.0 }
 0x741   : > { %2296 = vadd.xlane.f32.xlu1 %v2295_v37 }
 0x7ce   : > { %v2297_v43 = vpop.xlane.xlu1 %2296 }
 0x7cf   : > { %v2298_v44 = vmul.f32 0.03125, %v2297_v43 }
 0x7d1   : > { %v2299_v45 = vadd.f32 1e-05, %v2298_v44  ;;  %v7244_v44 = vld [vmem:[%s10269_s25 + $0x1] ss:$0 sm:$0xff]  ;;  %s10337_s25 = sld [smem:[#allocation49_spill]] }
 0x7d3   : > { %8482 = vrsqrt.f32 %v2299_v45 }
 0x7dd   : > { %v8483_v46 = vpop.eup %8482 }
 0x7de   : > { %v2301_v48 = vmul.f32 %v8483_v46, %v2293_v35 }
 0x7e0   : > { %v2308_v49 = vmul.f32 %v7192_v47, %v2301_v48 }
 0x7e2   : > { %v2315_v50 = vadd.f32 %v7193_v38, %v2308_v49 }
 0x7e4   : > { %v2316_v52 = vpack.c.bf16 %v2315_v50, %v2315_v50 }
 0x7e6   : > { %7761 = vmatmul.mubr.msk.bf16.vlgmr.msra.gmra.mrb[24].mxu0 %vm1587_vm1, %v2316_v52 }
 0x7e7   : > { %7780 = vmatprep.mubr.msk.bf16.mxu0 %vm8858_vm0, %v8857_v0  ;;  %7777 = vmatpush3.bf16.msra.mxu0 %v8406_v15 }
 0x7e8   : > { %7778 = vmatprep.subr.bf16.mxu0 %v8857_v0 }
 0x7eb   : > { %7779 = vmatpush3.bf16.msra.mxu0 %v8408_v17 }
 0x7ec   : > { %7784 = vmatprep.subr.bf16.mxu0 %v8857_v0 }
 0x8b9   : > { %v2372_v56 = vpop.f32.mrb[24].mxu0 }
 0x8ba   : > { %v2373_v57 = vadd.f32 %v7194_v55, %v2372_v56  ;;  %v7762_v58 = vpop.f32.mrb[25].mxu0 }
 0x8bb   : > { %v2375_v59 = vpop.f32.mrb[26].mxu0 }
 0x8bc   : > { %v2378_v60 = vmax.f32 %v2373_v57, 0.0  ;;  %v7763_v61 = vpop.f32.mrb[27].mxu0 }
 0x8be   : > { %v2379_v62 = vpack.c.bf16 %v2378_v60, %v2378_v60 }
 0x8c0   : > { %7773 = vmatmul.mubr.msk.bf16.vlgmr.msra.gmra.mrb[24].mxu1 %vm2404_vm6, %v2379_v62 }
 0x8c1   : > { %7796 = vmatprep.mubr.msk.bf16.mxu1 %vm8858_vm0, %v8857_v0  ;;  %7793 = vmatpush3.bf16.msra.mxu1 %v8407_v16 }
 0x8c2   : > { %7794 = vmatprep.subr.bf16.mxu1 %v8857_v0 }
 0x8c5   : > { %7795 = vmatpush3.bf16.msra.mxu1 %v8409_v18 }
 0x8c6   : > { %7806 = vmatprep.subr.bf16.mxu1 %v8857_v0 }
 0x993   : > { %v2442_v63 = vpop.f32.mrb[24].mxu1 }
 0x994   : > { %v2448_v2 = vadd.f32 %v2442_v63, %v2315_v50  ;;  %v7774_v3 = vpop.f32.mrb[25].mxu1  ;;  %v7252_v50 = vld [vmem:[%s10272_s14 + $0x1] ss:$0 sm:$0xff]  ;;  %s10328_s14 = sld [smem:[#allocation41_spill]] }
 0x995   : > { %v2445_v4 = vpop.f32.mrb[26].mxu1 }
 0x996   : > { %v7775_v5 = vpop.f32.mrb[27].mxu1  ;;  %v2455_v6 = vadd.f32 %v7203_v1, %v2448_v2 }
 0x998   : > { %v2456_v9 = vsel %vm1587_vm1, %v2455_v6, 0.0 }
 0x999   : > { %2457 = vadd.xlane.f32.xlu0 %v2456_v9 }
 0xa26   : > { %v2458_v10 = vpop.xlane.xlu0 %2457 }
 0xa27   : > { %v2459_v11 = vmul.f32 0.03125, %v2458_v10 }
 0xa29   : > { %v2460_v12 = vsub.f32 %v2455_v6, %v2459_v11 }
 0xa2b   : > { %v2461_v13 = vmul.f32 %v2460_v12, %v2460_v12 }
 0xa2d   : > { %v2462_v14 = vsel %vm1587_vm1, %v2461_v13, 0.0 }
 0xa2e   : > { %2463 = vadd.xlane.f32.xlu0 %v2462_v14 }
 0xabb   : > { %v2464_v19 = vpop.xlane.xlu0 %2463 }
 0xabc   : > { %v2465_v20 = vmul.f32 0.03125, %v2464_v19 }
 0xabe   : > { %v2466_v21 = vadd.f32 1e-05, %v2465_v20 }
 0xac0   : > { %8484 = vrsqrt.f32 %v2466_v21 }
 0xaca   : > { %v8485_v22 = vpop.eup %8484 }
 0xacb   : > { %v2468_v24 = vmul.f32 %v8485_v22, %v2460_v12 }
 0xacd   : > { %v2475_v26 = vmul.f32 %v7204_v23, %v2468_v24 }
 0xacf   : > { %v9449_v27 = vadd.f32 %v7205_v25, %v2475_v26 }
 0xad1   : > { %v2537_v29 = vpack.c.bf16 %v9449_v27, %v9449_v27 }
 0xad3   : > { %7781 = vmatmul.mubr.msk.bf16.vlgmr.msra.gmra.mrb[28].mxu0 %vm1587_vm1, %v2537_v29  ;;  %7797 = vmatmul.mubr.msk.bf16.vlgmr.msra.gmra.mrb[28].mxu1 %vm1587_vm1, %v2537_v29 }
 0xad4   : > { %7785 = vmatpush3.bf16.msra.mxu0 %v8410_v28  ;;  %7788 = vmatprep.mubr.msk.bf16.mxu0 %vm8858_vm0, %v8857_v0 }
 0xad5   : > { %7786 = vmatprep.subr.bf16.mxu0 %v8857_v0  ;;  %7808 = vmatprep.mubr.msk.bf16.mxu1 %vm8858_vm0, %v8857_v0 }
 0xad8   : > { %7787 = vmatpush3.bf16.msra.mxu0 %v8411_v30 }
 0xad9   : > { %7800 = vmatprep.subr.bf16.mxu0 %v8857_v0 }
 0xadb   : > { %7789 = vmatmul.mubr.msk.bf16.vlgmr.msra.gmra.mrb[32].mxu0 %vm1587_vm1, %v2537_v29 }
 0xadc   : > { %7802 = vmatprep.mubr.msk.bf16.mxu0 %vm8858_vm0, %v8857_v0 }
 0xba6   : > { %v2593_v31 = vpop.f32.mrb[28].mxu0  ;;  %v2709_v32 = vpop.f32.mrb[28].mxu1 }
 0xba7   : > { %v7782_v33 = vpop.f32.mrb[29].mxu0  ;;  %v7798_v34 = vpop.f32.mrb[29].mxu1  ;;  %v2594_v48 = vadd.f32 %v7244_v44, %v2593_v31  ;;  %v9480_v56 = vadd.f32 %v7252_v50, %v2709_v32 }
 0xba8   : > { %v2596_v35 = vpop.f32.mrb[30].mxu0  ;;  %v2712_v36 = vpop.f32.mrb[30].mxu1 }
 0xba9   : > { %v7783_v37 = vpop.f32.mrb[31].mxu0  ;;  %v7799_v39 = vpop.f32.mrb[31].mxu1  ;;  %v2745_v49 = vpack.c.bf16 %v2594_v48, %v2594_v48  ;;  %v2985_v61 = vpack.c.bf16 %v9480_v56, %v9480_v56 }
 0xbab   : > { %v2993_v4 = vsel %vm2025_vm3, %v2985_v61, 0 }
 0xbae   : > { %v2651_v41 = vpop.f32.mrb[32].mxu0 }
 0xbaf   : > { %v2652_v42 = vadd.f32 %v7248_v40, %v2651_v41  ;;  %v7790_v43 = vpop.f32.mrb[33].mxu0 }
 0xbb0   : > { %v2654_v45 = vpop.f32.mrb[34].mxu0 }
 0xbb1   : > { %2729 = vrot.lane.b32.xlu0 %v2652_v42, %s10317_s7  ;;  %2726 = vrot.lane.b32.xlu1 %v2652_v42, %s10318_s2  ;;  %v7791_v46 = vpop.f32.mrb[35].mxu0  ;;  %v2749_v47 = vpack.c.bf16 %v2652_v42, %v2652_v42 }
 0xbb3   : > { %v2757_v38 = vsel %vm1785_vm2, %v2749_v47, 0 }
 0xbb4   : > { %7801 = vmatpush3.bf16.xpose.msra.mxu0 %v2757_v38 }
 0xbb5   : > { %2719 = vrot.lane.b32.xlu0 %v2594_v48, %s10317_s7  ;;  %2716 = vrot.lane.b32.xlu1 %v2594_v48, %s10318_s2 }
 0xbb6   : > { %7812 = vmatprep.subr.bf16.mxu0 %v8857_v0 }
 0xbb9   : > { %2732 = vrot.lane.b32.xlu1 %v2652_v42, %s10319_s3 }
 0xbbb   : > { %7803 = vmatmul.mubr.msk.bf16.vlgmr.msra.gmra.mrb[36].mxu0 %vm1785_vm2, %v2745_v49 }
 0xbbc   : > { %7814 = vmatprep.mubr.msk.bf16.mxu0 %vm8858_vm0, %v8857_v0 }
 0xbbd   : > { %2722 = vrot.lane.b32.xlu1 %v2594_v48, %s10319_s3 }
 0xc23   : > { %v2730_v52 = vpop.permute.xlu0 %2729  ;;  %v2727_v53 = vpop.permute.xlu1 %2726 }
 0xc24   : > { %v2751_v54 = vpack.c.bf16 %v2730_v52, %v2730_v52  ;;  %v2750_v55 = vpack.c.bf16 %v2727_v53, %v2727_v53 }
 0xc26   : > { %v2803_v57 = vsel %vm1785_vm2, %v2750_v55, 0  ;;  %v2849_v58 = vsel %vm1785_vm2, %v2751_v54, 0 }
 0xc27   : > { %7807 = vmatpush3.bf16.xpose.msra.mxu1 %v2803_v57  ;;  %v2717_v59 = vpop.permute.xlu1 %2716  ;;  %7813 = vmatpush3.bf16.xpose.msra.mxu0 %v2849_v58  ;;  %v2720_v60 = vpop.permute.xlu0 %2719 }
 0xc28   : > { %7818 = vmatprep.subr.bf16.mxu1 %v8857_v0  ;;  %7824 = vmatprep.subr.bf16.mxu0 %v8857_v0  ;;  %v2747_v63 = vpack.c.bf16 %v2720_v60, %v2720_v60  ;;  %v2746_v1 = vpack.c.bf16 %v2717_v59, %v2717_v59 }
 0xc2b   : > { %v2733_v62 = vpop.permute.xlu1 %2732 }
 0xc2c   : > { %v2752_v2 = vpack.c.bf16 %v2733_v62, %v2733_v62 }
 0xc2e   : > { %7809 = vmatmul.mubr.msk.bf16.vlgmr.msra.gmra.mrb[32].mxu1 %vm1785_vm2, %v2746_v1  ;;  %7815 = vmatmul.mubr.msk.bf16.vlgmr.msra.gmra.mrb[40].mxu0 %vm1785_vm2, %v2747_v63  ;;  %v2895_v3 = vsel %vm1785_vm2, %v2752_v2, 0 }
 0xc2f   : > { %7819 = vmatpush3.bf16.xpose.msra.mxu1 %v2895_v3  ;;  %7825 = vmatpush3.bf16.msra.mxu0 %v2993_v4  ;;  %v2723_v5 = vpop.permute.xlu1 %2722 }
 0xc30   : > { %7820 = vmatprep.mubr.msk.bf16.mxu1 %vm8858_vm0, %v8857_v0  ;;  %7830 = vmatprep.subr.bf16.mxu1 %v8857_v0  ;;  %v2748_v6 = vpack.c.bf16 %v2723_v5, %v2723_v5 }
 0xc31   : > { %7826 = vmatprep.mubr.msk.bf16.mxu0 %vm8858_vm0, %v8857_v0  ;;  %7836 = vmatprep.subr.bf16.mxu0 %v8857_v0 }
 0xc36   : > { %7821 = vmatmul.mubr.msk.bf16.vlgmr.msra.gmra.mrb[36].mxu1 %vm1785_vm2, %v2748_v6 }
 0xc37   : > { %7832 = vmatprep.mubr.msk.bf16.mxu1 %vm8858_vm0, %v8857_v0 }
 0xc8e   : > { %v2793_v9 = vpop.f32.mrb[36].mxu0 }
 0xc8f   : > { %v2794_v10 = vadd.f32 %v2793_v9, %v9360_v51  ;;  %v7804_v11 = vpop.f32.mrb[37].mxu0 }
 0xc90   : > { %v2796_v12 = vpop.f32.mrb[38].mxu0 }
 0xc91   : > { %v7805_v13 = vpop.f32.mrb[39].mxu0  ;;  %v2937_v14 = vsel %vm1785_vm2, %v2794_v10, -inf }
 0xc92   : > { %2938 = vmax.xlane.f32.xlu0 %v2937_v14 }
 0xd01   : > { %v2839_v15 = vpop.f32.mrb[32].mxu1  ;;  %v2885_v16 = vpop.f32.mrb[40].mxu0 }
 0xd02   : > { %v2840_v17 = vadd.f32 %v2839_v15, %v9360_v51  ;;  %v2886_v18 = vadd.f32 %v2885_v16, %v9360_v51  ;;  %v7810_v19 = vpop.f32.mrb[33].mxu1  ;;  %v7816_v20 = vpop.f32.mrb[41].mxu0 }
 0xd03   : > { %v2842_v21 = vpop.f32.mrb[34].mxu1  ;;  %v2888_v22 = vpop.f32.mrb[42].mxu0 }
 0xd04   : > { %v7811_v23 = vpop.f32.mrb[35].mxu1  ;;  %v7817_v24 = vpop.f32.mrb[43].mxu0  ;;  %v2940_v25 = vsel %vm1785_vm2, %v2840_v17, -inf  ;;  %v2943_v26 = vsel %vm1785_vm2, %v2886_v18, -inf }
 0xd05   : > { %2941 = vmax.xlane.f32.xlu1 %v2940_v25  ;;  %2944 = vmax.xlane.f32.xlu0 %v2943_v26  ;;  %v8412_v23 = vld [vmem:[%s10303_s11 + $0x10] sm:$0xff]   ;;  %v8413_v24 = vld [vmem:[%s10303_s11 + $0x18] sm:$0xff]   ;;  %s10325_s11 = sld [smem:[#allocation40_spill]] }
 0xd09   : > { %v2931_v28 = vpop.f32.mrb[36].mxu1 }
 0xd0a   : > { %v2932_v29 = vadd.f32 %v2931_v28, %v9360_v51  ;;  %v7822_v30 = vpop.f32.mrb[37].mxu1 }
 0xd0b   : > { %v2934_v31 = vpop.f32.mrb[38].mxu1 }
 0xd0c   : > { %v7823_v32 = vpop.f32.mrb[39].mxu1  ;;  %v2946_v33 = vsel %vm1785_vm2, %v2932_v29, -inf }
 0xd0d   : > { %2947 = vmax.xlane.f32.xlu0 %v2946_v33 }
 0xd16   : > { %2736 = vrot.lane.b32.xlu1 %v9480_v56, %s10318_s2 }
 0xd1f   : > { %v2939_v34 = vpop.xlane.xlu0 %2938 }
 0xd20   : > { %v2949_v35 = vsub.f32 %v2794_v10, %v2939_v34 }
 0xd22   : > { %v2953_v36 = vmul.f32 1.442695, %v2949_v35 }
 0xd24   : > { %8486 = vpow2.f32 %v2953_v36 }
 0xd2e   : > { %v8487_v37 = vpop.eup %8486 }
 0xd2f   : > { %v2961_v39 = vsel %vm1785_vm2, %v8487_v37, 0.0 }
 0xd3a   : > { %2962 = vadd.xlane.f32.xlu1 %v2961_v39 }
 0xd92   : > { %v2942_v40 = vpop.xlane.xlu1 %2941  ;;  %v2945_v41 = vpop.xlane.xlu0 %2944 }
 0xd93   : > { %v2950_v42 = vsub.f32 %v2840_v17, %v2942_v40  ;;  %v2951_v43 = vsub.f32 %v2886_v18, %v2945_v41 }
 0xd95   : > { %v2955_v44 = vmul.f32 1.442695, %v2950_v42  ;;  %v2957_v45 = vmul.f32 1.442695, %v2951_v43 }
 0xd96   : > { %v2737_v46 = vpop.permute.xlu1 %2736 }
 0xd97   : > { %8488 = vpow2.f32 %v2955_v44  ;;  %v2986_v47 = vpack.c.bf16 %v2737_v46, %v2737_v46 }
 0xd98   : > { %8490 = vpow2.f32 %v2957_v45 }
 0xd99   : > { %v3039_v48 = vsel %vm2025_vm3, %v2986_v47, 0  ;;  %v7267_v47 = vld [vmem:[%s10304_s27 + $0x1] ss:$0 sm:$0xff]  ;;  %s10339_s27 = sld [smem:[#allocation51_spill]] }
 0xd9a   : > { %7831 = vmatpush3.bf16.msra.mxu1 %v3039_v48  ;;  %v2948_v38 = vpop.xlane.xlu0 %2947 }
 0xd9b   : > { %v2952_v49 = vsub.f32 %v2932_v29, %v2948_v38  ;;  %7842 = vmatprep.subr.bf16.mxu1 %v8857_v0 }
 0xd9d   : > { %v2959_v50 = vmul.f32 1.442695, %v2952_v49 }
 0xd9f   : > { %8492 = vpow2.f32 %v2959_v50 }
 0xda1   : > { %v8489_v52 = vpop.eup %8488 }
 0xda2   : > { %v8491_v53 = vpop.eup %8490  ;;  %v2964_v54 = vsel %vm1785_vm2, %v8489_v52, 0.0 }
 0xda3   : > { %2965 = vadd.xlane.f32.xlu0 %v2964_v54  ;;  %v2967_v55 = vsel %vm1785_vm2, %v8491_v53, 0.0 }
 0xda4   : > { %2968 = vadd.xlane.f32.xlu1 %v2967_v55 }
 0xda9   : > { %v8493_v57 = vpop.eup %8492 }
 0xdaa   : > { %v2970_v58 = vsel %vm1785_vm2, %v8493_v57, 0.0 }
 0xdab   : > { %2971 = vadd.xlane.f32.xlu0 %v2970_v58 }
 0xdb5   : > { %2742 = vrot.lane.b32.xlu1 %v9480_v56, %s10319_s3 }
 0xdc1   : > { %2739 = vrot.lane.b32.xlu0 %v9480_v56, %s10317_s7 }
 0xdc7   : > { %v2963_v59 = vpop.xlane.xlu1 %2962 }
 0xdc8   : > { %8494 = vrcp.f32 %v2963_v59 }
 0xdd2   : > { %v8495_v60 = vpop.eup %8494 }
 0xdd3   : > { %v2977_v61 = vmul.f32 %v8495_v60, %v8487_v37  ;;  %v8414_v60 = vld [vmem:[%s10305_s6 + $0x10] sm:$0xff]  }
 0xdd5   : > { %v2981_v62 = vpack.c.bf16 %v2977_v61, %v2977_v61  ;;  %v8420_v61 = vld [vmem:[%s10306_s26 + $0x20] sm:$0xff]  }
 0xdd7   : > { %7827 = vmatmul.mubr.msk.bf16.vlgmr.msra.gmra.mrb[44].mxu0 %vm1785_vm2, %v2981_v62  ;;  %v8421_v62 = vld [vmem:[%s10306_s26 + $0x28] sm:$0xff]  }
 0xdd8   : > { %7838 = vmatprep.mubr.msk.bf16.mxu0 %vm8858_vm0, %v8857_v0 }
 0xe30   : > { %v2966_v63 = vpop.xlane.xlu0 %2965 }
 0xe31   : > { %v2969_v1 = vpop.xlane.xlu1 %2968  ;;  %8496 = vrcp.f32 %v2966_v63 }
 0xe32   : > { %8498 = vrcp.f32 %v2969_v1 }
 0xe35   : > { %v2743_v3 = vpop.permute.xlu1 %2742 }
 0xe36   : > { %v2988_v56 = vpack.c.bf16 %v2743_v3, %v2743_v3 }
 0xe38   : > { %v2972_v2 = vpop.xlane.xlu0 %2971  ;;  %v3131_v14 = vsel %vm2025_vm3, %v2988_v56, 0  ;;  %v7269_v56 = vld [vmem:[%s10309_s23 + $0x1] ss:$0 sm:$0xff]  ;;  %s10336_s23 = sld [smem:[#allocation45_spill]] }
 0xe39   : > { %8500 = vrcp.f32 %v2972_v2 }
 0xe3b   : > { %v8497_v4 = vpop.eup %8496 }
 0xe3c   : > { %v8499_v5 = vpop.eup %8498  ;;  %v2740_v6 = vpop.permute.xlu0 %2739  ;;  %v2978_v9 = vmul.f32 %v8497_v4, %v8489_v52  ;;  %v7268_v4 = vld [vmem:[%s10307_s16 + $0x1] ss:$0 sm:$0xff]  ;;  %s10330_s16 = sld [smem:[#allocation46_spill]] }
 0xe3d   : > { %v2987_v10 = vpack.c.bf16 %v2740_v6, %v2740_v6  ;;  %v2979_v11 = vmul.f32 %v8499_v5, %v8491_v53 }
 0xe3e   : > { %v2982_v12 = vpack.c.bf16 %v2978_v9, %v2978_v9 }
 0xe3f   : > { %v3085_v13 = vsel %vm2025_vm3, %v2987_v10, 0  ;;  %v2983_v15 = vpack.c.bf16 %v2979_v11, %v2979_v11  ;;  %v8416_v10 = vld [vmem:[%s10323_s9] sm:$0xff]  }
 0xe40   : > { %7833 = vmatmul.mubr.msk.bf16.vlgmr.msra.gmra.mrb[40].mxu1 %vm1785_vm2, %v2982_v12  ;;  %7837 = vmatpush3.bf16.msra.mxu0 %v3085_v13  ;;  %v8417_v12 = vld [vmem:[%s10323_s9 + $0x8] sm:$0xff]  }
 0xe41   : > { %7843 = vmatpush3.bf16.msra.mxu1 %v3131_v14  ;;  %7844 = vmatprep.mubr.msk.bf16.mxu1 %vm8858_vm0, %v8857_v0 }
 0xe42   : > { %7848 = vmatprep.subr.bf16.mxu0 %v8857_v0  ;;  %7856 = vmatprep.subr.bf16.mxu1 %v8857_v0 }
 0xe43   : > { %v8501_v16 = vpop.eup %8500  ;;  %7839 = vmatmul.mubr.msk.bf16.vlgmr.msra.gmra.mrb[48].mxu0 %vm1785_vm2, %v2983_v15  ;;  %v8422_v15 = vld [vmem:[%s10306_s26 + $0x30] sm:$0xff]  }
 0xe44   : > { %v2980_v17 = vmul.f32 %v8501_v16, %v8493_v57  ;;  %7852 = vmatprep.mubr.msk.bf16.mxu0 %vm8858_vm0, %v8857_v0  ;;  %7849 = vmatpush3.bf16.msra.mxu0 %v8412_v23  ;;  %v8423_v16 = vld [vmem:[%s10306_s26 + $0x38] sm:$0xff]   ;;  %s10338_s26 = sld [smem:[#allocation50_spill]] }
 0xe45   : > { %7850 = vmatprep.subr.bf16.mxu0 %v8857_v0 }
 0xe46   : > { %v2984_v18 = vpack.c.bf16 %v2980_v17, %v2980_v17  ;;  %v7270_v17 = vld [vmem:[%s10310_s15 + $0x1] ss:$0 sm:$0xff]  ;;  %s10329_s15 = sld [smem:[#allocation42_spill]] }
 0xe48   : > { %7845 = vmatmul.mubr.msk.bf16.vlgmr.msra.gmra.mrb[44].mxu1 %vm1785_vm2, %v2984_v18  ;;  %7851 = vmatpush3.bf16.msra.mxu0 %v8413_v24  ;;  %v8424_v24 = vld [vmem:[%s10325_s11] sm:$0xff]  }
 0xe49   : > { %7860 = vmatprep.mubr.msk.bf16.mxu1 %vm8858_vm0, %v8857_v0  ;;  %7864 = vmatprep.subr.bf16.mxu0 %v8857_v0 }
 0xe4a   : > { %7857 = vmatpush3.bf16.msra.mxu1 %v8414_v60 }
 0xe4b   : > { %7858 = vmatprep.subr.bf16.mxu1 %v8857_v0 }
 0xeaa   : > { %v3029_v19 = vpop.f32.mrb[44].mxu0 }
 0xeab   : > { %v7828_v20 = vpop.f32.mrb[45].mxu0 }
 0xeac   : > { %v3032_v21 = vpop.f32.mrb[46].mxu0 }
 0xead   : > { %v7829_v22 = vpop.f32.mrb[47].mxu0 }
 0xf13   : > { %v3075_v25 = vpop.f32.mrb[40].mxu1 }
 0xf14   : > { %3174 = vrot.lane.b32.xlu1 %v3075_v25, %s10320_s4  ;;  %v7834_v26 = vpop.f32.mrb[41].mxu1 }
 0xf15   : > { %v3078_v28 = vpop.f32.mrb[42].mxu1 }
 0xf16   : > { %v7835_v29 = vpop.f32.mrb[43].mxu1  ;;  %v3121_v30 = vpop.f32.mrb[48].mxu0  ;;  %v8425_v28 = vld [vmem:[%s10325_s11 + $0x8] sm:$0xff]  }
 0xf17   : > { %3178 = vrot.lane.b32.xlu0 %v3121_v30, %s10321_s5  ;;  %v7840_v31 = vpop.f32.mrb[49].mxu0 }
 0xf18   : > { %v3124_v32 = vpop.f32.mrb[50].mxu0 }
 0xf19   : > { %v7841_v33 = vpop.f32.mrb[51].mxu0  ;;  %v7286_v32 = vld [vmem:[%s10326_s12] ss:$0 sm:$0xff] }
 0xf1b   : > { %v3167_v34 = vpop.f32.mrb[44].mxu1 }
 0xf1c   : > { %3182 = vrot.lane.b32.xlu1 %v3167_v34, %s10322_s8  ;;  %v7846_v35 = vpop.f32.mrb[45].mxu1 }
 0xf1d   : > { %v3170_v36 = vpop.f32.mrb[46].mxu1 }
 0xf1e   : > { %v7847_v37 = vpop.f32.mrb[47].mxu1  ;;  %v7282_v36 = vld [vmem:[%s10327_s13] ss:$0 sm:$0xff] }
 0xf86   : > { %v3175_v39 = vpop.permute.xlu1 %3174 }
 0xf87   : > { %v3185_v41 = vsel %vm1785_vm2, %v3029_v19, %v3175_v39 }
 0xf89   : > { %v3179_v40 = vpop.permute.xlu0 %3178 }
 0xf8a   : > { %v3186_v42 = vsel %vm2220_vm4, %v3185_v41, %v3179_v40 }
 0xf8e   : > { %v3183_v43 = vpop.permute.xlu1 %3182 }
 0xf8f   : > { %v3187_v44 = vsel %vm2222_vm5, %v3186_v42, %v3183_v43 }
 0xf90   : > { %v3188_v45 = vpack.c.bf16 %v3187_v44, %v3187_v44 }
 0xf92   : > { %7853 = vmatmul.mubr.msk.bf16.vlgmr.msra.gmra.mrb[52].mxu0 %vm1587_vm1, %v3188_v45 }
 0xf93   : > { %7872 = vmatprep.mubr.msk.bf16.mxu0 %vm8858_vm0, %v8857_v0  ;;  %7865 = vmatpush3.bf16.msra.mxu0 %v8420_v61 }
 0xf94   : > { %7866 = vmatprep.subr.bf16.mxu0 %v8857_v0 }
 0xf97   : > { %7867 = vmatpush3.bf16.msra.mxu0 %v8421_v62  ;;  %v7290_v62 = vld [vmem:[%s10328_s14] ss:$0 sm:$0xff] }
 0xf98   : > { %7868 = vmatprep.subr.bf16.mxu0 %v8857_v0 }
 0xf9b   : > { %7869 = vmatpush3.bf16.msra.mxu0 %v8422_v15 }
 0xf9c   : > { %7870 = vmatprep.subr.bf16.mxu0 %v8857_v0 }
 0xf9f   : > { %7871 = vmatpush3.bf16.msra.mxu0 %v8423_v16 }
 0xfa0   : > { %7892 = vmatprep.subr.bf16.mxu0 %v8857_v0 }
0x1065   : > { %v3238_v46 = vpop.f32.mrb[52].mxu0 }
0x1066   : > { %v3244_v48 = vadd.f32 %v3238_v46, %v9449_v27  ;;  %v7854_v38 = vpop.f32.mrb[53].mxu0  ;;  %v8415_v27 = vld [vmem:[%s10305_s6 + $0x18] sm:$0xff]   ;;  %s10324_s6 = sld [smem:[#allocation38_spill]] }
0x1067   : > { %v3241_v49 = vpop.f32.mrb[54].mxu0  ;;  %7859 = vmatpush3.bf16.msra.mxu1 %v8415_v27 }
0x1068   : > { %v7855_v50 = vpop.f32.mrb[55].mxu0  ;;  %v3251_v52 = vadd.f32 %v7267_v47, %v3244_v48  ;;  %7876 = vmatprep.subr.bf16.mxu1 %v8857_v0 }
0x106a   : > { %v3252_v53 = vsel %vm1587_vm1, %v3251_v52, 0.0 }
0x106b   : > { %3253 = vadd.xlane.f32.xlu0 %v3252_v53 }
0x106c   : > { %v8418_v13 = vld [vmem:[%s10324_s6] sm:$0xff]   ;;  %v8419_v14 = vld [vmem:[%s10324_s6 + $0x8] sm:$0xff]  }
0x10f8   : > { %v3254_v54 = vpop.xlane.xlu0 %3253 }
0x10f9   : > { %v3255_v55 = vmul.f32 0.03125, %v3254_v54 }
0x10fb   : > { %v3256_v57 = vsub.f32 %v3251_v52, %v3255_v55 }
0x10fd   : > { %v3257_v58 = vmul.f32 %v3256_v57, %v3256_v57 }
0x10ff   : > { %v3258_v59 = vsel %vm1587_vm1, %v3257_v58, 0.0 }
0x1100   : > { %3259 = vadd.xlane.f32.xlu1 %v3258_v59 }
0x118d   : > { %v3260_v63 = vpop.xlane.xlu1 %3259 }
0x118e   : > { %v3261_v1 = vmul.f32 0.03125, %v3260_v63 }
0x1190   : > { %v3262_v2 = vadd.f32 1e-05, %v3261_v1 }
0x1192   : > { %8502 = vrsqrt.f32 %v3262_v2 }
0x119c   : > { %v8503_v3 = vpop.eup %8502 }
0x119d   : > { %v3264_v5 = vmul.f32 %v8503_v3, %v3256_v57 }
0x119f   : > { %v3271_v6 = vmul.f32 %v7268_v4, %v3264_v5 }
0x11a1   : > { %v9564_v9 = vadd.f32 %v7269_v56, %v3271_v6 }
0x11a3   : > { %v3279_v11 = vpack.c.bf16 %v9564_v9, %v9564_v9 }
0x11a5   : > { %7861 = vmatmul.mubr.msk.bf16.vlgmr.msra.gmra.mrb[48].mxu1 %vm1587_vm1, %v3279_v11 }
0x11a6   : > { %7877 = vmatpush3.bf16.msra.mxu1 %v8416_v10  ;;  %7880 = vmatprep.mubr.msk.bf16.mxu1 %vm8858_vm0, %v8857_v0 }
0x11a7   : > { %7878 = vmatprep.subr.bf16.mxu1 %v8857_v0 }
0x11aa   : > { %7879 = vmatpush3.bf16.msra.mxu1 %v8417_v12 }
0x11ab   : > { %7884 = vmatprep.subr.bf16.mxu1 %v8857_v0 }
0x11ad   : > { %7881 = vmatmul.mubr.msk.bf16.vlgmr.msra.gmra.mrb[52].mxu1 %vm1587_vm1, %v9302_v8 }
0x11ae   : > { %7885 = vmatpush3.bf16.msra.mxu1 %v8418_v13  ;;  %7888 = vmatprep.mubr.msk.bf16.mxu1 %vm8858_vm0, %v8857_v0 }
0x11af   : > { %7886 = vmatprep.subr.bf16.mxu1 %v8857_v0 }
0x11b2   : > { %7887 = vmatpush3.bf16.msra.mxu1 %v8419_v14 }
0x11b3   : > { %7900 = vmatprep.subr.bf16.mxu1 %v8857_v0 }
0x11b5   : > { %7889 = vmatmul.mubr.msk.bf16.vlgmr.msra.gmra.mrb[56].mxu1 %vm1587_vm1, %v9302_v8 }
0x11b6   : > { %7902 = vmatprep.mubr.msk.bf16.mxu1 %vm8858_vm0, %v8857_v0 }
0x1278   : > { %v3335_v18 = vpop.f32.mrb[48].mxu1 }
0x1279   : > { %v3336_v19 = vadd.f32 %v7270_v17, %v3335_v18  ;;  %v7862_v20 = vpop.f32.mrb[49].mxu1 }
0x127a   : > { %v3338_v21 = vpop.f32.mrb[50].mxu1 }
0x127b   : > { %v3341_v22 = vmax.f32 %v3336_v19, 0.0  ;;  %v7863_v23 = vpop.f32.mrb[51].mxu1 }
0x127d   : > { %v3342_v25 = vpack.c.bf16 %v3341_v22, %v3341_v22 }
0x127f   : > { %7873 = vmatmul.mubr.msk.bf16.vlgmr.msra.gmra.mrb[56].mxu0 %vm2404_vm6, %v3342_v25 }
0x1280   : > { %v3557_v26 = vpop.f32.mrb[52].mxu1  ;;  %7893 = vmatpush3.bf16.msra.mxu0 %v8424_v24  ;;  %7896 = vmatprep.mubr.msk.bf16.mxu0 %vm8858_vm0, %v8857_v0 }
0x1281   : > { %v7882_v29 = vpop.f32.mrb[53].mxu1  ;;  %7894 = vmatprep.subr.bf16.mxu0 %v8857_v0  ;;  %v3558_v41 = vadd.f32 %v7282_v36, %v3557_v26 }
0x1282   : > { %v3560_v30 = vpop.f32.mrb[54].mxu1 }
0x1283   : > { %v7883_v31 = vpop.f32.mrb[55].mxu1 }
0x1284   : > { %7895 = vmatpush3.bf16.msra.mxu0 %v8425_v28 }
0x1285   : > { %7906 = vmatprep.subr.bf16.mxu0 %v8857_v0 }
0x1287   : > { %7897 = vmatmul.mubr.msk.bf16.vlgmr.msra.gmra.mrb[60].mxu0 %vm1587_vm1, %v9302_v8  ;;  %v3709_v8 = vpack.c.bf16 %v3558_v41, %v3558_v41 }
0x1288   : > { %v3615_v33 = vpop.f32.mrb[56].mxu1  ;;  %7908 = vmatprep.mubr.msk.bf16.mxu0 %vm8858_vm0, %v8857_v0 }
0x1289   : > { %v3616_v34 = vadd.f32 %v7286_v32, %v3615_v33  ;;  %v7890_v35 = vpop.f32.mrb[57].mxu1 }
0x128a   : > { %v3618_v37 = vpop.f32.mrb[58].mxu1 }
0x128b   : > { %3693 = vrot.lane.b32.xlu1 %v3616_v34, %s10317_s7  ;;  %3690 = vrot.lane.b32.xlu0 %v3616_v34, %s10318_s2  ;;  %v7891_v39 = vpop.f32.mrb[59].mxu1  ;;  %v3713_v40 = vpack.c.bf16 %v3616_v34, %v3616_v34 }
0x128d   : > { %v3721_v42 = vsel %vm1785_vm2, %v3713_v40, 0 }
0x128e   : > { %7901 = vmatpush3.bf16.xpose.msra.mxu1 %v3721_v42 }
0x128f   : > { %3696 = vrot.lane.b32.xlu1 %v3616_v34, %s10319_s3  ;;  %3680 = vrot.lane.b32.xlu0 %v3558_v41, %s10318_s2 }
0x1290   : > { %7912 = vmatprep.subr.bf16.mxu1 %v8857_v0 }
0x1293   : > { %3686 = vrot.lane.b32.xlu1 %v3558_v41, %s10319_s3  ;;  %3683 = vrot.lane.b32.xlu0 %v3558_v41, %s10317_s7 }
0x1295   : > { %7903 = vmatmul.mubr.msk.bf16.vlgmr.msra.gmra.mrb[60].mxu1 %vm1785_vm2, %v3709_v8 }
0x1296   : > { %7914 = vmatprep.mubr.msk.bf16.mxu1 %vm8858_vm0, %v8857_v0 }
0x12fd   : > { %v3694_v43 = vpop.permute.xlu1 %3693  ;;  %v3691_v44 = vpop.permute.xlu0 %3690 }
0x12fe   : > { %v3715_v45 = vpack.c.bf16 %v3694_v43, %v3694_v43  ;;  %v3714_v46 = vpack.c.bf16 %v3691_v44, %v3691_v44 }
0x1300   : > { %v3813_v47 = vsel %vm1785_vm2, %v3715_v45, 0  ;;  %v3767_v48 = vsel %vm1785_vm2, %v3714_v46, 0 }
0x1301   : > { %v3697_v38 = vpop.permute.xlu1 %3696  ;;  %7907 = vmatpush3.bf16.xpose.msra.mxu0 %v3767_v48  ;;  %v3681_v49 = vpop.permute.xlu0 %3680  ;;  %7913 = vmatpush3.bf16.xpose.msra.mxu1 %v3813_v47 }
0x1302   : > { %7918 = vmatprep.subr.bf16.mxu0 %v8857_v0  ;;  %7924 = vmatprep.subr.bf16.mxu1 %v8857_v0  ;;  %v3716_v50 = vpack.c.bf16 %v3697_v38, %v3697_v38  ;;  %v3710_v53 = vpack.c.bf16 %v3681_v49, %v3681_v49 }
0x1304   : > { %v3859_v55 = vsel %vm1785_vm2, %v3716_v50, 0 }
0x1305   : > { %v3684_v52 = vpop.permute.xlu0 %3683  ;;  %v3687_v57 = vpop.permute.xlu1 %3686 }
0x1306   : > { %v3711_v54 = vpack.c.bf16 %v3684_v52, %v3684_v52  ;;  %v3712_v58 = vpack.c.bf16 %v3687_v57, %v3687_v57 }
0x1308   : > { %7909 = vmatmul.mubr.msk.bf16.vlgmr.msra.gmra.mrb[64].mxu0 %vm1785_vm2, %v3710_v53  ;;  %7915 = vmatmul.mubr.msk.bf16.vlgmr.msra.gmra.mrb[64].mxu1 %vm1785_vm2, %v3711_v54 }
0x1309   : > { %7919 = vmatpush3.bf16.xpose.msra.mxu0 %v3859_v55  ;;  %7920 = vmatprep.mubr.msk.bf16.mxu0 %vm8858_vm0, %v8857_v0 }
0x130a   : > { %7930 = vmatprep.subr.bf16.mxu0 %v8857_v0  ;;  %7926 = vmatprep.mubr.msk.bf16.mxu1 %vm8858_vm0, %v8857_v0 }
0x1310   : > { %7921 = vmatmul.mubr.msk.bf16.vlgmr.msra.gmra.mrb[68].mxu0 %vm1785_vm2, %v3712_v58 }
0x1311   : > { %7932 = vmatprep.mubr.msk.bf16.mxu0 %vm8858_vm0, %v8857_v0 }
0x1352   : > { %v9631_v59 = vpop.f32.mrb[56].mxu0 }
0x1353   : > { %v7874_v60 = vpop.f32.mrb[57].mxu0 }
0x1354   : > { %v3407_v27 = vpop.f32.mrb[58].mxu0 }
0x1355   : > { %v7875_v61 = vpop.f32.mrb[59].mxu0 }
0x135a   : > { %v3673_v63 = vpop.f32.mrb[60].mxu0 }
0x135b   : > { %v9634_v1 = vadd.f32 %v7290_v62, %v3673_v63  ;;  %v7898_v2 = vpop.f32.mrb[61].mxu0 }
0x135c   : > { %v3676_v3 = vpop.f32.mrb[62].mxu0 }
0x135d   : > { %v7899_v4 = vpop.f32.mrb[63].mxu0  ;;  %v3949_v5 = vpack.c.bf16 %v9634_v1, %v9634_v1 }
0x135f   : > { %v3957_v56 = vsel %vm2025_vm3, %v3949_v5, 0 }
0x1360   : > { %7925 = vmatpush3.bf16.msra.mxu1 %v3957_v56 }
0x1361   : > { %7936 = vmatprep.subr.bf16.mxu1 %v8857_v0 }
0x1368   : > { %v3757_v6 = vpop.f32.mrb[60].mxu1 }
0x1369   : > { %v3758_v10 = vadd.f32 %v3757_v6, %v9360_v51  ;;  %v7904_v11 = vpop.f32.mrb[61].mxu1 }
0x136a   : > { %v3760_v12 = vpop.f32.mrb[62].mxu1 }
0x136b   : > { %v7905_v13 = vpop.f32.mrb[63].mxu1  ;;  %v3901_v14 = vsel %vm1785_vm2, %v3758_v10, -inf }
0x136c   : > { %3902 = vmax.xlane.f32.xlu0 %v3901_v14 }
0x13db   : > { %v3803_v15 = vpop.f32.mrb[64].mxu0  ;;  %v3849_v16 = vpop.f32.mrb[64].mxu1 }
0x13dc   : > { %v3804_v17 = vadd.f32 %v3803_v15, %v9360_v51  ;;  %v3850_v18 = vadd.f32 %v3849_v16, %v9360_v51  ;;  %v7910_v19 = vpop.f32.mrb[65].mxu0  ;;  %v7916_v20 = vpop.f32.mrb[65].mxu1 }
0x13dd   : > { %v3806_v21 = vpop.f32.mrb[66].mxu0  ;;  %v3852_v22 = vpop.f32.mrb[66].mxu1 }
0x13de   : > { %v7911_v23 = vpop.f32.mrb[67].mxu0  ;;  %v7917_v24 = vpop.f32.mrb[67].mxu1  ;;  %v3907_v25 = vsel %vm1785_vm2, %v3850_v18, -inf  ;;  %v3904_v26 = vsel %vm1785_vm2, %v3804_v17, -inf }
0x13df   : > { %3908 = vmax.xlane.f32.xlu0 %v3907_v25  ;;  %3905 = vmax.xlane.f32.xlu1 %v3904_v26  ;;  %v8426_v23 = vld [vmem:[%s10329_s15] sm:$0xff]   ;;  %v8427_v24 = vld [vmem:[%s10329_s15 + $0x8] sm:$0xff]  }
0x13e3   : > { %v3895_v28 = vpop.f32.mrb[68].mxu0 }
0x13e4   : > { %v3896_v29 = vadd.f32 %v3895_v28, %v9360_v51  ;;  %v7922_v30 = vpop.f32.mrb[69].mxu0 }
0x13e5   : > { %v3898_v31 = vpop.f32.mrb[70].mxu0 }
0x13e6   : > { %v7923_v32 = vpop.f32.mrb[71].mxu0  ;;  %v3910_v33 = vsel %vm1785_vm2, %v3896_v29, -inf }
0x13e7   : > { %3911 = vmax.xlane.f32.xlu0 %v3910_v33 }
0x13f0   : > { %3700 = vrot.lane.b32.xlu1 %v9634_v1, %s10318_s2 }
0x13f9   : > { %v3903_v34 = vpop.xlane.xlu0 %3902 }
0x13fa   : > { %v3913_v35 = vsub.f32 %v3758_v10, %v3903_v34 }
0x13fc   : > { %v3917_v36 = vmul.f32 1.442695, %v3913_v35 }
0x13fe   : > { %8504 = vpow2.f32 %v3917_v36 }
0x1408   : > { %v8505_v37 = vpop.eup %8504 }
0x1409   : > { %v3925_v39 = vsel %vm1785_vm2, %v8505_v37, 0.0 }
0x1414   : > { %3926 = vadd.xlane.f32.xlu1 %v3925_v39  ;;  %v3410_v39 = vadd.f32 %v9631_v59, %v9564_v9 }
0x146c   : > { %v3909_v40 = vpop.xlane.xlu0 %3908  ;;  %v3906_v41 = vpop.xlane.xlu1 %3905 }
0x146d   : > { %v3915_v42 = vsub.f32 %v3850_v18, %v3909_v40  ;;  %v3914_v8 = vsub.f32 %v3804_v17, %v3906_v41  ;;  %v7279_v40 = vld [vmem:[%s10312_s18 + $0x1] ss:$0 sm:$0xff]  ;;  %s10332_s18 = sld [smem:[#allocation44_spill]] }
0x146e   : > { %v3417_v41 = vadd.f32 %v7279_v40, %v3410_v39  ;;  %v8433_v39 = vld [vmem:[%s10335_s21 + $0x8] sm:$0xff]  }
0x146f   : > { %v3921_v43 = vmul.f32 1.442695, %v3915_v42  ;;  %v3919_v44 = vmul.f32 1.442695, %v3914_v8 }
0x1470   : > { %v3701_v45 = vpop.permute.xlu1 %3700  ;;  %v3418_v42 = vsel %vm1587_vm1, %v3417_v41, 0.0 }
0x1471   : > { %8506 = vpow2.f32 %v3921_v43  ;;  %v3950_v46 = vpack.c.bf16 %v3701_v45, %v3701_v45 }
0x1472   : > { %8508 = vpow2.f32 %v3919_v44 }
0x1473   : > { %v4003_v47 = vsel %vm2025_vm3, %v3950_v46, 0 }
0x1474   : > { %7931 = vmatpush3.bf16.msra.mxu0 %v4003_v47  ;;  %v3912_v48 = vpop.xlane.xlu0 %3911 }
0x1475   : > { %v3916_v38 = vsub.f32 %v3896_v29, %v3912_v48  ;;  %7942 = vmatprep.subr.bf16.mxu0 %v8857_v0 }
0x1477   : > { %v3923_v49 = vmul.f32 1.442695, %v3916_v38 }
0x1479   : > { %8510 = vpow2.f32 %v3923_v49 }
0x147b   : > { %v8507_v50 = vpop.eup %8506 }
0x147c   : > { %v8509_v52 = vpop.eup %8508  ;;  %v3931_v53 = vsel %vm1785_vm2, %v8507_v50, 0.0 }
0x147d   : > { %3932 = vadd.xlane.f32.xlu1 %v3931_v53  ;;  %v3928_v54 = vsel %vm1785_vm2, %v8509_v52, 0.0  ;;  %v8429_v53 = vld [vmem:[%s10330_s16 + $0x8] sm:$0xff]  }
0x147e   : > { %3929 = vadd.xlane.f32.xlu0 %v3928_v54 }
0x1483   : > { %v8511_v55 = vpop.eup %8510 }
0x1484   : > { %v3934_v57 = vsel %vm1785_vm2, %v8511_v55, 0.0 }
0x1485   : > { %3935 = vadd.xlane.f32.xlu0 %v3934_v57 }
0x148e   : > { %3706 = vrot.lane.b32.xlu1 %v9634_v1, %s10319_s3 }
0x149b   : > { %3703 = vrot.lane.b32.xlu0 %v9634_v1, %s10317_s7 }
0x14a1   : > { %v3927_v58 = vpop.xlane.xlu1 %3926 }
0x14a2   : > { %8512 = vrcp.f32 %v3927_v58 }
0x14ac   : > { %v8513_v60 = vpop.eup %8512 }
0x14ad   : > { %v3941_v27 = vmul.f32 %v8513_v60, %v8505_v37  ;;  %v7305_v60 = vld [vmem:[%s10331_s17] ss:$0 sm:$0xff] }
0x14af   : > { %v3945_v61 = vpack.c.bf16 %v3941_v27, %v3941_v27 }
0x14b1   : > { %7927 = vmatmul.mubr.msk.bf16.vlgmr.msra.gmra.mrb[68].mxu1 %vm1785_vm2, %v3945_v61 }
0x14b2   : > { %7938 = vmatprep.mubr.msk.bf16.mxu1 %vm8858_vm0, %v8857_v0 }
0x150a   : > { %v3933_v62 = vpop.xlane.xlu1 %3932 }
0x150b   : > { %8514 = vrcp.f32 %v3933_v62  ;;  %v3930_v63 = vpop.xlane.xlu0 %3929 }
0x150c   : > { %8516 = vrcp.f32 %v3930_v63  ;;  %v7280_v63 = vld [vmem:[%s10314_s10 + $0x1] ss:$0 sm:$0xff]  ;;  %s10334_s10 = sld [smem:[#allocation56_spill]] }
0x150e   : > { %v3707_v3 = vpop.permute.xlu1 %3706 }
0x150f   : > { %v3952_v10 = vpack.c.bf16 %v3707_v3, %v3707_v3 }
0x1511   : > { %v4095_v14 = vsel %vm2025_vm3, %v3952_v10, 0 }
0x1512   : > { %v3936_v2 = vpop.xlane.xlu0 %3935 }
0x1513   : > { %8518 = vrcp.f32 %v3936_v2 }
0x1515   : > { %v8515_v4 = vpop.eup %8514 }
0x1516   : > { %v8517_v5 = vpop.eup %8516  ;;  %v3704_v1 = vpop.permute.xlu0 %3703  ;;  %v3943_v56 = vmul.f32 %v8515_v4, %v8507_v50 }
0x1517   : > { %v3942_v6 = vmul.f32 %v8517_v5, %v8509_v52  ;;  %v3951_v11 = vpack.c.bf16 %v3704_v1, %v3704_v1  ;;  %v8428_v52 = vld [vmem:[%s10330_s16] sm:$0xff]  }
0x1518   : > { %v3947_v15 = vpack.c.bf16 %v3943_v56, %v3943_v56  ;;  %v7281_v1 = vld [vmem:[%s10316_s28 + $0x1] ss:$0 sm:$0xff]  ;;  %s10340_s28 = sld [smem:[#allocation52_spill]] }
0x1519   : > { %v4049_v12 = vsel %vm2025_vm3, %v3951_v11, 0  ;;  %v3946_v13 = vpack.c.bf16 %v3942_v6, %v3942_v6 }
0x151a   : > { %7937 = vmatpush3.bf16.msra.mxu1 %v4049_v12 }
0x151b   : > { %7933 = vmatmul.mubr.msk.bf16.vlgmr.msra.gmra.mrb[72].mxu0 %vm1785_vm2, %v3946_v13  ;;  %7948 = vmatprep.subr.bf16.mxu1 %v8857_v0 }
0x151c   : > { %7943 = vmatpush3.bf16.msra.mxu0 %v4095_v14  ;;  %7944 = vmatprep.mubr.msk.bf16.mxu0 %vm8858_vm0, %v8857_v0 }
0x151d   : > { %v8519_v16 = vpop.eup %8518  ;;  %7939 = vmatmul.mubr.msk.bf16.vlgmr.msra.gmra.mrb[72].mxu1 %vm1785_vm2, %v3947_v15  ;;  %7956 = vmatprep.subr.bf16.mxu0 %v8857_v0 }
0x151e   : > { %v3944_v17 = vmul.f32 %v8519_v16, %v8511_v55  ;;  %7952 = vmatprep.mubr.msk.bf16.mxu1 %vm8858_vm0, %v8857_v0  ;;  %7949 = vmatpush3.bf16.msra.mxu1 %v8426_v23  ;;  %v8430_v16 = vld [vmem:[%s10332_s18] sm:$0xff]  }
0x151f   : > { %7950 = vmatprep.subr.bf16.mxu1 %v8857_v0 }
0x1520   : > { %v3948_v18 = vpack.c.bf16 %v3944_v17, %v3944_v17  ;;  %v8431_v17 = vld [vmem:[%s10332_s18 + $0x8] sm:$0xff]  }
0x1522   : > { %7951 = vmatpush3.bf16.msra.mxu1 %v8427_v24 }
0x1523   : > { %7945 = vmatmul.mubr.msk.bf16.vlgmr.msra.gmra.mrb[76].mxu0 %vm1785_vm2, %v3948_v18  ;;  %7964 = vmatprep.subr.bf16.mxu1 %v8857_v0  ;;  %v7312_v18 = vld [vmem:[%s10333_s20] ss:$0 sm:$0xff] }
0x1524   : > { %7960 = vmatprep.mubr.msk.bf16.mxu0 %vm8858_vm0, %v8857_v0  ;;  %7957 = vmatpush3.bf16.msra.mxu0 %v8430_v16 }
0x1525   : > { %7958 = vmatprep.subr.bf16.mxu0 %v8857_v0 }
0x1528   : > { %7959 = vmatpush3.bf16.msra.mxu0 %v8431_v17 }
0x1529   : > { %7972 = vmatprep.subr.bf16.mxu0 %v8857_v0 }
0x1584   : > { %v3993_v19 = vpop.f32.mrb[68].mxu1 }
0x1585   : > { %v7928_v20 = vpop.f32.mrb[69].mxu1 }
0x1586   : > { %v3996_v21 = vpop.f32.mrb[70].mxu1 }
0x1587   : > { %v7929_v22 = vpop.f32.mrb[71].mxu1 }
0x15ee   : > { %v4039_v25 = vpop.f32.mrb[72].mxu0 }
0x15ef   : > { %4138 = vrot.lane.b32.xlu1 %v4039_v25, %s10320_s4  ;;  %v7934_v26 = vpop.f32.mrb[73].mxu0 }
0x15f0   : > { %v4042_v28 = vpop.f32.mrb[74].mxu0  ;;  %v4085_v29 = vpop.f32.mrb[72].mxu1 }
0x15f1   : > { %v7935_v30 = vpop.f32.mrb[75].mxu0  ;;  %4142 = vrot.lane.b32.xlu0 %v4085_v29, %s10321_s5  ;;  %v7940_v31 = vpop.f32.mrb[73].mxu1 }
0x15f2   : > { %v4088_v32 = vpop.f32.mrb[74].mxu1  ;;  %v7306_v31 = vld [vmem:[%s10334_s10] ss:$0 sm:$0xff] }
0x15f3   : > { %v7941_v33 = vpop.f32.mrb[75].mxu1 }
0x15f4   : > { %v7307_v33 = vld [vmem:[#allocation2] ss:$0 sm:$0xff] }
0x15f6   : > { %v4131_v34 = vpop.f32.mrb[76].mxu0 }
0x15f7   : > { %4146 = vrot.lane.b32.xlu1 %v4131_v34, %s10322_s8  ;;  %v7946_v35 = vpop.f32.mrb[77].mxu0 }
0x15f8   : > { %v4134_v36 = vpop.f32.mrb[78].mxu0 }
0x15f9   : > { %v7947_v37 = vpop.f32.mrb[79].mxu0  ;;  %v8432_v36 = vld [vmem:[%s10335_s21] sm:$0xff]  }
0x1610   : > { %3419 = vadd.xlane.f32.xlu0 %v3418_v42 }
0x1661   : > { %v4139_v8 = vpop.permute.xlu1 %4138 }
0x1662   : > { %v4149_v44 = vsel %vm1785_vm2, %v3993_v19, %v4139_v8 }
0x1663   : > { %v4143_v43 = vpop.permute.xlu0 %4142 }
0x1664   : > { %v4150_v45 = vsel %vm2220_vm4, %v4149_v44, %v4143_v43  ;;  %v7308_v43 = vld [vmem:[%s10336_s23] ss:$0 sm:$0xff] }
0x1669   : > { %v4147_v46 = vpop.permute.xlu1 %4146 }
0x166a   : > { %v4151_v47 = vsel %vm2222_vm5, %v4150_v45, %v4147_v46 }
0x166b   : > { %v4152_v48 = vpack.c.bf16 %v4151_v47, %v4151_v47 }
0x166d   : > { %7953 = vmatmul.mubr.msk.bf16.vlgmr.msra.gmra.mrb[76].mxu1 %vm1587_vm1, %v4152_v48 }
0x166e   : > { %7968 = vmatprep.mubr.msk.bf16.mxu1 %vm8858_vm0, %v8857_v0  ;;  %7965 = vmatpush3.bf16.msra.mxu1 %v8428_v52 }
0x166f   : > { %7966 = vmatprep.subr.bf16.mxu1 %v8857_v0 }
0x1672   : > { %7967 = vmatpush3.bf16.msra.mxu1 %v8429_v53 }
0x1673   : > { %7980 = vmatprep.subr.bf16.mxu1 %v8857_v0 }
0x169d   : > { %v3420_v9 = vpop.xlane.xlu0 %3419 }
0x169e   : > { %v3421_v59 = vmul.f32 0.03125, %v3420_v9 }
0x16a0   : > { %v3422_v38 = vsub.f32 %v3417_v41, %v3421_v59 }
0x16a2   : > { %v3423_v49 = vmul.f32 %v3422_v38, %v3422_v38 }
0x16a4   : > { %v3424_v50 = vsel %vm1587_vm1, %v3423_v49, 0.0 }
0x16a5   : > { %3425 = vadd.xlane.f32.xlu0 %v3424_v50 }
0x1732   : > { %v3426_v54 = vpop.xlane.xlu0 %3425 }
0x1733   : > { %v3427_v55 = vmul.f32 0.03125, %v3426_v54  ;;  %v7316_v54 = vld [vmem:[%s10337_s25] ss:$0 sm:$0xff] }
0x1735   : > { %v3428_v57 = vadd.f32 1e-05, %v3427_v55 }
0x1737   : > { %8520 = vrsqrt.f32 %v3428_v57 }
0x1740   : > { %v4202_v58 = vpop.f32.mrb[76].mxu1 }
0x1741   : > { %v8521_v27 = vpop.eup %8520  ;;  %v4208_v61 = vadd.f32 %v4202_v58, %v9298_v7  ;;  %v7954_v62 = vpop.f32.mrb[77].mxu1 }
0x1742   : > { %v3430_v2 = vmul.f32 %v8521_v27, %v3422_v38  ;;  %v4205_v3 = vpop.f32.mrb[78].mxu1 }
0x1743   : > { %v7955_v4 = vpop.f32.mrb[79].mxu1  ;;  %v4215_v5 = vadd.f32 %v7305_v60, %v4208_v61 }
0x1744   : > { %v3437_v56 = vmul.f32 %v7280_v63, %v3430_v2 }
0x1745   : > { %v4216_v6 = vsel %vm1587_vm1, %v4215_v5, 0.0 }
0x1746   : > { %4217 = vadd.xlane.f32.xlu1 %v4216_v6  ;;  %v3444_v10 = vadd.f32 %v7281_v1, %v3437_v56 }
0x1748   : > { %v9703_v11 = vpack.c.bf16 %v3444_v10, %v3444_v10 }
0x174a   : > { %7969 = vmatmul.mubr.msk.bf16.vlgmr.msra.gmra.mrb[80].mxu1 %vm1587_vm1, %v9703_v11 }
0x174b   : > { %7982 = vmatprep.mubr.msk.bf16.mxu1 %vm8858_vm0, %v8857_v0 }
0x17d3   : > { %v4218_v7 = vpop.xlane.xlu1 %4217 }
0x17d4   : > { %v4219_v12 = vmul.f32 0.03125, %v4218_v7 }
0x17d6   : > { %v4220_v13 = vsub.f32 %v4215_v5, %v4219_v12 }
0x17d8   : > { %v4221_v14 = vmul.f32 %v4220_v13, %v4220_v13 }
0x17da   : > { %v4222_v15 = vsel %vm1587_vm1, %v4221_v14, 0.0 }
0x17db   : > { %4223 = vadd.xlane.f32.xlu0 %v4222_v15 }
0x181d   : > { %v4361_v19 = vpop.f32.mrb[80].mxu1 }
0x181e   : > { %v4362_v20 = vadd.f32 %v7312_v18, %v4361_v19  ;;  %v7970_v21 = vpop.f32.mrb[81].mxu1 }
0x181f   : > { %v4364_v22 = vpop.f32.mrb[82].mxu1 }
0x1820   : > { %4439 = vrot.lane.b32.xlu0 %v4362_v20, %s10317_s7  ;;  %4436 = vrot.lane.b32.xlu1 %v4362_v20, %s10318_s2  ;;  %v7971_v23 = vpop.f32.mrb[83].mxu1  ;;  %v4459_v24 = vpack.c.bf16 %v4362_v20, %v4362_v20 }
0x1822   : > { %v4467_v25 = vsel %vm1785_vm2, %v4459_v24, 0 }
0x1823   : > { %7981 = vmatpush3.bf16.xpose.msra.mxu1 %v4467_v25 }
0x1824   : > { %7992 = vmatprep.subr.bf16.mxu1 %v8857_v0 }
0x1868   : > { %v4224_v26 = vpop.xlane.xlu0 %4223 }
0x1869   : > { %v4225_v28 = vmul.f32 0.03125, %v4224_v26 }
0x186b   : > { %v4226_v29 = vadd.f32 1e-05, %v4225_v28 }
0x186d   : > { %8522 = vrsqrt.f32 %v4226_v29 }
0x1877   : > { %v8523_v30 = vpop.eup %8522 }
0x1878   : > { %v4228_v32 = vmul.f32 %v8523_v30, %v4220_v13 }
0x187a   : > { %v4235_v34 = vmul.f32 %v7306_v31, %v4228_v32 }
0x187c   : > { %v9720_v35 = vadd.f32 %v7307_v33, %v4235_v34 }
0x187e   : > { %v4243_v37 = vpack.c.bf16 %v9720_v35, %v9720_v35 }
0x1880   : > { %7961 = vmatmul.mubr.msk.bf16.vlgmr.msra.gmra.mrb[80].mxu0 %vm1587_vm1, %v4243_v37 }
0x1881   : > { %7973 = vmatpush3.bf16.msra.mxu0 %v8432_v36  ;;  %7976 = vmatprep.mubr.msk.bf16.mxu0 %vm8858_vm0, %v8857_v0 }
0x1882   : > { %7974 = vmatprep.subr.bf16.mxu0 %v8857_v0 }
0x1885   : > { %7975 = vmatpush3.bf16.msra.mxu0 %v8433_v39 }
0x1886   : > { %7986 = vmatprep.subr.bf16.mxu0 %v8857_v0 }
0x1888   : > { %7977 = vmatmul.mubr.msk.bf16.vlgmr.msra.gmra.mrb[84].mxu0 %vm1587_vm1, %v9703_v11 }
0x1889   : > { %7988 = vmatprep.mubr.msk.bf16.mxu0 %vm8858_vm0, %v8857_v0 }
0x1892   : > { %v4437_v40 = vpop.permute.xlu1 %4436  ;;  %v4440_v8 = vpop.permute.xlu0 %4439 }
0x1893   : > { %v4460_v41 = vpack.c.bf16 %v4437_v40, %v4437_v40  ;;  %v4461_v45 = vpack.c.bf16 %v4440_v8, %v4440_v8 }
0x1895   : > { %v4513_v42 = vsel %vm1785_vm2, %v4460_v41, 0  ;;  %v4559_v38 = vsel %vm1785_vm2, %v4461_v45, 0 }
0x1896   : > { %7987 = vmatpush3.bf16.xpose.msra.mxu0 %v4513_v42 }
0x1897   : > { %7998 = vmatprep.subr.bf16.mxu0 %v8857_v0 }
0x1953   : > { %v4299_v44 = vpop.f32.mrb[80].mxu0 }
0x1954   : > { %v4300_v46 = vadd.f32 %v7308_v43, %v4299_v44  ;;  %v7962_v47 = vpop.f32.mrb[81].mxu0 }
0x1955   : > { %v4302_v48 = vpop.f32.mrb[82].mxu0 }
0x1956   : > { %v4455_v9 = vpack.c.bf16 %v4300_v46, %v4300_v46  ;;  %4429 = vrot.lane.b32.xlu0 %v4300_v46, %s10317_s7  ;;  %4426 = vrot.lane.b32.xlu1 %v4300_v46, %s10318_s2  ;;  %v7963_v59 = vpop.f32.mrb[83].mxu0 }
0x1958   : > { %7983 = vmatmul.mubr.msk.bf16.vlgmr.msra.gmra.mrb[84].mxu1 %vm1785_vm2, %v4455_v9 }
0x1959   : > { %7993 = vmatpush3.bf16.xpose.msra.mxu1 %v4559_v38  ;;  %7994 = vmatprep.mubr.msk.bf16.mxu1 %vm8858_vm0, %v8857_v0 }
0x195a   : > { %4442 = vrot.lane.b32.xlu1 %v4362_v20, %s10319_s3  ;;  %8004 = vmatprep.subr.bf16.mxu1 %v8857_v0 }
0x195b   : > { %v4419_v49 = vpop.f32.mrb[84].mxu0 }
0x195c   : > { %v7978_v50 = vpop.f32.mrb[85].mxu0  ;;  %v9748_v55 = vadd.f32 %v7316_v54, %v4419_v49 }
0x195d   : > { %v4422_v52 = vpop.f32.mrb[86].mxu0 }
0x195e   : > { %4432 = vrot.lane.b32.xlu1 %v4300_v46, %s10319_s3  ;;  %v7979_v53 = vpop.f32.mrb[87].mxu0  ;;  %v4695_v57 = vpack.c.bf16 %v9748_v55, %v9748_v55 }
0x1960   : > { %v4703_v62 = vsel %vm2025_vm3, %v4695_v57, 0 }
0x19c8   : > { %v4430_v58 = vpop.permute.xlu0 %4429  ;;  %v4427_v60 = vpop.permute.xlu1 %4426 }
0x19c9   : > { %v4457_v27 = vpack.c.bf16 %v4430_v58, %v4430_v58  ;;  %v4456_v61 = vpack.c.bf16 %v4427_v60, %v4427_v60 }
0x19cb   : > { %7989 = vmatmul.mubr.msk.bf16.vlgmr.msra.gmra.mrb[88].mxu0 %vm1785_vm2, %v4456_v61  ;;  %7995 = vmatmul.mubr.msk.bf16.vlgmr.msra.gmra.mrb[88].mxu1 %vm1785_vm2, %v4457_v27 }
0x19cc   : > { %8005 = vmatpush3.bf16.msra.mxu1 %v4703_v62  ;;  %v4443_v63 = vpop.permute.xlu1 %4442  ;;  %8000 = vmatprep.mubr.msk.bf16.mxu0 %vm8858_vm0, %v8857_v0 }
0x19cd   : > { %v4462_v2 = vpack.c.bf16 %v4443_v63, %v4443_v63  ;;  %8006 = vmatprep.mubr.msk.bf16.mxu1 %vm8858_vm0, %v8857_v0  ;;  %8016 = vmatprep.subr.bf16.mxu1 %v8857_v0 }
0x19cf   : > { %v4605_v3 = vsel %vm1785_vm2, %v4462_v2, 0 }
0x19d0   : > { %7999 = vmatpush3.bf16.xpose.msra.mxu0 %v4605_v3  ;;  %v4433_v4 = vpop.permute.xlu1 %4432 }
0x19d1   : > { %8010 = vmatprep.subr.bf16.mxu0 %v8857_v0  ;;  %v4458_v5 = vpack.c.bf16 %v4433_v4, %v4433_v4 }
0x19d7   : > { %8001 = vmatmul.mubr.msk.bf16.vlgmr.msra.gmra.mrb[92].mxu0 %vm1785_vm2, %v4458_v5 }
0x19d8   : > { %8012 = vmatprep.mubr.msk.bf16.mxu0 %vm8858_vm0, %v8857_v0 }
0x1a2b   : > { %v4503_v1 = vpop.f32.mrb[84].mxu1 }
0x1a2c   : > { %v4504_v56 = vadd.f32 %v4503_v1, %v9360_v51  ;;  %v7984_v6 = vpop.f32.mrb[85].mxu1 }
0x1a2d   : > { %v4506_v10 = vpop.f32.mrb[86].mxu1 }
0x1a2e   : > { %v7985_v7 = vpop.f32.mrb[87].mxu1  ;;  %v4647_v12 = vsel %vm1785_vm2, %v4504_v56, -inf }
0x1a2f   : > { %4648 = vmax.xlane.f32.xlu0 %v4647_v12 }
0x1a9e   : > { %v4549_v13 = vpop.f32.mrb[88].mxu0  ;;  %v4595_v14 = vpop.f32.mrb[88].mxu1 }
0x1a9f   : > { %v4550_v15 = vadd.f32 %v4549_v13, %v9360_v51  ;;  %v4596_v16 = vadd.f32 %v4595_v14, %v9360_v51  ;;  %v7990_v17 = vpop.f32.mrb[89].mxu0  ;;  %v7996_v18 = vpop.f32.mrb[89].mxu1 }
0x1aa0   : > { %v4552_v19 = vpop.f32.mrb[90].mxu0  ;;  %v4598_v20 = vpop.f32.mrb[90].mxu1 }
0x1aa1   : > { %v7991_v21 = vpop.f32.mrb[91].mxu0  ;;  %v7997_v22 = vpop.f32.mrb[91].mxu1  ;;  %v4653_v23 = vsel %vm1785_vm2, %v4596_v16, -inf  ;;  %v4650_v24 = vsel %vm1785_vm2, %v4550_v15, -inf  ;;  %v8434_v20 = vld [vmem:[%s10338_s26] sm:$0xff]  }
0x1aa2   : > { %4654 = vmax.xlane.f32.xlu0 %v4653_v23  ;;  %4651 = vmax.xlane.f32.xlu1 %v4650_v24  ;;  %v8435_v21 = vld [vmem:[%s10338_s26 + $0x8] sm:$0xff]  }
0x1aaa   : > { %v4641_v25 = vpop.f32.mrb[92].mxu0 }
0x1aab   : > { %v4642_v26 = vadd.f32 %v4641_v25, %v9360_v51  ;;  %v8002_v28 = vpop.f32.mrb[93].mxu0 }
0x1aac   : > { %v4644_v29 = vpop.f32.mrb[94].mxu0 }
0x1aad   : > { %v8003_v30 = vpop.f32.mrb[95].mxu0  ;;  %v4656_v31 = vsel %vm1785_vm2, %v4642_v26, -inf }
0x1aae   : > { %4657 = vmax.xlane.f32.xlu0 %v4656_v31 }
0x1ab3   : > { %4446 = vrot.lane.b32.xlu1 %v9748_v55, %s10318_s2 }
0x1abc   : > { %v4649_v32 = vpop.xlane.xlu0 %4648 }
0x1abd   : > { %v4659_v33 = vsub.f32 %v4504_v56, %v4649_v32 }
0x1abf   : > { %v4663_v34 = vmul.f32 1.442695, %v4659_v33 }
0x1ac1   : > { %8524 = vpow2.f32 %v4663_v34 }
0x1acb   : > { %v8525_v36 = vpop.eup %8524 }
0x1acc   : > { %v4671_v37 = vsel %vm1785_vm2, %v8525_v36, 0.0 }
0x1ad7   : > { %4672 = vadd.xlane.f32.xlu1 %v4671_v37 }
0x1b2f   : > { %v4655_v39 = vpop.xlane.xlu0 %4654  ;;  %v4652_v40 = vpop.xlane.xlu1 %4651 }
0x1b30   : > { %v4661_v41 = vsub.f32 %v4596_v16, %v4655_v39  ;;  %v4660_v42 = vsub.f32 %v4550_v15, %v4652_v40 }
0x1b32   : > { %v4667_v8 = vmul.f32 1.442695, %v4661_v41  ;;  %v4665_v43 = vmul.f32 1.442695, %v4660_v42 }
0x1b33   : > { %v4447_v44 = vpop.permute.xlu1 %4446 }
0x1b34   : > { %8526 = vpow2.f32 %v4667_v8  ;;  %v4696_v45 = vpack.c.bf16 %v4447_v44, %v4447_v44  ;;  %v7331_v44 = vld [vmem:[%s10339_s27] ss:$0 sm:$0xff] }
0x1b35   : > { %8528 = vpow2.f32 %v4665_v43 }
0x1b36   : > { %v4749_v46 = vsel %vm2025_vm3, %v4696_v45, 0 }
0x1b37   : > { %8011 = vmatpush3.bf16.msra.mxu0 %v4749_v46 }
0x1b38   : > { %8022 = vmatprep.subr.bf16.mxu0 %v8857_v0 }
0x1b3b   : > { %v4658_v47 = vpop.xlane.xlu0 %4657 }
0x1b3c   : > { %v4662_v48 = vsub.f32 %v4642_v26, %v4658_v47 }
0x1b3e   : > { %v8527_v9 = vpop.eup %8526  ;;  %v4669_v59 = vmul.f32 1.442695, %v4662_v48 }
0x1b3f   : > { %v8529_v38 = vpop.eup %8528  ;;  %v4677_v49 = vsel %vm1785_vm2, %v8527_v9, 0.0 }
0x1b40   : > { %8530 = vpow2.f32 %v4669_v59  ;;  %4678 = vadd.xlane.f32.xlu1 %v4677_v49  ;;  %v4674_v50 = vsel %vm1785_vm2, %v8529_v38, 0.0 }
0x1b41   : > { %4675 = vadd.xlane.f32.xlu0 %v4674_v50 }
0x1b4a   : > { %v8531_v52 = vpop.eup %8530 }
0x1b4b   : > { %v4680_v53 = vsel %vm1785_vm2, %v8531_v52, 0.0 }
0x1b4c   : > { %4681 = vadd.xlane.f32.xlu0 %v4680_v53 }
0x1b51   : > { %4452 = vrot.lane.b32.xlu1 %v9748_v55, %s10319_s3 }
0x1b62   : > { %4449 = vrot.lane.b32.xlu0 %v9748_v55, %s10317_s7 }
0x1b64   : > { %v4673_v54 = vpop.xlane.xlu1 %4672 }
0x1b65   : > { %8532 = vrcp.f32 %v4673_v54  ;;  %v8436_v54 = vld [vmem:[%s10340_s28] sm:$0xff]  }
0x1b6f   : > { %v8533_v57 = vpop.eup %8532 }
0x1b70   : > { %v4687_v58 = vmul.f32 %v8533_v57, %v8525_v36  ;;  %v8437_v57 = vld [vmem:[%s10340_s28 + $0x8] sm:$0xff]  }
0x1b72   : > { %v4691_v60 = vpack.c.bf16 %v4687_v58, %v4687_v58  ;;  %v8439_v58 = vld [vmem:[%s10341_s29 + $0x8] sm:$0xff]  }
0x1b74   : > { %8007 = vmatmul.mubr.msk.bf16.vlgmr.msra.gmra.mrb[92].mxu1 %vm1785_vm2, %v4691_v60 }
0x1b75   : > { %8018 = vmatprep.mubr.msk.bf16.mxu1 %vm8858_vm0, %v8857_v0 }
0x1bcd   : > { %v4679_v27 = vpop.xlane.xlu1 %4678 }
0x1bce   : > { %v4676_v61 = vpop.xlane.xlu0 %4675 }
0x1bcf   : > { %8534 = vrcp.f32 %v4676_v61 }
0x1bd0   : > { %8536 = vrcp.f32 %v4679_v27 }
0x1bd1   : > { %v4453_v62 = vpop.permute.xlu1 %4452 }
0x1bd2   : > { %v4698_v4 = vpack.c.bf16 %v4453_v62, %v4453_v62 }
0x1bd4   : > { %v4841_v6 = vsel %vm2025_vm3, %v4698_v4, 0 }
0x1bd9   : > { %v8535_v63 = vpop.eup %8534  ;;  %v4682_v2 = vpop.xlane.xlu0 %4681 }
0x1bda   : > { %v4688_v3 = vmul.f32 %v8535_v63, %v8529_v38  ;;  %8538 = vrcp.f32 %v4682_v2  ;;  %v8537_v55 = vpop.eup %8536  ;;  %v7332_v63 = vld [vmem:[#allocation5] ss:$0 sm:$0xff] }
0x1bdb   : > { %v4689_v56 = vmul.f32 %v8537_v55, %v8527_v9 }
0x1bdc   : > { %v4692_v5 = vpack.c.bf16 %v4688_v3, %v4688_v3  ;;  %v7333_v3 = vld [vmem:[#allocation7] ss:$0 sm:$0xff] }
0x1bdd   : > { %v4450_v1 = vpop.permute.xlu0 %4449  ;;  %v4693_v12 = vpack.c.bf16 %v4689_v56, %v4689_v56  ;;  %v8441_v56 = vld [vmem:[%s10341_s29 + $0x18] sm:$0xff]  }
0x1bde   : > { %8013 = vmatmul.mubr.msk.bf16.vlgmr.msra.gmra.mrb[96].mxu0 %vm1785_vm2, %v4692_v5  ;;  %v4697_v10 = vpack.c.bf16 %v4450_v1, %v4450_v1  ;;  %v8440_v1 = vld [vmem:[%s10341_s29 + $0x10] sm:$0xff]  }
0x1bdf   : > { %8023 = vmatpush3.bf16.msra.mxu0 %v4841_v6  ;;  %8024 = vmatprep.mubr.msk.bf16.mxu0 %vm8858_vm0, %v8857_v0  ;;  %v7334_v6 = vld [vmem:[%s10342_s22] ss:$0 sm:$0xff] }
0x1be0   : > { %v4795_v7 = vsel %vm2025_vm3, %v4697_v10, 0  ;;  %8036 = vmatprep.subr.bf16.mxu0 %v8857_v0 }
0x1be1   : > { %8017 = vmatpush3.bf16.msra.mxu1 %v4795_v7 }
0x1be2   : > { %8028 = vmatprep.subr.bf16.mxu1 %v8857_v0 }
0x1be4   : > { %v8539_v13 = vpop.eup %8538  ;;  %8019 = vmatmul.mubr.msk.bf16.vlgmr.msra.gmra.mrb[96].mxu1 %vm1785_vm2, %v4693_v12 }
0x1be5   : > { %v4690_v14 = vmul.f32 %v8539_v13, %v8531_v52  ;;  %8032 = vmatprep.mubr.msk.bf16.mxu1 %vm8858_vm0, %v8857_v0  ;;  %8029 = vmatpush3.bf16.msra.mxu1 %v8434_v20 }
0x1be6   : > { %8030 = vmatprep.subr.bf16.mxu1 %v8857_v0 }
0x1be7   : > { %v4694_v15 = vpack.c.bf16 %v4690_v14, %v4690_v14 }
0x1be9   : > { %8025 = vmatmul.mubr.msk.bf16.vlgmr.msra.gmra.mrb[100].mxu0 %vm1785_vm2, %v4694_v15  ;;  %8031 = vmatpush3.bf16.msra.mxu1 %v8435_v21 }
0x1bea   : > { %8040 = vmatprep.mubr.msk.bf16.mxu0 %vm8858_vm0, %v8857_v0  ;;  %8044 = vmatprep.subr.bf16.mxu1 %v8857_v0 }
0x1beb   : > { %8037 = vmatpush3.bf16.msra.mxu0 %v8436_v54  ;;  %v7405_v54 = vld [vmem:[%s10326_s12 + $0x1] ss:$0 sm:$0xff] }
0x1bec   : > { %8038 = vmatprep.subr.bf16.mxu0 %v8857_v0 }
0x1bef   : > { %8039 = vmatpush3.bf16.msra.mxu0 %v8437_v57 }
0x1bf0   : > { %8056 = vmatprep.subr.bf16.mxu0 %v8857_v0 }
0x1c47   : > { %v4739_v16 = vpop.f32.mrb[92].mxu1 }
0x1c48   : > { %v8008_v17 = vpop.f32.mrb[93].mxu1 }
0x1c49   : > { %v4742_v18 = vpop.f32.mrb[94].mxu1 }
0x1c4a   : > { %v8009_v19 = vpop.f32.mrb[95].mxu1  ;;  %v7343_v18 = vld [vmem:[%s10343_s19] ss:$0 sm:$0xff] }
0x1cb1   : > { %v4785_v22 = vpop.f32.mrb[96].mxu0 }
0x1cb2   : > { %4884 = vrot.lane.b32.xlu1 %v4785_v22, %s10320_s4  ;;  %v8014_v23 = vpop.f32.mrb[97].mxu0 }
0x1cb3   : > { %v4788_v24 = vpop.f32.mrb[98].mxu0 }
0x1cb4   : > { %v8015_v25 = vpop.f32.mrb[99].mxu0 }
0x1cb7   : > { %v4831_v26 = vpop.f32.mrb[96].mxu1 }
0x1cb8   : > { %4888 = vrot.lane.b32.xlu0 %v4831_v26, %s10321_s5  ;;  %v8020_v28 = vpop.f32.mrb[97].mxu1 }
0x1cb9   : > { %v4834_v29 = vpop.f32.mrb[98].mxu1 }
0x1cba   : > { %v8021_v30 = vpop.f32.mrb[99].mxu1 }
0x1cbc   : > { %v4877_v31 = vpop.f32.mrb[100].mxu0 }
0x1cbd   : > { %4892 = vrot.lane.b32.xlu1 %v4877_v31, %s10322_s8  ;;  %v8026_v32 = vpop.f32.mrb[101].mxu0  ;;  %v8442_v31 = vld [vmem:[%s10323_s9 + $0x10] sm:$0xff]  }
0x1cbe   : > { %v4880_v33 = vpop.f32.mrb[102].mxu0  ;;  %v8443_v32 = vld [vmem:[%s10325_s11 + $0x10] sm:$0xff]  }
0x1cbf   : > { %v8027_v34 = vpop.f32.mrb[103].mxu0  ;;  %v8444_v33 = vld [vmem:[%s10323_s9 + $0x18] sm:$0xff]  }
0x1cc0   : > { %v8445_v34 = vld [vmem:[%s10325_s11 + $0x18] sm:$0xff]  }
0x1d24   : > { %v4885_v36 = vpop.permute.xlu1 %4884 }
0x1d25   : > { %v4895_v39 = vsel %vm1785_vm2, %v4739_v16, %v4885_v36 }
0x1d2a   : > { %v4889_v37 = vpop.permute.xlu0 %4888 }
0x1d2b   : > { %v4896_v40 = vsel %vm2220_vm4, %v4895_v39, %v4889_v37 }
0x1d2f   : > { %v4893_v41 = vpop.permute.xlu1 %4892 }
0x1d30   : > { %v4897_v42 = vsel %vm2222_vm5, %v4896_v40, %v4893_v41  ;;  %v7344_v41 = vld [vmem:[#allocation8] ss:$0 sm:$0xff] }
0x1d31   : > { %v4898_v8 = vpack.c.bf16 %v4897_v42, %v4897_v42 }
0x1d33   : > { %8033 = vmatmul.mubr.msk.bf16.vlgmr.msra.gmra.mrb[100].mxu1 %vm1587_vm1, %v4898_v8  ;;  %v7345_v8 = vld [vmem:[#allocation10] ss:$0 sm:$0xff] }
0x1d34   : > { %8052 = vmatprep.mubr.msk.bf16.mxu1 %vm8858_vm0, %v8857_v0 }
0x1e06   : > { %v4948_v43 = vpop.f32.mrb[100].mxu1 }
0x1e07   : > { %v4954_v45 = vadd.f32 %v4948_v43, %v9720_v35  ;;  %v8034_v46 = vpop.f32.mrb[101].mxu1  ;;  %v8438_v35 = vld [vmem:[%s10341_s29] sm:$0xff]  }
0x1e08   : > { %v4951_v47 = vpop.f32.mrb[102].mxu1  ;;  %8045 = vmatpush3.bf16.msra.mxu1 %v8438_v35 }
0x1e09   : > { %v8035_v48 = vpop.f32.mrb[103].mxu1  ;;  %v4961_v9 = vadd.f32 %v7331_v44, %v4954_v45  ;;  %8046 = vmatprep.subr.bf16.mxu1 %v8857_v0  ;;  %v8446_v45 = vld [vmem:[%s10324_s6 + $0x10] sm:$0xff]   ;;  %v8447_v47 = vld [vmem:[%s10324_s6 + $0x18] sm:$0xff]  }
0x1e0b   : > { %v4962_v59 = vsel %vm1587_vm1, %v4961_v9, 0.0 }
0x1e0c   : > { %4963 = vadd.xlane.f32.xlu0 %v4962_v59  ;;  %8047 = vmatpush3.bf16.msra.mxu1 %v8439_v58 }
0x1e0d   : > { %8048 = vmatprep.subr.bf16.mxu1 %v8857_v0 }
0x1e10   : > { %8049 = vmatpush3.bf16.msra.mxu1 %v8440_v1 }
0x1e11   : > { %8050 = vmatprep.subr.bf16.mxu1 %v8857_v0 }
0x1e14   : > { %8051 = vmatpush3.bf16.msra.mxu1 %v8441_v56 }
0x1e15   : > { %8072 = vmatprep.subr.bf16.mxu1 %v8857_v0 }
0x1e99   : > { %v4964_v38 = vpop.xlane.xlu0 %4963 }
0x1e9a   : > { %v4965_v49 = vmul.f32 0.03125, %v4964_v38 }
0x1e9c   : > { %v4966_v50 = vsub.f32 %v4961_v9, %v4965_v49 }
0x1e9e   : > { %v4967_v52 = vmul.f32 %v4966_v50, %v4966_v50 }
0x1ea0   : > { %v4968_v53 = vsel %vm1587_vm1, %v4967_v52, 0.0 }
0x1ea1   : > { %4969 = vadd.xlane.f32.xlu1 %v4968_v53 }
0x1f2e   : > { %v4970_v60 = vpop.xlane.xlu1 %4969 }
0x1f2f   : > { %v4971_v27 = vmul.f32 0.03125, %v4970_v60  ;;  %v7401_v60 = vld [vmem:[%s10327_s13 + $0x1] ss:$0 sm:$0xff] }
0x1f31   : > { %v4972_v61 = vadd.f32 1e-05, %v4971_v27 }
0x1f33   : > { %8540 = vrsqrt.f32 %v4972_v61 }
0x1f3d   : > { %v8541_v62 = vpop.eup %8540 }
0x1f3e   : > { %v4974_v2 = vmul.f32 %v8541_v62, %v4966_v50 }
0x1f40   : > { %v4981_v4 = vmul.f32 %v7332_v63, %v4974_v2 }
0x1f42   : > { %v4988_v55 = vadd.f32 %v7333_v3, %v4981_v4  ;;  %v7409_v4 = vld [vmem:[%s10328_s14 + $0x1] ss:$0 sm:$0xff] }
0x1f44   : > { %v4989_v5 = vpack.c.bf16 %v4988_v55, %v4988_v55 }
0x1f46   : > { %8041 = vmatmul.mubr.msk.bf16.vlgmr.msra.gmra.mrb[104].mxu0 %vm1587_vm1, %v4989_v5 }
0x1f47   : > { %8060 = vmatprep.mubr.msk.bf16.mxu0 %vm8858_vm0, %v8857_v0  ;;  %8057 = vmatpush3.bf16.msra.mxu0 %v8442_v31 }
0x1f48   : > { %8058 = vmatprep.subr.bf16.mxu0 %v8857_v0 }
0x1f4b   : > { %8059 = vmatpush3.bf16.msra.mxu0 %v8444_v33 }
0x1f4c   : > { %8064 = vmatprep.subr.bf16.mxu0 %v8857_v0 }
0x2019   : > { %v5045_v10 = vpop.f32.mrb[104].mxu0 }
0x201a   : > { %v5046_v7 = vadd.f32 %v7334_v6, %v5045_v10  ;;  %v8042_v12 = vpop.f32.mrb[105].mxu0 }
0x201b   : > { %v5048_v13 = vpop.f32.mrb[106].mxu0 }
0x201c   : > { %v5051_v14 = vmax.f32 %v5046_v7, 0.0  ;;  %v8043_v15 = vpop.f32.mrb[107].mxu0 }
0x201e   : > { %v5052_v16 = vpack.c.bf16 %v5051_v14, %v5051_v14 }
0x2020   : > { %8053 = vmatmul.mubr.msk.bf16.vlgmr.msra.gmra.mrb[104].mxu1 %vm2404_vm6, %v5052_v16 }
0x2021   : > { %8076 = vmatprep.mubr.msk.bf16.mxu1 %vm8858_vm0, %v8857_v0  ;;  %8073 = vmatpush3.bf16.msra.mxu1 %v8443_v32 }
0x2022   : > { %8074 = vmatprep.subr.bf16.mxu1 %v8857_v0 }
0x2025   : > { %8075 = vmatpush3.bf16.msra.mxu1 %v8445_v34 }
0x2026   : > { %8086 = vmatprep.subr.bf16.mxu1 %v8857_v0 }
0x20f3   : > { %v5114_v17 = vpop.f32.mrb[104].mxu1 }
0x20f4   : > { %v5120_v19 = vadd.f32 %v5114_v17, %v4988_v55  ;;  %v8054_v20 = vpop.f32.mrb[105].mxu1 }
0x20f5   : > { %v5117_v21 = vpop.f32.mrb[106].mxu1 }
0x20f6   : > { %v8055_v22 = vpop.f32.mrb[107].mxu1  ;;  %v5127_v23 = vadd.f32 %v7343_v18, %v5120_v19 }
0x20f8   : > { %v5128_v24 = vsel %vm1587_vm1, %v5127_v23, 0.0 }
0x20f9   : > { %5129 = vadd.xlane.f32.xlu0 %v5128_v24 }
0x2186   : > { %v5130_v25 = vpop.xlane.xlu0 %5129 }
0x2187   : > { %v5131_v26 = vmul.f32 0.03125, %v5130_v25 }
0x2189   : > { %v5132_v28 = vsub.f32 %v5127_v23, %v5131_v26 }
0x218b   : > { %v5133_v29 = vmul.f32 %v5132_v28, %v5132_v28 }
0x218d   : > { %v5134_v30 = vsel %vm1587_vm1, %v5133_v29, 0.0 }
0x218e   : > { %5135 = vadd.xlane.f32.xlu0 %v5134_v30 }
0x221b   : > { %v5136_v36 = vpop.xlane.xlu0 %5135 }
0x221c   : > { %v5137_v37 = vmul.f32 0.03125, %v5136_v36 }
0x221e   : > { %v5138_v39 = vadd.f32 1e-05, %v5137_v37 }
0x2220   : > { %8542 = vrsqrt.f32 %v5138_v39 }
0x222a   : > { %v8543_v40 = vpop.eup %8542 }
0x222b   : > { %v5140_v42 = vmul.f32 %v8543_v40, %v5132_v28 }
0x222d   : > { %v5147_v43 = vmul.f32 %v7344_v41, %v5140_v42 }
0x222f   : > { %v9848_v44 = vadd.f32 %v7345_v8, %v5147_v43 }
0x2231   : > { %v5241_v46 = vpack.c.bf16 %v9848_v44, %v9848_v44 }
0x2233   : > { %8061 = vmatmul.mubr.msk.bf16.vlgmr.msra.gmra.mrb[108].mxu0 %vm1587_vm1, %v5241_v46  ;;  %8077 = vmatmul.mubr.msk.bf16.vlgmr.msra.gmra.mrb[108].mxu1 %vm1587_vm1, %v5241_v46 }
0x2234   : > { %8065 = vmatpush3.bf16.msra.mxu0 %v8446_v45  ;;  %8068 = vmatprep.mubr.msk.bf16.mxu0 %vm8858_vm0, %v8857_v0 }
0x2235   : > { %8066 = vmatprep.subr.bf16.mxu0 %v8857_v0  ;;  %8088 = vmatprep.mubr.msk.bf16.mxu1 %vm8858_vm0, %v8857_v0 }
0x2238   : > { %8067 = vmatpush3.bf16.msra.mxu0 %v8447_v47 }
0x2239   : > { %8080 = vmatprep.subr.bf16.mxu0 %v8857_v0 }
0x223b   : > { %8069 = vmatmul.mubr.msk.bf16.vlgmr.msra.gmra.mrb[112].mxu0 %vm1587_vm1, %v5241_v46 }
0x223c   : > { %8082 = vmatprep.mubr.msk.bf16.mxu0 %vm8858_vm0, %v8857_v0 }
0x2306   : > { %v5297_v48 = vpop.f32.mrb[108].mxu0  ;;  %v5413_v9 = vpop.f32.mrb[108].mxu1 }
0x2307   : > { %v8062_v59 = vpop.f32.mrb[109].mxu0  ;;  %v8078_v38 = vpop.f32.mrb[109].mxu1  ;;  %v5298_v63 = vadd.f32 %v7401_v60, %v5297_v48  ;;  %v9879_v6 = vadd.f32 %v7409_v4, %v5413_v9 }
0x2308   : > { %v5300_v49 = vpop.f32.mrb[110].mxu0  ;;  %v5416_v50 = vpop.f32.mrb[110].mxu1 }
0x2309   : > { %v8063_v52 = vpop.f32.mrb[111].mxu0  ;;  %v8079_v53 = vpop.f32.mrb[111].mxu1  ;;  %v5449_v3 = vpack.c.bf16 %v5298_v63, %v5298_v63  ;;  %v5689_v14 = vpack.c.bf16 %v9879_v6, %v9879_v6 }
0x230b   : > { %v5697_v20 = vsel %vm2025_vm3, %v5689_v14, 0 }
0x230e   : > { %v5355_v57 = vpop.f32.mrb[112].mxu0 }
0x230f   : > { %v5356_v35 = vadd.f32 %v7405_v54, %v5355_v57  ;;  %v8070_v58 = vpop.f32.mrb[113].mxu0 }
0x2310   : > { %v5358_v27 = vpop.f32.mrb[114].mxu0 }
0x2311   : > { %5433 = vrot.lane.b32.xlu0 %v5356_v35, %s10317_s7  ;;  %5430 = vrot.lane.b32.xlu1 %v5356_v35, %s10318_s2  ;;  %v8071_v61 = vpop.f32.mrb[115].mxu0  ;;  %v5453_v62 = vpack.c.bf16 %v5356_v35, %v5356_v35 }
0x2313   : > { %v5461_v2 = vsel %vm1785_vm2, %v5453_v62, 0 }
0x2314   : > { %8081 = vmatpush3.bf16.xpose.msra.mxu0 %v5461_v2 }
0x2315   : > { %5423 = vrot.lane.b32.xlu0 %v5298_v63, %s10317_s7  ;;  %5420 = vrot.lane.b32.xlu1 %v5298_v63, %s10318_s2 }
0x2316   : > { %8092 = vmatprep.subr.bf16.mxu0 %v8857_v0 }
0x2319   : > { %5436 = vrot.lane.b32.xlu1 %v5356_v35, %s10319_s3 }
0x231b   : > { %8083 = vmatmul.mubr.msk.bf16.vlgmr.msra.gmra.mrb[116].mxu0 %vm1785_vm2, %v5449_v3 }
0x231c   : > { %8094 = vmatprep.mubr.msk.bf16.mxu0 %vm8858_vm0, %v8857_v0 }
0x231d   : > { %5426 = vrot.lane.b32.xlu1 %v5298_v63, %s10319_s3 }
0x2383   : > { %v5434_v55 = vpop.permute.xlu0 %5433  ;;  %v5431_v5 = vpop.permute.xlu1 %5430 }
0x2384   : > { %v5455_v1 = vpack.c.bf16 %v5434_v55, %v5434_v55  ;;  %v5454_v56 = vpack.c.bf16 %v5431_v5, %v5431_v5 }
0x2386   : > { %v5553_v10 = vsel %vm1785_vm2, %v5455_v1, 0  ;;  %v5507_v7 = vsel %vm1785_vm2, %v5454_v56, 0 }
0x2387   : > { %8087 = vmatpush3.bf16.xpose.msra.mxu1 %v5507_v7  ;;  %v5421_v12 = vpop.permute.xlu1 %5420  ;;  %8093 = vmatpush3.bf16.xpose.msra.mxu0 %v5553_v10  ;;  %v5424_v13 = vpop.permute.xlu0 %5423 }
0x2388   : > { %8098 = vmatprep.subr.bf16.mxu1 %v8857_v0  ;;  %8104 = vmatprep.subr.bf16.mxu0 %v8857_v0  ;;  %v5451_v16 = vpack.c.bf16 %v5424_v13, %v5424_v13  ;;  %v5450_v17 = vpack.c.bf16 %v5421_v12, %v5421_v12 }
0x238b   : > { %v5437_v15 = vpop.permute.xlu1 %5436 }
0x238c   : > { %v5456_v18 = vpack.c.bf16 %v5437_v15, %v5437_v15 }
0x238e   : > { %v5599_v19 = vsel %vm1785_vm2, %v5456_v18, 0  ;;  %8089 = vmatmul.mubr.msk.bf16.vlgmr.msra.gmra.mrb[112].mxu1 %vm1785_vm2, %v5450_v17  ;;  %8095 = vmatmul.mubr.msk.bf16.vlgmr.msra.gmra.mrb[120].mxu0 %vm1785_vm2, %v5451_v16 }
0x238f   : > { %8099 = vmatpush3.bf16.xpose.msra.mxu1 %v5599_v19  ;;  %8105 = vmatpush3.bf16.msra.mxu0 %v5697_v20  ;;  %v5427_v21 = vpop.permute.xlu1 %5426 }
0x2390   : > { %8100 = vmatprep.mubr.msk.bf16.mxu1 %vm8858_vm0, %v8857_v0  ;;  %8110 = vmatprep.subr.bf16.mxu1 %v8857_v0  ;;  %v5452_v22 = vpack.c.bf16 %v5427_v21, %v5427_v21 }
0x2391   : > { %8106 = vmatprep.mubr.msk.bf16.mxu0 %vm8858_vm0, %v8857_v0  ;;  %8116 = vmatprep.subr.bf16.mxu0 %v8857_v0 }
0x2396   : > { %8101 = vmatmul.mubr.msk.bf16.vlgmr.msra.gmra.mrb[116].mxu1 %vm1785_vm2, %v5452_v22 }
0x2397   : > { %8112 = vmatprep.mubr.msk.bf16.mxu1 %vm8858_vm0, %v8857_v0 }
0x23ee   : > { %v5497_v23 = vpop.f32.mrb[116].mxu0 }
0x23ef   : > { %v5498_v24 = vadd.f32 %v5497_v23, %v9360_v51  ;;  %v8084_v25 = vpop.f32.mrb[117].mxu0 }
0x23f0   : > { %v5500_v26 = vpop.f32.mrb[118].mxu0 }
0x23f1   : > { %v8085_v28 = vpop.f32.mrb[119].mxu0  ;;  %v5641_v29 = vsel %vm1785_vm2, %v5498_v24, -inf }
0x23f2   : > { %5642 = vmax.xlane.f32.xlu0 %v5641_v29 }
0x2461   : > { %v5543_v30 = vpop.f32.mrb[112].mxu1  ;;  %v5589_v31 = vpop.f32.mrb[120].mxu0 }
0x2462   : > { %v5544_v32 = vadd.f32 %v5543_v30, %v9360_v51  ;;  %v5590_v33 = vadd.f32 %v5589_v31, %v9360_v51  ;;  %v8090_v34 = vpop.f32.mrb[113].mxu1  ;;  %v8096_v36 = vpop.f32.mrb[121].mxu0 }
0x2463   : > { %v5546_v37 = vpop.f32.mrb[114].mxu1  ;;  %v5592_v39 = vpop.f32.mrb[122].mxu0 }
0x2464   : > { %v8091_v40 = vpop.f32.mrb[115].mxu1  ;;  %v8097_v41 = vpop.f32.mrb[123].mxu0  ;;  %v5644_v42 = vsel %vm1785_vm2, %v5544_v32, -inf  ;;  %v5647_v8 = vsel %vm1785_vm2, %v5590_v33, -inf  ;;  %v8448_v39 = vld [vmem:[%s10329_s15 + $0x10] sm:$0xff]  }
0x2465   : > { %5645 = vmax.xlane.f32.xlu1 %v5644_v42  ;;  %5648 = vmax.xlane.f32.xlu0 %v5647_v8  ;;  %v8449_v40 = vld [vmem:[%s10329_s15 + $0x18] sm:$0xff]  }
0x2469   : > { %v5635_v43 = vpop.f32.mrb[116].mxu1 }
0x246a   : > { %v5636_v45 = vadd.f32 %v5635_v43, %v9360_v51  ;;  %v8102_v46 = vpop.f32.mrb[117].mxu1 }
0x246b   : > { %v5638_v47 = vpop.f32.mrb[118].mxu1 }
0x246c   : > { %v8103_v48 = vpop.f32.mrb[119].mxu1  ;;  %v5650_v9 = vsel %vm1785_vm2, %v5636_v45, -inf }
0x246d   : > { %5651 = vmax.xlane.f32.xlu0 %v5650_v9 }
0x2476   : > { %5440 = vrot.lane.b32.xlu1 %v9879_v6, %s10318_s2 }
0x247f   : > { %v5643_v59 = vpop.xlane.xlu0 %5642 }
0x2480   : > { %v5653_v38 = vsub.f32 %v5498_v24, %v5643_v59 }
0x2482   : > { %v5657_v49 = vmul.f32 1.442695, %v5653_v38 }
0x2484   : > { %8544 = vpow2.f32 %v5657_v49 }
0x248e   : > { %v8545_v50 = vpop.eup %8544 }
0x248f   : > { %v5665_v52 = vsel %vm1785_vm2, %v8545_v50, 0.0 }
0x249a   : > { %5666 = vadd.xlane.f32.xlu1 %v5665_v52 }
0x24f2   : > { %v5646_v53 = vpop.xlane.xlu1 %5645  ;;  %v5649_v54 = vpop.xlane.xlu0 %5648 }
0x24f3   : > { %v5654_v57 = vsub.f32 %v5544_v32, %v5646_v53  ;;  %v5655_v35 = vsub.f32 %v5590_v33, %v5649_v54 }
0x24f5   : > { %v5659_v58 = vmul.f32 1.442695, %v5654_v57  ;;  %v5661_v60 = vmul.f32 1.442695, %v5655_v35 }
0x24f6   : > { %v5441_v27 = vpop.permute.xlu1 %5440 }
0x24f7   : > { %8546 = vpow2.f32 %v5659_v58  ;;  %v5690_v61 = vpack.c.bf16 %v5441_v27, %v5441_v27  ;;  %v8450_v58 = vld [vmem:[%s10330_s16 + $0x10] sm:$0xff]   ;;  %v8451_v27 = vld [vmem:[%s10330_s16 + $0x18] sm:$0xff]  }
0x24f8   : > { %8548 = vpow2.f32 %v5661_v60 }
0x24f9   : > { %v5743_v62 = vsel %vm2025_vm3, %v5690_v61, 0  ;;  %v7424_v61 = vld [vmem:[%s10331_s17 + $0x1] ss:$0 sm:$0xff] }
0x24fa   : > { %8111 = vmatpush3.bf16.msra.mxu1 %v5743_v62  ;;  %v5652_v63 = vpop.xlane.xlu0 %5651 }
0x24fb   : > { %v5656_v2 = vsub.f32 %v5636_v45, %v5652_v63  ;;  %8122 = vmatprep.subr.bf16.mxu1 %v8857_v0 }
0x24fd   : > { %v5663_v3 = vmul.f32 1.442695, %v5656_v2 }
0x24ff   : > { %8550 = vpow2.f32 %v5663_v3 }
0x2501   : > { %v8547_v4 = vpop.eup %8546 }
0x2502   : > { %v8549_v55 = vpop.eup %8548  ;;  %v5668_v5 = vsel %vm1785_vm2, %v8547_v4, 0.0 }
0x2503   : > { %5669 = vadd.xlane.f32.xlu0 %v5668_v5  ;;  %v5671_v1 = vsel %vm1785_vm2, %v8549_v55, 0.0 }
0x2504   : > { %5672 = vadd.xlane.f32.xlu1 %v5671_v1  ;;  %v7431_v1 = vld [vmem:[%s10333_s20 + $0x1] ss:$0 sm:$0xff] }
0x2509   : > { %v8551_v56 = vpop.eup %8550 }
0x250a   : > { %v5674_v10 = vsel %vm1785_vm2, %v8551_v56, 0.0 }
0x250b   : > { %5675 = vadd.xlane.f32.xlu0 %v5674_v10 }
0x2515   : > { %5446 = vrot.lane.b32.xlu1 %v9879_v6, %s10319_s3 }
0x2521   : > { %5443 = vrot.lane.b32.xlu0 %v9879_v6, %s10317_s7 }
0x2527   : > { %v5667_v7 = vpop.xlane.xlu1 %5666 }
0x2528   : > { %8552 = vrcp.f32 %v5667_v7 }
0x2532   : > { %v8553_v12 = vpop.eup %8552 }
0x2533   : > { %v5681_v13 = vmul.f32 %v8553_v12, %v8545_v50 }
0x2535   : > { %v5685_v14 = vpack.c.bf16 %v5681_v13, %v5681_v13 }
0x2537   : > { %8107 = vmatmul.mubr.msk.bf16.vlgmr.msra.gmra.mrb[124].mxu0 %vm1785_vm2, %v5685_v14 }
0x2538   : > { %8118 = vmatprep.mubr.msk.bf16.mxu0 %vm8858_vm0, %v8857_v0 }
0x2590   : > { %v5670_v15 = vpop.xlane.xlu0 %5669 }
0x2591   : > { %v5673_v16 = vpop.xlane.xlu1 %5672  ;;  %8554 = vrcp.f32 %v5670_v15 }
0x2592   : > { %8556 = vrcp.f32 %v5673_v16 }
0x2595   : > { %v5447_v18 = vpop.permute.xlu1 %5446 }
0x2596   : > { %v5692_v21 = vpack.c.bf16 %v5447_v18, %v5447_v18 }
0x2598   : > { %v5676_v17 = vpop.xlane.xlu0 %5675  ;;  %v5835_v28 = vsel %vm2025_vm3, %v5692_v21, 0 }
0x2599   : > { %8558 = vrcp.f32 %v5676_v17 }
0x259b   : > { %v8555_v19 = vpop.eup %8554 }
0x259c   : > { %v8557_v20 = vpop.eup %8556  ;;  %v5682_v6 = vmul.f32 %v8555_v19, %v8547_v4  ;;  %v5444_v22 = vpop.permute.xlu0 %5443 }
0x259d   : > { %v5683_v23 = vmul.f32 %v8557_v20, %v8549_v55  ;;  %v5691_v24 = vpack.c.bf16 %v5444_v22, %v5444_v22  ;;  %v8452_v20 = vld [vmem:[%s10332_s18 + $0x10] sm:$0xff]  }
0x259e   : > { %v5686_v25 = vpack.c.bf16 %v5682_v6, %v5682_v6  ;;  %v8453_v6 = vld [vmem:[%s10332_s18 + $0x18] sm:$0xff]  }
0x259f   : > { %v5789_v26 = vsel %vm2025_vm3, %v5691_v24, 0  ;;  %v5687_v29 = vpack.c.bf16 %v5683_v23, %v5683_v23 }
0x25a0   : > { %8113 = vmatmul.mubr.msk.bf16.vlgmr.msra.gmra.mrb[120].mxu1 %vm1785_vm2, %v5686_v25  ;;  %8117 = vmatpush3.bf16.msra.mxu0 %v5789_v26  ;;  %v7425_v25 = vld [vmem:[%s10334_s10 + $0x1] ss:$0 sm:$0xff] }
0x25a1   : > { %8123 = vmatpush3.bf16.msra.mxu1 %v5835_v28  ;;  %8124 = vmatprep.mubr.msk.bf16.mxu1 %vm8858_vm0, %v8857_v0  ;;  %v7426_v28 = vld [vmem:[#allocation2 + $0x1] ss:$0 sm:$0xff] }
0x25a2   : > { %8128 = vmatprep.subr.bf16.mxu0 %v8857_v0  ;;  %8136 = vmatprep.subr.bf16.mxu1 %v8857_v0 }
0x25a3   : > { %v8559_v30 = vpop.eup %8558  ;;  %8119 = vmatmul.mubr.msk.bf16.vlgmr.msra.gmra.mrb[128].mxu0 %vm1785_vm2, %v5687_v29 }
0x25a4   : > { %v5684_v31 = vmul.f32 %v8559_v30, %v8551_v56  ;;  %8132 = vmatprep.mubr.msk.bf16.mxu0 %vm8858_vm0, %v8857_v0  ;;  %8129 = vmatpush3.bf16.msra.mxu0 %v8448_v39 }
0x25a5   : > { %8130 = vmatprep.subr.bf16.mxu0 %v8857_v0 }
0x25a6   : > { %v5688_v32 = vpack.c.bf16 %v5684_v31, %v5684_v31  ;;  %v8454_v31 = vld [vmem:[%s10335_s21 + $0x10] sm:$0xff]  }
0x25a8   : > { %8125 = vmatmul.mubr.msk.bf16.vlgmr.msra.gmra.mrb[124].mxu1 %vm1785_vm2, %v5688_v32  ;;  %8131 = vmatpush3.bf16.msra.mxu0 %v8449_v40  ;;  %v7427_v40 = vld [vmem:[%s10336_s23 + $0x1] ss:$0 sm:$0xff] }
0x25a9   : > { %8140 = vmatprep.mubr.msk.bf16.mxu1 %vm8858_vm0, %v8857_v0  ;;  %8144 = vmatprep.subr.bf16.mxu0 %v8857_v0 }
0x25aa   : > { %8137 = vmatpush3.bf16.msra.mxu1 %v8452_v20 }
0x25ab   : > { %8138 = vmatprep.subr.bf16.mxu1 %v8857_v0 }
0x25ae   : > { %8139 = vmatpush3.bf16.msra.mxu1 %v8453_v6 }
0x25af   : > { %8152 = vmatprep.subr.bf16.mxu1 %v8857_v0 }
0x260a   : > { %v5733_v33 = vpop.f32.mrb[124].mxu0 }
0x260b   : > { %v8108_v34 = vpop.f32.mrb[125].mxu0 }
0x260c   : > { %v5736_v36 = vpop.f32.mrb[126].mxu0 }
0x260d   : > { %v8109_v37 = vpop.f32.mrb[127].mxu0 }
0x2673   : > { %v5779_v41 = vpop.f32.mrb[120].mxu1 }
0x2674   : > { %5878 = vrot.lane.b32.xlu1 %v5779_v41, %s10320_s4  ;;  %v8114_v42 = vpop.f32.mrb[121].mxu1 }
0x2675   : > { %v5782_v8 = vpop.f32.mrb[122].mxu1 }
0x2676   : > { %v8115_v43 = vpop.f32.mrb[123].mxu1  ;;  %v5825_v45 = vpop.f32.mrb[128].mxu0 }
0x2677   : > { %5882 = vrot.lane.b32.xlu0 %v5825_v45, %s10321_s5  ;;  %v8120_v46 = vpop.f32.mrb[129].mxu0 }
0x2678   : > { %v5828_v47 = vpop.f32.mrb[130].mxu0 }
0x2679   : > { %v8121_v48 = vpop.f32.mrb[131].mxu0 }
0x267b   : > { %v5871_v9 = vpop.f32.mrb[124].mxu1 }
0x267c   : > { %5886 = vrot.lane.b32.xlu1 %v5871_v9, %s10322_s8  ;;  %v8126_v59 = vpop.f32.mrb[125].mxu1 }
0x267d   : > { %v5874_v38 = vpop.f32.mrb[126].mxu1 }
0x267e   : > { %v8127_v49 = vpop.f32.mrb[127].mxu1 }
0x26e6   : > { %v5879_v50 = vpop.permute.xlu1 %5878 }
0x26e7   : > { %v5889_v53 = vsel %vm1785_vm2, %v5733_v33, %v5879_v50  ;;  %v8455_v33 = vld [vmem:[%s10335_s21 + $0x18] sm:$0xff]   ;;  %v7435_v50 = vld [vmem:[%s10337_s25 + $0x1] ss:$0 sm:$0xff] }
0x26e9   : > { %v5883_v52 = vpop.permute.xlu0 %5882 }
0x26ea   : > { %v5890_v54 = vsel %vm2220_vm4, %v5889_v53, %v5883_v52 }
0x26ee   : > { %v5887_v57 = vpop.permute.xlu1 %5886 }
0x26ef   : > { %v5891_v35 = vsel %vm2222_vm5, %v5890_v54, %v5887_v57 }
0x26f0   : > { %v5892_v60 = vpack.c.bf16 %v5891_v35, %v5891_v35 }
0x26f2   : > { %8133 = vmatmul.mubr.msk.bf16.vlgmr.msra.gmra.mrb[132].mxu0 %vm1587_vm1, %v5892_v60 }
0x26f3   : > { %8145 = vmatpush3.bf16.msra.mxu0 %v8450_v58  ;;  %8148 = vmatprep.mubr.msk.bf16.mxu0 %vm8858_vm0, %v8857_v0 }
0x26f4   : > { %8146 = vmatprep.subr.bf16.mxu0 %v8857_v0 }
0x26f7   : > { %8147 = vmatpush3.bf16.msra.mxu0 %v8451_v27 }
0x26f8   : > { %8160 = vmatprep.subr.bf16.mxu0 %v8857_v0 }
0x26fa   : > { %8149 = vmatmul.mubr.msk.bf16.vlgmr.msra.gmra.mrb[136].mxu0 %vm1587_vm1, %v9703_v11 }
0x26fb   : > { %8162 = vmatprep.mubr.msk.bf16.mxu0 %vm8858_vm0, %v8857_v0 }
0x27c5   : > { %v5942_v62 = vpop.f32.mrb[132].mxu0 }
0x27c6   : > { %v5948_v63 = vadd.f32 %v5942_v62, %v9848_v44  ;;  %v8134_v2 = vpop.f32.mrb[133].mxu0 }
0x27c7   : > { %v5945_v3 = vpop.f32.mrb[134].mxu0 }
0x27c8   : > { %v5955_v4 = vadd.f32 %v7424_v61, %v5948_v63  ;;  %v8135_v55 = vpop.f32.mrb[135].mxu0 }
0x27ca   : > { %v5956_v5 = vsel %vm1587_vm1, %v5955_v4, 0.0 }
0x27cb   : > { %5957 = vadd.xlane.f32.xlu0 %v5956_v5 }
0x27cd   : > { %v6097_v56 = vpop.f32.mrb[136].mxu0 }
0x27ce   : > { %v6098_v10 = vadd.f32 %v7431_v1, %v6097_v56  ;;  %v8150_v7 = vpop.f32.mrb[137].mxu0 }
0x27cf   : > { %v6100_v12 = vpop.f32.mrb[138].mxu0 }
0x27d0   : > { %v8151_v13 = vpop.f32.mrb[139].mxu0  ;;  %v6195_v14 = vpack.c.bf16 %v6098_v10, %v6098_v10 }
0x27d2   : > { %v6203_v15 = vsel %vm1785_vm2, %v6195_v14, 0 }
0x27d3   : > { %8161 = vmatpush3.bf16.xpose.msra.mxu0 %v6203_v15 }
0x27d4   : > { %8172 = vmatprep.subr.bf16.mxu0 %v8857_v0 }
0x27e1   : > { %6172 = vrot.lane.b32.xlu0 %v6098_v10, %s10318_s2 }
0x2858   : > { %v5958_v44 = vpop.xlane.xlu0 %5957 }
0x2859   : > { %v5959_v16 = vmul.f32 0.03125, %v5958_v44 }
0x285b   : > { %v5960_v17 = vsub.f32 %v5955_v4, %v5959_v16 }
0x285c   : > { %v6173_v34 = vpop.permute.xlu0 %6172 }
0x285d   : > { %v5961_v18 = vmul.f32 %v5960_v17, %v5960_v17  ;;  %v6196_v36 = vpack.c.bf16 %v6173_v34, %v6173_v34 }
0x285f   : > { %v5962_v19 = vsel %vm1587_vm1, %v5961_v18, 0.0  ;;  %v6249_v37 = vsel %vm1785_vm2, %v6196_v36, 0 }
0x2860   : > { %5963 = vadd.xlane.f32.xlu1 %v5962_v19 }
0x2871   : > { %6175 = vrot.lane.b32.xlu1 %v6098_v10, %s10317_s7 }
0x2875   : > { %6178 = vrot.lane.b32.xlu1 %v6098_v10, %s10319_s3 }
0x28ed   : > { %v5964_v21 = vpop.xlane.xlu1 %5963 }
0x28ee   : > { %v5965_v22 = vmul.f32 0.03125, %v5964_v21 }
0x28f0   : > { %v5966_v23 = vadd.f32 1e-05, %v5965_v22 }
0x28f1   : > { %v6176_v39 = vpop.permute.xlu1 %6175 }
0x28f2   : > { %8560 = vrsqrt.f32 %v5966_v23  ;;  %v6197_v42 = vpack.c.bf16 %v6176_v39, %v6176_v39 }
0x28f5   : > { %v6179_v49 = vpop.permute.xlu1 %6178 }
0x28f6   : > { %v6198_v52 = vpack.c.bf16 %v6179_v49, %v6179_v49 }
0x28f8   : > { %v6341_v35 = vsel %vm1785_vm2, %v6198_v52, 0 }
0x28fc   : > { %v8561_v24 = vpop.eup %8560 }
0x28fd   : > { %v5968_v26 = vmul.f32 %v8561_v24, %v5960_v17 }
0x28ff   : > { %v5975_v29 = vmul.f32 %v7425_v25, %v5968_v26 }
0x2901   : > { %v9972_v30 = vadd.f32 %v7426_v28, %v5975_v29 }
0x2903   : > { %v5983_v32 = vpack.c.bf16 %v9972_v30, %v9972_v30 }
0x2905   : > { %8141 = vmatmul.mubr.msk.bf16.vlgmr.msra.gmra.mrb[128].mxu1 %vm1587_vm1, %v5983_v32 }
0x2906   : > { %8153 = vmatpush3.bf16.msra.mxu1 %v8454_v31  ;;  %8156 = vmatprep.mubr.msk.bf16.mxu1 %vm8858_vm0, %v8857_v0 }
0x2907   : > { %8154 = vmatprep.subr.bf16.mxu1 %v8857_v0 }
0x290a   : > { %8155 = vmatpush3.bf16.msra.mxu1 %v8455_v33 }
0x290b   : > { %8166 = vmatprep.subr.bf16.mxu1 %v8857_v0 }
0x290d   : > { %8157 = vmatmul.mubr.msk.bf16.vlgmr.msra.gmra.mrb[132].mxu1 %vm1587_vm1, %v9703_v11  ;;  %v6295_v11 = vsel %vm1785_vm2, %v6197_v42, 0 }
0x290e   : > { %8168 = vmatprep.mubr.msk.bf16.mxu1 %vm8858_vm0, %v8857_v0 }
0x2913   : > { %8167 = vmatpush3.bf16.xpose.msra.mxu1 %v6249_v37 }
0x2914   : > { %8178 = vmatprep.subr.bf16.mxu1 %v8857_v0 }
0x29d8   : > { %v6039_v41 = vpop.f32.mrb[128].mxu1 }
0x29d9   : > { %v6040_v8 = vadd.f32 %v7427_v40, %v6039_v41  ;;  %v8142_v43 = vpop.f32.mrb[129].mxu1 }
0x29da   : > { %v6042_v45 = vpop.f32.mrb[130].mxu1 }
0x29db   : > { %v6191_v46 = vpack.c.bf16 %v6040_v8, %v6040_v8  ;;  %v8143_v47 = vpop.f32.mrb[131].mxu1  ;;  %6168 = vrot.lane.b32.xlu1 %v6040_v8, %s10319_s3  ;;  %6162 = vrot.lane.b32.xlu0 %v6040_v8, %s10318_s2 }
0x29dd   : > { %8163 = vmatmul.mubr.msk.bf16.vlgmr.msra.gmra.mrb[140].mxu0 %vm1785_vm2, %v6191_v46 }
0x29de   : > { %8173 = vmatpush3.bf16.xpose.msra.mxu0 %v6295_v11  ;;  %8174 = vmatprep.mubr.msk.bf16.mxu0 %vm8858_vm0, %v8857_v0 }
0x29df   : > { %6165 = vrot.lane.b32.xlu0 %v6040_v8, %s10317_s7  ;;  %8184 = vmatprep.subr.bf16.mxu0 %v8857_v0 }
0x29e0   : > { %v6155_v48 = vpop.f32.mrb[132].mxu1 }
0x29e1   : > { %v8158_v9 = vpop.f32.mrb[133].mxu1  ;;  %v9999_v53 = vadd.f32 %v7435_v50, %v6155_v48 }
0x29e2   : > { %v6158_v59 = vpop.f32.mrb[134].mxu1 }
0x29e3   : > { %v8159_v38 = vpop.f32.mrb[135].mxu1  ;;  %v6431_v58 = vpack.c.bf16 %v9999_v53, %v9999_v53 }
0x29e5   : > { %v6439_v62 = vsel %vm2025_vm3, %v6431_v58, 0 }
0x2a4d   : > { %v6163_v54 = vpop.permute.xlu0 %6162  ;;  %v6169_v61 = vpop.permute.xlu1 %6168 }
0x2a4e   : > { %v6192_v57 = vpack.c.bf16 %v6163_v54, %v6163_v54  ;;  %v6194_v63 = vpack.c.bf16 %v6169_v61, %v6169_v61 }
0x2a50   : > { %8169 = vmatmul.mubr.msk.bf16.vlgmr.msra.gmra.mrb[136].mxu1 %vm1785_vm2, %v6192_v57 }
0x2a51   : > { %8179 = vmatpush3.bf16.xpose.msra.mxu1 %v6341_v35  ;;  %v6166_v60 = vpop.permute.xlu0 %6165  ;;  %8180 = vmatprep.mubr.msk.bf16.mxu1 %vm8858_vm0, %v8857_v0 }
0x2a52   : > { %v6193_v27 = vpack.c.bf16 %v6166_v60, %v6166_v60  ;;  %8190 = vmatprep.subr.bf16.mxu1 %v8857_v0 }
0x2a54   : > { %8175 = vmatmul.mubr.msk.bf16.vlgmr.msra.gmra.mrb[144].mxu0 %vm1785_vm2, %v6193_v27 }
0x2a55   : > { %8185 = vmatpush3.bf16.msra.mxu0 %v6439_v62  ;;  %8186 = vmatprep.mubr.msk.bf16.mxu0 %vm8858_vm0, %v8857_v0 }
0x2a56   : > { %8196 = vmatprep.subr.bf16.mxu0 %v8857_v0 }
0x2a58   : > { %8181 = vmatmul.mubr.msk.bf16.vlgmr.msra.gmra.mrb[140].mxu1 %vm1785_vm2, %v6194_v63 }
0x2a59   : > { %8192 = vmatprep.mubr.msk.bf16.mxu1 %vm8858_vm0, %v8857_v0 }
0x2ab0   : > { %v6239_v2 = vpop.f32.mrb[140].mxu0 }
0x2ab1   : > { %v6240_v3 = vadd.f32 %v6239_v2, %v9360_v51  ;;  %v8164_v4 = vpop.f32.mrb[141].mxu0 }
0x2ab2   : > { %v6242_v55 = vpop.f32.mrb[142].mxu0 }
0x2ab3   : > { %v8165_v5 = vpop.f32.mrb[143].mxu0  ;;  %v6383_v1 = vsel %vm1785_vm2, %v6240_v3, -inf }
0x2ab4   : > { %6384 = vmax.xlane.f32.xlu0 %v6383_v1 }
0x2b23   : > { %v6285_v56 = vpop.f32.mrb[136].mxu1 }
0x2b24   : > { %v6286_v10 = vadd.f32 %v6285_v56, %v9360_v51  ;;  %v8170_v7 = vpop.f32.mrb[137].mxu1 }
0x2b25   : > { %v6288_v12 = vpop.f32.mrb[138].mxu1 }
0x2b26   : > { %v8171_v13 = vpop.f32.mrb[139].mxu1  ;;  %v6386_v14 = vsel %vm1785_vm2, %v6286_v10, -inf }
0x2b27   : > { %6387 = vmax.xlane.f32.xlu1 %v6386_v14  ;;  %v6331_v15 = vpop.f32.mrb[144].mxu0  ;;  %v8456_v14 = vld [vmem:[%s10338_s26 + $0x10] sm:$0xff]  }
0x2b28   : > { %v6332_v44 = vadd.f32 %v6331_v15, %v9360_v51  ;;  %v8176_v16 = vpop.f32.mrb[145].mxu0  ;;  %v8457_v15 = vld [vmem:[%s10338_s26 + $0x18] sm:$0xff]  }
0x2b29   : > { %v6334_v17 = vpop.f32.mrb[146].mxu0 }
0x2b2a   : > { %v8177_v18 = vpop.f32.mrb[147].mxu0  ;;  %v6389_v19 = vsel %vm1785_vm2, %v6332_v44, -inf }
0x2b2b   : > { %v6377_v20 = vpop.f32.mrb[140].mxu1  ;;  %6390 = vmax.xlane.f32.xlu0 %v6389_v19 }
0x2b2c   : > { %v6378_v6 = vadd.f32 %v6377_v20, %v9360_v51  ;;  %v8182_v21 = vpop.f32.mrb[141].mxu1 }
0x2b2d   : > { %v6380_v22 = vpop.f32.mrb[142].mxu1 }
0x2b2e   : > { %v8183_v23 = vpop.f32.mrb[143].mxu1  ;;  %v6392_v24 = vsel %vm1785_vm2, %v6378_v6, -inf }
0x2b2f   : > { %6393 = vmax.xlane.f32.xlu0 %v6392_v24 }
0x2b38   : > { %6182 = vrot.lane.b32.xlu1 %v9999_v53, %s10318_s2 }
0x2b41   : > { %v6385_v25 = vpop.xlane.xlu0 %6384 }
0x2b42   : > { %v6395_v26 = vsub.f32 %v6240_v3, %v6385_v25 }
0x2b44   : > { %v6399_v28 = vmul.f32 1.442695, %v6395_v26 }
0x2b46   : > { %8562 = vpow2.f32 %v6399_v28 }
0x2b50   : > { %v8563_v29 = vpop.eup %8562 }
0x2b51   : > { %v6407_v31 = vsel %vm1785_vm2, %v8563_v29, 0.0 }
0x2b5c   : > { %6408 = vadd.xlane.f32.xlu1 %v6407_v31 }
0x2bb4   : > { %v6388_v32 = vpop.xlane.xlu1 %6387 }
0x2bb5   : > { %v6396_v33 = vsub.f32 %v6286_v10, %v6388_v32 }
0x2bb7   : > { %v6401_v51 = vmul.f32 1.442695, %v6396_v33 }
0x2bb8   : > { %v6183_v34 = vpop.permute.xlu1 %6182  ;;  %v6391_v36 = vpop.xlane.xlu0 %6390 }
0x2bb9   : > { %8564 = vpow2.f32 %v6401_v51  ;;  %v6432_v37 = vpack.c.bf16 %v6183_v34, %v6183_v34  ;;  %v6397_v39 = vsub.f32 %v6332_v44, %v6391_v36  ;;  %v7450_v34 = vld [vmem:[%s10339_s27 + $0x1] ss:$0 sm:$0xff] }
0x2bbb   : > { %v6485_v40 = vsel %vm2025_vm3, %v6432_v37, 0  ;;  %v6403_v41 = vmul.f32 1.442695, %v6397_v39 }
0x2bbc   : > { %8191 = vmatpush3.bf16.msra.mxu1 %v6485_v40  ;;  %v6394_v42 = vpop.xlane.xlu0 %6393 }
0x2bbd   : > { %8566 = vpow2.f32 %v6403_v41  ;;  %v6398_v8 = vsub.f32 %v6378_v6, %v6394_v42  ;;  %8202 = vmatprep.subr.bf16.mxu1 %v8857_v0 }
0x2bbf   : > { %v6405_v43 = vmul.f32 1.442695, %v6398_v8 }
0x2bc1   : > { %8568 = vpow2.f32 %v6405_v43 }
0x2bc3   : > { %v8565_v45 = vpop.eup %8564 }
0x2bc4   : > { %v6410_v46 = vsel %vm1785_vm2, %v8565_v45, 0.0 }
0x2bc5   : > { %6411 = vadd.xlane.f32.xlu0 %v6410_v46 }
0x2bc7   : > { %v8567_v47 = vpop.eup %8566 }
0x2bc8   : > { %v6413_v11 = vsel %vm1785_vm2, %v8567_v47, 0.0 }
0x2bc9   : > { %6414 = vadd.xlane.f32.xlu1 %v6413_v11 }
0x2bcb   : > { %v8569_v48 = vpop.eup %8568 }
0x2bcc   : > { %v6416_v9 = vsel %vm1785_vm2, %v8569_v48, 0.0 }
0x2bcd   : > { %6417 = vadd.xlane.f32.xlu0 %v6416_v9  ;;  %v8459_v9 = vld [vmem:[%s10340_s28 + $0x18] sm:$0xff]  }
0x2bda   : > { %6188 = vrot.lane.b32.xlu1 %v9999_v53, %s10319_s3  ;;  %s10345_s3 = sld [smem:[#allocation68_spill]] }
0x2be0   : > { %p10346_p3 = scmp.ne.s32.totalorder %s10345_s3, 0 }
0x2be3   : > { %6185 = vrot.lane.b32.xlu0 %v9999_v53, %s10317_s7  ;;  %s7470_s7 = sshll.u32 %s9137_s0, 7  ;;  %s8865_s0 = smov [#allocation11]  }
0x2be9   : > { %v6409_v59 = vpop.xlane.xlu1 %6408 }
0x2bea   : > { %8570 = vrcp.f32 %v6409_v59  ;;  %v8461_v59 = vld [vmem:[%s10341_s29 + $0x28] sm:$0xff]  }
0x2bf4   : > { %v8571_v38 = vpop.eup %8570 }
0x2bf5   : > { %v6423_v49 = vmul.f32 %v8571_v38, %v8563_v29 }
0x2bf7   : > { %v6427_v50 = vpack.c.bf16 %v6423_v49, %v6423_v49 }
0x2bf9   : > { %8187 = vmatmul.mubr.msk.bf16.vlgmr.msra.gmra.mrb[148].mxu0 %vm1785_vm2, %v6427_v50 }
0x2bfa   : > { %8198 = vmatprep.mubr.msk.bf16.mxu0 %vm8858_vm0, %v8857_v0 }
0x2c52   : > { %v6412_v52 = vpop.xlane.xlu0 %6411 }
0x2c53   : > { %8572 = vrcp.f32 %v6412_v52 }
0x2c56   : > { %v6415_v54 = vpop.xlane.xlu1 %6414 }
0x2c57   : > { %8574 = vrcp.f32 %v6415_v54  ;;  %v7451_v54 = vld [vmem:[#allocation5 + $0x1] ss:$0 sm:$0xff] }
0x2c5a   : > { %v6418_v57 = vpop.xlane.xlu0 %6417  ;;  %v6189_v35 = vpop.permute.xlu1 %6188 }
0x2c5b   : > { %8576 = vrcp.f32 %v6418_v57  ;;  %v6434_v53 = vpack.c.bf16 %v6189_v35, %v6189_v35  ;;  %v7452_v35 = vld [vmem:[#allocation7 + $0x1] ss:$0 sm:$0xff] }
0x2c5d   : > { %v8573_v58 = vpop.eup %8572  ;;  %v6577_v4 = vsel %vm2025_vm3, %v6434_v53, 0 }
0x2c5e   : > { %v6424_v60 = vmul.f32 %v8573_v58, %v8565_v45  ;;  %v6186_v27 = vpop.permute.xlu0 %6185 }
0x2c5f   : > { %v6433_v61 = vpack.c.bf16 %v6186_v27, %v6186_v27  ;;  %v8462_v27 = vld [vmem:[%s10341_s29 + $0x30] sm:$0xff]  }
0x2c60   : > { %v6428_v62 = vpack.c.bf16 %v6424_v60, %v6424_v60 }
0x2c61   : > { %v8575_v63 = vpop.eup %8574  ;;  %v6531_v2 = vsel %vm2025_vm3, %v6433_v61, 0  ;;  %v8463_v61 = vld [vmem:[%s10341_s29 + $0x38] sm:$0xff]  }
0x2c62   : > { %v6425_v3 = vmul.f32 %v8575_v63, %v8567_v47  ;;  %8193 = vmatmul.mubr.msk.bf16.vlgmr.msra.gmra.mrb[144].mxu1 %vm1785_vm2, %v6428_v62  ;;  %8197 = vmatpush3.bf16.msra.mxu0 %v6531_v2  ;;  %v7453_v62 = vld [vmem:[%s10342_s22 + $0x1] ss:$0 sm:$0xff] }
0x2c63   : > { %8203 = vmatpush3.bf16.msra.mxu1 %v6577_v4  ;;  %8204 = vmatprep.mubr.msk.bf16.mxu1 %vm8858_vm0, %v8857_v0 }
0x2c64   : > { %v6429_v55 = vpack.c.bf16 %v6425_v3, %v6425_v3  ;;  %8208 = vmatprep.subr.bf16.mxu0 %v8857_v0  ;;  %8216 = vmatprep.subr.bf16.mxu1 %v8857_v0 }
0x2c65   : > { %v8577_v5 = vpop.eup %8576 }
0x2c66   : > { %v6426_v1 = vmul.f32 %v8577_v5, %v8569_v48  ;;  %8199 = vmatmul.mubr.msk.bf16.vlgmr.msra.gmra.mrb[152].mxu0 %vm1785_vm2, %v6429_v55  ;;  %v8458_v48 = vld [vmem:[%s10340_s28 + $0x10] sm:$0xff]  }
0x2c67   : > { %8212 = vmatprep.mubr.msk.bf16.mxu0 %vm8858_vm0, %v8857_v0  ;;  %8209 = vmatpush3.bf16.msra.mxu0 %v8456_v14 }
0x2c68   : > { %v6430_v56 = vpack.c.bf16 %v6426_v1, %v6426_v1  ;;  %8210 = vmatprep.subr.bf16.mxu0 %v8857_v0 }
0x2c6a   : > { %8205 = vmatmul.mubr.msk.bf16.vlgmr.msra.gmra.mrb[148].mxu1 %vm1785_vm2, %v6430_v56  ;;  %v7462_v56 = vld [vmem:[%s10343_s19 + $0x1] ss:$0 sm:$0xff] }
0x2c6b   : > { %8220 = vmatprep.mubr.msk.bf16.mxu1 %vm8858_vm0, %v8857_v0  ;;  %8211 = vmatpush3.bf16.msra.mxu0 %v8457_v15 }
0x2c6c   : > { %8224 = vmatprep.subr.bf16.mxu0 %v8857_v0  ;;  %8217 = vmatpush3.bf16.msra.mxu1 %v8458_v48 }
0x2c6d   : > { %8218 = vmatprep.subr.bf16.mxu1 %v8857_v0 }
0x2c70   : > { %8219 = vmatpush3.bf16.msra.mxu1 %v8459_v9 }
0x2c71   : > { %8236 = vmatprep.subr.bf16.mxu1 %v8857_v0 }
0x2ccc   : > { %v6475_v10 = vpop.f32.mrb[148].mxu0 }
0x2ccd   : > { %v8188_v7 = vpop.f32.mrb[149].mxu0 }
0x2cce   : > { %v6478_v12 = vpop.f32.mrb[150].mxu0 }
0x2ccf   : > { %v8189_v13 = vpop.f32.mrb[151].mxu0 }
0x2d35   : > { %v6521_v44 = vpop.f32.mrb[144].mxu1 }
0x2d36   : > { %6620 = vrot.lane.b32.xlu1 %v6521_v44, %s10320_s4  ;;  %v8194_v16 = vpop.f32.mrb[145].mxu1 }
0x2d37   : > { %v6524_v17 = vpop.f32.mrb[146].mxu1 }
0x2d38   : > { %v8195_v18 = vpop.f32.mrb[147].mxu1 }
0x2d39   : > { %v6567_v19 = vpop.f32.mrb[152].mxu0 }
0x2d3a   : > { %6624 = vrot.lane.b32.xlu0 %v6567_v19, %s10321_s5  ;;  %v8200_v20 = vpop.f32.mrb[153].mxu0  ;;  %s10344_s5 = sld [smem:[#allocation62_spill]] }
0x2d3b   : > { %v6570_v6 = vpop.f32.mrb[154].mxu0 }
0x2d3c   : > { %v8201_v21 = vpop.f32.mrb[155].mxu0  ;;  %v8464_v6 = vld [vmem:[%s9104_s30] sm:$0xff]  }
0x2d3d   : > { %v6613_v22 = vpop.f32.mrb[148].mxu1  ;;  %v8465_v21 = vld [vmem:[%s9104_s30 + $0x8] sm:$0xff]  }
0x2d3e   : > { %6628 = vrot.lane.b32.xlu1 %v6613_v22, %s10322_s8  ;;  %v8206_v23 = vpop.f32.mrb[149].mxu1  ;;  %s1507_s8 = sand.u32 1, %s8792_s1  }
0x2d3f   : > { %v6616_v24 = vpop.f32.mrb[150].mxu1  ;;  %s7165_s4 = sshll.u32 %s1507_s8, 3  ;;  %s6972_s10 = scalar_lea.sflag [#allocation4], %s1507_s8 }
0x2d40   : > { %v8207_v25 = vpop.f32.mrb[151].mxu1  ;;  %s1509_s2 = scalar_lea.vmem [#allocation11], %s7165_s4  ;;  %s10098_s9 = scalar_lea.hbm %s10344_s5, %s7470_s7 }
0x2d41   : > { %s6985_s6 = sshll.u32 %s1509_s2, 4  ;;  %s8730_s4 = sshll.u32 %s8865_s0, 4  ;;  %s10100_s6 = int_to_ptr.vmem [resolvable:$true] %s6985_s6  ;;  %s8731_s4 = int_to_ptr.vmem [resolvable:$false] %s8730_s4 }
0x2d42   : > { %s8726_s11 = scalar_lea.vmem %s10100_s6, 128  ;;  %s8732_s12 = scalar_lea.vmem %s8731_s4, 256 }
0x2d43   : > { %p8727_p2 = scmp.ne.s32.totalorder %s10100_s6, %s8726_s11  ;;  %p8733_p8 = scmp.lt.s32.totalorder %s10100_s6, %s8731_s4 }
0x2d44   : > { %p8734_p11 = scmp.lt.s32.totalorder %s8732_s12, %s8726_s11 }
0x2d45   : > { %p8728_p4 = pnand %p8727_p2, %p10346_p3 }
0x2d46   : > { %p8735_p13 = por %p8734_p11, %p8733_p8 }
0x2d47   : > { %p8729_p7 = pneg %p8728_p4 }
0x2d49   : > { %p8736_p6 = pnand %p8735_p13, %p8729_p7 }
0x2da8   : > { %v6621_v26 = vpop.permute.xlu1 %6620 }
0x2da9   : > { %v6631_v29 = vsel %vm1785_vm2, %v6475_v10, %v6621_v26  ;;  %v7463_v26 = vld [vmem:[#allocation8 + $0x1] ss:$0 sm:$0xff] }
0x2dac   : > { %v6625_v28 = vpop.permute.xlu0 %6624 }
0x2dad   : > { %v6632_v31 = vsel %vm2220_vm4, %v6631_v29, %v6625_v28  ;;  %v7464_v29 = vld [vmem:[#allocation10 + $0x1] ss:$0 sm:$0xff] }
0x2db0   : > { %v6629_v32 = vpop.permute.xlu1 %6628 }
0x2db1   : > { %v6633_v33 = vsel %vm2222_vm5, %v6632_v31, %v6629_v32 }
0x2db2   : > { %v6634_v51 = vpack.c.bf16 %v6633_v33, %v6633_v33 }
0x2db4   : > { %8213 = vmatmul.mubr.msk.bf16.vlgmr.msra.gmra.mrb[156].mxu0 %vm1587_vm1, %v6634_v51  ;;  %v7465_v51 = vld [vmem:[%s9109_s24] ss:$0 sm:$0xff] }
0x2db5   : > { %8232 = vmatprep.mubr.msk.bf16.mxu0 %vm8858_vm0, %v8857_v0 }
0x2e87   : > { %v6684_v36 = vpop.f32.mrb[156].mxu0 }
0x2e88   : > { %v6690_v37 = vadd.f32 %v6684_v36, %v9972_v30  ;;  %v8214_v39 = vpop.f32.mrb[157].mxu0  ;;  %v8460_v30 = vld [vmem:[%s10341_s29 + $0x20] sm:$0xff]  }
0x2e89   : > { %v6687_v40 = vpop.f32.mrb[158].mxu0  ;;  %8225 = vmatpush3.bf16.msra.mxu0 %v8460_v30 }
0x2e8a   : > { %v6697_v41 = vadd.f32 %v7450_v34, %v6690_v37  ;;  %v8215_v42 = vpop.f32.mrb[159].mxu0  ;;  %8226 = vmatprep.subr.bf16.mxu0 %v8857_v0 }
0x2e8c   : > { %v6698_v8 = vsel %vm1587_vm1, %v6697_v41, 0.0 }
0x2e8d   : > { %6699 = vadd.xlane.f32.xlu0 %v6698_v8  ;;  %8227 = vmatpush3.bf16.msra.mxu0 %v8461_v59 }
0x2e8e   : > { %8228 = vmatprep.subr.bf16.mxu0 %v8857_v0 }
0x2e91   : > { %8229 = vmatpush3.bf16.msra.mxu0 %v8462_v27 }
0x2e92   : > { %8230 = vmatprep.subr.bf16.mxu0 %v8857_v0 }
0x2e95   : > { %8231 = vmatpush3.bf16.msra.mxu0 %v8463_v61 }
0x2f1a   : > { %v6700_v43 = vpop.xlane.xlu0 %6699 }
0x2f1b   : > { %v6701_v45 = vmul.f32 0.03125, %v6700_v43 }
0x2f1d   : > { %v6702_v46 = vsub.f32 %v6697_v41, %v6701_v45 }
0x2f1f   : > { %v6703_v47 = vmul.f32 %v6702_v46, %v6702_v46 }
0x2f21   : > { %v6704_v11 = vsel %vm1587_vm1, %v6703_v47, 0.0 }
0x2f22   : > { %6705 = vadd.xlane.f32.xlu1 %v6704_v11 }
0x2faf   : > { %v6706_v38 = vpop.xlane.xlu1 %6705 }
0x2fb0   : > { %v6707_v49 = vmul.f32 0.03125, %v6706_v38 }
0x2fb2   : > { %v6708_v50 = vadd.f32 1e-05, %v6707_v49 }
0x2fb4   : > { %8578 = vrsqrt.f32 %v6708_v50 }
0x2fbe   : > { %v8579_v52 = vpop.eup %8578 }
0x2fbf   : > { %v6710_v57 = vmul.f32 %v8579_v52, %v6702_v46 }
0x2fc1   : > { %v6717_v58 = vmul.f32 %v7451_v54, %v6710_v57 }
0x2fc3   : > { %v6724_v60 = vadd.f32 %v7452_v35, %v6717_v58 }
0x2fc5   : > { %v6725_v53 = vpack.c.bf16 %v6724_v60, %v6724_v60 }
0x2fc7   : > { %8221 = vmatmul.mubr.msk.bf16.vlgmr.msra.gmra.mrb[152].mxu1 %vm1587_vm1, %v6725_v53 }
0x2fc8   : > { %8240 = vmatprep.mubr.msk.bf16.mxu1 %vm8858_vm0, %v8857_v0  ;;  %8237 = vmatpush3.bf16.msra.mxu1 %v8464_v6 }
0x2fc9   : > { %8238 = vmatprep.subr.bf16.mxu1 %v8857_v0 }
0x2fcc   : > { %8239 = vmatpush3.bf16.msra.mxu1 %v8465_v21 }
0x309a   : > { %v6781_v63 = vpop.f32.mrb[152].mxu1 }
0x309b   : > { %v6782_v2 = vadd.f32 %v7453_v62, %v6781_v63  ;;  %v8222_v3 = vpop.f32.mrb[153].mxu1 }
0x309c   : > { %v6784_v4 = vpop.f32.mrb[154].mxu1 }
0x309d   : > { %v6787_v55 = vmax.f32 %v6782_v2, 0.0  ;;  %v8223_v5 = vpop.f32.mrb[155].mxu1 }
0x309f   : > { %v6788_v1 = vpack.c.bf16 %v6787_v55, %v6787_v55 }
0x30a1   : > { %8233 = vmatmul.mubr.msk.bf16.vlgmr.msra.gmra.mrb[160].mxu0 %vm2404_vm6, %v6788_v1 }
0x3174   : > { %v6850_v10 = vpop.f32.mrb[160].mxu0 }
0x3175   : > { %v6856_v7 = vadd.f32 %v6850_v10, %v6724_v60  ;;  %v8234_v12 = vpop.f32.mrb[161].mxu0 }
0x3176   : > { %v6853_v13 = vpop.f32.mrb[162].mxu0 }
0x3177   : > { %v6863_v14 = vadd.f32 %v7462_v56, %v6856_v7  ;;  %v8235_v15 = vpop.f32.mrb[163].mxu0 }
0x3179   : > { %v6864_v44 = vsel %vm1587_vm1, %v6863_v14, 0.0 }
0x317a   : > { %6865 = vadd.xlane.f32.xlu0 %v6864_v44 }
0x3207   : > { %v6866_v16 = vpop.xlane.xlu0 %6865 }
0x3208   : > { %v6867_v17 = vmul.f32 0.03125, %v6866_v16 }
0x320a   : > { %v6868_v18 = vsub.f32 %v6863_v14, %v6867_v17 }
0x320c   : > { %v6869_v19 = vmul.f32 %v6868_v18, %v6868_v18 }
0x320e   : > { %v6870_v20 = vsel %vm1587_vm1, %v6869_v19, 0.0 }
0x320f   : > { %6871 = vadd.xlane.f32.xlu0 %v6870_v20 }
0x329c   : > { %v6872_v22 = vpop.xlane.xlu0 %6871 }
0x329d   : > { %v6873_v23 = vmul.f32 0.03125, %v6872_v22 }
0x329f   : > { %v6874_v24 = vadd.f32 1e-05, %v6873_v23 }
0x32a1   : > { %8580 = vrsqrt.f32 %v6874_v24 }
0x32ab   : > { %v8581_v25 = vpop.eup %8580 }
0x32ac   : > { %v6876_v28 = vmul.f32 %v8581_v25, %v6868_v18 }
0x32ae   : > { %v6883_v31 = vmul.f32 %v7463_v26, %v6876_v28 }
0x32b0   : > { %v6890_v32 = vadd.f32 %v7464_v29, %v6883_v31 }
0x32b2   : > { %v6895_v33 = vpack.c.bf16 %v6890_v32, %v6890_v32 }
0x32b4   : > { %8241 = vmatmul.mubr.msk.bf16.vlgmr.msra.gmra.mrb[156].mxu1 %vm1587_vm1, %v6895_v33 }
0x3387   : > { %v6952_v34 = vpop.f32.mrb[156].mxu1 }
0x3388   : > { %v6953_v36 = vadd.f32 %v7465_v51, %v6952_v34  ;;  %v8242_v37 = vpop.f32.mrb[157].mxu1 }
0x3389   : > { %v6955_v0 = vpop.f32.mrb[158].mxu1 }
0x338a   : > { %v8243_v39 = vpop.f32.mrb[159].mxu1  ;;  %v6958_v40 = vsel %vm2220_vm4, %v6953_v36, -inf }
0x338b   : > { %6959 = vmax.xlane.f32.xlu1 %v6958_v40 }
0x3418   : > { %v6960_v41 = vpop.xlane.xlu1 %6959 }
0x3419   : > { %v6961_v42 = vsub.f32 %v6953_v36, %v6960_v41 }
0x341b   : > { %v6962_v8 = vmul.f32 1.442695, %v6961_v42 }
0x341d   : > { %8582 = vpow2.f32 %v6962_v8 }
0x3427   : > { %v8583_v43 = vpop.eup %8582 }
0x3428   : > { %v6964_v45 = vsel %vm2220_vm4, %v8583_v43, 0.0 }
0x3429   : > { %6965 = vadd.xlane.f32.xlu0 %v6964_v45 }
0x34b6   : > { %v6966_v46 = vpop.xlane.xlu0 %6965 }
0x34b7   : > { %8584 = vlog2.f32 %v6966_v46 }
0x34c1   : > { %v8585_v47 = vpop.eup %8584 }
0x34c2   : > { %v6968_v11 = vmul.f32 0.6931472, %v8585_v47 }
0x34c4   : > { %v6969_v48 = vsub.f32 %v6961_v42, %v6968_v11 }
0x34c6   : > { %6970 = vst.msk [vmem:[%s1509_s2] sm:$0xff] %vm2220_vm4, %v6969_v48 }
0x34c7   : > { %8739 = shalt.err (!%p8736_p6)
}
0x34c8   : > { %s8740_s8 = scalar_lea.hbm %s10098_s9, 128  ;;  %s8744_s7 = scalar_lea.hbm %s10344_s5, 256 }
0x34c9   : > { %p8741_p0 = scmp.ne.s32.totalorder %s10098_s9, %s8740_s8  ;;  %p8745_p10 = scmp.lt.u32.totalorder %s10098_s9, %s10344_s5 }
0x34ca   : > { %p8746_p12 = scmp.lt.u32.totalorder %s8744_s7, %s8740_s8  ;;  %p8748_p2 = scmp.lt.u32.totalorder %s8740_s8, %s10098_s9 }
0x34cb   : > { %p8742_p5 = pnand %p8741_p0, %p10346_p3 }
0x34cc   : > { %p8747_p1 = por %p8746_p12, %p8745_p10 }
0x34cd   : > { %p8743_p9 = pneg %p8742_p5 }
0x34ce   : > { %p8749_p4 = por %p8748_p2, %p8747_p1 }
0x34d0   : > { %p8750_p7 = pnand %p8749_p4, %p8743_p9 }
0x34d2   : > { %8753 = shalt.err (!%p8750_p7)
}
0x34d3   : > { %8264 = dma.vmem_to_hbm [thread:$0]  (%p10346_p3), %s10100_s6, 128, %s10098_s9, %s6972_s10  }
0x34d4 PF: > { %s10347_s12 = sld [smem:[#allocation65_spill]]  ;;  %s10348_s11 = sld [smem:[#allocation63_spill]] }
0x34d5   : > { %s10349_s2 = sld [smem:[#allocation69_spill]] }
0x34da   : > { %p8296_p8 = scmp.ge.s32.totalorder %s10347_s12, 2  ;;  %s6997_s0 = sand.u32 1, %s10348_s11  }
0x34db   : > { %p10350_p11 = scmp.ne.s32.totalorder %s10349_s2, 0  ;;  %s6998_s4 = scalar_lea.sflag [#allocation4], %s6997_s0 }
0x34dd   : > { %p8283_p13 = pnand %p8296_p8, %p10350_p11 }
0x34df   : > { %8783 = dma.done.wait (!%p8283_p13), %s6998_s4, 128  }
0x34e0   : > { %8785 = vsyncadd (!%p8283_p13), %s6998_s4, 4294967168  ;;  %s10351_s7 = sld [smem:[#allocation66_spill]]  ;;  %s10352_s8 = sld [smem:[#allocation64_spill]] }
0x34e1   : > { %s10353_s2 = sld [smem:[#allocation67_spill]]  ;;  %10354 = sst [smem:[#allocation63_spill]] %s8792_s1 }
0x34e6   : > { %p110_p6 = scmp.ge.s32.totalorder %s10351_s7, 4   ;;  %s10355_s1 = smov %s10352_s8 }
0x34e8   :  { %112 = sbr.rel (!%p110_p6) target bundleno = 120 (0x78), region = 361 }
0x34ef   :  { %7003 = vsyncpa [#allocation3], 1 }
0x34f0   :  { %7005 = vsyncpa [#allocation3 + $0x1], 1 }
0x34f1   :  { %7006 = vsyncpa [#allocation6], 1 }
0x34f2   :  { %7007 = vsyncpa [#allocation9], 1 }
0x34f3   :  { %7008 = vsyncpa [#allocation4], 1 }
0x34f4   :  { %7010 = vsyncpa [#allocation4 + $0x1], 1 }

</bundles_post_ra>
